<compile_context>
chip_gen: v7x
topology: tpu7x:2x2x1
jax: 0.10.0
libtpu: 0.0.40
codegen_flags: <defaults>
</compile_context>

<pallas_src>
import functools

import jax
import jax.numpy as jnp
from jax.experimental import pallas as pl
from jax.experimental.pallas import tpu as pltpu

HIDDEN1 = 2048
HIDDEN2 = 1024
LANE = 128


# --------------------------------------------------------------------------
# Fused linear (+ bias + activation) kernel, K-tiled with an f32 accumulator.
# Weights arrive as bf16 tiles; the MXU accumulates in f32.
# --------------------------------------------------------------------------
def _make_linear_kernel(activation):
    def kernel(x_ref, w_ref, b_ref, o_ref, acc_ref):
        k = pl.program_id(1)

        @pl.when(k == 0)
        def _init():
            acc_ref[...] = jnp.zeros_like(acc_ref)

        acc_ref[...] += jnp.dot(
            x_ref[...].astype(jnp.bfloat16),   # tiny (B, tk) cast on the VPU
            w_ref[...],                        # bf16 weight tile (streamed)
            preferred_element_type=jnp.float32)

        @pl.when(k == pl.num_programs(1) - 1)
        def _finish():
            y = acc_ref[...] + b_ref[...]
            if activation == "relu":
                y = jnp.maximum(y, 0.0)
            elif activation == "tanh":
                y = jnp.tanh(y)
            o_ref[...] = y.astype(o_ref.dtype)

    return kernel


def _pick_tile(dim, cap):
    """Largest multiple of 128 that is <= cap and divides dim (dim % 128 == 0)."""
    t = min(dim, cap)
    while dim % t:
        t -= LANE
    return t


def linear(x, w_bf16, b, activation, *, tk_cap=2048, tn_cap=2048):
    B, K = x.shape
    Kw, N = w_bf16.shape
    assert K == Kw and K % LANE == 0 and N % LANE == 0
    tk = _pick_tile(K, tk_cap)
    tn = _pick_tile(N, tn_cap)
    b2d = b.reshape(1, N).astype(jnp.float32)

    # Explicit VMEM budget: double-buffered x / weight / bias / out tiles plus
    # the accumulator, with headroom for compiler temps.  Stays well under the
    # 64 MiB physical VMEM of v7x even at tk = tn = 2048.
    vmem_bytes = int(
        2 * (tk * tn * 2 + B * tk * 4 + tn * 4 + B * tn * 4)
        + B * tn * 4
        + (8 << 20))

    grid_spec = pltpu.PrefetchScalarGridSpec(
        num_scalar_prefetch=0,
        grid=(N // tn, K // tk),
        in_specs=[
            pl.BlockSpec((B, tk), lambda n, k: (0, k)),
            pl.BlockSpec((tk, tn), lambda n, k: (k, n)),
            pl.BlockSpec((1, tn), lambda n, k: (0, n)),
        ],
        out_specs=pl.BlockSpec((B, tn), lambda n, k: (0, n)),
        scratch_shapes=[pltpu.VMEM((B, tn), jnp.float32)],
    )
    return pl.pallas_call(
        _make_linear_kernel(activation),
        out_shape=jax.ShapeDtypeStruct((B, N), jnp.float32),
        grid_spec=grid_spec,
        compiler_params=pltpu.CompilerParams(
            dimension_semantics=("parallel", "arbitrary"),
            vmem_limit_bytes=vmem_bytes),
    )(x, w_bf16, b2d)


# --------------------------------------------------------------------------
# Parameter initialization (PyTorch nn.Linear default init, synthetic seeds).
# --------------------------------------------------------------------------
def _init_linear_params(key, fan_in, fan_out):
    kw, kb = jax.random.split(key)
    bound = 1.0 / fan_in ** 0.5
    # stored as (in, out) so the kernel computes x @ w  (== x @ W_pt.T)
    w = jax.random.uniform(kw, (fan_in, fan_out), jnp.float32, -bound, bound)
    b = jax.random.uniform(kb, (fan_out,), jnp.float32, -bound, bound)
    return w, b


def init_classifier_params(key, in_channel, out_channel):
    k1, k2, k3 = jax.random.split(key, 3)
    w1, b1 = _init_linear_params(k1, in_channel, HIDDEN1)
    w2, b2 = _init_linear_params(k2, HIDDEN1, HIDDEN2)
    w3, b3 = _init_linear_params(k3, HIDDEN2, out_channel)

    # Pad the final output dim to a full 128-lane tile so the Pallas out_spec
    # stays lane-dense; padded columns have zero weight/bias (tanh(0) = 0) and
    # are sliced off after the kernel.
    n_pad = pl.cdiv(out_channel, LANE) * LANE
    w3p = jnp.zeros((HIDDEN2, n_pad), jnp.float32).at[:, :out_channel].set(w3)
    b3p = jnp.zeros((n_pad,), jnp.float32).at[:out_channel].set(b3)

    # bf16 weight streaming (classifier is HBM-bandwidth bound at small batch);
    # the kernel accumulates in f32 on the MXU.
    return {
        "l1": (w1.astype(jnp.bfloat16), b1),
        "l2": (w2.astype(jnp.bfloat16), b2),
        "l3": (w3p.astype(jnp.bfloat16), b3p),
    }


# --------------------------------------------------------------------------
# Classfier forward
# --------------------------------------------------------------------------
@functools.partial(jax.jit, static_argnames=("out_channel",))
def classifier_forward(x, params, *, out_channel):
    w1, b1 = params["l1"]
    w2, b2 = params["l2"]
    w3, b3 = params["l3"]
    # TODO(synk): F.dropout(p=0.3) omitted (eval/deterministic = identity).
    h = linear(x, w1, b1, "relu")
    h = linear(h, w2, b2, "relu")
    out = linear(h, w3, b3, "tanh")
    return out[:, :out_channel]


if __name__ == "__main__":
    key = jax.random.PRNGKey(0)
    k_x, k_p = jax.random.split(key)
    B, in_channel, out_channel = 2, 512, 1

    x = jax.random.normal(k_x, (B, in_channel), jnp.float32)
    params = init_classifier_params(k_p, in_channel, out_channel)

    out = classifier_forward(x, params, out_channel=out_channel)
    jax.block_until_ready(out)

    # Plain-JAX reference mirroring the kernel's bf16 weight streaming.
    w1, b1 = params["l1"]
    w2, b2 = params["l2"]
    w3, b3 = params["l3"]
    h = jnp.maximum(
        jnp.dot(x.astype(jnp.bfloat16), w1, preferred_element_type=jnp.float32)
        + b1, 0.0)
    h = jnp.maximum(
        jnp.dot(h.astype(jnp.bfloat16), w2, preferred_element_type=jnp.float32)
        + b2, 0.0)
    ref = jnp.tanh(
        jnp.dot(h.astype(jnp.bfloat16), w3, preferred_element_type=jnp.float32)
        + b3)[:, :out_channel]

    assert out.shape == (B, out_channel) and out.dtype == jnp.float32
    assert jnp.allclose(out, ref, atol=2e-2, rtol=2e-2)
    print("KERNEL_OK")
</pallas_src>

<mosaic_0001>
module attributes {stable_mosaic.version = 11 : i64} {
  func.func @kernel(%arg0: i32, %arg1: i32, %arg2: memref<2x512xf32, #tpu.memory_space<vmem>>, %arg3: memref<512x2048xbf16, #tpu.memory_space<vmem>>, %arg4: memref<1x2048xf32, #tpu.memory_space<vmem>>, %arg5: memref<2x2048xf32, #tpu.memory_space<vmem>>, %arg6: memref<2x2048xf32, #tpu.memory_space<vmem>>) attributes {dimension_semantics = [#tpu.dimension_semantics<parallel>, #tpu.dimension_semantics<arbitrary>], iteration_bounds = array<i64: 1, 1>, scalar_prefetch = 0 : i64, scratch_operands = 1 : i64, tpu.core_type = #tpu.core_type<tc>, window_params = [{transform_indices = @transform_0, window_bounds = array<i64: 2, 512>}, {transform_indices = @transform_1, window_bounds = array<i64: 512, 2048>}, {transform_indices = @transform_2, window_bounds = array<i64: 1, 2048>}, {transform_indices = @transform_3, window_bounds = array<i64: 2, 2048>}]} {
    %c0_i32 = arith.constant 0 : i32
    %0 = arith.cmpi eq, %arg1, %c0_i32 : i32
    %1 = arith.extui %0 : i1 to i32
    %c0_i32_0 = arith.constant 0 : i32
    %2 = arith.cmpi ne, %1, %c0_i32_0 : i32
    scf.if %2 {
      %cst_10 = arith.constant 0.000000e+00 : f32
      %13 = vector.broadcast %cst_10 : f32 to vector<2x2048xf32>
      %c0_11 = arith.constant 0 : index
      %c0_12 = arith.constant 0 : index
      %14 = vector.load %arg6[%c0_11, %c0_12] : memref<2x2048xf32, #tpu.memory_space<vmem>>, vector<2x2048xf32>
      tpu.vector_store %arg6[%c0_11, %c0_12], %13 {strides = array<i32>} : memref<2x2048xf32, #tpu.memory_space<vmem>>, vector<2x2048xf32>,
    } else {
    }
    %c0 = arith.constant 0 : index
    %c0_1 = arith.constant 0 : index
    %3 = vector.load %arg6[%c0, %c0_1] : memref<2x2048xf32, #tpu.memory_space<vmem>>, vector<2x2048xf32>
    %c0_2 = arith.constant 0 : index
    %c0_3 = arith.constant 0 : index
    %4 = vector.load %arg2[%c0_2, %c0_3] : memref<2x512xf32, #tpu.memory_space<vmem>>, vector<2x512xf32>
    %5 = arith.truncf %4 : vector<2x512xf32> to vector<2x512xbf16>
    %c0_4 = arith.constant 0 : index
    %c0_5 = arith.constant 0 : index
    %6 = vector.load %arg3[%c0_4, %c0_5] : memref<512x2048xbf16, #tpu.memory_space<vmem>>, vector<512x2048xbf16>
    %cst = arith.constant dense<0.000000e+00> : vector<2x2048xf32>
    %7 = tpu.matmul %5, %6, %cst {dimension_numbers = #tpu.dot_dimension_numbers<[1], [0], [0], [1], [0, 0, 1, 1], [], []>} : vector<2x512xbf16>, vector<512x2048xbf16>, vector<2x2048xf32> -> vector<2x2048xf32>
    %8 = arith.addf %3, %7 : vector<2x2048xf32>
    %c0_6 = arith.constant 0 : index
    %c0_7 = arith.constant 0 : index
    %9 = vector.load %arg6[%c0_6, %c0_7] : memref<2x2048xf32, #tpu.memory_space<vmem>>, vector<2x2048xf32>
    tpu.vector_store %arg6[%c0_6, %c0_7], %8 {strides = array<i32>} : memref<2x2048xf32, #tpu.memory_space<vmem>>, vector<2x2048xf32>,
    %c0_i32_8 = arith.constant 0 : i32
    %10 = arith.cmpi eq, %arg1, %c0_i32_8 : i32
    %11 = arith.extui %10 : i1 to i32
    %c0_i32_9 = arith.constant 0 : i32
    %12 = arith.cmpi ne, %11, %c0_i32_9 : i32
    scf.if %12 {
      %c0_10 = arith.constant 0 : index
      %c0_11 = arith.constant 0 : index
      %13 = vector.load %arg6[%c0_10, %c0_11] : memref<2x2048xf32, #tpu.memory_space<vmem>>, vector<2x2048xf32>
      %c0_12 = arith.constant 0 : index
      %c0_13 = arith.constant 0 : index
      %14 = vector.load %arg4[%c0_12, %c0_13] : memref<1x2048xf32, #tpu.memory_space<vmem>>, vector<1x2048xf32>
      %15 = vector.broadcast %14 : vector<1x2048xf32> to vector<2x2048xf32>
      %16 = arith.addf %13, %15 : vector<2x2048xf32>
      %cst_14 = arith.constant 0.000000e+00 : f32
      %17 = vector.broadcast %cst_14 : f32 to vector<2x2048xf32>
      %18 = arith.maximumf %16, %17 : vector<2x2048xf32>
      %c0_15 = arith.constant 0 : index
      %c0_16 = arith.constant 0 : index
      %19 = vector.load %arg5[%c0_15, %c0_16] : memref<2x2048xf32, #tpu.memory_space<vmem>>, vector<2x2048xf32>
      tpu.vector_store %arg5[%c0_15, %c0_16], %18 {strides = array<i32>} : memref<2x2048xf32, #tpu.memory_space<vmem>>, vector<2x2048xf32>,
    } else {
    }
    return
  }
  func.func @transform_0(%arg0: i32, %arg1: i32) -> (i32, i32) {
    %c0_i32 = arith.constant 0 : i32
    %c0_i32_0 = arith.constant 0 : i32
    return %c0_i32, %arg1 : i32, i32
  }
  func.func @transform_1(%arg0: i32, %arg1: i32) -> (i32, i32) {
    %c0_i32 = arith.constant 0 : i32
    return %arg1, %arg0 : i32, i32
  }
  func.func @transform_2(%arg0: i32, %arg1: i32) -> (i32, i32) {
    %c0_i32 = arith.constant 0 : i32
    %c0_i32_0 = arith.constant 0 : i32
    return %c0_i32, %arg0 : i32, i32
  }
  func.func @transform_3(%arg0: i32, %arg1: i32) -> (i32, i32) {
    %c0_i32 = arith.constant 0 : i32
    %c0_i32_0 = arith.constant 0 : i32
    return %c0_i32, %arg0 : i32, i32
  }
}

module attributes {stable_mosaic.version = 11 : i64} {
  func.func @kernel(%arg0: i32, %arg1: i32, %arg2: memref<2x2048xf32, #tpu.memory_space<vmem>>, %arg3: memref<2048x1024xbf16, #tpu.memory_space<vmem>>, %arg4: memref<1x1024xf32, #tpu.memory_space<vmem>>, %arg5: memref<2x1024xf32, #tpu.memory_space<vmem>>, %arg6: memref<2x1024xf32, #tpu.memory_space<vmem>>) attributes {dimension_semantics = [#tpu.dimension_semantics<parallel>, #tpu.dimension_semantics<arbitrary>], iteration_bounds = array<i64: 1, 1>, scalar_prefetch = 0 : i64, scratch_operands = 1 : i64, tpu.core_type = #tpu.core_type<tc>, window_params = [{transform_indices = @transform_0, window_bounds = array<i64: 2, 2048>}, {transform_indices = @transform_1, window_bounds = array<i64: 2048, 1024>}, {transform_indices = @transform_2, window_bounds = array<i64: 1, 1024>}, {transform_indices = @transform_3, window_bounds = array<i64: 2, 1024>}]} {
    %c0_i32 = arith.constant 0 : i32
    %0 = arith.cmpi eq, %arg1, %c0_i32 : i32
    %1 = arith.extui %0 : i1 to i32
    %c0_i32_0 = arith.constant 0 : i32
    %2 = arith.cmpi ne, %1, %c0_i32_0 : i32
    scf.if %2 {
      %cst_10 = arith.constant 0.000000e+00 : f32
      %13 = vector.broadcast %cst_10 : f32 to vector<2x1024xf32>
      %c0_11 = arith.constant 0 : index
      %c0_12 = arith.constant 0 : index
      %14 = vector.load %arg6[%c0_11, %c0_12] : memref<2x1024xf32, #tpu.memory_space<vmem>>, vector<2x1024xf32>
      tpu.vector_store %arg6[%c0_11, %c0_12], %13 {strides = array<i32>} : memref<2x1024xf32, #tpu.memory_space<vmem>>, vector<2x1024xf32>,
    } else {
    }
    %c0 = arith.constant 0 : index
    %c0_1 = arith.constant 0 : index
    %3 = vector.load %arg6[%c0, %c0_1] : memref<2x1024xf32, #tpu.memory_space<vmem>>, vector<2x1024xf32>
    %c0_2 = arith.constant 0 : index
    %c0_3 = arith.constant 0 : index
    %4 = vector.load %arg2[%c0_2, %c0_3] : memref<2x2048xf32, #tpu.memory_space<vmem>>, vector<2x2048xf32>
    %5 = arith.truncf %4 : vector<2x2048xf32> to vector<2x2048xbf16>
    %c0_4 = arith.constant 0 : index
    %c0_5 = arith.constant 0 : index
    %6 = vector.load %arg3[%c0_4, %c0_5] : memref<2048x1024xbf16, #tpu.memory_space<vmem>>, vector<2048x1024xbf16>
    %cst = arith.constant dense<0.000000e+00> : vector<2x1024xf32>
    %7 = tpu.matmul %5, %6, %cst {dimension_numbers = #tpu.dot_dimension_numbers<[1], [0], [0], [1], [0, 0, 1, 1], [], []>} : vector<2x2048xbf16>, vector<2048x1024xbf16>, vector<2x1024xf32> -> vector<2x1024xf32>
    %8 = arith.addf %3, %7 : vector<2x1024xf32>
    %c0_6 = arith.constant 0 : index
    %c0_7 = arith.constant 0 : index
    %9 = vector.load %arg6[%c0_6, %c0_7] : memref<2x1024xf32, #tpu.memory_space<vmem>>, vector<2x1024xf32>
    tpu.vector_store %arg6[%c0_6, %c0_7], %8 {strides = array<i32>} : memref<2x1024xf32, #tpu.memory_space<vmem>>, vector<2x1024xf32>,
    %c0_i32_8 = arith.constant 0 : i32
    %10 = arith.cmpi eq, %arg1, %c0_i32_8 : i32
    %11 = arith.extui %10 : i1 to i32
    %c0_i32_9 = arith.constant 0 : i32
    %12 = arith.cmpi ne, %11, %c0_i32_9 : i32
    scf.if %12 {
      %c0_10 = arith.constant 0 : index
      %c0_11 = arith.constant 0 : index
      %13 = vector.load %arg6[%c0_10, %c0_11] : memref<2x1024xf32, #tpu.memory_space<vmem>>, vector<2x1024xf32>
      %c0_12 = arith.constant 0 : index
      %c0_13 = arith.constant 0 : index
      %14 = vector.load %arg4[%c0_12, %c0_13] : memref<1x1024xf32, #tpu.memory_space<vmem>>, vector<1x1024xf32>
      %15 = vector.broadcast %14 : vector<1x1024xf32> to vector<2x1024xf32>
      %16 = arith.addf %13, %15 : vector<2x1024xf32>
      %cst_14 = arith.constant 0.000000e+00 : f32
      %17 = vector.broadcast %cst_14 : f32 to vector<2x1024xf32>
      %18 = arith.maximumf %16, %17 : vector<2x1024xf32>
      %c0_15 = arith.constant 0 : index
      %c0_16 = arith.constant 0 : index
      %19 = vector.load %arg5[%c0_15, %c0_16] : memref<2x1024xf32, #tpu.memory_space<vmem>>, vector<2x1024xf32>
      tpu.vector_store %arg5[%c0_15, %c0_16], %18 {strides = array<i32>} : memref<2x1024xf32, #tpu.memory_space<vmem>>, vector<2x1024xf32>,
    } else {
    }
    return
  }
  func.func @transform_0(%arg0: i32, %arg1: i32) -> (i32, i32) {
    %c0_i32 = arith.constant 0 : i32
    %c0_i32_0 = arith.constant 0 : i32
    return %c0_i32, %arg1 : i32, i32
  }
  func.func @transform_1(%arg0: i32, %arg1: i32) -> (i32, i32) {
    %c0_i32 = arith.constant 0 : i32
    return %arg1, %arg0 : i32, i32
  }
  func.func @transform_2(%arg0: i32, %arg1: i32) -> (i32, i32) {
    %c0_i32 = arith.constant 0 : i32
    %c0_i32_0 = arith.constant 0 : i32
    return %c0_i32, %arg0 : i32, i32
  }
  func.func @transform_3(%arg0: i32, %arg1: i32) -> (i32, i32) {
    %c0_i32 = arith.constant 0 : i32
    %c0_i32_0 = arith.constant 0 : i32
    return %c0_i32, %arg0 : i32, i32
  }
}

module attributes {stable_mosaic.version = 11 : i64} {
  func.func @kernel(%arg0: i32, %arg1: i32, %arg2: memref<2x1024xf32, #tpu.memory_space<vmem>>, %arg3: memref<1024x128xbf16, #tpu.memory_space<vmem>>, %arg4: memref<1x128xf32, #tpu.memory_space<vmem>>, %arg5: memref<2x128xf32, #tpu.memory_space<vmem>>, %arg6: memref<2x128xf32, #tpu.memory_space<vmem>>) attributes {dimension_semantics = [#tpu.dimension_semantics<parallel>, #tpu.dimension_semantics<arbitrary>], iteration_bounds = array<i64: 1, 1>, scalar_prefetch = 0 : i64, scratch_operands = 1 : i64, tpu.core_type = #tpu.core_type<tc>, window_params = [{transform_indices = @transform_0, window_bounds = array<i64: 2, 1024>}, {transform_indices = @transform_1, window_bounds = array<i64: 1024, 128>}, {transform_indices = @transform_2, window_bounds = array<i64: 1, 128>}, {transform_indices = @transform_3, window_bounds = array<i64: 2, 128>}]} {
    %c0_i32 = arith.constant 0 : i32
    %0 = arith.cmpi eq, %arg1, %c0_i32 : i32
    %1 = arith.extui %0 : i1 to i32
    %c0_i32_0 = arith.constant 0 : i32
    %2 = arith.cmpi ne, %1, %c0_i32_0 : i32
    scf.if %2 {
      %cst_10 = arith.constant 0.000000e+00 : f32
      %13 = vector.broadcast %cst_10 : f32 to vector<2x128xf32>
      %c0_11 = arith.constant 0 : index
      %c0_12 = arith.constant 0 : index
      %14 = vector.load %arg6[%c0_11, %c0_12] : memref<2x128xf32, #tpu.memory_space<vmem>>, vector<2x128xf32>
      tpu.vector_store %arg6[%c0_11, %c0_12], %13 {strides = array<i32>} : memref<2x128xf32, #tpu.memory_space<vmem>>, vector<2x128xf32>,
    } else {
    }
    %c0 = arith.constant 0 : index
    %c0_1 = arith.constant 0 : index
    %3 = vector.load %arg6[%c0, %c0_1] : memref<2x128xf32, #tpu.memory_space<vmem>>, vector<2x128xf32>
    %c0_2 = arith.constant 0 : index
    %c0_3 = arith.constant 0 : index
    %4 = vector.load %arg2[%c0_2, %c0_3] : memref<2x1024xf32, #tpu.memory_space<vmem>>, vector<2x1024xf32>
    %5 = arith.truncf %4 : vector<2x1024xf32> to vector<2x1024xbf16>
    %c0_4 = arith.constant 0 : index
    %c0_5 = arith.constant 0 : index
    %6 = vector.load %arg3[%c0_4, %c0_5] : memref<1024x128xbf16, #tpu.memory_space<vmem>>, vector<1024x128xbf16>
    %cst = arith.constant dense<0.000000e+00> : vector<2x128xf32>
    %7 = tpu.matmul %5, %6, %cst {dimension_numbers = #tpu.dot_dimension_numbers<[1], [0], [0], [1], [0, 0, 1, 1], [], []>} : vector<2x1024xbf16>, vector<1024x128xbf16>, vector<2x128xf32> -> vector<2x128xf32>
    %8 = arith.addf %3, %7 : vector<2x128xf32>
    %c0_6 = arith.constant 0 : index
    %c0_7 = arith.constant 0 : index
    %9 = vector.load %arg6[%c0_6, %c0_7] : memref<2x128xf32, #tpu.memory_space<vmem>>, vector<2x128xf32>
    tpu.vector_store %arg6[%c0_6, %c0_7], %8 {strides = array<i32>} : memref<2x128xf32, #tpu.memory_space<vmem>>, vector<2x128xf32>,
    %c0_i32_8 = arith.constant 0 : i32
    %10 = arith.cmpi eq, %arg1, %c0_i32_8 : i32
    %11 = arith.extui %10 : i1 to i32
    %c0_i32_9 = arith.constant 0 : i32
    %12 = arith.cmpi ne, %11, %c0_i32_9 : i32
    scf.if %12 {
      %c0_10 = arith.constant 0 : index
      %c0_11 = arith.constant 0 : index
      %13 = vector.load %arg6[%c0_10, %c0_11] : memref<2x128xf32, #tpu.memory_space<vmem>>, vector<2x128xf32>
      %c0_12 = arith.constant 0 : index
      %c0_13 = arith.constant 0 : index
      %14 = vector.load %arg4[%c0_12, %c0_13] : memref<1x128xf32, #tpu.memory_space<vmem>>, vector<1x128xf32>
      %15 = vector.broadcast %14 : vector<1x128xf32> to vector<2x128xf32>
      %16 = arith.addf %13, %15 : vector<2x128xf32>
      %17 = math.tanh %16 : vector<2x128xf32>
      %c0_14 = arith.constant 0 : index
      %c0_15 = arith.constant 0 : index
      %18 = vector.load %arg5[%c0_14, %c0_15] : memref<2x128xf32, #tpu.memory_space<vmem>>, vector<2x128xf32>
      tpu.vector_store %arg5[%c0_14, %c0_15], %17 {strides = array<i32>} : memref<2x128xf32, #tpu.memory_space<vmem>>, vector<2x128xf32>,
    } else {
    }
    return
  }
  func.func @transform_0(%arg0: i32, %arg1: i32) -> (i32, i32) {
    %c0_i32 = arith.constant 0 : i32
    %c0_i32_0 = arith.constant 0 : i32
    return %c0_i32, %arg1 : i32, i32
  }
  func.func @transform_1(%arg0: i32, %arg1: i32) -> (i32, i32) {
    %c0_i32 = arith.constant 0 : i32
    return %arg1, %arg0 : i32, i32
  }
  func.func @transform_2(%arg0: i32, %arg1: i32) -> (i32, i32) {
    %c0_i32 = arith.constant 0 : i32
    %c0_i32_0 = arith.constant 0 : i32
    return %c0_i32, %arg0 : i32, i32
  }
  func.func @transform_3(%arg0: i32, %arg1: i32) -> (i32, i32) {
    %c0_i32 = arith.constant 0 : i32
    %c0_i32_0 = arith.constant 0 : i32
    return %c0_i32, %arg0 : i32, i32
  }
}

</mosaic_0001>

<bundles_post_ra>
// kernel: classifier_forward.5
= control target key start
LH: loop header
LB: loop body
LE: loop exit
PB: predicated region body
PF: predicated region fallthrough
CT: control target
= control target key end

     0   :  { %v990_v22 = vmov 1983009808   ;;  %v29_v24 = vlaneseq  ;;  %s1228_s1 = inlined_call_operand.vmem [shape: bf16[1024,128], index: 1, kind: input, shape index: {}]   ;;  %s1229_s0 = inlined_call_operand.vmem [shape: f32[2,1024], index: 0, kind: input, shape index: {}]   ;;  %s1230_s2 = inlined_call_operand.vmem [shape: f32[1,128], index: 2, kind: input, shape index: {}]   ;;  %s1231_s3 = inlined_call_operand.vmem [shape: f32[2,128], index: 3, kind: output, shape index: {}]  }
   0x1   :  { %v922_v0 = vld [vmem:[%s1228_s1 + $0x40] sm:$0xff]   ;;  %v926_v4 = vld [vmem:[%s1228_s1 + $0x48] sm:$0xff]   ;;  %v930_v8 = vld [vmem:[%s1228_s1 + $0x50] sm:$0xff]   ;;  %v27_v23 = vunpack.c.l.s4 %v990_v22 }
   0x2   :  { %v923_v1 = vld [vmem:[%s1228_s1 + $0xc0] sm:$0xff]   ;;  %832 = vmatprep.subr.bf16.mxu0 %v922_v0  ;;  %v927_v5 = vld [vmem:[%s1228_s1 + $0xc8] sm:$0xff]   ;;  %v931_v9 = vld [vmem:[%s1228_s1 + $0xd0] sm:$0xff]   ;;  %v30_v30 = vshrl.u32 %v29_v24, 7 }
   0x3   :  { %v924_v2 = vld [vmem:[%s1228_s1] sm:$0xff]   ;;  %854 = vmatprep.subr.bf16.mxu1 %v923_v1  ;;  %v928_v6 = vld [vmem:[%s1228_s1 + $0x8] sm:$0xff]   ;;  %v932_v10 = vld [vmem:[%s1228_s1 + $0x10] sm:$0xff]   ;;  %v28_v29 = vunpack.c.0.s8 %v27_v23 }
   0x4   :  { %v925_v3 = vld [vmem:[%s1228_s1 + $0x80] sm:$0xff]   ;;  %833 = vmatpush3.bf16.msra.mxu0 %v924_v2  ;;  %v929_v7 = vld [vmem:[%s1228_s1 + $0x88] sm:$0xff]   ;;  %v933_v11 = vld [vmem:[%s1228_s1 + $0x90] sm:$0xff]  }
   0x5   :  { %855 = vmatpush3.bf16.msra.mxu1 %v925_v3  ;;  %834 = vmatprep.subr.bf16.mxu0 %v926_v4  ;;  %v934_v12 = vld [vmem:[%s1228_s1 + $0x58] sm:$0xff]   ;;  %v938_v16 = vld [vmem:[%s1228_s1 + $0x60] sm:$0xff]   ;;  %v942_v20 = vld [vmem:[%s1228_s1 + $0x68] sm:$0xff]   ;;  %v31_v35 = vsub.s32 %v28_v29, %v30_v30 }
   0x6   :  { %856 = vmatprep.subr.bf16.mxu1 %v927_v5  ;;  %v935_v13 = vld [vmem:[%s1228_s1 + $0xd8] sm:$0xff]   ;;  %v939_v17 = vld [vmem:[%s1228_s1 + $0xe0] sm:$0xff]   ;;  %v943_v21 = vld [vmem:[%s1228_s1 + $0xe8] sm:$0xff]  }
   0x7   :  { %v936_v14 = vld [vmem:[%s1228_s1 + $0x18] sm:$0xff]   ;;  %v940_v18 = vld [vmem:[%s1228_s1 + $0x20] sm:$0xff]   ;;  %v944_v25 = vld [vmem:[%s1228_s1 + $0x28] sm:$0xff]  }
   0x8   :  { %835 = vmatpush3.bf16.msra.mxu0 %v928_v6  ;;  %v937_v15 = vld [vmem:[%s1228_s1 + $0x98] sm:$0xff]   ;;  %v941_v19 = vld [vmem:[%s1228_s1 + $0xa0] sm:$0xff]   ;;  %v945_v26 = vld [vmem:[%s1228_s1 + $0xa8] sm:$0xff]  }
   0x9   :  { %857 = vmatpush3.bf16.msra.mxu1 %v929_v7  ;;  %836 = vmatprep.subr.bf16.mxu0 %v930_v8  ;;  %v946_v27 = vld [vmem:[%s1228_s1 + $0x70] sm:$0xff]   ;;  %v950_v33 = vld [vmem:[%s1228_s1 + $0x78] sm:$0xff]   ;;  %v21_v38 = vld [vmem:[%s1229_s0] sm:$0xff] }
   0xa   :  { %858 = vmatprep.subr.bf16.mxu1 %v931_v9  ;;  %v947_v28 = vld [vmem:[%s1228_s1 + $0xf0] sm:$0xff]   ;;  %v951_v34 = vld [vmem:[%s1228_s1 + $0xf8] sm:$0xff]   ;;  %v22_v39 = vld [vmem:[%s1229_s0 + $0x8] sm:$0xff]  ;;  %v32_v40 = vrot.slane %v21_v38, %v31_v35  ;;  %v25_v42 = vcombine.high %v21_v38, %v21_v38 }
   0xb   :  { %v948_v31 = vld [vmem:[%s1228_s1 + $0x30] sm:$0xff]   ;;  %v952_v36 = vld [vmem:[%s1228_s1 + $0x38] sm:$0xff]   ;;  %v42_v41 = vcombine.high %v22_v39, %v22_v39  ;;  %v956_v43 = vld [vmem:[%s1228_s1 + $0x140] sm:$0xff]   ;;  %v1117_v44 = vrot.slane %v22_v39, %v31_v35 }
   0xc   :  { %837 = vmatpush3.bf16.msra.mxu0 %v932_v10  ;;  %v949_v32 = vld [vmem:[%s1228_s1 + $0xb0] sm:$0xff]   ;;  %v953_v37 = vld [vmem:[%s1228_s1 + $0xb8] sm:$0xff]   ;;  %v957_v45 = vld [vmem:[%s1228_s1 + $0x1c0] sm:$0xff]   ;;  %v40_v46 = vcombine.high %v32_v40, %v32_v40  ;;  %v39_v47 = vrot.slane %v25_v42, %v31_v35  ;;  %v67_v49 = vpack.c.bf16 %v32_v40, %v32_v40 }
   0xd   :  { %859 = vmatpush3.bf16.msra.mxu1 %v933_v11  ;;  %838 = vmatprep.subr.bf16.mxu0 %v934_v12  ;;  %v57_v48 = vcombine.high %v1117_v44, %v1117_v44  ;;  %v1124_v50 = vrot.slane %v42_v41, %v31_v35  ;;  %v958_v53 = vld [vmem:[%s1228_s1 + $0x100] sm:$0xff]   ;;  %v960_v55 = vld [vmem:[%s1228_s1 + $0x148] sm:$0xff]   ;;  %v964_v63 = vld [vmem:[%s1228_s1 + $0x150] sm:$0xff]   ;;  %v71_v24 = vpack.c.bf16 %v1117_v44, %v1117_v44 }
   0xe   :  { %860 = vmatprep.subr.bf16.mxu1 %v935_v13  ;;  %v68_v51 = vpack.c.bf16 %v40_v46, %v40_v46  ;;  %v41_v52 = vcombine.high %v39_v47, %v39_v47  ;;  %v69_v54 = vpack.c.bf16 %v39_v47, %v39_v47  ;;  %v959_v58 = vld [vmem:[%s1228_s1 + $0x180] sm:$0xff]   ;;  %v961_v60 = vld [vmem:[%s1228_s1 + $0x1c8] sm:$0xff]   ;;  %v965_v1 = vld [vmem:[%s1228_s1 + $0x1d0] sm:$0xff]  }
   0xf   :  { %v58_v56 = vcombine.high %v1124_v50, %v1124_v50  ;;  %v72_v59 = vpack.c.bf16 %v57_v48, %v57_v48  ;;  %v962_v62 = vld [vmem:[%s1228_s1 + $0x108] sm:$0xff]   ;;  %v966_v2 = vld [vmem:[%s1228_s1 + $0x110] sm:$0xff]   ;;  %v968_v3 = vld [vmem:[%s1228_s1 + $0x158] sm:$0xff]  }
  0x10   :  { %839 = vmatpush3.bf16.msra.mxu0 %v936_v14  ;;  %619 = vmatprep.mubr.bf16.mxu0 %v68_v51  ;;  %v70_v57 = vpack.c.bf16 %v41_v52, %v41_v52  ;;  %v963_v0 = vld [vmem:[%s1228_s1 + $0x188] sm:$0xff]   ;;  %v967_v4 = vld [vmem:[%s1228_s1 + $0x190] sm:$0xff]   ;;  %v969_v5 = vld [vmem:[%s1228_s1 + $0x1d8] sm:$0xff]  }
  0x11   :  { %861 = vmatpush3.bf16.msra.mxu1 %v937_v15  ;;  %840 = vmatprep.subr.bf16.mxu0 %v938_v16  ;;  %v74_v61 = vpack.c.bf16 %v58_v56, %v58_v56  ;;  %v970_v6 = vld [vmem:[%s1228_s1 + $0x118] sm:$0xff]   ;;  %v972_v7 = vld [vmem:[%s1228_s1 + $0x160] sm:$0xff]   ;;  %v976_v11 = vld [vmem:[%s1228_s1 + $0x168] sm:$0xff]  }
  0x12   :  { %862 = vmatprep.subr.bf16.mxu1 %v939_v17  ;;  %659 = vmatprep.mubr.bf16.mxu1 %v70_v57  ;;  %v971_v8 = vld [vmem:[%s1228_s1 + $0x198] sm:$0xff]   ;;  %v973_v9 = vld [vmem:[%s1228_s1 + $0x1e0] sm:$0xff]   ;;  %v977_v13 = vld [vmem:[%s1228_s1 + $0x1e8] sm:$0xff]  }
  0x13   :  { %v974_v10 = vld [vmem:[%s1228_s1 + $0x120] sm:$0xff]   ;;  %v978_v14 = vld [vmem:[%s1228_s1 + $0x128] sm:$0xff]   ;;  %v980_v15 = vld [vmem:[%s1228_s1 + $0x170] sm:$0xff]  }
  0x14   :  { %841 = vmatpush3.bf16.msra.mxu0 %v940_v18  ;;  %v975_v12 = vld [vmem:[%s1228_s1 + $0x1a0] sm:$0xff]   ;;  %v979_v16 = vld [vmem:[%s1228_s1 + $0x1a8] sm:$0xff]   ;;  %v981_v17 = vld [vmem:[%s1228_s1 + $0x1f0] sm:$0xff]  }
  0x15   :  { %863 = vmatpush3.bf16.msra.mxu1 %v941_v19  ;;  %842 = vmatprep.subr.bf16.mxu0 %v942_v20  ;;  %v982_v18 = vld [vmem:[%s1228_s1 + $0x130] sm:$0xff]   ;;  %v984_v19 = vld [vmem:[%s1228_s1 + $0x178] sm:$0xff]   ;;  %v831_v52 = vld [vmem:[%s1230_s2] ss:$0 sm:$0xff] }
  0x16   :  { %864 = vmatprep.subr.bf16.mxu1 %v943_v21  ;;  %v983_v20 = vld [vmem:[%s1228_s1 + $0x1b0] sm:$0xff]   ;;  %v985_v21 = vld [vmem:[%s1228_s1 + $0x1f8] sm:$0xff]  }
  0x17   :  { %v986_v22 = vld [vmem:[%s1228_s1 + $0x138] sm:$0xff]  }
  0x18   :  { %843 = vmatpush3.bf16.msra.mxu0 %v944_v25  ;;  %v987_v23 = vld [vmem:[%s1228_s1 + $0x1b8] sm:$0xff]   ;;  %v73_v25 = vpack.c.bf16 %v1124_v50, %v1124_v50 }
  0x19   :  { %865 = vmatpush3.bf16.msra.mxu1 %v945_v26  ;;  %844 = vmatprep.subr.bf16.mxu0 %v946_v27  ;;  %v991_v26 = vmov 0.0  }
  0x1a   :  { %866 = vmatprep.subr.bf16.mxu1 %v947_v28  ;;  %19 = vst [vmem:[#allocation2] sm:$0x3] %v991_v26 }
  0x1c   :  { %845 = vmatpush3.bf16.msra.mxu0 %v948_v31 }
  0x1d   :  { %867 = vmatpush3.bf16.msra.mxu1 %v949_v32  ;;  %846 = vmatprep.subr.bf16.mxu0 %v950_v33 }
  0x1e   :  { %868 = vmatprep.subr.bf16.mxu1 %v951_v34 }
  0x20   :  { %847 = vmatpush3.bf16.msra.mxu0 %v952_v36 }
  0x21   :  { %869 = vmatpush3.bf16.msra.mxu1 %v953_v37  ;;  %876 = vmatprep.subr.bf16.mxu0 %v956_v43  ;;  %v20_v48 = vld [vmem:[#allocation2] sm:$0x3] }
  0x22   :  { %898 = vmatprep.subr.bf16.mxu1 %v957_v45 }
  0x23   :  { %620 = vmatmul.mubr.bf16.vlgmr.msra.gmra.mrb[0].mxu0 %v67_v49 }
  0x24   :  { %877 = vmatpush3.bf16.msra.mxu0 %v958_v53  ;;  %660 = vmatmul.mubr.bf16.vlgmr.msra.gmra.mrb[0].mxu1 %v69_v54 }
  0x25   :  { %878 = vmatprep.subr.bf16.mxu0 %v960_v55  ;;  %899 = vmatpush3.bf16.msra.mxu1 %v959_v58 }
  0x26   :  { %699 = vmatprep.mubr.bf16.mxu0 %v72_v59  ;;  %900 = vmatprep.subr.bf16.mxu1 %v961_v60 }
  0x27   :  { %739 = vmatprep.mubr.bf16.mxu1 %v74_v61 }
  0x28   :  { %879 = vmatpush3.bf16.msra.mxu0 %v962_v62 }
  0x29   :  { %880 = vmatprep.subr.bf16.mxu0 %v964_v63  ;;  %901 = vmatpush3.bf16.msra.mxu1 %v963_v0 }
  0x2a   :  { %902 = vmatprep.subr.bf16.mxu1 %v965_v1 }
  0x2c   :  { %881 = vmatpush3.bf16.msra.mxu0 %v966_v2 }
  0x2d   :  { %882 = vmatprep.subr.bf16.mxu0 %v968_v3  ;;  %903 = vmatpush3.bf16.msra.mxu1 %v967_v4 }
  0x2e   :  { %904 = vmatprep.subr.bf16.mxu1 %v969_v5 }
  0x30   :  { %883 = vmatpush3.bf16.msra.mxu0 %v970_v6 }
  0x31   :  { %884 = vmatprep.subr.bf16.mxu0 %v972_v7  ;;  %905 = vmatpush3.bf16.msra.mxu1 %v971_v8 }
  0x32   :  { %906 = vmatprep.subr.bf16.mxu1 %v973_v9 }
  0x34   :  { %885 = vmatpush3.bf16.msra.mxu0 %v974_v10 }
  0x35   :  { %886 = vmatprep.subr.bf16.mxu0 %v976_v11  ;;  %907 = vmatpush3.bf16.msra.mxu1 %v975_v12 }
  0x36   :  { %908 = vmatprep.subr.bf16.mxu1 %v977_v13 }
  0x38   :  { %887 = vmatpush3.bf16.msra.mxu0 %v978_v14 }
  0x39   :  { %888 = vmatprep.subr.bf16.mxu0 %v980_v15  ;;  %909 = vmatpush3.bf16.msra.mxu1 %v979_v16 }
  0x3a   :  { %910 = vmatprep.subr.bf16.mxu1 %v981_v17 }
  0x3c   :  { %889 = vmatpush3.bf16.msra.mxu0 %v982_v18 }
  0x3d   :  { %890 = vmatprep.subr.bf16.mxu0 %v984_v19  ;;  %911 = vmatpush3.bf16.msra.mxu1 %v983_v20 }
  0x3e   :  { %912 = vmatprep.subr.bf16.mxu1 %v985_v21 }
  0x40   :  { %891 = vmatpush3.bf16.msra.mxu0 %v986_v22 }
  0x41   :  { %913 = vmatpush3.bf16.msra.mxu1 %v987_v23 }
  0x43   :  { %700 = vmatmul.mubr.bf16.vlgmr.msra.gmra.mrb[4].mxu0 %v71_v24 }
  0x44   :  { %740 = vmatmul.mubr.bf16.vlgmr.msra.gmra.mrb[4].mxu1 %v73_v25 }
  0xf6   :  { %v848_v27 = vpop.f32.mrb[0].mxu0 }
  0xf7   :  { %v849_v28 = vpop.f32.mrb[1].mxu0  ;;  %v870_v29 = vpop.f32.mrb[0].mxu1 }
  0xf8   :  { %v850_v30 = vadd.f32 %v849_v28, %v848_v27  ;;  %v851_v31 = vpop.f32.mrb[2].mxu0  ;;  %v871_v32 = vpop.f32.mrb[1].mxu1 }
  0xf9   :  { %v852_v33 = vpop.f32.mrb[3].mxu0  ;;  %v872_v34 = vadd.f32 %v871_v32, %v870_v29  ;;  %v873_v35 = vpop.f32.mrb[2].mxu1 }
  0xfa   :  { %v874_v36 = vpop.f32.mrb[3].mxu1 }
  0xfb   :  { %v662_v37 = vadd.f32 %v872_v34, %v850_v30 }
 0x116   :  { %v892_v38 = vpop.f32.mrb[4].mxu0 }
 0x117   :  { %v893_v39 = vpop.f32.mrb[5].mxu0  ;;  %v914_v40 = vpop.f32.mrb[4].mxu1 }
 0x118   :  { %v894_v41 = vadd.f32 %v893_v39, %v892_v38  ;;  %v895_v42 = vpop.f32.mrb[6].mxu0  ;;  %v915_v43 = vpop.f32.mrb[5].mxu1 }
 0x119   :  { %v896_v44 = vpop.f32.mrb[7].mxu0  ;;  %v916_v46 = vadd.f32 %v915_v43, %v914_v40  ;;  %v917_v47 = vpop.f32.mrb[6].mxu1 }
 0x11a   :  { %v702_v45 = vadd.f32 %v894_v41, %v662_v37  ;;  %v918_v49 = vpop.f32.mrb[7].mxu1 }
 0x11c   :  { %v742_v50 = vadd.f32 %v916_v46, %v702_v45 }
 0x11e   :  { %v747_v51 = vadd.f32 %v742_v50, %v20_v48 }
 0x120   :  { %748 = vst [vmem:[#allocation2] sm:$0x3] %v747_v51 }
 0x127   :  { %v752_v53 = vld [vmem:[#allocation2] sm:$0x3] }
 0x128   :  { %v760_v54 = vadd.f32 %v831_v52, %v752_v53 }
 0x12a   :  { %988 = vtanh.f32 %v760_v54 }
 0x134   :  { %v989_v55 = vpop.eup %988 }
 0x135   :  { %762 = vst [vmem:[%s1231_s3] sm:$0x3] %v989_v55 }

// kernel: classifier_forward.3
= control target key start
LH: loop header
LB: loop body
LE: loop exit
PB: predicated region body
PF: predicated region fallthrough
CT: control target
= control target key end

     0   :  { %8 = vsyncpa [#allocation4], 0  ;;  %s4904_s0 = inlined_call_operand.hbm [shape: f32[2,512], index: 0, kind: input, shape index: {}]   ;;  %s4905_s1 = inlined_call_operand.hbm [shape: bf16[512,2048], index: 1, kind: input, shape index: {}]   ;;  %s4906_s2 = inlined_call_operand.hbm [shape: f32[1,2048], index: 2, kind: input, shape index: {}]   ;;  %s4907_s3 = inlined_call_operand.vmem [shape: f32[2,2048], index: 3, kind: output, shape index: {}]  }
   0x1   :  { %9 = vsyncpa [#allocation6], 0  ;;  %s4700_s12 = smov [#allocation5]   ;;  %s4630_s16 = scalar_lea.hbm %s4905_s1, 65536 }
   0x2   :  { %s25_s13 = sshll.u32 %s4700_s12, 4  ;;  %p4631_p0 = scmp.ne.s32.totalorder %s4905_s1, %s4630_s16  ;;  %s26_s13 = int_to_ptr.vmem [resolvable:$true] %s25_s13 }
   0x3   :  { %p4634_p1 = scmp.lt.u32.totalorder %s4630_s16, %s4905_s1 }
   0x5   :  { %p4636_p2 = pnand %p4634_p1, %p4631_p0 }
   0x7   :  { %4639 = shalt.err (!%p4636_p2)
}
   0x8   :  { %s4640_s21 = scalar_lea.vmem %s26_s13, 65536  ;;  %p4645_p4 = scmp.lt.s32.totalorder %s26_s13, %s26_s13 }
   0x9   :  { %p4641_p3 = scmp.ne.s32.totalorder %s26_s13, %s4640_s21  ;;  %p4646_p5 = scmp.lt.s32.totalorder %s4640_s21, %s4640_s21 }
   0xb   :  { %p4647_p6 = por %p4646_p5, %p4645_p4 }
   0xd   :  { %p4648_p7 = pnand %p4647_p6, %p4641_p3 }
   0xf   :  { %4651 = shalt.err (!%p4648_p7)
}
  0x10   :  { %s4701_s22 = smov 1024   ;;  %s4702_s23 = smov 64  }
  0x11   :  { %31 = dma.hbm_to_vmem [thread:$0]  %s4905_s1, 65536, %s26_s13, [#allocation6], %s4701_s22, %s4701_s22, %s4702_s23  }
  0x12   :  { %s4703_s26 = smov [#allocation3]   ;;  %s4704_s28 = smov [#allocation7]  }
  0x13   :  { %s16_s27 = sshll.u32 %s4703_s26, 4  ;;  %s38_s29 = sshll.u32 %s4704_s28, 4  ;;  %s17_s27 = int_to_ptr.vmem [resolvable:$true] %s16_s27  ;;  %s39_s29 = int_to_ptr.vmem [resolvable:$true] %s38_s29 }
  0x14   :  { %s4652_s5 = scalar_lea.hbm %s4904_s0, 128 }
  0x15   :  { %p4653_p8 = scmp.ne.s32.totalorder %s4904_s0, %s4652_s5  ;;  %p4656_p9 = scmp.lt.u32.totalorder %s4652_s5, %s4904_s0 }
  0x17   :  { %p4658_p10 = pnand %p4656_p9, %p4653_p8 }
  0x19   :  { %4661 = shalt.err (!%p4658_p10)
}
  0x1a   :  { %s4662_s1 = scalar_lea.vmem %s17_s27, 128  ;;  %p4667_p12 = scmp.lt.s32.totalorder %s17_s27, %s17_s27 }
  0x1b   :  { %p4663_p11 = scmp.ne.s32.totalorder %s17_s27, %s4662_s1  ;;  %p4668_p13 = scmp.lt.s32.totalorder %s4662_s1, %s4662_s1 }
  0x1d   :  { %p4669_p0 = por %p4668_p13, %p4667_p12 }
  0x1f   :  { %p4670_p1 = pnand %p4669_p0, %p4663_p11 }
  0x21   :  { %4673 = shalt.err (!%p4670_p1)
}
  0x22   :  { %19 = dma.hbm_to_vmem [thread:$0]  %s4904_s0, 128, %s17_s27, [#allocation4]  }
  0x23   :  { %s4674_s14 = scalar_lea.hbm %s4906_s2, 256 }
  0x24   :  { %p4675_p2 = scmp.ne.s32.totalorder %s4906_s2, %s4674_s14  ;;  %p4678_p3 = scmp.lt.u32.totalorder %s4674_s14, %s4906_s2 }
  0x26   :  { %p4680_p4 = pnand %p4678_p3, %p4675_p2 }
  0x28   :  { %4683 = shalt.err (!%p4680_p4)
}
  0x29   :  { %s4684_s19 = scalar_lea.vmem %s39_s29, 256  ;;  %p4689_p6 = scmp.lt.s32.totalorder %s39_s29, %s39_s29 }
  0x2a   :  { %p4685_p5 = scmp.ne.s32.totalorder %s39_s29, %s4684_s19  ;;  %p4690_p7 = scmp.lt.s32.totalorder %s4684_s19, %s4684_s19 }
  0x2c   :  { %p4691_p8 = por %p4690_p7, %p4689_p6 }
  0x2e   :  { %p4692_p9 = pnand %p4691_p8, %p4685_p5 }
  0x30   :  { %4695 = shalt.err (!%p4692_p9)
}
  0x31   :  { %41 = dma.hbm_to_vmem [thread:$0]  %s4906_s2, 256, %s39_s29, [#allocation6]  }
  0x32   :  { %4696 = dma.done.wait [#allocation4], 128  }
  0x33   :  { %4697 = vsyncadd [#allocation4], 4294967168 }
  0x34   :  { %4698 = dma.done.wait [#allocation6], 65792  }
  0x35   :  { %4699 = vsyncadd [#allocation6], 4294901504  ;;  %v90_v0 = vld [vmem:[#allocation5] sm:$0xff]  ;;  %v91_v2 = vld [vmem:[#allocation5 + $0x8] sm:$0xff]  ;;  %v4705_v32 = vmov 1983009808   ;;  %v69_v34 = vlaneseq }
  0x36   :  { %v98_v1 = vld [vmem:[#allocation5 + $0x40] sm:$0xff]  ;;  %v99_v4 = vld [vmem:[#allocation5 + $0x48] sm:$0xff]  ;;  %v67_v33 = vunpack.c.l.s4 %v4705_v32  ;;  %v4767_v59 = vld [vmem:[#allocation3] sm:$0xff] }
  0x37   :  { %v4080_v3 = vcombine.high %v90_v0, %v98_v1  ;;  %v4079_v5 = vcombine.low %v90_v0, %v98_v1  ;;  %v106_v6 = vld [vmem:[#allocation5 + $0x80] sm:$0xff]  ;;  %v4082_v8 = vcombine.high %v91_v2, %v99_v4  ;;  %v4081_v9 = vcombine.low %v91_v2, %v99_v4  ;;  %v107_v11 = vld [vmem:[#allocation5 + $0x88] sm:$0xff] }
  0x38   :  { %v114_v7 = vld [vmem:[#allocation5 + $0xc0] sm:$0xff]  ;;  %v115_v12 = vld [vmem:[#allocation5 + $0xc8] sm:$0xff]  ;;  %v68_v43 = vunpack.c.0.s8 %v67_v33  ;;  %v4762_v44 = vshrl.u32 %v69_v34, 7 }
  0x39   :  { %v4096_v10 = vcombine.high %v106_v6, %v114_v7  ;;  %v122_v13 = vld [vmem:[#allocation5 + $0x100] sm:$0xff]  ;;  %3162 = vmatprep.subr.bf16.mxu0 %v4080_v3  ;;  %v4098_v14 = vcombine.high %v107_v11, %v115_v12  ;;  %v123_v16 = vld [vmem:[#allocation5 + $0x108] sm:$0xff]  ;;  %3244 = vmatprep.subr.bf16.mxu1 %v4082_v8  ;;  %v4095_v18 = vcombine.low %v106_v6, %v114_v7 }
  0x3a   :  { %v130_v15 = vld [vmem:[#allocation5 + $0x140] sm:$0xff]  ;;  %v131_v17 = vld [vmem:[#allocation5 + $0x148] sm:$0xff]  ;;  %3163 = vmatpush1.bf16.msra.mxu0 %v4079_v5  ;;  %3245 = vmatpush1.bf16.msra.mxu1 %v4081_v9  ;;  %v4097_v19 = vcombine.low %v107_v11, %v115_v12  ;;  %v4765_v53 = vsub.s32 %v68_v43, %v4762_v44 }
  0x3b   :  { %3164 = vmatprep.subr.bf16.mxu0 %v4096_v10  ;;  %v4112_v20 = vcombine.high %v122_v13, %v130_v15  ;;  %3246 = vmatprep.subr.bf16.mxu1 %v4098_v14  ;;  %v4114_v21 = vcombine.high %v123_v16, %v131_v17  ;;  %v138_v22 = vld [vmem:[#allocation5 + $0x180] sm:$0xff]  ;;  %v139_v24 = vld [vmem:[#allocation5 + $0x188] sm:$0xff]  ;;  %v4111_v26 = vcombine.low %v122_v13, %v130_v15 }
  0x3c   :  { %v146_v23 = vld [vmem:[#allocation5 + $0x1c0] sm:$0xff]  ;;  %v147_v25 = vld [vmem:[#allocation5 + $0x1c8] sm:$0xff]  ;;  %v4113_v27 = vcombine.low %v123_v16, %v131_v17  ;;  %v4771_v63 = vrot.slane %v4767_v59, %v4765_v53 }
  0x3d   :  { %v4128_v28 = vcombine.high %v138_v22, %v146_v23  ;;  %v4130_v29 = vcombine.high %v139_v24, %v147_v25  ;;  %v154_v30 = vld [vmem:[#allocation5 + $0x200] sm:$0xff]  ;;  %v155_v35 = vld [vmem:[#allocation5 + $0x208] sm:$0xff]  ;;  %v4127_v37 = vcombine.low %v138_v22, %v146_v23  ;;  %v4129_v38 = vcombine.low %v139_v24, %v147_v25 }
  0x3e   :  { %3165 = vmatpush1.bf16.msra.mxu0 %v4095_v18  ;;  %3247 = vmatpush1.bf16.msra.mxu1 %v4097_v19  ;;  %v162_v31 = vld [vmem:[#allocation5 + $0x240] sm:$0xff]  ;;  %v163_v36 = vld [vmem:[#allocation5 + $0x248] sm:$0xff]  ;;  %v80_v3 = vcombine.high %v4771_v63, %v4771_v63 }
  0x3f   :  { %3166 = vmatprep.subr.bf16.mxu0 %v4112_v20  ;;  %3248 = vmatprep.subr.bf16.mxu1 %v4114_v21  ;;  %v4144_v39 = vcombine.high %v154_v30, %v162_v31  ;;  %v4146_v40 = vcombine.high %v155_v35, %v163_v36  ;;  %v170_v41 = vld [vmem:[#allocation5 + $0x280] sm:$0xff]  ;;  %v171_v45 = vld [vmem:[#allocation5 + $0x288] sm:$0xff]  ;;  %v4143_v47 = vcombine.low %v154_v30, %v162_v31 }
  0x40   :  { %v178_v42 = vld [vmem:[#allocation5 + $0x2c0] sm:$0xff]  ;;  %v179_v46 = vld [vmem:[#allocation5 + $0x2c8] sm:$0xff]  ;;  %v4145_v48 = vcombine.low %v155_v35, %v163_v36  ;;  %v4775_v9 = vpack.c.bf16 %v80_v3, %v80_v3 }
  0x41   :  { %v4160_v49 = vcombine.high %v170_v41, %v178_v42  ;;  %v4162_v50 = vcombine.high %v171_v45, %v179_v46  ;;  %v186_v51 = vld [vmem:[#allocation5 + $0x300] sm:$0xff]  ;;  %v187_v54 = vld [vmem:[#allocation5 + $0x308] sm:$0xff]  ;;  %v4159_v56 = vcombine.low %v170_v41, %v178_v42  ;;  %v4161_v57 = vcombine.low %v171_v45, %v179_v46 }
  0x42   :  { %3167 = vmatpush1.bf16.msra.mxu0 %v4111_v26  ;;  %3249 = vmatpush1.bf16.msra.mxu1 %v4113_v27  ;;  %v194_v52 = vld [vmem:[#allocation5 + $0x340] sm:$0xff]  ;;  %v195_v55 = vld [vmem:[#allocation5 + $0x348] sm:$0xff] }
  0x43   :  { %3168 = vmatprep.subr.bf16.mxu0 %v4128_v28  ;;  %3250 = vmatprep.subr.bf16.mxu1 %v4130_v29  ;;  %v4176_v58 = vcombine.high %v186_v51, %v194_v52  ;;  %v4178_v60 = vcombine.high %v187_v54, %v195_v55  ;;  %v202_v61 = vld [vmem:[#allocation5 + $0x380] sm:$0xff]  ;;  %v203_v0 = vld [vmem:[#allocation5 + $0x388] sm:$0xff]  ;;  %v4175_v2 = vcombine.low %v186_v51, %v194_v52 }
  0x44   :  { %v210_v62 = vld [vmem:[#allocation5 + $0x3c0] sm:$0xff]  ;;  %v211_v1 = vld [vmem:[#allocation5 + $0x3c8] sm:$0xff]  ;;  %v4177_v4 = vcombine.low %v187_v54, %v195_v55  ;;  %3194 = vmatprep.mubr.bf16.mxu0 %v4775_v9  ;;  %3276 = vmatprep.mubr.bf16.mxu1 %v4775_v9 }
  0x45   :  { %v4192_v5 = vcombine.high %v202_v61, %v210_v62  ;;  %v4194_v6 = vcombine.high %v203_v0, %v211_v1  ;;  %v218_v7 = vld [vmem:[#allocation5 + $0x400] sm:$0xff]  ;;  %v219_v10 = vld [vmem:[#allocation5 + $0x408] sm:$0xff]  ;;  %v4191_v12 = vcombine.low %v202_v61, %v210_v62  ;;  %v4193_v13 = vcombine.low %v203_v0, %v211_v1 }
  0x46   :  { %3169 = vmatpush1.bf16.msra.mxu0 %v4127_v37  ;;  %3251 = vmatpush1.bf16.msra.mxu1 %v4129_v38  ;;  %v226_v8 = vld [vmem:[#allocation5 + $0x440] sm:$0xff]  ;;  %v227_v11 = vld [vmem:[#allocation5 + $0x448] sm:$0xff] }
  0x47   :  { %3170 = vmatprep.subr.bf16.mxu0 %v4144_v39  ;;  %3252 = vmatprep.subr.bf16.mxu1 %v4146_v40  ;;  %v4208_v14 = vcombine.high %v218_v7, %v226_v8  ;;  %v4210_v15 = vcombine.high %v219_v10, %v227_v11  ;;  %v234_v16 = vld [vmem:[#allocation5 + $0x480] sm:$0xff]  ;;  %v235_v18 = vld [vmem:[#allocation5 + $0x488] sm:$0xff]  ;;  %v4207_v20 = vcombine.low %v218_v7, %v226_v8 }
  0x48   :  { %v242_v17 = vld [vmem:[#allocation5 + $0x4c0] sm:$0xff]  ;;  %v243_v19 = vld [vmem:[#allocation5 + $0x4c8] sm:$0xff]  ;;  %v4209_v21 = vcombine.low %v219_v10, %v227_v11 }
  0x49   :  { %v4224_v22 = vcombine.high %v234_v16, %v242_v17  ;;  %v4226_v23 = vcombine.high %v235_v18, %v243_v19  ;;  %v250_v24 = vld [vmem:[#allocation5 + $0x500] sm:$0xff]  ;;  %v251_v26 = vld [vmem:[#allocation5 + $0x508] sm:$0xff]  ;;  %v4223_v28 = vcombine.low %v234_v16, %v242_v17  ;;  %v4225_v29 = vcombine.low %v235_v18, %v243_v19 }
  0x4a   :  { %3171 = vmatpush1.bf16.msra.mxu0 %v4143_v47  ;;  %3253 = vmatpush1.bf16.msra.mxu1 %v4145_v48  ;;  %v258_v25 = vld [vmem:[#allocation5 + $0x540] sm:$0xff]  ;;  %v259_v27 = vld [vmem:[#allocation5 + $0x548] sm:$0xff] }
  0x4b   :  { %3172 = vmatprep.subr.bf16.mxu0 %v4160_v49  ;;  %3254 = vmatprep.subr.bf16.mxu1 %v4162_v50  ;;  %v4240_v30 = vcombine.high %v250_v24, %v258_v25  ;;  %v4242_v31 = vcombine.high %v251_v26, %v259_v27  ;;  %v266_v32 = vld [vmem:[#allocation5 + $0x580] sm:$0xff]  ;;  %v267_v34 = vld [vmem:[#allocation5 + $0x588] sm:$0xff]  ;;  %v4239_v36 = vcombine.low %v250_v24, %v258_v25 }
  0x4c   :  { %v274_v33 = vld [vmem:[#allocation5 + $0x5c0] sm:$0xff]  ;;  %v275_v35 = vld [vmem:[#allocation5 + $0x5c8] sm:$0xff]  ;;  %v4241_v37 = vcombine.low %v251_v26, %v259_v27  ;;  %v4788_v25 = vpack.c.bf16 %v4771_v63, %v4771_v63 }
  0x4d   :  { %v4256_v38 = vcombine.high %v266_v32, %v274_v33  ;;  %v4258_v39 = vcombine.high %v267_v34, %v275_v35  ;;  %v282_v40 = vld [vmem:[#allocation5 + $0x600] sm:$0xff]  ;;  %v283_v42 = vld [vmem:[#allocation5 + $0x608] sm:$0xff]  ;;  %v4255_v45 = vcombine.low %v266_v32, %v274_v33  ;;  %v4257_v46 = vcombine.low %v267_v34, %v275_v35 }
  0x4e   :  { %3173 = vmatpush1.bf16.msra.mxu0 %v4159_v56  ;;  %3255 = vmatpush1.bf16.msra.mxu1 %v4161_v57  ;;  %v290_v41 = vld [vmem:[#allocation5 + $0x640] sm:$0xff]  ;;  %v291_v43 = vld [vmem:[#allocation5 + $0x648] sm:$0xff] }
  0x4f   :  { %3174 = vmatprep.subr.bf16.mxu0 %v4176_v58  ;;  %3256 = vmatprep.subr.bf16.mxu1 %v4178_v60  ;;  %v4272_v47 = vcombine.high %v282_v40, %v290_v41  ;;  %v4274_v48 = vcombine.high %v283_v42, %v291_v43  ;;  %v298_v49 = vld [vmem:[#allocation5 + $0x680] sm:$0xff]  ;;  %v299_v51 = vld [vmem:[#allocation5 + $0x688] sm:$0xff]  ;;  %v4271_v54 = vcombine.low %v282_v40, %v290_v41 }
  0x50   :  { %v306_v50 = vld [vmem:[#allocation5 + $0x6c0] sm:$0xff]  ;;  %v307_v52 = vld [vmem:[#allocation5 + $0x6c8] sm:$0xff]  ;;  %v4273_v55 = vcombine.low %v283_v42, %v291_v43 }
  0x51   :  { %v4288_v56 = vcombine.high %v298_v49, %v306_v50  ;;  %v4290_v57 = vcombine.high %v299_v51, %v307_v52  ;;  %v314_v58 = vld [vmem:[#allocation5 + $0x700] sm:$0xff]  ;;  %v315_v61 = vld [vmem:[#allocation5 + $0x708] sm:$0xff]  ;;  %v4287_v0 = vcombine.low %v298_v49, %v306_v50  ;;  %v4289_v1 = vcombine.low %v299_v51, %v307_v52 }
  0x52   :  { %3175 = vmatpush1.bf16.msra.mxu0 %v4175_v2  ;;  %3257 = vmatpush1.bf16.msra.mxu1 %v4177_v4  ;;  %v322_v60 = vld [vmem:[#allocation5 + $0x740] sm:$0xff]  ;;  %v323_v62 = vld [vmem:[#allocation5 + $0x748] sm:$0xff] }
  0x53   :  { %3176 = vmatprep.subr.bf16.mxu0 %v4192_v5  ;;  %3258 = vmatprep.subr.bf16.mxu1 %v4194_v6  ;;  %v4304_v2 = vcombine.high %v314_v58, %v322_v60  ;;  %v4306_v3 = vcombine.high %v315_v61, %v323_v62  ;;  %v330_v4 = vld [vmem:[#allocation5 + $0x780] sm:$0xff]  ;;  %v65_v6 = vcombine.high %v4767_v59, %v4767_v59  ;;  %v331_v7 = vld [vmem:[#allocation5 + $0x788] sm:$0xff] }
  0x54   :  { %v338_v5 = vld [vmem:[#allocation5 + $0x7c0] sm:$0xff]  ;;  %v339_v8 = vld [vmem:[#allocation5 + $0x7c8] sm:$0xff]  ;;  %v4303_v10 = vcombine.low %v314_v58, %v322_v60  ;;  %v4305_v11 = vcombine.low %v315_v61, %v323_v62 }
  0x55   :  { %v4782_v16 = vrot.slane %v65_v6, %v4765_v53  ;;  %v347_v17 = vld [vmem:[#allocation5 + $0x808] sm:$0xff]  ;;  %v4319_v19 = vcombine.low %v330_v4, %v338_v5  ;;  %v4321_v59 = vcombine.low %v331_v7, %v339_v8  ;;  %v378_v32 = vld [vmem:[#allocation5 + $0x900] sm:$0xff] }
  0x56   :  { %3177 = vmatpush1.bf16.msra.mxu0 %v4191_v12  ;;  %3259 = vmatpush1.bf16.msra.mxu1 %v4193_v13  ;;  %v4320_v12 = vcombine.high %v330_v4, %v338_v5  ;;  %v4322_v13 = vcombine.high %v331_v7, %v339_v8  ;;  %v355_v18 = vld [vmem:[#allocation5 + $0x848] sm:$0xff]  ;;  %v386_v33 = vld [vmem:[#allocation5 + $0x940] sm:$0xff] }
  0x57   :  { %3178 = vmatprep.subr.bf16.mxu0 %v4208_v14  ;;  %3260 = vmatprep.subr.bf16.mxu1 %v4210_v15  ;;  %v346_v14 = vld [vmem:[#allocation5 + $0x800] sm:$0xff]  ;;  %v81_v24 = vcombine.high %v4782_v16, %v4782_v16  ;;  %v363_v26 = vld [vmem:[#allocation5 + $0x888] sm:$0xff] }
  0x58   :  { %v354_v15 = vld [vmem:[#allocation5 + $0x840] sm:$0xff]  ;;  %v371_v27 = vld [vmem:[#allocation5 + $0x8c8] sm:$0xff] }
  0x59   :  { %v4790_v34 = vpack.c.bf16 %v81_v24, %v81_v24  ;;  %v379_v35 = vld [vmem:[#allocation5 + $0x908] sm:$0xff]  ;;  %v394_v40 = vld [vmem:[#allocation5 + $0x980] sm:$0xff] }
  0x5a   :  { %3179 = vmatpush1.bf16.msra.mxu0 %v4207_v20  ;;  %3261 = vmatpush1.bf16.msra.mxu1 %v4209_v21  ;;  %v4336_v20 = vcombine.high %v346_v14, %v354_v15  ;;  %v4338_v21 = vcombine.high %v347_v17, %v355_v18  ;;  %v402_v41 = vld [vmem:[#allocation5 + $0x9c0] sm:$0xff]  ;;  %v395_v42 = vld [vmem:[#allocation5 + $0x988] sm:$0xff] }
  0x5b   :  { %3180 = vmatprep.subr.bf16.mxu0 %v4224_v22  ;;  %3262 = vmatprep.subr.bf16.mxu1 %v4226_v23  ;;  %v362_v22 = vld [vmem:[#allocation5 + $0x880] sm:$0xff]  ;;  %v403_v43 = vld [vmem:[#allocation5 + $0x9c8] sm:$0xff] }
  0x5c   :  { %v370_v23 = vld [vmem:[#allocation5 + $0x8c0] sm:$0xff]  ;;  %v411_v51 = vld [vmem:[#allocation5 + $0xa08] sm:$0xff] }
  0x5d   :  { %v4351_v63 = vcombine.low %v362_v22, %v370_v23  ;;  %v410_v49 = vld [vmem:[#allocation5 + $0xa00] sm:$0xff]  ;;  %v419_v52 = vld [vmem:[#allocation5 + $0xa48] sm:$0xff] }
  0x5e   :  { %3181 = vmatpush1.bf16.msra.mxu0 %v4223_v28  ;;  %3263 = vmatpush1.bf16.msra.mxu1 %v4225_v29  ;;  %v4335_v28 = vcombine.low %v346_v14, %v354_v15  ;;  %v4337_v29 = vcombine.low %v347_v17, %v355_v18  ;;  %v418_v50 = vld [vmem:[#allocation5 + $0xa40] sm:$0xff]  ;;  %v427_v61 = vld [vmem:[#allocation5 + $0xa88] sm:$0xff] }
  0x5f   :  { %3182 = vmatprep.subr.bf16.mxu0 %v4240_v30  ;;  %3264 = vmatprep.subr.bf16.mxu1 %v4242_v31  ;;  %v4352_v30 = vcombine.high %v362_v22, %v370_v23  ;;  %v4354_v31 = vcombine.high %v363_v26, %v371_v27  ;;  %v426_v58 = vld [vmem:[#allocation5 + $0xa80] sm:$0xff]  ;;  %v435_v62 = vld [vmem:[#allocation5 + $0xac8] sm:$0xff] }
  0x60   :  { %v434_v60 = vld [vmem:[#allocation5 + $0xac0] sm:$0xff]  ;;  %v443_v6 = vld [vmem:[#allocation5 + $0xb08] sm:$0xff] }
  0x61   :  { %v442_v4 = vld [vmem:[#allocation5 + $0xb00] sm:$0xff]  ;;  %v451_v7 = vld [vmem:[#allocation5 + $0xb48] sm:$0xff]  ;;  %v4415_v8 = vcombine.low %v426_v58, %v434_v60 }
  0x62   :  { %3183 = vmatpush1.bf16.msra.mxu0 %v4239_v36  ;;  %3265 = vmatpush1.bf16.msra.mxu1 %v4241_v37  ;;  %v387_v36 = vld [vmem:[#allocation5 + $0x948] sm:$0xff]  ;;  %v4353_v37 = vcombine.low %v363_v26, %v371_v27  ;;  %v450_v5 = vld [vmem:[#allocation5 + $0xb40] sm:$0xff] }
  0x63   :  { %3184 = vmatprep.subr.bf16.mxu0 %v4256_v38  ;;  %3266 = vmatprep.subr.bf16.mxu1 %v4258_v39  ;;  %v4368_v38 = vcombine.high %v378_v32, %v386_v33  ;;  %v4370_v39 = vcombine.high %v379_v35, %v387_v36  ;;  %v466_v14 = vld [vmem:[#allocation5 + $0xbc0] sm:$0xff]  ;;  %v459_v15 = vld [vmem:[#allocation5 + $0xb88] sm:$0xff]  ;;  %v4431_v18 = vcombine.low %v442_v4, %v450_v5 }
  0x64   :  { %v467_v17 = vld [vmem:[#allocation5 + $0xbc8] sm:$0xff]  ;;  %v482_v22 = vld [vmem:[#allocation5 + $0xc40] sm:$0xff] }
  0x65   :  { %v475_v23 = vld [vmem:[#allocation5 + $0xc08] sm:$0xff]  ;;  %v4449_v27 = vcombine.low %v459_v15, %v467_v17 }
  0x66   :  { %3185 = vmatpush1.bf16.msra.mxu0 %v4255_v45  ;;  %3267 = vmatpush1.bf16.msra.mxu1 %v4257_v46  ;;  %v4367_v45 = vcombine.low %v378_v32, %v386_v33  ;;  %v4369_v46 = vcombine.low %v379_v35, %v387_v36  ;;  %v483_v24 = vld [vmem:[#allocation5 + $0xc48] sm:$0xff] }
  0x67   :  { %3186 = vmatprep.subr.bf16.mxu0 %v4272_v47  ;;  %3268 = vmatprep.subr.bf16.mxu1 %v4274_v48  ;;  %v4384_v47 = vcombine.high %v394_v40, %v402_v41  ;;  %v4386_v48 = vcombine.high %v395_v42, %v403_v43  ;;  %v491_v32 = vld [vmem:[#allocation5 + $0xc88] sm:$0xff]  ;;  %v4465_v36 = vcombine.low %v475_v23, %v483_v24 }
  0x68   :  { %v499_v33 = vld [vmem:[#allocation5 + $0xcc8] sm:$0xff] }
  0x6a   :  { %3187 = vmatpush1.bf16.msra.mxu0 %v4271_v54  ;;  %3269 = vmatpush1.bf16.msra.mxu1 %v4273_v55  ;;  %v4383_v54 = vcombine.low %v394_v40, %v402_v41  ;;  %v4385_v55 = vcombine.low %v395_v42, %v403_v43  ;;  %v507_v40 = vld [vmem:[#allocation5 + $0xd08] sm:$0xff]  ;;  %v4481_v43 = vcombine.low %v491_v32, %v499_v33 }
  0x6b   :  { %3188 = vmatprep.subr.bf16.mxu0 %v4288_v56  ;;  %3270 = vmatprep.subr.bf16.mxu1 %v4290_v57  ;;  %v4400_v56 = vcombine.high %v410_v49, %v418_v50  ;;  %v4402_v57 = vcombine.high %v411_v51, %v419_v52  ;;  %v515_v41 = vld [vmem:[#allocation5 + $0xd48] sm:$0xff] }
  0x6e   :  { %3189 = vmatpush1.bf16.msra.mxu0 %v4287_v0  ;;  %3271 = vmatpush1.bf16.msra.mxu1 %v4289_v1  ;;  %v4399_v0 = vcombine.low %v410_v49, %v418_v50  ;;  %v4401_v1 = vcombine.low %v411_v51, %v419_v52  ;;  %v523_v49 = vld [vmem:[#allocation5 + $0xd88] sm:$0xff]  ;;  %v4497_v52 = vcombine.low %v507_v40, %v515_v41 }
  0x6f   :  { %3190 = vmatprep.subr.bf16.mxu0 %v4304_v2  ;;  %3272 = vmatprep.subr.bf16.mxu1 %v4306_v3  ;;  %v4416_v2 = vcombine.high %v426_v58, %v434_v60  ;;  %v4418_v3 = vcombine.high %v427_v61, %v435_v62  ;;  %v531_v50 = vld [vmem:[#allocation5 + $0xdc8] sm:$0xff] }
  0x70   :  { %v539_v58 = vld [vmem:[#allocation5 + $0xe08] sm:$0xff] }
  0x71   :  { %v547_v60 = vld [vmem:[#allocation5 + $0xe48] sm:$0xff] }
  0x72   :  { %3191 = vmatpush1.bf16.msra.mxu0 %v4303_v10  ;;  %3273 = vmatpush1.bf16.msra.mxu1 %v4305_v11  ;;  %v4417_v10 = vcombine.low %v427_v61, %v435_v62  ;;  %v4432_v11 = vcombine.high %v442_v4, %v450_v5  ;;  %v4513_v62 = vcombine.low %v523_v49, %v531_v50  ;;  %v555_v4 = vld [vmem:[#allocation5 + $0xe88] sm:$0xff] }
  0x73   :  { %3192 = vmatprep.subr.bf16.mxu0 %v4320_v12  ;;  %3274 = vmatprep.subr.bf16.mxu1 %v4322_v13  ;;  %v4434_v12 = vcombine.high %v443_v6, %v451_v7  ;;  %v458_v13 = vld [vmem:[#allocation5 + $0xb80] sm:$0xff]  ;;  %v563_v5 = vld [vmem:[#allocation5 + $0xec8] sm:$0xff] }
  0x74   :  { %v4447_v26 = vcombine.low %v458_v13, %v466_v14 }
  0x76   :  { %3193 = vmatpush1.bf16.msra.mxu0 %v4319_v19  ;;  %3275 = vmatpush1.bf16.msra.mxu1 %v4321_v59  ;;  %v4433_v19 = vcombine.low %v443_v6, %v451_v7  ;;  %v4448_v59 = vcombine.high %v458_v13, %v466_v14  ;;  %v4529_v7 = vcombine.low %v539_v58, %v547_v60  ;;  %v571_v13 = vld [vmem:[#allocation5 + $0xf08] sm:$0xff] }
  0x77   :  { %3203 = vmatprep.subr.bf16.mxu0 %v4336_v20  ;;  %3285 = vmatprep.subr.bf16.mxu1 %v4338_v21  ;;  %v4450_v20 = vcombine.high %v459_v15, %v467_v17  ;;  %v474_v21 = vld [vmem:[#allocation5 + $0xc00] sm:$0xff]  ;;  %v579_v14 = vld [vmem:[#allocation5 + $0xf48] sm:$0xff]  ;;  %v4545_v17 = vcombine.low %v555_v4, %v563_v5 }
  0x78   :  { %v4463_v35 = vcombine.low %v474_v21, %v482_v22 }
  0x79   :  { %3195 = vmatmul.mubr.bf16.vlgmr.msra.gmra.mrb[0].mxu0 %v4788_v25  ;;  %3277 = vmatmul.mubr.bf16.vlgmr.msra.gmra.mrb[0].mxu1 %v4788_v25 }
  0x7a   :  { %3204 = vmatpush1.bf16.msra.mxu0 %v4335_v28  ;;  %3286 = vmatpush1.bf16.msra.mxu1 %v4337_v29  ;;  %v4464_v28 = vcombine.high %v474_v21, %v482_v22  ;;  %v4466_v29 = vcombine.high %v475_v23, %v483_v24  ;;  %v587_v21 = vld [vmem:[#allocation5 + $0xf88] sm:$0xff]  ;;  %v4561_v24 = vcombine.low %v571_v13, %v579_v14 }
  0x7b   :  { %3205 = vmatprep.subr.bf16.mxu0 %v4352_v30  ;;  %3287 = vmatprep.subr.bf16.mxu1 %v4354_v31  ;;  %v490_v30 = vld [vmem:[#allocation5 + $0xc80] sm:$0xff]  ;;  %v595_v22 = vld [vmem:[#allocation5 + $0xfc8] sm:$0xff] }
  0x7c   :  { %3235 = vmatprep.mubr.bf16.mxu0 %v4790_v34  ;;  %3317 = vmatprep.mubr.bf16.mxu1 %v4790_v34  ;;  %v498_v31 = vld [vmem:[#allocation5 + $0xcc0] sm:$0xff] }
  0x7d   :  { %v4479_v42 = vcombine.low %v490_v30, %v498_v31 }
  0x7e   :  { %3206 = vmatpush1.bf16.msra.mxu0 %v4351_v63  ;;  %3288 = vmatpush1.bf16.msra.mxu1 %v4353_v37  ;;  %v4480_v63 = vcombine.high %v490_v30, %v498_v31  ;;  %v4482_v37 = vcombine.high %v491_v32, %v499_v33  ;;  %v93_v30 = vld [vmem:[#allocation5 + $0x18] sm:$0xff]  ;;  %v4577_v33 = vcombine.low %v587_v21, %v595_v22 }
  0x7f   :  { %3207 = vmatprep.subr.bf16.mxu0 %v4368_v38  ;;  %3289 = vmatprep.subr.bf16.mxu1 %v4370_v39  ;;  %v506_v38 = vld [vmem:[#allocation5 + $0xd00] sm:$0xff]  ;;  %v101_v31 = vld [vmem:[#allocation5 + $0x58] sm:$0xff] }
  0x80   :  { %v514_v39 = vld [vmem:[#allocation5 + $0xd40] sm:$0xff] }
  0x81   :  { %v4495_v51 = vcombine.low %v506_v38, %v514_v39 }
  0x82   :  { %3208 = vmatpush1.bf16.msra.mxu0 %v4367_v45  ;;  %3290 = vmatpush1.bf16.msra.mxu1 %v4369_v46  ;;  %v4496_v45 = vcombine.high %v506_v38, %v514_v39  ;;  %v4498_v46 = vcombine.high %v507_v40, %v515_v41  ;;  %v4798_v38 = vpack.c.bf16 %v4782_v16, %v4782_v16  ;;  %v109_v39 = vld [vmem:[#allocation5 + $0x98] sm:$0xff] }
  0x83   :  { %3209 = vmatprep.subr.bf16.mxu0 %v4384_v47  ;;  %3291 = vmatprep.subr.bf16.mxu1 %v4386_v48  ;;  %v522_v47 = vld [vmem:[#allocation5 + $0xd80] sm:$0xff]  ;;  %v117_v40 = vld [vmem:[#allocation5 + $0xd8] sm:$0xff] }
  0x84   :  { %v530_v48 = vld [vmem:[#allocation5 + $0xdc0] sm:$0xff] }
  0x85   :  { %v4511_v61 = vcombine.low %v522_v47, %v530_v48 }
  0x86   :  { %3210 = vmatpush1.bf16.msra.mxu0 %v4383_v54  ;;  %3292 = vmatpush1.bf16.msra.mxu1 %v4385_v55  ;;  %v4512_v54 = vcombine.high %v522_v47, %v530_v48  ;;  %v4514_v55 = vcombine.high %v523_v49, %v531_v50  ;;  %v132_v47 = vld [vmem:[#allocation5 + $0x150] sm:$0xff]  ;;  %v125_v48 = vld [vmem:[#allocation5 + $0x118] sm:$0xff]  ;;  %v4101_v50 = vcombine.low %v109_v39, %v117_v40 }
  0x87   :  { %3211 = vmatprep.subr.bf16.mxu0 %v4400_v56  ;;  %3293 = vmatprep.subr.bf16.mxu1 %v4402_v57  ;;  %v538_v56 = vld [vmem:[#allocation5 + $0xe00] sm:$0xff]  ;;  %v133_v49 = vld [vmem:[#allocation5 + $0x158] sm:$0xff] }
  0x88   :  { %v546_v57 = vld [vmem:[#allocation5 + $0xe40] sm:$0xff] }
  0x89   :  { %v4527_v6 = vcombine.low %v538_v56, %v546_v57 }
  0x8a   :  { %3212 = vmatpush1.bf16.msra.mxu0 %v4399_v0  ;;  %3294 = vmatpush1.bf16.msra.mxu1 %v4401_v1  ;;  %v4528_v0 = vcombine.high %v538_v56, %v546_v57  ;;  %v4530_v1 = vcombine.high %v539_v58, %v547_v60  ;;  %v141_v56 = vld [vmem:[#allocation5 + $0x198] sm:$0xff]  ;;  %v4117_v60 = vcombine.low %v125_v48, %v133_v49 }
  0x8b   :  { %3213 = vmatprep.subr.bf16.mxu0 %v4416_v2  ;;  %3295 = vmatprep.subr.bf16.mxu1 %v4418_v3  ;;  %v554_v2 = vld [vmem:[#allocation5 + $0xe80] sm:$0xff]  ;;  %v149_v57 = vld [vmem:[#allocation5 + $0x1d8] sm:$0xff] }
  0x8c   :  { %v562_v3 = vld [vmem:[#allocation5 + $0xec0] sm:$0xff] }
  0x8d   :  { %v4543_v15 = vcombine.low %v554_v2, %v562_v3 }
  0x8e   :  { %3214 = vmatpush1.bf16.msra.mxu0 %v4415_v8  ;;  %3296 = vmatpush1.bf16.msra.mxu1 %v4417_v10  ;;  %v4544_v8 = vcombine.high %v554_v2, %v562_v3  ;;  %v4546_v10 = vcombine.high %v555_v4, %v563_v5  ;;  %v157_v2 = vld [vmem:[#allocation5 + $0x218] sm:$0xff]  ;;  %v4133_v5 = vcombine.low %v141_v56, %v149_v57 }
  0x8f   :  { %3215 = vmatprep.subr.bf16.mxu0 %v4432_v11  ;;  %3297 = vmatprep.subr.bf16.mxu1 %v4434_v12  ;;  %v570_v11 = vld [vmem:[#allocation5 + $0xf00] sm:$0xff]  ;;  %v165_v3 = vld [vmem:[#allocation5 + $0x258] sm:$0xff] }
  0x90   :  { %v578_v12 = vld [vmem:[#allocation5 + $0xf40] sm:$0xff] }
  0x91   :  { %v4559_v23 = vcombine.low %v570_v11, %v578_v12 }
  0x92   :  { %3216 = vmatpush1.bf16.msra.mxu0 %v4431_v18  ;;  %3298 = vmatpush1.bf16.msra.mxu1 %v4433_v19  ;;  %v4560_v18 = vcombine.high %v570_v11, %v578_v12  ;;  %v4562_v19 = vcombine.high %v571_v13, %v579_v14  ;;  %v173_v11 = vld [vmem:[#allocation5 + $0x298] sm:$0xff]  ;;  %v4149_v14 = vcombine.low %v157_v2, %v165_v3 }
  0x93   :  { %3217 = vmatprep.subr.bf16.mxu0 %v4448_v59  ;;  %3299 = vmatprep.subr.bf16.mxu1 %v4450_v20  ;;  %v586_v59 = vld [vmem:[#allocation5 + $0xf80] sm:$0xff]  ;;  %v181_v12 = vld [vmem:[#allocation5 + $0x2d8] sm:$0xff] }
  0x94   :  { %v594_v20 = vld [vmem:[#allocation5 + $0xfc0] sm:$0xff] }
  0x95   :  { %v4575_v32 = vcombine.low %v586_v59, %v594_v20 }
  0x96   :  { %3218 = vmatpush1.bf16.msra.mxu0 %v4447_v26  ;;  %3300 = vmatpush1.bf16.msra.mxu1 %v4449_v27  ;;  %v4576_v26 = vcombine.high %v586_v59, %v594_v20  ;;  %v4578_v27 = vcombine.high %v587_v21, %v595_v22  ;;  %v189_v59 = vld [vmem:[#allocation5 + $0x318] sm:$0xff]  ;;  %v4165_v22 = vcombine.low %v173_v11, %v181_v12 }
  0x97   :  { %3219 = vmatprep.subr.bf16.mxu0 %v4464_v28  ;;  %3301 = vmatprep.subr.bf16.mxu1 %v4466_v29  ;;  %v92_v28 = vld [vmem:[#allocation5 + $0x10] sm:$0xff]  ;;  %v197_v20 = vld [vmem:[#allocation5 + $0x358] sm:$0xff] }
  0x98   :  { %v100_v29 = vld [vmem:[#allocation5 + $0x50] sm:$0xff] }
  0x99   :  { %v4083_v41 = vcombine.low %v92_v28, %v100_v29 }
  0x9a   :  { %3220 = vmatpush1.bf16.msra.mxu0 %v4463_v35  ;;  %3302 = vmatpush1.bf16.msra.mxu1 %v4465_v36  ;;  %v4084_v35 = vcombine.high %v92_v28, %v100_v29  ;;  %v4086_v36 = vcombine.high %v93_v30, %v101_v31  ;;  %v205_v28 = vld [vmem:[#allocation5 + $0x398] sm:$0xff] }
  0x9b   :  { %3221 = vmatprep.subr.bf16.mxu0 %v4480_v63  ;;  %3303 = vmatprep.subr.bf16.mxu1 %v4482_v37  ;;  %v108_v63 = vld [vmem:[#allocation5 + $0x90] sm:$0xff]  ;;  %v213_v29 = vld [vmem:[#allocation5 + $0x3d8] sm:$0xff] }
  0x9c   :  { %v116_v37 = vld [vmem:[#allocation5 + $0xd0] sm:$0xff] }
  0x9d   :  { %v4099_v16 = vcombine.low %v108_v63, %v116_v37 }
  0x9e   :  { %3222 = vmatpush1.bf16.msra.mxu0 %v4479_v42  ;;  %3304 = vmatpush1.bf16.msra.mxu1 %v4481_v43  ;;  %v4085_v42 = vcombine.low %v93_v30, %v101_v31  ;;  %v4100_v43 = vcombine.high %v108_v63, %v116_v37  ;;  %v4181_v31 = vcombine.low %v189_v59, %v197_v20  ;;  %v221_v63 = vld [vmem:[#allocation5 + $0x418] sm:$0xff] }
  0x9f   :  { %3223 = vmatprep.subr.bf16.mxu0 %v4496_v45  ;;  %3305 = vmatprep.subr.bf16.mxu1 %v4498_v46  ;;  %v4102_v45 = vcombine.high %v109_v39, %v117_v40  ;;  %v124_v46 = vld [vmem:[#allocation5 + $0x110] sm:$0xff]  ;;  %v229_v37 = vld [vmem:[#allocation5 + $0x458] sm:$0xff]  ;;  %v4197_v40 = vcombine.low %v205_v28, %v213_v29 }
  0xa0   :  { %v4115_v58 = vcombine.low %v124_v46, %v132_v47 }
  0xa2   :  { %3224 = vmatpush1.bf16.msra.mxu0 %v4495_v51  ;;  %3306 = vmatpush1.bf16.msra.mxu1 %v4497_v52  ;;  %v4116_v51 = vcombine.high %v124_v46, %v132_v47  ;;  %v4118_v52 = vcombine.high %v125_v48, %v133_v49  ;;  %v237_v46 = vld [vmem:[#allocation5 + $0x498] sm:$0xff]  ;;  %v4213_v49 = vcombine.low %v221_v63, %v229_v37 }
  0xa3   :  { %3225 = vmatprep.subr.bf16.mxu0 %v4512_v54  ;;  %3307 = vmatprep.subr.bf16.mxu1 %v4514_v55  ;;  %v140_v54 = vld [vmem:[#allocation5 + $0x190] sm:$0xff]  ;;  %v245_v47 = vld [vmem:[#allocation5 + $0x4d8] sm:$0xff] }
  0xa4   :  { %v148_v55 = vld [vmem:[#allocation5 + $0x1d0] sm:$0xff] }
  0xa5   :  { %v4131_v4 = vcombine.low %v140_v54, %v148_v55 }
  0xa6   :  { %3226 = vmatpush1.bf16.msra.mxu0 %v4511_v61  ;;  %3308 = vmatpush1.bf16.msra.mxu1 %v4513_v62  ;;  %v4132_v61 = vcombine.high %v140_v54, %v148_v55  ;;  %v4134_v62 = vcombine.high %v141_v56, %v149_v57  ;;  %v253_v54 = vld [vmem:[#allocation5 + $0x518] sm:$0xff]  ;;  %v4229_v57 = vcombine.low %v237_v46, %v245_v47 }
  0xa7   :  { %3227 = vmatprep.subr.bf16.mxu0 %v4528_v0  ;;  %3309 = vmatprep.subr.bf16.mxu1 %v4530_v1  ;;  %v156_v0 = vld [vmem:[#allocation5 + $0x210] sm:$0xff]  ;;  %v261_v55 = vld [vmem:[#allocation5 + $0x558] sm:$0xff] }
  0xa8   :  { %v164_v1 = vld [vmem:[#allocation5 + $0x250] sm:$0xff] }
  0xa9   :  { %v4147_v13 = vcombine.low %v156_v0, %v164_v1 }
  0xaa   :  { %3228 = vmatpush1.bf16.msra.mxu0 %v4527_v6  ;;  %3310 = vmatpush1.bf16.msra.mxu1 %v4529_v7  ;;  %v4148_v6 = vcombine.high %v156_v0, %v164_v1  ;;  %v4150_v7 = vcombine.high %v157_v2, %v165_v3  ;;  %v269_v0 = vld [vmem:[#allocation5 + $0x598] sm:$0xff]  ;;  %v4245_v3 = vcombine.low %v253_v54, %v261_v55 }
  0xab   :  { %3229 = vmatprep.subr.bf16.mxu0 %v4544_v8  ;;  %3311 = vmatprep.subr.bf16.mxu1 %v4546_v10  ;;  %v172_v8 = vld [vmem:[#allocation5 + $0x290] sm:$0xff]  ;;  %v277_v1 = vld [vmem:[#allocation5 + $0x5d8] sm:$0xff] }
  0xac   :  { %v180_v10 = vld [vmem:[#allocation5 + $0x2d0] sm:$0xff] }
  0xad   :  { %v4163_v21 = vcombine.low %v172_v8, %v180_v10 }
  0xae   :  { %3230 = vmatpush1.bf16.msra.mxu0 %v4543_v15  ;;  %3312 = vmatpush1.bf16.msra.mxu1 %v4545_v17  ;;  %v4164_v15 = vcombine.high %v172_v8, %v180_v10  ;;  %v4166_v17 = vcombine.high %v173_v11, %v181_v12  ;;  %v285_v8 = vld [vmem:[#allocation5 + $0x618] sm:$0xff]  ;;  %v4261_v12 = vcombine.low %v269_v0, %v277_v1 }
  0xaf   :  { %3231 = vmatprep.subr.bf16.mxu0 %v4560_v18  ;;  %3313 = vmatprep.subr.bf16.mxu1 %v4562_v19  ;;  %v188_v18 = vld [vmem:[#allocation5 + $0x310] sm:$0xff]  ;;  %v293_v10 = vld [vmem:[#allocation5 + $0x658] sm:$0xff] }
  0xb0   :  { %v196_v19 = vld [vmem:[#allocation5 + $0x350] sm:$0xff] }
  0xb1   :  { %v4179_v30 = vcombine.low %v188_v18, %v196_v19 }
  0xb2   :  { %3232 = vmatpush1.bf16.msra.mxu0 %v4559_v23  ;;  %3314 = vmatpush1.bf16.msra.mxu1 %v4561_v24  ;;  %v4180_v23 = vcombine.high %v188_v18, %v196_v19  ;;  %v4182_v24 = vcombine.high %v189_v59, %v197_v20  ;;  %v301_v18 = vld [vmem:[#allocation5 + $0x698] sm:$0xff]  ;;  %v4277_v20 = vcombine.low %v285_v8, %v293_v10 }
  0xb3   :  { %3233 = vmatprep.subr.bf16.mxu0 %v4576_v26  ;;  %3315 = vmatprep.subr.bf16.mxu1 %v4578_v27  ;;  %v204_v26 = vld [vmem:[#allocation5 + $0x390] sm:$0xff]  ;;  %v309_v19 = vld [vmem:[#allocation5 + $0x6d8] sm:$0xff] }
  0xb4   :  { %v212_v27 = vld [vmem:[#allocation5 + $0x3d0] sm:$0xff] }
  0xb5   :  { %v4195_v39 = vcombine.low %v204_v26, %v212_v27 }
  0xb6   :  { %3234 = vmatpush1.bf16.msra.mxu0 %v4575_v32  ;;  %3316 = vmatpush1.bf16.msra.mxu1 %v4577_v33  ;;  %v4196_v32 = vcombine.high %v204_v26, %v212_v27  ;;  %v4198_v33 = vcombine.high %v205_v28, %v213_v29  ;;  %v317_v26 = vld [vmem:[#allocation5 + $0x718] sm:$0xff]  ;;  %v4293_v29 = vcombine.low %v301_v18, %v309_v19 }
  0xb7   :  { %3326 = vmatprep.subr.bf16.mxu0 %v4084_v35  ;;  %3408 = vmatprep.subr.bf16.mxu1 %v4086_v36  ;;  %v220_v35 = vld [vmem:[#allocation5 + $0x410] sm:$0xff]  ;;  %v325_v27 = vld [vmem:[#allocation5 + $0x758] sm:$0xff] }
  0xb8   :  { %v228_v36 = vld [vmem:[#allocation5 + $0x450] sm:$0xff] }
  0xb9   :  { %3236 = vmatmul.mubr.bf16.vlgmr.msra.gmra.mrb[0].mxu0 %v4798_v38  ;;  %3318 = vmatmul.mubr.bf16.vlgmr.msra.gmra.mrb[0].mxu1 %v4798_v38  ;;  %v4211_v48 = vcombine.low %v220_v35, %v228_v36 }
  0xba   :  { %3327 = vmatpush1.bf16.msra.mxu0 %v4083_v41  ;;  %3409 = vmatpush1.bf16.msra.mxu1 %v4085_v42  ;;  %v4212_v41 = vcombine.high %v220_v35, %v228_v36  ;;  %v4214_v42 = vcombine.high %v221_v63, %v229_v37  ;;  %v333_v35 = vld [vmem:[#allocation5 + $0x798] sm:$0xff]  ;;  %v4309_v37 = vcombine.low %v317_v26, %v325_v27 }
  0xbb   :  { %3328 = vmatprep.subr.bf16.mxu0 %v4100_v43  ;;  %3410 = vmatprep.subr.bf16.mxu1 %v4102_v45  ;;  %v236_v43 = vld [vmem:[#allocation5 + $0x490] sm:$0xff]  ;;  %v341_v36 = vld [vmem:[#allocation5 + $0x7d8] sm:$0xff] }
  0xbc   :  { %3358 = vmatprep.mubr.bf16.mxu0 %v4775_v9  ;;  %3440 = vmatprep.mubr.bf16.mxu1 %v4775_v9  ;;  %v244_v45 = vld [vmem:[#allocation5 + $0x4d0] sm:$0xff] }
  0xbd   :  { %v4227_v56 = vcombine.low %v236_v43, %v244_v45 }
  0xbe   :  { %3329 = vmatpush1.bf16.msra.mxu0 %v4099_v16  ;;  %3411 = vmatpush1.bf16.msra.mxu1 %v4101_v50  ;;  %v4228_v16 = vcombine.high %v236_v43, %v244_v45  ;;  %v4230_v50 = vcombine.high %v237_v46, %v245_v47  ;;  %v349_v43 = vld [vmem:[#allocation5 + $0x818] sm:$0xff]  ;;  %v4325_v47 = vcombine.low %v333_v35, %v341_v36 }
  0xbf   :  { %3330 = vmatprep.subr.bf16.mxu0 %v4116_v51  ;;  %3412 = vmatprep.subr.bf16.mxu1 %v4118_v52  ;;  %v252_v51 = vld [vmem:[#allocation5 + $0x510] sm:$0xff]  ;;  %v357_v45 = vld [vmem:[#allocation5 + $0x858] sm:$0xff] }
  0xc0   :  { %v260_v52 = vld [vmem:[#allocation5 + $0x550] sm:$0xff] }
  0xc1   :  { %v4243_v2 = vcombine.low %v252_v51, %v260_v52 }
  0xc2   :  { %3331 = vmatpush1.bf16.msra.mxu0 %v4115_v58  ;;  %3413 = vmatpush1.bf16.msra.mxu1 %v4117_v60  ;;  %v4244_v58 = vcombine.high %v252_v51, %v260_v52  ;;  %v4246_v60 = vcombine.high %v253_v54, %v261_v55  ;;  %v365_v51 = vld [vmem:[#allocation5 + $0x898] sm:$0xff]  ;;  %v4341_v55 = vcombine.low %v349_v43, %v357_v45 }
  0xc3   :  { %3332 = vmatprep.subr.bf16.mxu0 %v4132_v61  ;;  %3414 = vmatprep.subr.bf16.mxu1 %v4134_v62  ;;  %v268_v61 = vld [vmem:[#allocation5 + $0x590] sm:$0xff]  ;;  %v373_v52 = vld [vmem:[#allocation5 + $0x8d8] sm:$0xff] }
  0xc4   :  { %v276_v62 = vld [vmem:[#allocation5 + $0x5d0] sm:$0xff] }
  0xc5   :  { %v4259_v11 = vcombine.low %v268_v61, %v276_v62 }
  0xc6   :  { %3333 = vmatpush1.bf16.msra.mxu0 %v4131_v4  ;;  %3415 = vmatpush1.bf16.msra.mxu1 %v4133_v5  ;;  %v4260_v4 = vcombine.high %v268_v61, %v276_v62  ;;  %v4262_v5 = vcombine.high %v269_v0, %v277_v1  ;;  %v381_v61 = vld [vmem:[#allocation5 + $0x918] sm:$0xff]  ;;  %v4357_v1 = vcombine.low %v365_v51, %v373_v52 }
  0xc7   :  { %3334 = vmatprep.subr.bf16.mxu0 %v4148_v6  ;;  %3416 = vmatprep.subr.bf16.mxu1 %v4150_v7  ;;  %v284_v6 = vld [vmem:[#allocation5 + $0x610] sm:$0xff]  ;;  %v389_v62 = vld [vmem:[#allocation5 + $0x958] sm:$0xff] }
  0xc8   :  { %v292_v7 = vld [vmem:[#allocation5 + $0x650] sm:$0xff] }
  0xc9   :  { %v4275_v59 = vcombine.low %v284_v6, %v292_v7 }
  0xca   :  { %3335 = vmatpush1.bf16.msra.mxu0 %v4147_v13  ;;  %3417 = vmatpush1.bf16.msra.mxu1 %v4149_v14  ;;  %v4276_v13 = vcombine.high %v284_v6, %v292_v7  ;;  %v4278_v14 = vcombine.high %v285_v8, %v293_v10  ;;  %v397_v6 = vld [vmem:[#allocation5 + $0x998] sm:$0xff]  ;;  %v4373_v10 = vcombine.low %v381_v61, %v389_v62 }
  0xcb   :  { %3336 = vmatprep.subr.bf16.mxu0 %v4164_v15  ;;  %3418 = vmatprep.subr.bf16.mxu1 %v4166_v17  ;;  %v300_v15 = vld [vmem:[#allocation5 + $0x690] sm:$0xff]  ;;  %v405_v7 = vld [vmem:[#allocation5 + $0x9d8] sm:$0xff] }
  0xcc   :  { %v308_v17 = vld [vmem:[#allocation5 + $0x6d0] sm:$0xff] }
  0xcd   :  { %v4291_v28 = vcombine.low %v300_v15, %v308_v17 }
  0xce   :  { %3337 = vmatpush1.bf16.msra.mxu0 %v4163_v21  ;;  %3419 = vmatpush1.bf16.msra.mxu1 %v4165_v22  ;;  %v4292_v21 = vcombine.high %v300_v15, %v308_v17  ;;  %v4294_v22 = vcombine.high %v301_v18, %v309_v19  ;;  %v413_v15 = vld [vmem:[#allocation5 + $0xa18] sm:$0xff]  ;;  %v4389_v19 = vcombine.low %v397_v6, %v405_v7 }
  0xcf   :  { %3338 = vmatprep.subr.bf16.mxu0 %v4180_v23  ;;  %3420 = vmatprep.subr.bf16.mxu1 %v4182_v24  ;;  %v316_v23 = vld [vmem:[#allocation5 + $0x710] sm:$0xff]  ;;  %v421_v17 = vld [vmem:[#allocation5 + $0xa58] sm:$0xff] }
  0xd0   :  { %v324_v24 = vld [vmem:[#allocation5 + $0x750] sm:$0xff] }
  0xd1   :  { %v4307_v63 = vcombine.low %v316_v23, %v324_v24 }
  0xd2   :  { %3339 = vmatpush1.bf16.msra.mxu0 %v4179_v30  ;;  %3421 = vmatpush1.bf16.msra.mxu1 %v4181_v31  ;;  %v4308_v30 = vcombine.high %v316_v23, %v324_v24  ;;  %v4310_v31 = vcombine.high %v317_v26, %v325_v27  ;;  %v429_v23 = vld [vmem:[#allocation5 + $0xa98] sm:$0xff]  ;;  %v4405_v27 = vcombine.low %v413_v15, %v421_v17 }
  0xd3   :  { %3340 = vmatprep.subr.bf16.mxu0 %v4196_v32  ;;  %3422 = vmatprep.subr.bf16.mxu1 %v4198_v33  ;;  %v332_v32 = vld [vmem:[#allocation5 + $0x790] sm:$0xff]  ;;  %v437_v24 = vld [vmem:[#allocation5 + $0xad8] sm:$0xff] }
  0xd4   :  { %v340_v33 = vld [vmem:[#allocation5 + $0x7d0] sm:$0xff] }
  0xd5   :  { %v4323_v46 = vcombine.low %v332_v32, %v340_v33 }
  0xd6   :  { %3341 = vmatpush1.bf16.msra.mxu0 %v4195_v39  ;;  %3423 = vmatpush1.bf16.msra.mxu1 %v4197_v40  ;;  %v4324_v39 = vcombine.high %v332_v32, %v340_v33  ;;  %v4326_v40 = vcombine.high %v333_v35, %v341_v36  ;;  %v445_v32 = vld [vmem:[#allocation5 + $0xb18] sm:$0xff]  ;;  %v4421_v36 = vcombine.low %v429_v23, %v437_v24 }
  0xd7   :  { %3342 = vmatprep.subr.bf16.mxu0 %v4212_v41  ;;  %3424 = vmatprep.subr.bf16.mxu1 %v4214_v42  ;;  %v348_v41 = vld [vmem:[#allocation5 + $0x810] sm:$0xff]  ;;  %v453_v33 = vld [vmem:[#allocation5 + $0xb58] sm:$0xff] }
  0xd8   :  { %v356_v42 = vld [vmem:[#allocation5 + $0x850] sm:$0xff] }
  0xd9   :  { %v4339_v54 = vcombine.low %v348_v41, %v356_v42 }
  0xda   :  { %3343 = vmatpush1.bf16.msra.mxu0 %v4211_v48  ;;  %3425 = vmatpush1.bf16.msra.mxu1 %v4213_v49  ;;  %v4340_v48 = vcombine.high %v348_v41, %v356_v42  ;;  %v4342_v49 = vcombine.high %v349_v43, %v357_v45  ;;  %v461_v41 = vld [vmem:[#allocation5 + $0xb98] sm:$0xff]  ;;  %v4437_v45 = vcombine.low %v445_v32, %v453_v33 }
  0xdb   :  { %3344 = vmatprep.subr.bf16.mxu0 %v4228_v16  ;;  %3426 = vmatprep.subr.bf16.mxu1 %v4230_v50  ;;  %v364_v16 = vld [vmem:[#allocation5 + $0x890] sm:$0xff]  ;;  %v469_v42 = vld [vmem:[#allocation5 + $0xbd8] sm:$0xff] }
  0xdc   :  { %v372_v50 = vld [vmem:[#allocation5 + $0x8d0] sm:$0xff] }
  0xdd   :  { %v4355_v0 = vcombine.low %v364_v16, %v372_v50 }
  0xde   :  { %3345 = vmatpush1.bf16.msra.mxu0 %v4227_v56  ;;  %3427 = vmatpush1.bf16.msra.mxu1 %v4229_v57  ;;  %v4356_v56 = vcombine.high %v364_v16, %v372_v50  ;;  %v4358_v57 = vcombine.high %v365_v51, %v373_v52  ;;  %v477_v16 = vld [vmem:[#allocation5 + $0xc18] sm:$0xff]  ;;  %v4453_v52 = vcombine.low %v461_v41, %v469_v42 }
  0xdf   :  { %3346 = vmatprep.subr.bf16.mxu0 %v4244_v58  ;;  %3428 = vmatprep.subr.bf16.mxu1 %v4246_v60  ;;  %v380_v58 = vld [vmem:[#allocation5 + $0x910] sm:$0xff]  ;;  %v485_v50 = vld [vmem:[#allocation5 + $0xc58] sm:$0xff] }
  0xe0   :  { %v388_v60 = vld [vmem:[#allocation5 + $0x950] sm:$0xff] }
  0xe1   :  { %v4371_v8 = vcombine.low %v380_v58, %v388_v60 }
  0xe2   :  { %3347 = vmatpush1.bf16.msra.mxu0 %v4243_v2  ;;  %3429 = vmatpush1.bf16.msra.mxu1 %v4245_v3  ;;  %v4372_v2 = vcombine.high %v380_v58, %v388_v60  ;;  %v4374_v3 = vcombine.high %v381_v61, %v389_v62  ;;  %v493_v58 = vld [vmem:[#allocation5 + $0xc98] sm:$0xff]  ;;  %v4469_v62 = vcombine.low %v477_v16, %v485_v50 }
  0xe3   :  { %3348 = vmatprep.subr.bf16.mxu0 %v4260_v4  ;;  %3430 = vmatprep.subr.bf16.mxu1 %v4262_v5  ;;  %v396_v4 = vld [vmem:[#allocation5 + $0x990] sm:$0xff]  ;;  %v501_v60 = vld [vmem:[#allocation5 + $0xcd8] sm:$0xff] }
  0xe4   :  { %v404_v5 = vld [vmem:[#allocation5 + $0x9d0] sm:$0xff] }
  0xe5   :  { %v4387_v18 = vcombine.low %v396_v4, %v404_v5 }
  0xe6   :  { %3349 = vmatpush1.bf16.msra.mxu0 %v4259_v11  ;;  %3431 = vmatpush1.bf16.msra.mxu1 %v4261_v12  ;;  %v4388_v11 = vcombine.high %v396_v4, %v404_v5  ;;  %v4390_v12 = vcombine.high %v397_v6, %v405_v7  ;;  %v509_v4 = vld [vmem:[#allocation5 + $0xd18] sm:$0xff]  ;;  %v4485_v7 = vcombine.low %v493_v58, %v501_v60 }
  0xe7   :  { %3350 = vmatprep.subr.bf16.mxu0 %v4276_v13  ;;  %3432 = vmatprep.subr.bf16.mxu1 %v4278_v14  ;;  %v412_v13 = vld [vmem:[#allocation5 + $0xa10] sm:$0xff]  ;;  %v517_v5 = vld [vmem:[#allocation5 + $0xd58] sm:$0xff] }
  0xe8   :  { %v420_v14 = vld [vmem:[#allocation5 + $0xa50] sm:$0xff] }
  0xe9   :  { %v4403_v26 = vcombine.low %v412_v13, %v420_v14 }
  0xea   :  { %3351 = vmatpush1.bf16.msra.mxu0 %v4275_v59  ;;  %3433 = vmatpush1.bf16.msra.mxu1 %v4277_v20  ;;  %v4404_v59 = vcombine.high %v412_v13, %v420_v14  ;;  %v4406_v20 = vcombine.high %v413_v15, %v421_v17  ;;  %v525_v13 = vld [vmem:[#allocation5 + $0xd98] sm:$0xff]  ;;  %v4501_v17 = vcombine.low %v509_v4, %v517_v5 }
  0xeb   :  { %3352 = vmatprep.subr.bf16.mxu0 %v4292_v21  ;;  %3434 = vmatprep.subr.bf16.mxu1 %v4294_v22  ;;  %v428_v21 = vld [vmem:[#allocation5 + $0xa90] sm:$0xff]  ;;  %v533_v14 = vld [vmem:[#allocation5 + $0xdd8] sm:$0xff] }
  0xec   :  { %v436_v22 = vld [vmem:[#allocation5 + $0xad0] sm:$0xff] }
  0xed   :  { %v4419_v35 = vcombine.low %v428_v21, %v436_v22 }
  0xee   :  { %3353 = vmatpush1.bf16.msra.mxu0 %v4291_v28  ;;  %3435 = vmatpush1.bf16.msra.mxu1 %v4293_v29  ;;  %v4420_v28 = vcombine.high %v428_v21, %v436_v22  ;;  %v4422_v29 = vcombine.high %v429_v23, %v437_v24  ;;  %v541_v21 = vld [vmem:[#allocation5 + $0xe18] sm:$0xff]  ;;  %v4517_v24 = vcombine.low %v525_v13, %v533_v14 }
  0xef   :  { %3354 = vmatprep.subr.bf16.mxu0 %v4308_v30  ;;  %3436 = vmatprep.subr.bf16.mxu1 %v4310_v31  ;;  %v444_v30 = vld [vmem:[#allocation5 + $0xb10] sm:$0xff]  ;;  %v549_v22 = vld [vmem:[#allocation5 + $0xe58] sm:$0xff] }
  0xf0   :  { %v452_v31 = vld [vmem:[#allocation5 + $0xb50] sm:$0xff] }
  0xf1   :  { %v4435_v43 = vcombine.low %v444_v30, %v452_v31 }
  0xf2   :  { %3355 = vmatpush1.bf16.msra.mxu0 %v4307_v63  ;;  %3437 = vmatpush1.bf16.msra.mxu1 %v4309_v37  ;;  %v4436_v63 = vcombine.high %v444_v30, %v452_v31  ;;  %v4438_v37 = vcombine.high %v445_v32, %v453_v33  ;;  %v557_v30 = vld [vmem:[#allocation5 + $0xe98] sm:$0xff]  ;;  %v4533_v33 = vcombine.low %v541_v21, %v549_v22 }
  0xf3   :  { %3356 = vmatprep.subr.bf16.mxu0 %v4324_v39  ;;  %3438 = vmatprep.subr.bf16.mxu1 %v4326_v40  ;;  %v460_v39 = vld [vmem:[#allocation5 + $0xb90] sm:$0xff]  ;;  %v565_v31 = vld [vmem:[#allocation5 + $0xed8] sm:$0xff] }
  0xf4   :  { %v468_v40 = vld [vmem:[#allocation5 + $0xbd0] sm:$0xff] }
  0xf5   :  { %v4451_v51 = vcombine.low %v460_v39, %v468_v40 }
  0xf6   :  { %3357 = vmatpush1.bf16.msra.mxu0 %v4323_v46  ;;  %3439 = vmatpush1.bf16.msra.mxu1 %v4325_v47  ;;  %v4452_v46 = vcombine.high %v460_v39, %v468_v40  ;;  %v4454_v47 = vcombine.high %v461_v41, %v469_v42  ;;  %v573_v39 = vld [vmem:[#allocation5 + $0xf18] sm:$0xff]  ;;  %v4549_v42 = vcombine.low %v557_v30, %v565_v31 }
  0xf7   :  { %3367 = vmatprep.subr.bf16.mxu0 %v4340_v48  ;;  %3449 = vmatprep.subr.bf16.mxu1 %v4342_v49  ;;  %v476_v48 = vld [vmem:[#allocation5 + $0xc10] sm:$0xff]  ;;  %v581_v40 = vld [vmem:[#allocation5 + $0xf58] sm:$0xff] }
  0xf8   :  { %v484_v49 = vld [vmem:[#allocation5 + $0xc50] sm:$0xff] }
  0xf9   :  { %3359 = vmatmul.mubr.bf16.vlgmr.msra.gmra.mrb[4].mxu0 %v4788_v25  ;;  %3441 = vmatmul.mubr.bf16.vlgmr.msra.gmra.mrb[4].mxu1 %v4788_v25  ;;  %v4467_v61 = vcombine.low %v476_v48, %v484_v49 }
  0xfa   :  { %3368 = vmatpush1.bf16.msra.mxu0 %v4339_v54  ;;  %3450 = vmatpush1.bf16.msra.mxu1 %v4341_v55  ;;  %v4468_v54 = vcombine.high %v476_v48, %v484_v49  ;;  %v4470_v55 = vcombine.high %v477_v16, %v485_v50  ;;  %v589_v48 = vld [vmem:[#allocation5 + $0xf98] sm:$0xff]  ;;  %v4565_v50 = vcombine.low %v573_v39, %v581_v40 }
  0xfb   :  { %3369 = vmatprep.subr.bf16.mxu0 %v4356_v56  ;;  %3451 = vmatprep.subr.bf16.mxu1 %v4358_v57  ;;  %v492_v56 = vld [vmem:[#allocation5 + $0xc90] sm:$0xff]  ;;  %v597_v49 = vld [vmem:[#allocation5 + $0xfd8] sm:$0xff] }
  0xfc   :  { %3399 = vmatprep.mubr.bf16.mxu0 %v4790_v34  ;;  %3481 = vmatprep.mubr.bf16.mxu1 %v4790_v34  ;;  %v500_v57 = vld [vmem:[#allocation5 + $0xcd0] sm:$0xff] }
  0xfd   :  { %v4483_v6 = vcombine.low %v492_v56, %v500_v57 }
  0xfe   :  { %3370 = vmatpush1.bf16.msra.mxu0 %v4355_v0  ;;  %3452 = vmatpush1.bf16.msra.mxu1 %v4357_v1  ;;  %v4484_v0 = vcombine.high %v492_v56, %v500_v57  ;;  %v4486_v1 = vcombine.high %v493_v58, %v501_v60  ;;  %v95_v56 = vld [vmem:[#allocation5 + $0x28] sm:$0xff]  ;;  %v4581_v60 = vcombine.low %v589_v48, %v597_v49 }
  0xff   :  { %3371 = vmatprep.subr.bf16.mxu0 %v4372_v2  ;;  %3453 = vmatprep.subr.bf16.mxu1 %v4374_v3  ;;  %v508_v2 = vld [vmem:[#allocation5 + $0xd10] sm:$0xff]  ;;  %v103_v57 = vld [vmem:[#allocation5 + $0x68] sm:$0xff] }
 0x100   :  { %v516_v3 = vld [vmem:[#allocation5 + $0xd50] sm:$0xff] }
 0x101   :  { %v4499_v15 = vcombine.low %v508_v2, %v516_v3 }
 0x102   :  { %3372 = vmatpush1.bf16.msra.mxu0 %v4371_v8  ;;  %3454 = vmatpush1.bf16.msra.mxu1 %v4373_v10  ;;  %v4500_v8 = vcombine.high %v508_v2, %v516_v3  ;;  %v4502_v10 = vcombine.high %v509_v4, %v517_v5  ;;  %v111_v2 = vld [vmem:[#allocation5 + $0xa8] sm:$0xff]  ;;  %v4089_v5 = vcombine.low %v95_v56, %v103_v57 }
 0x103   :  { %3373 = vmatprep.subr.bf16.mxu0 %v4388_v11  ;;  %3455 = vmatprep.subr.bf16.mxu1 %v4390_v12  ;;  %v524_v11 = vld [vmem:[#allocation5 + $0xd90] sm:$0xff]  ;;  %v119_v3 = vld [vmem:[#allocation5 + $0xe8] sm:$0xff] }
 0x104   :  { %v532_v12 = vld [vmem:[#allocation5 + $0xdd0] sm:$0xff] }
 0x105   :  { %v4515_v23 = vcombine.low %v524_v11, %v532_v12 }
 0x106   :  { %3374 = vmatpush1.bf16.msra.mxu0 %v4387_v18  ;;  %3456 = vmatpush1.bf16.msra.mxu1 %v4389_v19  ;;  %v4516_v18 = vcombine.high %v524_v11, %v532_v12  ;;  %v4518_v19 = vcombine.high %v525_v13, %v533_v14  ;;  %v127_v11 = vld [vmem:[#allocation5 + $0x128] sm:$0xff]  ;;  %v4105_v14 = vcombine.low %v111_v2, %v119_v3 }
 0x107   :  { %3375 = vmatprep.subr.bf16.mxu0 %v4404_v59  ;;  %3457 = vmatprep.subr.bf16.mxu1 %v4406_v20  ;;  %v540_v59 = vld [vmem:[#allocation5 + $0xe10] sm:$0xff]  ;;  %v135_v12 = vld [vmem:[#allocation5 + $0x168] sm:$0xff] }
 0x108   :  { %v548_v20 = vld [vmem:[#allocation5 + $0xe50] sm:$0xff] }
 0x109   :  { %v4531_v32 = vcombine.low %v540_v59, %v548_v20 }
 0x10a   :  { %3376 = vmatpush1.bf16.msra.mxu0 %v4403_v26  ;;  %3458 = vmatpush1.bf16.msra.mxu1 %v4405_v27  ;;  %v4532_v26 = vcombine.high %v540_v59, %v548_v20  ;;  %v4534_v27 = vcombine.high %v541_v21, %v549_v22  ;;  %v143_v59 = vld [vmem:[#allocation5 + $0x1a8] sm:$0xff]  ;;  %v4121_v22 = vcombine.low %v127_v11, %v135_v12 }
 0x10b   :  { %3377 = vmatprep.subr.bf16.mxu0 %v4420_v28  ;;  %3459 = vmatprep.subr.bf16.mxu1 %v4422_v29  ;;  %v556_v28 = vld [vmem:[#allocation5 + $0xe90] sm:$0xff]  ;;  %v151_v20 = vld [vmem:[#allocation5 + $0x1e8] sm:$0xff] }
 0x10c   :  { %v564_v29 = vld [vmem:[#allocation5 + $0xed0] sm:$0xff] }
 0x10d   :  { %v4547_v41 = vcombine.low %v556_v28, %v564_v29 }
 0x10e   :  { %3378 = vmatpush1.bf16.msra.mxu0 %v4419_v35  ;;  %3460 = vmatpush1.bf16.msra.mxu1 %v4421_v36  ;;  %v4548_v35 = vcombine.high %v556_v28, %v564_v29  ;;  %v4550_v36 = vcombine.high %v557_v30, %v565_v31  ;;  %v159_v28 = vld [vmem:[#allocation5 + $0x228] sm:$0xff]  ;;  %v4137_v31 = vcombine.low %v143_v59, %v151_v20 }
 0x10f   :  { %3379 = vmatprep.subr.bf16.mxu0 %v4436_v63  ;;  %3461 = vmatprep.subr.bf16.mxu1 %v4438_v37  ;;  %v572_v63 = vld [vmem:[#allocation5 + $0xf10] sm:$0xff]  ;;  %v167_v29 = vld [vmem:[#allocation5 + $0x268] sm:$0xff] }
 0x110   :  { %v580_v37 = vld [vmem:[#allocation5 + $0xf50] sm:$0xff] }
 0x111   :  { %v4563_v16 = vcombine.low %v572_v63, %v580_v37 }
 0x112   :  { %3380 = vmatpush1.bf16.msra.mxu0 %v4435_v43  ;;  %3462 = vmatpush1.bf16.msra.mxu1 %v4437_v45  ;;  %v4564_v43 = vcombine.high %v572_v63, %v580_v37  ;;  %v4566_v45 = vcombine.high %v573_v39, %v581_v40  ;;  %v175_v63 = vld [vmem:[#allocation5 + $0x2a8] sm:$0xff]  ;;  %v4153_v40 = vcombine.low %v159_v28, %v167_v29 }
 0x113   :  { %3381 = vmatprep.subr.bf16.mxu0 %v4452_v46  ;;  %3463 = vmatprep.subr.bf16.mxu1 %v4454_v47  ;;  %v588_v46 = vld [vmem:[#allocation5 + $0xf90] sm:$0xff]  ;;  %v183_v37 = vld [vmem:[#allocation5 + $0x2e8] sm:$0xff] }
 0x114   :  { %v596_v47 = vld [vmem:[#allocation5 + $0xfd0] sm:$0xff] }
 0x115   :  { %v4579_v58 = vcombine.low %v588_v46, %v596_v47 }
 0x116   :  { %3382 = vmatpush1.bf16.msra.mxu0 %v4451_v51  ;;  %3464 = vmatpush1.bf16.msra.mxu1 %v4453_v52  ;;  %v4580_v51 = vcombine.high %v588_v46, %v596_v47  ;;  %v4582_v52 = vcombine.high %v589_v48, %v597_v49  ;;  %v191_v46 = vld [vmem:[#allocation5 + $0x328] sm:$0xff]  ;;  %v4169_v49 = vcombine.low %v175_v63, %v183_v37 }
 0x117   :  { %3383 = vmatprep.subr.bf16.mxu0 %v4468_v54  ;;  %3465 = vmatprep.subr.bf16.mxu1 %v4470_v55  ;;  %v94_v54 = vld [vmem:[#allocation5 + $0x20] sm:$0xff]  ;;  %v199_v47 = vld [vmem:[#allocation5 + $0x368] sm:$0xff] }
 0x118   :  { %v102_v55 = vld [vmem:[#allocation5 + $0x60] sm:$0xff] }
 0x119   :  { %v4087_v4 = vcombine.low %v94_v54, %v102_v55 }
 0x11a   :  { %3384 = vmatpush1.bf16.msra.mxu0 %v4467_v61  ;;  %3466 = vmatpush1.bf16.msra.mxu1 %v4469_v62  ;;  %v4088_v61 = vcombine.high %v94_v54, %v102_v55  ;;  %v4090_v62 = vcombine.high %v95_v56, %v103_v57  ;;  %v207_v54 = vld [vmem:[#allocation5 + $0x3a8] sm:$0xff]  ;;  %v4185_v57 = vcombine.low %v191_v46, %v199_v47 }
 0x11b   :  { %3385 = vmatprep.subr.bf16.mxu0 %v4484_v0  ;;  %3467 = vmatprep.subr.bf16.mxu1 %v4486_v1  ;;  %v110_v0 = vld [vmem:[#allocation5 + $0xa0] sm:$0xff]  ;;  %v215_v55 = vld [vmem:[#allocation5 + $0x3e8] sm:$0xff] }
 0x11c   :  { %v118_v1 = vld [vmem:[#allocation5 + $0xe0] sm:$0xff] }
 0x11d   :  { %v4103_v13 = vcombine.low %v110_v0, %v118_v1 }
 0x11e   :  { %3386 = vmatpush1.bf16.msra.mxu0 %v4483_v6  ;;  %3468 = vmatpush1.bf16.msra.mxu1 %v4485_v7  ;;  %v4104_v6 = vcombine.high %v110_v0, %v118_v1  ;;  %v4106_v7 = vcombine.high %v111_v2, %v119_v3  ;;  %v223_v0 = vld [vmem:[#allocation5 + $0x428] sm:$0xff]  ;;  %v4201_v3 = vcombine.low %v207_v54, %v215_v55 }
 0x11f   :  { %3387 = vmatprep.subr.bf16.mxu0 %v4500_v8  ;;  %3469 = vmatprep.subr.bf16.mxu1 %v4502_v10  ;;  %v126_v8 = vld [vmem:[#allocation5 + $0x120] sm:$0xff]  ;;  %v231_v1 = vld [vmem:[#allocation5 + $0x468] sm:$0xff] }
 0x120   :  { %v134_v10 = vld [vmem:[#allocation5 + $0x160] sm:$0xff] }
 0x121   :  { %v4119_v21 = vcombine.low %v126_v8, %v134_v10 }
 0x122   :  { %3388 = vmatpush1.bf16.msra.mxu0 %v4499_v15  ;;  %3470 = vmatpush1.bf16.msra.mxu1 %v4501_v17  ;;  %v4120_v15 = vcombine.high %v126_v8, %v134_v10  ;;  %v4122_v17 = vcombine.high %v127_v11, %v135_v12  ;;  %v239_v8 = vld [vmem:[#allocation5 + $0x4a8] sm:$0xff]  ;;  %v4217_v12 = vcombine.low %v223_v0, %v231_v1 }
 0x123   :  { %3389 = vmatprep.subr.bf16.mxu0 %v4516_v18  ;;  %3471 = vmatprep.subr.bf16.mxu1 %v4518_v19  ;;  %v142_v18 = vld [vmem:[#allocation5 + $0x1a0] sm:$0xff]  ;;  %v247_v10 = vld [vmem:[#allocation5 + $0x4e8] sm:$0xff] }
 0x124   :  { %v150_v19 = vld [vmem:[#allocation5 + $0x1e0] sm:$0xff] }
 0x125   :  { %v4135_v30 = vcombine.low %v142_v18, %v150_v19 }
 0x126   :  { %3390 = vmatpush1.bf16.msra.mxu0 %v4515_v23  ;;  %3472 = vmatpush1.bf16.msra.mxu1 %v4517_v24  ;;  %v4136_v23 = vcombine.high %v142_v18, %v150_v19  ;;  %v4138_v24 = vcombine.high %v143_v59, %v151_v20  ;;  %v255_v18 = vld [vmem:[#allocation5 + $0x528] sm:$0xff]  ;;  %v4233_v20 = vcombine.low %v239_v8, %v247_v10 }
 0x127   :  { %3391 = vmatprep.subr.bf16.mxu0 %v4532_v26  ;;  %3473 = vmatprep.subr.bf16.mxu1 %v4534_v27  ;;  %v158_v26 = vld [vmem:[#allocation5 + $0x220] sm:$0xff]  ;;  %v263_v19 = vld [vmem:[#allocation5 + $0x568] sm:$0xff] }
 0x128   :  { %v166_v27 = vld [vmem:[#allocation5 + $0x260] sm:$0xff] }
 0x129   :  { %v4151_v39 = vcombine.low %v158_v26, %v166_v27 }
 0x12a   :  { %3392 = vmatpush1.bf16.msra.mxu0 %v4531_v32  ;;  %3474 = vmatpush1.bf16.msra.mxu1 %v4533_v33  ;;  %v4152_v32 = vcombine.high %v158_v26, %v166_v27  ;;  %v4154_v33 = vcombine.high %v159_v28, %v167_v29  ;;  %v271_v26 = vld [vmem:[#allocation5 + $0x5a8] sm:$0xff]  ;;  %v4249_v29 = vcombine.low %v255_v18, %v263_v19 }
 0x12b   :  { %3393 = vmatprep.subr.bf16.mxu0 %v4548_v35  ;;  %3475 = vmatprep.subr.bf16.mxu1 %v4550_v36  ;;  %v174_v35 = vld [vmem:[#allocation5 + $0x2a0] sm:$0xff]  ;;  %v279_v27 = vld [vmem:[#allocation5 + $0x5e8] sm:$0xff] }
 0x12c   :  { %v182_v36 = vld [vmem:[#allocation5 + $0x2e0] sm:$0xff] }
 0x12d   :  { %v4167_v48 = vcombine.low %v174_v35, %v182_v36 }
 0x12e   :  { %3394 = vmatpush1.bf16.msra.mxu0 %v4547_v41  ;;  %3476 = vmatpush1.bf16.msra.mxu1 %v4549_v42  ;;  %v4168_v41 = vcombine.high %v174_v35, %v182_v36  ;;  %v4170_v42 = vcombine.high %v175_v63, %v183_v37  ;;  %v287_v35 = vld [vmem:[#allocation5 + $0x628] sm:$0xff]  ;;  %v4265_v37 = vcombine.low %v271_v26, %v279_v27 }
 0x12f   :  { %3395 = vmatprep.subr.bf16.mxu0 %v4564_v43  ;;  %3477 = vmatprep.subr.bf16.mxu1 %v4566_v45  ;;  %v190_v43 = vld [vmem:[#allocation5 + $0x320] sm:$0xff]  ;;  %v295_v36 = vld [vmem:[#allocation5 + $0x668] sm:$0xff] }
 0x130   :  { %v198_v45 = vld [vmem:[#allocation5 + $0x360] sm:$0xff] }
 0x131   :  { %v4183_v56 = vcombine.low %v190_v43, %v198_v45 }
 0x132   :  { %3396 = vmatpush1.bf16.msra.mxu0 %v4563_v16  ;;  %3478 = vmatpush1.bf16.msra.mxu1 %v4565_v50  ;;  %v4184_v16 = vcombine.high %v190_v43, %v198_v45  ;;  %v4186_v50 = vcombine.high %v191_v46, %v199_v47  ;;  %v303_v43 = vld [vmem:[#allocation5 + $0x6a8] sm:$0xff]  ;;  %v4281_v47 = vcombine.low %v287_v35, %v295_v36 }
 0x133   :  { %3397 = vmatprep.subr.bf16.mxu0 %v4580_v51  ;;  %3479 = vmatprep.subr.bf16.mxu1 %v4582_v52  ;;  %v206_v51 = vld [vmem:[#allocation5 + $0x3a0] sm:$0xff]  ;;  %v311_v45 = vld [vmem:[#allocation5 + $0x6e8] sm:$0xff] }
 0x134   :  { %v214_v52 = vld [vmem:[#allocation5 + $0x3e0] sm:$0xff] }
 0x135   :  { %v4199_v2 = vcombine.low %v206_v51, %v214_v52 }
 0x136   :  { %3398 = vmatpush1.bf16.msra.mxu0 %v4579_v58  ;;  %3480 = vmatpush1.bf16.msra.mxu1 %v4581_v60  ;;  %v4200_v58 = vcombine.high %v206_v51, %v214_v52  ;;  %v4202_v60 = vcombine.high %v207_v54, %v215_v55  ;;  %v319_v51 = vld [vmem:[#allocation5 + $0x728] sm:$0xff]  ;;  %v4297_v55 = vcombine.low %v303_v43, %v311_v45 }
 0x137   :  { %3490 = vmatprep.subr.bf16.mxu0 %v4088_v61  ;;  %3572 = vmatprep.subr.bf16.mxu1 %v4090_v62  ;;  %v222_v61 = vld [vmem:[#allocation5 + $0x420] sm:$0xff]  ;;  %v327_v52 = vld [vmem:[#allocation5 + $0x768] sm:$0xff] }
 0x138   :  { %v230_v62 = vld [vmem:[#allocation5 + $0x460] sm:$0xff] }
 0x139   :  { %3400 = vmatmul.mubr.bf16.vlgmr.msra.gmra.mrb[4].mxu0 %v4798_v38  ;;  %3482 = vmatmul.mubr.bf16.vlgmr.msra.gmra.mrb[4].mxu1 %v4798_v38  ;;  %v4215_v11 = vcombine.low %v222_v61, %v230_v62 }
 0x13a   :  { %3491 = vmatpush1.bf16.msra.mxu0 %v4087_v4  ;;  %3573 = vmatpush1.bf16.msra.mxu1 %v4089_v5  ;;  %v4216_v4 = vcombine.high %v222_v61, %v230_v62  ;;  %v4218_v5 = vcombine.high %v223_v0, %v231_v1  ;;  %v335_v61 = vld [vmem:[#allocation5 + $0x7a8] sm:$0xff]  ;;  %v4313_v1 = vcombine.low %v319_v51, %v327_v52 }
 0x13b   :  { %3492 = vmatprep.subr.bf16.mxu0 %v4104_v6  ;;  %3574 = vmatprep.subr.bf16.mxu1 %v4106_v7  ;;  %v238_v6 = vld [vmem:[#allocation5 + $0x4a0] sm:$0xff]  ;;  %v343_v62 = vld [vmem:[#allocation5 + $0x7e8] sm:$0xff] }
 0x13c   :  { %3522 = vmatprep.mubr.bf16.mxu0 %v4775_v9  ;;  %3604 = vmatprep.mubr.bf16.mxu1 %v4775_v9  ;;  %v246_v7 = vld [vmem:[#allocation5 + $0x4e0] sm:$0xff] }
 0x13d   :  { %v4231_v59 = vcombine.low %v238_v6, %v246_v7 }
 0x13e   :  { %3493 = vmatpush1.bf16.msra.mxu0 %v4103_v13  ;;  %3575 = vmatpush1.bf16.msra.mxu1 %v4105_v14  ;;  %v4232_v13 = vcombine.high %v238_v6, %v246_v7  ;;  %v4234_v14 = vcombine.high %v239_v8, %v247_v10  ;;  %v351_v6 = vld [vmem:[#allocation5 + $0x828] sm:$0xff]  ;;  %v4329_v10 = vcombine.low %v335_v61, %v343_v62 }
 0x13f   :  { %3494 = vmatprep.subr.bf16.mxu0 %v4120_v15  ;;  %3576 = vmatprep.subr.bf16.mxu1 %v4122_v17  ;;  %v254_v15 = vld [vmem:[#allocation5 + $0x520] sm:$0xff]  ;;  %v359_v7 = vld [vmem:[#allocation5 + $0x868] sm:$0xff] }
 0x140   :  { %v262_v17 = vld [vmem:[#allocation5 + $0x560] sm:$0xff] }
 0x141   :  { %v4247_v28 = vcombine.low %v254_v15, %v262_v17 }
 0x142   :  { %3495 = vmatpush1.bf16.msra.mxu0 %v4119_v21  ;;  %3577 = vmatpush1.bf16.msra.mxu1 %v4121_v22  ;;  %v4248_v21 = vcombine.high %v254_v15, %v262_v17  ;;  %v4250_v22 = vcombine.high %v255_v18, %v263_v19  ;;  %v367_v15 = vld [vmem:[#allocation5 + $0x8a8] sm:$0xff]  ;;  %v4345_v19 = vcombine.low %v351_v6, %v359_v7 }
 0x143   :  { %3496 = vmatprep.subr.bf16.mxu0 %v4136_v23  ;;  %3578 = vmatprep.subr.bf16.mxu1 %v4138_v24  ;;  %v270_v23 = vld [vmem:[#allocation5 + $0x5a0] sm:$0xff]  ;;  %v375_v17 = vld [vmem:[#allocation5 + $0x8e8] sm:$0xff] }
 0x144   :  { %v278_v24 = vld [vmem:[#allocation5 + $0x5e0] sm:$0xff] }
 0x145   :  { %v4263_v63 = vcombine.low %v270_v23, %v278_v24 }
 0x146   :  { %3497 = vmatpush1.bf16.msra.mxu0 %v4135_v30  ;;  %3579 = vmatpush1.bf16.msra.mxu1 %v4137_v31  ;;  %v4264_v30 = vcombine.high %v270_v23, %v278_v24  ;;  %v4266_v31 = vcombine.high %v271_v26, %v279_v27  ;;  %v383_v23 = vld [vmem:[#allocation5 + $0x928] sm:$0xff]  ;;  %v4361_v27 = vcombine.low %v367_v15, %v375_v17 }
 0x147   :  { %3498 = vmatprep.subr.bf16.mxu0 %v4152_v32  ;;  %3580 = vmatprep.subr.bf16.mxu1 %v4154_v33  ;;  %v286_v32 = vld [vmem:[#allocation5 + $0x620] sm:$0xff]  ;;  %v391_v24 = vld [vmem:[#allocation5 + $0x968] sm:$0xff] }
 0x148   :  { %v294_v33 = vld [vmem:[#allocation5 + $0x660] sm:$0xff] }
 0x149   :  { %v4279_v46 = vcombine.low %v286_v32, %v294_v33 }
 0x14a   :  { %3499 = vmatpush1.bf16.msra.mxu0 %v4151_v39  ;;  %3581 = vmatpush1.bf16.msra.mxu1 %v4153_v40  ;;  %v4280_v39 = vcombine.high %v286_v32, %v294_v33  ;;  %v4282_v40 = vcombine.high %v287_v35, %v295_v36  ;;  %v399_v32 = vld [vmem:[#allocation5 + $0x9a8] sm:$0xff]  ;;  %v4377_v36 = vcombine.low %v383_v23, %v391_v24 }
 0x14b   :  { %3500 = vmatprep.subr.bf16.mxu0 %v4168_v41  ;;  %3582 = vmatprep.subr.bf16.mxu1 %v4170_v42  ;;  %v302_v41 = vld [vmem:[#allocation5 + $0x6a0] sm:$0xff]  ;;  %v407_v33 = vld [vmem:[#allocation5 + $0x9e8] sm:$0xff] }
 0x14c   :  { %v310_v42 = vld [vmem:[#allocation5 + $0x6e0] sm:$0xff] }
 0x14d   :  { %v4295_v54 = vcombine.low %v302_v41, %v310_v42 }
 0x14e   :  { %3501 = vmatpush1.bf16.msra.mxu0 %v4167_v48  ;;  %3583 = vmatpush1.bf16.msra.mxu1 %v4169_v49  ;;  %v4296_v48 = vcombine.high %v302_v41, %v310_v42  ;;  %v4298_v49 = vcombine.high %v303_v43, %v311_v45  ;;  %v415_v41 = vld [vmem:[#allocation5 + $0xa28] sm:$0xff]  ;;  %v3927_v43 = vsub.s32 0, %v4762_v44  ;;  %v3931_v45 = vsub.s32 1, %v4762_v44 }
 0x14f   :  { %3502 = vmatprep.subr.bf16.mxu0 %v4184_v16  ;;  %3584 = vmatprep.subr.bf16.mxu1 %v4186_v50  ;;  %v318_v16 = vld [vmem:[#allocation5 + $0x720] sm:$0xff]  ;;  %v423_v42 = vld [vmem:[#allocation5 + $0xa68] sm:$0xff] }
 0x150   :  { %v326_v50 = vld [vmem:[#allocation5 + $0x760] sm:$0xff] }
 0x151   :  { %v4311_v0 = vcombine.low %v318_v16, %v326_v50 }
 0x152   :  { %3503 = vmatpush1.bf16.msra.mxu0 %v4183_v56  ;;  %3585 = vmatpush1.bf16.msra.mxu1 %v4185_v57  ;;  %v4312_v56 = vcombine.high %v318_v16, %v326_v50  ;;  %v4314_v57 = vcombine.high %v319_v51, %v327_v52  ;;  %v4393_v16 = vcombine.low %v399_v32, %v407_v33  ;;  %v430_v52 = vld [vmem:[#allocation5 + $0xaa0] sm:$0xff] }
 0x153   :  { %3504 = vmatprep.subr.bf16.mxu0 %v4200_v58  ;;  %3586 = vmatprep.subr.bf16.mxu1 %v4202_v60  ;;  %v334_v58 = vld [vmem:[#allocation5 + $0x7a0] sm:$0xff]  ;;  %v4410_v51 = vcombine.high %v415_v41, %v423_v42 }
 0x154   :  { %v342_v60 = vld [vmem:[#allocation5 + $0x7e0] sm:$0xff] }
 0x155   :  { %v4327_v8 = vcombine.low %v334_v58, %v342_v60 }
 0x156   :  { %3505 = vmatpush1.bf16.msra.mxu0 %v4199_v2  ;;  %3587 = vmatpush1.bf16.msra.mxu1 %v4201_v3  ;;  %v4328_v2 = vcombine.high %v334_v58, %v342_v60  ;;  %v4330_v3 = vcombine.high %v335_v61, %v343_v62  ;;  %v431_v60 = vld [vmem:[#allocation5 + $0xaa8] sm:$0xff] }
 0x157   :  { %3506 = vmatprep.subr.bf16.mxu0 %v4216_v4  ;;  %3588 = vmatprep.subr.bf16.mxu1 %v4218_v5  ;;  %v350_v4 = vld [vmem:[#allocation5 + $0x820] sm:$0xff]  ;;  %v439_v61 = vld [vmem:[#allocation5 + $0xae8] sm:$0xff] }
 0x158   :  { %v358_v5 = vld [vmem:[#allocation5 + $0x860] sm:$0xff] }
 0x159   :  { %v4343_v18 = vcombine.low %v350_v4, %v358_v5 }
 0x15a   :  { %3507 = vmatpush1.bf16.msra.mxu0 %v4215_v11  ;;  %3589 = vmatpush1.bf16.msra.mxu1 %v4217_v12  ;;  %v4344_v11 = vcombine.high %v350_v4, %v358_v5  ;;  %v4346_v12 = vcombine.high %v351_v6, %v359_v7  ;;  %v454_v4 = vld [vmem:[#allocation5 + $0xb60] sm:$0xff]  ;;  %v447_v7 = vld [vmem:[#allocation5 + $0xb28] sm:$0xff] }
 0x15b   :  { %3508 = vmatprep.subr.bf16.mxu0 %v4232_v13  ;;  %3590 = vmatprep.subr.bf16.mxu1 %v4234_v14  ;;  %v366_v13 = vld [vmem:[#allocation5 + $0x8a0] sm:$0xff] }
 0x15c   :  { %v374_v14 = vld [vmem:[#allocation5 + $0x8e0] sm:$0xff] }
 0x15d   :  { %v4359_v26 = vcombine.low %v366_v13, %v374_v14 }
 0x15e   :  { %3509 = vmatpush1.bf16.msra.mxu0 %v4231_v59  ;;  %3591 = vmatpush1.bf16.msra.mxu1 %v4233_v20  ;;  %v4360_v59 = vcombine.high %v366_v13, %v374_v14  ;;  %v4362_v20 = vcombine.high %v367_v15, %v375_v17  ;;  %v462_v15 = vld [vmem:[#allocation5 + $0xba0] sm:$0xff] }
 0x15f   :  { %3510 = vmatprep.subr.bf16.mxu0 %v4248_v21  ;;  %3592 = vmatprep.subr.bf16.mxu1 %v4250_v22  ;;  %v382_v21 = vld [vmem:[#allocation5 + $0x920] sm:$0xff] }
 0x160   :  { %v390_v22 = vld [vmem:[#allocation5 + $0x960] sm:$0xff] }
 0x161   :  { %v4375_v35 = vcombine.low %v382_v21, %v390_v22  ;;  %v470_v17 = vld [vmem:[#allocation5 + $0xbe0] sm:$0xff] }
 0x162   :  { %3511 = vmatpush1.bf16.msra.mxu0 %v4247_v28  ;;  %3593 = vmatpush1.bf16.msra.mxu1 %v4249_v29  ;;  %v4376_v28 = vcombine.high %v382_v21, %v390_v22  ;;  %v4378_v29 = vcombine.high %v383_v23, %v391_v24  ;;  %v463_v21 = vld [vmem:[#allocation5 + $0xba8] sm:$0xff] }
 0x163   :  { %3512 = vmatprep.subr.bf16.mxu0 %v4264_v30  ;;  %3594 = vmatprep.subr.bf16.mxu1 %v4266_v31  ;;  %v398_v30 = vld [vmem:[#allocation5 + $0x9a0] sm:$0xff]  ;;  %v471_v22 = vld [vmem:[#allocation5 + $0xbe8] sm:$0xff] }
 0x164   :  { %v406_v31 = vld [vmem:[#allocation5 + $0x9e0] sm:$0xff] }
 0x166   :  { %3513 = vmatpush1.bf16.msra.mxu0 %v4263_v63  ;;  %3595 = vmatpush1.bf16.msra.mxu1 %v4265_v37  ;;  %v4392_v63 = vcombine.high %v398_v30, %v406_v31  ;;  %v4394_v37 = vcombine.high %v399_v32, %v407_v33  ;;  %v4456_v32 = vcombine.high %v462_v15, %v470_v17 }
 0x167   :  { %3514 = vmatprep.subr.bf16.mxu0 %v4280_v39  ;;  %3596 = vmatprep.subr.bf16.mxu1 %v4282_v40  ;;  %v414_v39 = vld [vmem:[#allocation5 + $0xa20] sm:$0xff] }
 0x168   :  { %v422_v40 = vld [vmem:[#allocation5 + $0xa60] sm:$0xff] }
 0x169   :  { %v4408_v50 = vcombine.high %v414_v39, %v422_v40  ;;  %v4407_v62 = vcombine.low %v414_v39, %v422_v40 }
 0x16a   :  { %3515 = vmatpush1.bf16.msra.mxu0 %v4279_v46  ;;  %3597 = vmatpush1.bf16.msra.mxu1 %v4281_v47  ;;  %v3935_v46 = vsub.s32 2, %v4762_v44  ;;  %v3939_v47 = vsub.s32 3, %v4762_v44 }
 0x16b   :  { %3516 = vmatprep.subr.bf16.mxu0 %v4296_v48  ;;  %3598 = vmatprep.subr.bf16.mxu1 %v4298_v49  ;;  %v4391_v48 = vcombine.low %v398_v30, %v406_v31  ;;  %v4820_v49 = vld [vmem:[#allocation7] sm:$0xff] }
 0x16c   :  { %v3940_v58 = vrot.slane %v4820_v49, %v3939_v47 }
 0x16e   :  { %3517 = vmatpush1.bf16.msra.mxu0 %v4295_v54  ;;  %3599 = vmatpush1.bf16.msra.mxu1 %v4297_v55  ;;  %v438_v54 = vld [vmem:[#allocation5 + $0xae0] sm:$0xff]  ;;  %v3928_v55 = vrot.slane %v4820_v49, %v3927_v43 }
 0x16f   :  { %3518 = vmatprep.subr.bf16.mxu0 %v4312_v56  ;;  %3600 = vmatprep.subr.bf16.mxu1 %v4314_v57  ;;  %v3932_v56 = vrot.slane %v4820_v49, %v3931_v45  ;;  %v3936_v57 = vrot.slane %v4820_v49, %v3935_v46 }
 0x171   :  { %v3989_v5 = vcombine.low %v3928_v55, %v3932_v56  ;;  %v3990_v6 = vcombine.low %v3936_v57, %v3940_v58  ;;  %v502_v55 = vld [vmem:[#allocation5 + $0xce0] sm:$0xff]  ;;  %v495_v57 = vld [vmem:[#allocation5 + $0xca8] sm:$0xff] }
 0x172   :  { %3519 = vmatpush1.bf16.msra.mxu0 %v4311_v0  ;;  %3601 = vmatpush1.bf16.msra.mxu1 %v4313_v1  ;;  %v4409_v0 = vcombine.low %v415_v41, %v423_v42  ;;  %v4424_v1 = vcombine.high %v430_v52, %v438_v54  ;;  %v479_v41 = vld [vmem:[#allocation5 + $0xc28] sm:$0xff] }
 0x173   :  { %3520 = vmatprep.subr.bf16.mxu0 %v4328_v2  ;;  %3602 = vmatprep.subr.bf16.mxu1 %v4330_v3  ;;  %v4426_v2 = vcombine.high %v431_v60, %v439_v61  ;;  %v446_v3 = vld [vmem:[#allocation5 + $0xb20] sm:$0xff]  ;;  %v487_v42 = vld [vmem:[#allocation5 + $0xc68] sm:$0xff] }
 0x174   :  { %v503_v58 = vld [vmem:[#allocation5 + $0xce8] sm:$0xff] }
 0x176   :  { %3521 = vmatpush1.bf16.msra.mxu0 %v4327_v8  ;;  %3603 = vmatpush1.bf16.msra.mxu1 %v4329_v10  ;;  %v455_v8 = vld [vmem:[#allocation5 + $0xb68] sm:$0xff]  ;;  %v4423_v10 = vcombine.low %v430_v52, %v438_v54  ;;  %v4474_v52 = vcombine.high %v479_v41, %v487_v42  ;;  %v494_v54 = vld [vmem:[#allocation5 + $0xca0] sm:$0xff] }
 0x177   :  { %3531 = vmatprep.subr.bf16.mxu0 %v4344_v11  ;;  %3613 = vmatprep.subr.bf16.mxu1 %v4346_v12  ;;  %v4425_v11 = vcombine.low %v431_v60, %v439_v61  ;;  %v4440_v12 = vcombine.high %v446_v3, %v454_v4  ;;  %v4442_v14 = vcombine.high %v447_v7, %v455_v8 }
 0x178   :  { %v4441_v31 = vcombine.low %v447_v7, %v455_v8  ;;  %v4489_v7 = vcombine.low %v495_v57, %v503_v58 }
 0x179   :  { %3523 = vmatmul.mubr.bf16.vlgmr.msra.gmra.mrb[8].mxu0 %v4788_v25  ;;  %3605 = vmatmul.mubr.bf16.vlgmr.msra.gmra.mrb[8].mxu1 %v4788_v25 }
 0x17a   :  { %3532 = vmatpush1.bf16.msra.mxu0 %v4343_v18  ;;  %3614 = vmatpush1.bf16.msra.mxu1 %v4345_v19 }
 0x17b   :  { %3533 = vmatprep.subr.bf16.mxu0 %v4360_v59  ;;  %3615 = vmatprep.subr.bf16.mxu1 %v4362_v20  ;;  %v3997_v59 = vrot.slane %v3989_v5, %v4765_v53  ;;  %v4004_v20 = vrot.slane %v3990_v6, %v4765_v53  ;;  %v519_v5 = vld [vmem:[#allocation5 + $0xd68] sm:$0xff]  ;;  %v4487_v6 = vcombine.low %v494_v54, %v502_v55 }
 0x17c   :  { %3563 = vmatprep.mubr.bf16.mxu0 %v4790_v34  ;;  %3645 = vmatprep.mubr.bf16.mxu1 %v4790_v34 }
 0x17d   :  { %v4005_v40 = vcombine.low %v3997_v59, %v4004_v20  ;;  %v542_v59 = vld [vmem:[#allocation5 + $0xe20] sm:$0xff] }
 0x17e   :  { %3534 = vmatpush1.bf16.msra.mxu0 %v4359_v26  ;;  %3616 = vmatpush1.bf16.msra.mxu1 %v4361_v27  ;;  %v4439_v27 = vcombine.low %v446_v3, %v454_v4  ;;  %v518_v3 = vld [vmem:[#allocation5 + $0xd60] sm:$0xff]  ;;  %v511_v4 = vld [vmem:[#allocation5 + $0xd28] sm:$0xff] }
 0x17f   :  { %3535 = vmatprep.subr.bf16.mxu0 %v4376_v28  ;;  %3617 = vmatprep.subr.bf16.mxu1 %v4378_v29  ;;  %v550_v20 = vld [vmem:[#allocation5 + $0xe60] sm:$0xff] }
 0x182   :  { %3536 = vmatpush1.bf16.msra.mxu0 %v4375_v35  ;;  %3618 = vmatpush1.bf16.msra.mxu1 %v4377_v36  ;;  %v4458_v36 = vcombine.high %v463_v21, %v471_v22 }
 0x183   :  { %3537 = vmatprep.subr.bf16.mxu0 %v4392_v63  ;;  %3619 = vmatprep.subr.bf16.mxu1 %v4394_v37  ;;  %v478_v63 = vld [vmem:[#allocation5 + $0xc20] sm:$0xff] }
 0x184   :  { %v486_v37 = vld [vmem:[#allocation5 + $0xc60] sm:$0xff] }
 0x185   :  { %v4471_v60 = vcombine.low %v478_v63, %v486_v37 }
 0x186   :  { %3538 = vmatpush1.bf16.msra.mxu0 %v4391_v48  ;;  %3620 = vmatpush1.bf16.msra.mxu1 %v4393_v16  ;;  %v4455_v48 = vcombine.low %v462_v15, %v470_v17  ;;  %v4505_v17 = vcombine.low %v511_v4, %v519_v5 }
 0x187   :  { %3539 = vmatprep.subr.bf16.mxu0 %v4408_v50  ;;  %3621 = vmatprep.subr.bf16.mxu1 %v4410_v51  ;;  %v4457_v50 = vcombine.low %v463_v21, %v471_v22  ;;  %v4472_v51 = vcombine.high %v478_v63, %v486_v37  ;;  %v543_v21 = vld [vmem:[#allocation5 + $0xe28] sm:$0xff]  ;;  %v574_v63 = vld [vmem:[#allocation5 + $0xf20] sm:$0xff] }
 0x188   :  { %v551_v22 = vld [vmem:[#allocation5 + $0xe68] sm:$0xff]  ;;  %v582_v37 = vld [vmem:[#allocation5 + $0xf60] sm:$0xff] }
 0x18a   :  { %3540 = vmatpush1.bf16.msra.mxu0 %v4407_v62  ;;  %3622 = vmatpush1.bf16.msra.mxu1 %v4409_v0  ;;  %v4473_v62 = vcombine.low %v479_v41, %v487_v42  ;;  %v4488_v0 = vcombine.high %v494_v54, %v502_v55  ;;  %v599_v54 = vld [vmem:[#allocation5 + $0xfe8] sm:$0xff]  ;;  %v4567_v55 = vcombine.low %v574_v63, %v582_v37 }
 0x18b   :  { %3541 = vmatprep.subr.bf16.mxu0 %v4424_v1  ;;  %3623 = vmatprep.subr.bf16.mxu1 %v4426_v2  ;;  %v4490_v1 = vcombine.high %v495_v57, %v503_v58  ;;  %v510_v2 = vld [vmem:[#allocation5 + $0xd20] sm:$0xff] }
 0x18c   :  { %v3237_v13 = vpop.f32.mrb[0].mxu0  ;;  %v3319_v18 = vpop.f32.mrb[0].mxu1  ;;  %v4504_v8 = vcombine.high %v510_v2, %v518_v3  ;;  %v4503_v15 = vcombine.low %v510_v2, %v518_v3 }
 0x18d   :  { %v3239_v19 = vpop.f32.mrb[1].mxu0  ;;  %v3321_v24 = vpop.f32.mrb[1].mxu1 }
 0x18e   :  { %v3834_v23 = vcombine.low %v3237_v13, %v3239_v19  ;;  %v3241_v26 = vpop.f32.mrb[2].mxu0  ;;  %3542 = vmatpush1.bf16.msra.mxu0 %v4423_v10  ;;  %v3835_v28 = vcombine.low %v3319_v18, %v3321_v24  ;;  %v3323_v29 = vpop.f32.mrb[2].mxu1  ;;  %3624 = vmatpush1.bf16.msra.mxu1 %v4425_v11  ;;  %v4506_v10 = vcombine.high %v511_v4, %v519_v5  ;;  %v526_v11 = vld [vmem:[#allocation5 + $0xda0] sm:$0xff]  ;;  %v527_v13 = vld [vmem:[#allocation5 + $0xda8] sm:$0xff]  ;;  %v112_v5 = vld [vmem:[#allocation5 + $0xb0] sm:$0xff] }
 0x18f   :  { %v3242_v30 = vpop.f32.mrb[3].mxu0  ;;  %3543 = vmatprep.subr.bf16.mxu0 %v4440_v12  ;;  %v3324_v35 = vpop.f32.mrb[3].mxu1  ;;  %3625 = vmatprep.subr.bf16.mxu1 %v4442_v14  ;;  %v534_v12 = vld [vmem:[#allocation5 + $0xde0] sm:$0xff]  ;;  %v535_v14 = vld [vmem:[#allocation5 + $0xde8] sm:$0xff]  ;;  %v4536_v26 = vcombine.high %v542_v59, %v550_v20 }
 0x190   :  { %v3842_v33 = vrot.slane %v3834_v23, %v4765_v53  ;;  %v3849_v39 = vrot.slane %v3835_v28, %v4765_v53  ;;  %v4520_v18 = vcombine.high %v526_v11, %v534_v12  ;;  %v4522_v19 = vcombine.high %v527_v13, %v535_v14  ;;  %v558_v28 = vld [vmem:[#allocation5 + $0xea0] sm:$0xff]  ;;  %v559_v30 = vld [vmem:[#allocation5 + $0xea8] sm:$0xff] }
 0x191   :  { %v4519_v23 = vcombine.low %v526_v11, %v534_v12  ;;  %v4521_v24 = vcombine.low %v527_v13, %v535_v14  ;;  %v566_v29 = vld [vmem:[#allocation5 + $0xee0] sm:$0xff]  ;;  %v128_v14 = vld [vmem:[#allocation5 + $0x130] sm:$0xff] }
 0x192   :  { %3544 = vmatpush1.bf16.msra.mxu0 %v4439_v27  ;;  %v3850_v16 = vcombine.low %v3842_v33, %v3849_v39  ;;  %3626 = vmatpush1.bf16.msra.mxu1 %v4441_v31  ;;  %v4538_v27 = vcombine.high %v543_v21, %v551_v22  ;;  %v567_v31 = vld [vmem:[#allocation5 + $0xee8] sm:$0xff]  ;;  %v4537_v33 = vcombine.low %v543_v21, %v551_v22  ;;  %v144_v22 = vld [vmem:[#allocation5 + $0x1b0] sm:$0xff] }
 0x193   :  { %3545 = vmatprep.subr.bf16.mxu0 %v4456_v32  ;;  %3627 = vmatprep.subr.bf16.mxu1 %v4458_v36  ;;  %v4535_v32 = vcombine.low %v542_v59, %v550_v20  ;;  %v4552_v35 = vcombine.high %v558_v28, %v566_v29  ;;  %v4554_v36 = vcombine.high %v559_v30, %v567_v31  ;;  %v575_v39 = vld [vmem:[#allocation5 + $0xf28] sm:$0xff] }
 0x194   :  { %v4061_v56 = vadd.f32 %v4005_v40, %v3850_v16  ;;  %v583_v40 = vld [vmem:[#allocation5 + $0xf68] sm:$0xff]  ;;  %v4551_v41 = vcombine.low %v558_v28, %v566_v29  ;;  %v4553_v42 = vcombine.low %v559_v30, %v567_v31  ;;  %v160_v31 = vld [vmem:[#allocation5 + $0x230] sm:$0xff] }
 0x195   :  { %v4570_v16 = vcombine.high %v575_v39, %v583_v40 }
 0x196   :  { %3546 = vmatpush1.bf16.msra.mxu0 %v4455_v48  ;;  %v4065_v61 = vmax.f32 %v4061_v56, 0.0  ;;  %3628 = vmatpush1.bf16.msra.mxu1 %v4457_v50  ;;  %v4568_v48 = vcombine.high %v574_v63, %v582_v37  ;;  %v590_v50 = vld [vmem:[#allocation5 + $0xfa0] sm:$0xff]  ;;  %v4569_v56 = vcombine.low %v575_v39, %v583_v40  ;;  %v176_v39 = vld [vmem:[#allocation5 + $0x2b0] sm:$0xff] }
 0x197   :  { %3547 = vmatprep.subr.bf16.mxu0 %v4472_v51  ;;  %3629 = vmatprep.subr.bf16.mxu1 %v4474_v52  ;;  %v598_v51 = vld [vmem:[#allocation5 + $0xfe0] sm:$0xff]  ;;  %v591_v52 = vld [vmem:[#allocation5 + $0xfa8] sm:$0xff]  ;;  %v184_v40 = vld [vmem:[#allocation5 + $0x2f0] sm:$0xff] }
 0x198   :  { %4069 = vst [vmem:[%s4907_s3] sm:$0xff] %v4065_v61  ;;  %v4584_v57 = vcombine.high %v590_v50, %v598_v51  ;;  %v4586_v58 = vcombine.high %v591_v52, %v599_v54  ;;  %v104_v61 = vld [vmem:[#allocation5 + $0x70] sm:$0xff]  ;;  %v4585_v2 = vcombine.low %v591_v52, %v599_v54 }
 0x199   :  { %v192_v52 = vld [vmem:[#allocation5 + $0x330] sm:$0xff] }
 0x19a   :  { %3548 = vmatpush1.bf16.msra.mxu0 %v4471_v60  ;;  %3630 = vmatpush1.bf16.msra.mxu1 %v4473_v62  ;;  %v96_v60 = vld [vmem:[#allocation5 + $0x30] sm:$0xff]  ;;  %v97_v62 = vld [vmem:[#allocation5 + $0x38] sm:$0xff] }
 0x19b   :  { %3549 = vmatprep.subr.bf16.mxu0 %v4488_v0  ;;  %3631 = vmatprep.subr.bf16.mxu1 %v4490_v1  ;;  %v105_v0 = vld [vmem:[#allocation5 + $0x78] sm:$0xff]  ;;  %v4583_v1 = vcombine.low %v590_v50, %v598_v51  ;;  %v4092_v3 = vcombine.high %v96_v60, %v104_v61  ;;  %v4172_v50 = vcombine.high %v176_v39, %v184_v40  ;;  %v200_v54 = vld [vmem:[#allocation5 + $0x370] sm:$0xff] }
 0x19c   :  { %v4094_v4 = vcombine.high %v97_v62, %v105_v0  ;;  %v4093_v11 = vcombine.low %v97_v62, %v105_v0  ;;  %v208_v62 = vld [vmem:[#allocation5 + $0x3b0] sm:$0xff] }
 0x19d   :  { %v216_v0 = vld [vmem:[#allocation5 + $0x3f0] sm:$0xff] }
 0x19e   :  { %3550 = vmatpush1.bf16.msra.mxu0 %v4487_v6  ;;  %3632 = vmatpush1.bf16.msra.mxu1 %v4489_v7  ;;  %v120_v6 = vld [vmem:[#allocation5 + $0xf0] sm:$0xff]  ;;  %v113_v7 = vld [vmem:[#allocation5 + $0xb8] sm:$0xff] }
 0x19f   :  { %3551 = vmatprep.subr.bf16.mxu0 %v4504_v8  ;;  %3633 = vmatprep.subr.bf16.mxu1 %v4506_v10  ;;  %v121_v8 = vld [vmem:[#allocation5 + $0xf8] sm:$0xff]  ;;  %v4091_v10 = vcombine.low %v96_v60, %v104_v61  ;;  %v4108_v12 = vcombine.high %v112_v5, %v120_v6  ;;  %v4188_v60 = vcombine.high %v192_v52, %v200_v54 }
 0x1a0   :  { %v4110_v13 = vcombine.high %v113_v7, %v121_v8  ;;  %v4109_v59 = vcombine.low %v113_v7, %v121_v8  ;;  %v224_v7 = vld [vmem:[#allocation5 + $0x430] sm:$0xff] }
 0x1a1   :  { %v232_v8 = vld [vmem:[#allocation5 + $0x470] sm:$0xff] }
 0x1a2   :  { %3552 = vmatpush1.bf16.msra.mxu0 %v4503_v15  ;;  %3634 = vmatpush1.bf16.msra.mxu1 %v4505_v17  ;;  %v136_v15 = vld [vmem:[#allocation5 + $0x170] sm:$0xff]  ;;  %v129_v17 = vld [vmem:[#allocation5 + $0x138] sm:$0xff] }
 0x1a3   :  { %3553 = vmatprep.subr.bf16.mxu0 %v4520_v18  ;;  %3635 = vmatprep.subr.bf16.mxu1 %v4522_v19  ;;  %v137_v18 = vld [vmem:[#allocation5 + $0x178] sm:$0xff]  ;;  %v4107_v19 = vcombine.low %v112_v5, %v120_v6  ;;  %v4124_v20 = vcombine.high %v128_v14, %v136_v15  ;;  %v4204_v5 = vcombine.high %v208_v62, %v216_v0 }
 0x1a4   :  { %v4126_v21 = vcombine.high %v129_v17, %v137_v18  ;;  %v4125_v28 = vcombine.low %v129_v17, %v137_v18  ;;  %v240_v17 = vld [vmem:[#allocation5 + $0x4b0] sm:$0xff] }
 0x1a5   :  { %v248_v18 = vld [vmem:[#allocation5 + $0x4f0] sm:$0xff] }
 0x1a6   :  { %3554 = vmatpush1.bf16.msra.mxu0 %v4519_v23  ;;  %3636 = vmatpush1.bf16.msra.mxu1 %v4521_v24  ;;  %v152_v23 = vld [vmem:[#allocation5 + $0x1f0] sm:$0xff]  ;;  %v145_v24 = vld [vmem:[#allocation5 + $0x1b8] sm:$0xff] }
 0x1a7   :  { %3555 = vmatprep.subr.bf16.mxu0 %v4536_v26  ;;  %3637 = vmatprep.subr.bf16.mxu1 %v4538_v27  ;;  %v153_v26 = vld [vmem:[#allocation5 + $0x1f8] sm:$0xff]  ;;  %v4123_v27 = vcombine.low %v128_v14, %v136_v15  ;;  %v4140_v29 = vcombine.high %v144_v22, %v152_v23  ;;  %v4220_v14 = vcombine.high %v224_v7, %v232_v8 }
 0x1a8   :  { %v4142_v30 = vcombine.high %v145_v24, %v153_v26  ;;  %v4141_v63 = vcombine.low %v145_v24, %v153_v26  ;;  %v256_v24 = vld [vmem:[#allocation5 + $0x530] sm:$0xff] }
 0x1a9   :  { %v264_v26 = vld [vmem:[#allocation5 + $0x570] sm:$0xff] }
 0x1aa   :  { %3556 = vmatpush1.bf16.msra.mxu0 %v4535_v32  ;;  %3638 = vmatpush1.bf16.msra.mxu1 %v4537_v33  ;;  %v168_v32 = vld [vmem:[#allocation5 + $0x270] sm:$0xff]  ;;  %v161_v33 = vld [vmem:[#allocation5 + $0x238] sm:$0xff] }
 0x1ab   :  { %3557 = vmatprep.subr.bf16.mxu0 %v4552_v35  ;;  %3639 = vmatprep.subr.bf16.mxu1 %v4554_v36  ;;  %v169_v35 = vld [vmem:[#allocation5 + $0x278] sm:$0xff]  ;;  %v4139_v36 = vcombine.low %v144_v22, %v152_v23  ;;  %v4156_v37 = vcombine.high %v160_v31, %v168_v32  ;;  %v4236_v22 = vcombine.high %v240_v17, %v248_v18 }
 0x1ae   :  { %3558 = vmatpush1.bf16.msra.mxu0 %v4551_v41  ;;  %3640 = vmatpush1.bf16.msra.mxu1 %v4553_v42  ;;  %v177_v41 = vld [vmem:[#allocation5 + $0x2b8] sm:$0xff] }
 0x1af   :  { %3559 = vmatprep.subr.bf16.mxu0 %v4568_v48  ;;  %3641 = vmatprep.subr.bf16.mxu1 %v4570_v16  ;;  %v185_v42 = vld [vmem:[#allocation5 + $0x2f8] sm:$0xff]  ;;  %v4155_v48 = vcombine.low %v160_v31, %v168_v32  ;;  %v4157_v16 = vcombine.low %v161_v33, %v169_v35  ;;  %v4252_v31 = vcombine.high %v256_v24, %v264_v26 }
 0x1b0   :  { %v4174_v51 = vcombine.high %v177_v41, %v185_v42 }
 0x1b2   :  { %3560 = vmatpush1.bf16.msra.mxu0 %v4567_v55  ;;  %3642 = vmatpush1.bf16.msra.mxu1 %v4569_v56  ;;  %v193_v55 = vld [vmem:[#allocation5 + $0x338] sm:$0xff] }
 0x1b3   :  { %3561 = vmatprep.subr.bf16.mxu0 %v4584_v57  ;;  %3643 = vmatprep.subr.bf16.mxu1 %v4586_v58  ;;  %v201_v56 = vld [vmem:[#allocation5 + $0x378] sm:$0xff]  ;;  %v4171_v57 = vcombine.low %v176_v39, %v184_v40  ;;  %v4173_v58 = vcombine.low %v177_v41, %v185_v42  ;;  %v288_v41 = vld [vmem:[#allocation5 + $0x630] sm:$0xff] }
 0x1b4   :  { %v4190_v61 = vcombine.high %v193_v55, %v201_v56  ;;  %v296_v42 = vld [vmem:[#allocation5 + $0x670] sm:$0xff] }
 0x1b6   :  { %3562 = vmatpush1.bf16.msra.mxu0 %v4583_v1  ;;  %3644 = vmatpush1.bf16.msra.mxu1 %v4585_v2  ;;  %v209_v1 = vld [vmem:[#allocation5 + $0x3b8] sm:$0xff] }
 0x1b7   :  { %3654 = vmatprep.subr.bf16.mxu0 %v4092_v3  ;;  %3736 = vmatprep.subr.bf16.mxu1 %v4094_v4  ;;  %v217_v2 = vld [vmem:[#allocation5 + $0x3f8] sm:$0xff]  ;;  %v4187_v3 = vcombine.low %v192_v52, %v200_v54  ;;  %v4189_v4 = vcombine.low %v193_v55, %v201_v56  ;;  %v4284_v52 = vcombine.high %v288_v41, %v296_v42  ;;  %v304_v55 = vld [vmem:[#allocation5 + $0x6b0] sm:$0xff] }
 0x1b8   :  { %v4206_v6 = vcombine.high %v209_v1, %v217_v2  ;;  %v312_v56 = vld [vmem:[#allocation5 + $0x6f0] sm:$0xff] }
 0x1b9   :  { %3564 = vmatmul.mubr.bf16.vlgmr.msra.gmra.mrb[8].mxu0 %v4798_v38  ;;  %3646 = vmatmul.mubr.bf16.vlgmr.msra.gmra.mrb[8].mxu1 %v4798_v38 }
 0x1ba   :  { %3655 = vmatpush1.bf16.msra.mxu0 %v4091_v10  ;;  %3737 = vmatpush1.bf16.msra.mxu1 %v4093_v11  ;;  %v225_v10 = vld [vmem:[#allocation5 + $0x438] sm:$0xff] }
 0x1bb   :  { %3656 = vmatprep.subr.bf16.mxu0 %v4108_v12  ;;  %3738 = vmatprep.subr.bf16.mxu1 %v4110_v13  ;;  %v233_v11 = vld [vmem:[#allocation5 + $0x478] sm:$0xff]  ;;  %v4203_v12 = vcombine.low %v208_v62, %v216_v0  ;;  %v4205_v13 = vcombine.low %v209_v1, %v217_v2  ;;  %v4300_v62 = vcombine.high %v304_v55, %v312_v56  ;;  %v320_v1 = vld [vmem:[#allocation5 + $0x730] sm:$0xff] }
 0x1bc   :  { %3686 = vmatprep.mubr.bf16.mxu0 %v4775_v9  ;;  %3768 = vmatprep.mubr.bf16.mxu1 %v4775_v9  ;;  %v4158_v9 = vcombine.high %v161_v33, %v169_v35  ;;  %v4222_v15 = vcombine.high %v225_v10, %v233_v11  ;;  %v272_v33 = vld [vmem:[#allocation5 + $0x5b0] sm:$0xff] }
 0x1bd   :  { %v280_v35 = vld [vmem:[#allocation5 + $0x5f0] sm:$0xff] }
 0x1be   :  { %3657 = vmatpush1.bf16.msra.mxu0 %v4107_v19  ;;  %3739 = vmatpush1.bf16.msra.mxu1 %v4109_v59  ;;  %v241_v19 = vld [vmem:[#allocation5 + $0x4b8] sm:$0xff]  ;;  %v4268_v39 = vcombine.high %v272_v33, %v280_v35  ;;  %v328_v2 = vld [vmem:[#allocation5 + $0x770] sm:$0xff] }
 0x1bf   :  { %3658 = vmatprep.subr.bf16.mxu0 %v4124_v20  ;;  %3740 = vmatprep.subr.bf16.mxu1 %v4126_v21  ;;  %v249_v59 = vld [vmem:[#allocation5 + $0x4f8] sm:$0xff]  ;;  %v4219_v20 = vcombine.low %v224_v7, %v232_v8  ;;  %v4221_v21 = vcombine.low %v225_v10, %v233_v11  ;;  %v4316_v7 = vcombine.high %v320_v1, %v328_v2  ;;  %v336_v10 = vld [vmem:[#allocation5 + $0x7b0] sm:$0xff] }
 0x1c0   :  { %v4238_v23 = vcombine.high %v241_v19, %v249_v59  ;;  %v344_v11 = vld [vmem:[#allocation5 + $0x7f0] sm:$0xff] }
 0x1c2   :  { %3659 = vmatpush1.bf16.msra.mxu0 %v4123_v27  ;;  %3741 = vmatpush1.bf16.msra.mxu1 %v4125_v28  ;;  %v257_v27 = vld [vmem:[#allocation5 + $0x538] sm:$0xff] }
 0x1c3   :  { %3660 = vmatprep.subr.bf16.mxu0 %v4140_v29  ;;  %3742 = vmatprep.subr.bf16.mxu1 %v4142_v30  ;;  %v265_v28 = vld [vmem:[#allocation5 + $0x578] sm:$0xff]  ;;  %v4235_v29 = vcombine.low %v240_v17, %v248_v18  ;;  %v4237_v30 = vcombine.low %v241_v19, %v249_v59  ;;  %v4332_v17 = vcombine.high %v336_v10, %v344_v11  ;;  %v352_v19 = vld [vmem:[#allocation5 + $0x830] sm:$0xff] }
 0x1c4   :  { %v4254_v32 = vcombine.high %v257_v27, %v265_v28  ;;  %v360_v59 = vld [vmem:[#allocation5 + $0x870] sm:$0xff] }
 0x1c6   :  { %3661 = vmatpush1.bf16.msra.mxu0 %v4139_v36  ;;  %3743 = vmatpush1.bf16.msra.mxu1 %v4141_v63  ;;  %v273_v36 = vld [vmem:[#allocation5 + $0x5b8] sm:$0xff] }
 0x1c7   :  { %3662 = vmatprep.subr.bf16.mxu0 %v4156_v37  ;;  %3744 = vmatprep.subr.bf16.mxu1 %v4158_v9  ;;  %v281_v63 = vld [vmem:[#allocation5 + $0x5f8] sm:$0xff]  ;;  %v4251_v37 = vcombine.low %v256_v24, %v264_v26  ;;  %v4253_v9 = vcombine.low %v257_v27, %v265_v28  ;;  %v4348_v24 = vcombine.high %v352_v19, %v360_v59  ;;  %v368_v27 = vld [vmem:[#allocation5 + $0x8b0] sm:$0xff] }
 0x1c8   :  { %v4270_v40 = vcombine.high %v273_v36, %v281_v63  ;;  %v376_v28 = vld [vmem:[#allocation5 + $0x8f0] sm:$0xff] }
 0x1ca   :  { %3663 = vmatpush1.bf16.msra.mxu0 %v4155_v48  ;;  %3745 = vmatpush1.bf16.msra.mxu1 %v4157_v16  ;;  %v289_v48 = vld [vmem:[#allocation5 + $0x638] sm:$0xff] }
 0x1cb   :  { %3664 = vmatprep.subr.bf16.mxu0 %v4172_v50  ;;  %3746 = vmatprep.subr.bf16.mxu1 %v4174_v51  ;;  %v297_v16 = vld [vmem:[#allocation5 + $0x678] sm:$0xff]  ;;  %v4267_v50 = vcombine.low %v272_v33, %v280_v35  ;;  %v4269_v51 = vcombine.low %v273_v36, %v281_v63  ;;  %v4364_v33 = vcombine.high %v368_v27, %v376_v28  ;;  %v384_v36 = vld [vmem:[#allocation5 + $0x930] sm:$0xff] }
 0x1cc   :  { %v4286_v54 = vcombine.high %v289_v48, %v297_v16  ;;  %v392_v63 = vld [vmem:[#allocation5 + $0x970] sm:$0xff] }
 0x1ce   :  { %3665 = vmatpush1.bf16.msra.mxu0 %v4171_v57  ;;  %3747 = vmatpush1.bf16.msra.mxu1 %v4173_v58  ;;  %v305_v57 = vld [vmem:[#allocation5 + $0x6b8] sm:$0xff] }
 0x1cf   :  { %3666 = vmatprep.subr.bf16.mxu0 %v4188_v60  ;;  %3748 = vmatprep.subr.bf16.mxu1 %v4190_v61  ;;  %v313_v58 = vld [vmem:[#allocation5 + $0x6f8] sm:$0xff]  ;;  %v4283_v60 = vcombine.low %v288_v41, %v296_v42  ;;  %v4285_v61 = vcombine.low %v289_v48, %v297_v16  ;;  %v4380_v41 = vcombine.high %v384_v36, %v392_v63  ;;  %v400_v48 = vld [vmem:[#allocation5 + $0x9b0] sm:$0xff] }
 0x1d0   :  { %v4302_v0 = vcombine.high %v305_v57, %v313_v58  ;;  %v408_v16 = vld [vmem:[#allocation5 + $0x9f0] sm:$0xff] }
 0x1d2   :  { %3667 = vmatpush1.bf16.msra.mxu0 %v4187_v3  ;;  %3749 = vmatpush1.bf16.msra.mxu1 %v4189_v4  ;;  %v321_v3 = vld [vmem:[#allocation5 + $0x738] sm:$0xff] }
 0x1d3   :  { %3668 = vmatprep.subr.bf16.mxu0 %v4204_v5  ;;  %3750 = vmatprep.subr.bf16.mxu1 %v4206_v6  ;;  %v329_v4 = vld [vmem:[#allocation5 + $0x778] sm:$0xff]  ;;  %v4299_v5 = vcombine.low %v304_v55, %v312_v56  ;;  %v4301_v6 = vcombine.low %v305_v57, %v313_v58  ;;  %v416_v56 = vld [vmem:[#allocation5 + $0xa30] sm:$0xff] }
 0x1d4   :  { %v4318_v8 = vcombine.high %v321_v3, %v329_v4  ;;  %v424_v57 = vld [vmem:[#allocation5 + $0xa70] sm:$0xff]  ;;  %v417_v58 = vld [vmem:[#allocation5 + $0xa38] sm:$0xff] }
 0x1d6   :  { %3669 = vmatpush1.bf16.msra.mxu0 %v4203_v12  ;;  %3751 = vmatpush1.bf16.msra.mxu1 %v4205_v13  ;;  %v337_v12 = vld [vmem:[#allocation5 + $0x7b8] sm:$0xff] }
 0x1d7   :  { %3670 = vmatprep.subr.bf16.mxu0 %v4220_v14  ;;  %3752 = vmatprep.subr.bf16.mxu1 %v4222_v15  ;;  %v345_v13 = vld [vmem:[#allocation5 + $0x7f8] sm:$0xff]  ;;  %v4315_v14 = vcombine.low %v320_v1, %v328_v2  ;;  %v4317_v15 = vcombine.low %v321_v3, %v329_v4  ;;  %v4395_v1 = vcombine.low %v400_v48, %v408_v16 }
 0x1d8   :  { %v4334_v18 = vcombine.high %v337_v12, %v345_v13  ;;  %v4412_v3 = vcombine.high %v416_v56, %v424_v57 }
 0x1da   :  { %3671 = vmatpush1.bf16.msra.mxu0 %v4219_v20  ;;  %3753 = vmatpush1.bf16.msra.mxu1 %v4221_v21  ;;  %v353_v20 = vld [vmem:[#allocation5 + $0x838] sm:$0xff] }
 0x1db   :  { %3672 = vmatprep.subr.bf16.mxu0 %v4236_v22  ;;  %3754 = vmatprep.subr.bf16.mxu1 %v4238_v23  ;;  %v361_v21 = vld [vmem:[#allocation5 + $0x878] sm:$0xff]  ;;  %v4331_v22 = vcombine.low %v336_v10, %v344_v11  ;;  %v4333_v23 = vcombine.low %v337_v12, %v345_v13 }
 0x1dc   :  { %v4350_v26 = vcombine.high %v353_v20, %v361_v21  ;;  %v433_v12 = vld [vmem:[#allocation5 + $0xab8] sm:$0xff] }
 0x1dd   :  { %v441_v13 = vld [vmem:[#allocation5 + $0xaf8] sm:$0xff] }
 0x1de   :  { %3673 = vmatpush1.bf16.msra.mxu0 %v4235_v29  ;;  %3755 = vmatpush1.bf16.msra.mxu1 %v4237_v30  ;;  %v369_v29 = vld [vmem:[#allocation5 + $0x8b8] sm:$0xff] }
 0x1df   :  { %3674 = vmatprep.subr.bf16.mxu0 %v4252_v31  ;;  %3756 = vmatprep.subr.bf16.mxu1 %v4254_v32  ;;  %v377_v30 = vld [vmem:[#allocation5 + $0x8f8] sm:$0xff]  ;;  %v4347_v31 = vcombine.low %v352_v19, %v360_v59  ;;  %v4349_v32 = vcombine.low %v353_v20, %v361_v21  ;;  %v448_v19 = vld [vmem:[#allocation5 + $0xb30] sm:$0xff] }
 0x1e0   :  { %v4366_v35 = vcombine.high %v369_v29, %v377_v30  ;;  %v456_v59 = vld [vmem:[#allocation5 + $0xb70] sm:$0xff] }
 0x1e2   :  { %3675 = vmatpush1.bf16.msra.mxu0 %v4251_v37  ;;  %3757 = vmatpush1.bf16.msra.mxu1 %v4253_v9  ;;  %v385_v37 = vld [vmem:[#allocation5 + $0x938] sm:$0xff] }
 0x1e3   :  { %3676 = vmatprep.subr.bf16.mxu0 %v4268_v39  ;;  %3758 = vmatprep.subr.bf16.mxu1 %v4270_v40  ;;  %v393_v9 = vld [vmem:[#allocation5 + $0x978] sm:$0xff]  ;;  %v4363_v39 = vcombine.low %v368_v27, %v376_v28  ;;  %v4365_v40 = vcombine.low %v369_v29, %v377_v30  ;;  %v464_v29 = vld [vmem:[#allocation5 + $0xbb0] sm:$0xff] }
 0x1e4   :  { %v4382_v42 = vcombine.high %v385_v37, %v393_v9  ;;  %v472_v30 = vld [vmem:[#allocation5 + $0xbf0] sm:$0xff] }
 0x1e6   :  { %3677 = vmatpush1.bf16.msra.mxu0 %v4267_v50  ;;  %3759 = vmatpush1.bf16.msra.mxu1 %v4269_v51  ;;  %v401_v50 = vld [vmem:[#allocation5 + $0x9b8] sm:$0xff] }
 0x1e7   :  { %3678 = vmatprep.subr.bf16.mxu0 %v4284_v52  ;;  %3760 = vmatprep.subr.bf16.mxu1 %v4286_v54  ;;  %v409_v51 = vld [vmem:[#allocation5 + $0x9f8] sm:$0xff]  ;;  %v4379_v52 = vcombine.low %v384_v36, %v392_v63  ;;  %v4396_v54 = vcombine.high %v400_v48, %v408_v16 }
 0x1e8   :  { %v4398_v55 = vcombine.high %v401_v50, %v409_v51  ;;  %v4397_v2 = vcombine.low %v401_v50, %v409_v51  ;;  %v465_v36 = vld [vmem:[#allocation5 + $0xbb8] sm:$0xff]  ;;  %v4460_v50 = vcombine.high %v464_v29, %v472_v30 }
 0x1e9   :  { %v473_v63 = vld [vmem:[#allocation5 + $0xbf8] sm:$0xff] }
 0x1ea   :  { %3679 = vmatpush1.bf16.msra.mxu0 %v4283_v60  ;;  %3761 = vmatpush1.bf16.msra.mxu1 %v4285_v61  ;;  %v425_v60 = vld [vmem:[#allocation5 + $0xa78] sm:$0xff]  ;;  %v3943_v61 = vsub.s32 4, %v4762_v44 }
 0x1eb   :  { %3680 = vmatprep.subr.bf16.mxu0 %v4300_v62  ;;  %3762 = vmatprep.subr.bf16.mxu1 %v4302_v0  ;;  %v3947_v62 = vsub.s32 5, %v4762_v44  ;;  %v3951_v0 = vsub.s32 6, %v4762_v44  ;;  %v4414_v4 = vcombine.high %v417_v58, %v425_v60 }
 0x1ed   :  { %v3952_v10 = vrot.slane %v4820_v49, %v3951_v0 }
 0x1ee   :  { %3681 = vmatpush1.bf16.msra.mxu0 %v4299_v5  ;;  %3763 = vmatpush1.bf16.msra.mxu1 %v4301_v6  ;;  %v432_v5 = vld [vmem:[#allocation5 + $0xab0] sm:$0xff] }
 0x1ef   :  { %3682 = vmatprep.subr.bf16.mxu0 %v4316_v7  ;;  %3764 = vmatprep.subr.bf16.mxu1 %v4318_v8  ;;  %v440_v6 = vld [vmem:[#allocation5 + $0xaf0] sm:$0xff]  ;;  %v3944_v7 = vrot.slane %v4820_v49, %v3943_v61  ;;  %v3948_v8 = vrot.slane %v4820_v49, %v3947_v62 }
 0x1f1   :  { %v4006_v20 = vcombine.low %v3944_v7, %v3948_v8  ;;  %v504_v7 = vld [vmem:[#allocation5 + $0xcf0] sm:$0xff] }
 0x1f2   :  { %3683 = vmatpush1.bf16.msra.mxu0 %v4315_v14  ;;  %3765 = vmatpush1.bf16.msra.mxu1 %v4317_v15  ;;  %v4411_v14 = vcombine.low %v416_v56, %v424_v57  ;;  %v4413_v15 = vcombine.low %v417_v58, %v425_v60  ;;  %v481_v58 = vld [vmem:[#allocation5 + $0xc38] sm:$0xff] }
 0x1f3   :  { %3684 = vmatprep.subr.bf16.mxu0 %v4332_v17  ;;  %3766 = vmatprep.subr.bf16.mxu1 %v4334_v18  ;;  %v4428_v17 = vcombine.high %v432_v5, %v440_v6  ;;  %v4430_v18 = vcombine.high %v433_v12, %v441_v13  ;;  %v489_v60 = vld [vmem:[#allocation5 + $0xc78] sm:$0xff] }
 0x1f6   :  { %3685 = vmatpush1.bf16.msra.mxu0 %v4331_v22  ;;  %3767 = vmatpush1.bf16.msra.mxu1 %v4333_v23  ;;  %v449_v22 = vld [vmem:[#allocation5 + $0xb38] sm:$0xff] }
 0x1f7   :  { %3695 = vmatprep.subr.bf16.mxu0 %v4348_v24  ;;  %3777 = vmatprep.subr.bf16.mxu1 %v4350_v26  ;;  %v457_v23 = vld [vmem:[#allocation5 + $0xb78] sm:$0xff]  ;;  %v4427_v24 = vcombine.low %v432_v5, %v440_v6  ;;  %v4444_v26 = vcombine.high %v448_v19, %v456_v59  ;;  %v4478_v5 = vcombine.high %v481_v58, %v489_v60  ;;  %v496_v6 = vld [vmem:[#allocation5 + $0xcb0] sm:$0xff] }
 0x1f8   :  { %v4446_v28 = vcombine.high %v449_v22, %v457_v23  ;;  %v4445_v16 = vcombine.low %v449_v22, %v457_v23 }
 0x1f9   :  { %3687 = vmatmul.mubr.bf16.vlgmr.msra.gmra.mrb[12].mxu0 %v4788_v25  ;;  %3769 = vmatmul.mubr.bf16.vlgmr.msra.gmra.mrb[12].mxu1 %v4788_v25  ;;  %v4381_v25 = vcombine.low %v385_v37, %v393_v9 }
 0x1fa   :  { %3696 = vmatpush1.bf16.msra.mxu0 %v4347_v31  ;;  %3778 = vmatpush1.bf16.msra.mxu1 %v4349_v32 }
 0x1fb   :  { %3697 = vmatprep.subr.bf16.mxu0 %v4364_v33  ;;  %3779 = vmatprep.subr.bf16.mxu1 %v4366_v35  ;;  %v4014_v33 = vrot.slane %v4006_v20, %v4765_v53  ;;  %v521_v20 = vld [vmem:[#allocation5 + $0xd78] sm:$0xff] }
 0x1fc   :  { %3727 = vmatprep.mubr.bf16.mxu0 %v4790_v34  ;;  %3809 = vmatprep.mubr.bf16.mxu1 %v4790_v34  ;;  %v3955_v34 = vsub.s32 7, %v4762_v44 }
 0x1fe   :  { %3698 = vmatpush1.bf16.msra.mxu0 %v4363_v39  ;;  %3780 = vmatpush1.bf16.msra.mxu1 %v4365_v40  ;;  %v3956_v11 = vrot.slane %v4820_v49, %v3955_v34  ;;  %v4429_v49 = vcombine.low %v433_v12, %v441_v13  ;;  %v4443_v40 = vcombine.low %v448_v19, %v456_v59  ;;  %v520_v19 = vld [vmem:[#allocation5 + $0xd70] sm:$0xff]  ;;  %v513_v59 = vld [vmem:[#allocation5 + $0xd38] sm:$0xff] }
 0x1ff   :  { %3699 = vmatprep.subr.bf16.mxu0 %v4380_v41  ;;  %3781 = vmatprep.subr.bf16.mxu1 %v4382_v42 }
 0x200   :  { %v4007_v21 = vcombine.low %v3952_v10, %v3956_v11  ;;  %v497_v10 = vld [vmem:[#allocation5 + $0xcb8] sm:$0xff] }
 0x201   :  { %v505_v11 = vld [vmem:[#allocation5 + $0xcf8] sm:$0xff] }
 0x202   :  { %3700 = vmatpush1.bf16.msra.mxu0 %v4379_v52  ;;  %3782 = vmatpush1.bf16.msra.mxu1 %v4381_v25  ;;  %v4021_v35 = vrot.slane %v4007_v21, %v4765_v53  ;;  %v4462_v25 = vcombine.high %v465_v36, %v473_v63  ;;  %v4491_v21 = vcombine.low %v496_v6, %v504_v7 }
 0x203   :  { %3701 = vmatprep.subr.bf16.mxu0 %v4396_v54  ;;  %3783 = vmatprep.subr.bf16.mxu1 %v4398_v55  ;;  %v480_v54 = vld [vmem:[#allocation5 + $0xc30] sm:$0xff]  ;;  %v4493_v22 = vcombine.low %v497_v10, %v505_v11 }
 0x204   :  { %v488_v55 = vld [vmem:[#allocation5 + $0xc70] sm:$0xff]  ;;  %v4022_v57 = vcombine.low %v4014_v33, %v4021_v35 }
 0x205   :  { %v4475_v12 = vcombine.low %v480_v54, %v488_v55  ;;  %v544_v33 = vld [vmem:[#allocation5 + $0xe30] sm:$0xff] }
 0x206   :  { %3702 = vmatpush1.bf16.msra.mxu0 %v4395_v1  ;;  %3784 = vmatpush1.bf16.msra.mxu1 %v4397_v2  ;;  %v4459_v1 = vcombine.low %v464_v29, %v472_v30  ;;  %v4509_v30 = vcombine.low %v513_v59, %v521_v20  ;;  %v552_v35 = vld [vmem:[#allocation5 + $0xe70] sm:$0xff] }
 0x207   :  { %3703 = vmatprep.subr.bf16.mxu0 %v4412_v3  ;;  %3785 = vmatprep.subr.bf16.mxu1 %v4414_v4  ;;  %v4461_v3 = vcombine.low %v465_v36, %v473_v63  ;;  %v4476_v4 = vcombine.high %v480_v54, %v488_v55  ;;  %v545_v36 = vld [vmem:[#allocation5 + $0xe38] sm:$0xff]  ;;  %v576_v54 = vld [vmem:[#allocation5 + $0xf30] sm:$0xff] }
 0x208   :  { %v553_v63 = vld [vmem:[#allocation5 + $0xe78] sm:$0xff]  ;;  %v584_v55 = vld [vmem:[#allocation5 + $0xf70] sm:$0xff] }
 0x20a   :  { %3704 = vmatpush1.bf16.msra.mxu0 %v4411_v14  ;;  %3786 = vmatpush1.bf16.msra.mxu1 %v4413_v15  ;;  %v4477_v14 = vcombine.low %v481_v58, %v489_v60  ;;  %v4492_v15 = vcombine.high %v496_v6, %v504_v7  ;;  %v601_v6 = vld [vmem:[#allocation5 + $0xff8] sm:$0xff]  ;;  %v4571_v7 = vcombine.low %v576_v54, %v584_v55 }
 0x20b   :  { %3705 = vmatprep.subr.bf16.mxu0 %v4428_v17  ;;  %3787 = vmatprep.subr.bf16.mxu1 %v4430_v18  ;;  %v4494_v17 = vcombine.high %v497_v10, %v505_v11  ;;  %v512_v18 = vld [vmem:[#allocation5 + $0xd30] sm:$0xff] }
 0x20c   :  { %v3401_v27 = vpop.f32.mrb[4].mxu0  ;;  %v3483_v31 = vpop.f32.mrb[4].mxu1  ;;  %v4508_v23 = vcombine.high %v512_v18, %v520_v19  ;;  %v4507_v29 = vcombine.low %v512_v18, %v520_v19 }
 0x20d   :  { %v3403_v32 = vpop.f32.mrb[5].mxu0  ;;  %v3485_v9 = vpop.f32.mrb[5].mxu1 }
 0x20e   :  { %v3851_v37 = vcombine.low %v3401_v27, %v3403_v32  ;;  %v3405_v39 = vpop.f32.mrb[6].mxu0  ;;  %3706 = vmatpush1.bf16.msra.mxu0 %v4427_v24  ;;  %v3852_v41 = vcombine.low %v3483_v31, %v3485_v9  ;;  %v3487_v42 = vpop.f32.mrb[6].mxu1  ;;  %3788 = vmatpush1.bf16.msra.mxu1 %v4429_v49  ;;  %v4510_v24 = vcombine.high %v513_v59, %v521_v20  ;;  %v528_v49 = vld [vmem:[#allocation5 + $0xdb0] sm:$0xff]  ;;  %v529_v27 = vld [vmem:[#allocation5 + $0xdb8] sm:$0xff] }
 0x20f   :  { %v3406_v48 = vpop.f32.mrb[7].mxu0  ;;  %3707 = vmatprep.subr.bf16.mxu0 %v4444_v26  ;;  %v3488_v52 = vpop.f32.mrb[7].mxu1  ;;  %3789 = vmatprep.subr.bf16.mxu1 %v4446_v28  ;;  %v536_v26 = vld [vmem:[#allocation5 + $0xdf0] sm:$0xff]  ;;  %v537_v28 = vld [vmem:[#allocation5 + $0xdf8] sm:$0xff]  ;;  %v4540_v39 = vcombine.high %v544_v33, %v552_v35 }
 0x210   :  { %v3859_v51 = vrot.slane %v3851_v37, %v4765_v53  ;;  %v3866_v56 = vrot.slane %v3852_v41, %v4765_v53  ;;  %v4524_v31 = vcombine.high %v528_v49, %v536_v26  ;;  %v4526_v32 = vcombine.high %v529_v27, %v537_v28  ;;  %v560_v41 = vld [vmem:[#allocation5 + $0xeb0] sm:$0xff]  ;;  %v561_v48 = vld [vmem:[#allocation5 + $0xeb8] sm:$0xff] }
 0x211   :  { %v4523_v37 = vcombine.low %v528_v49, %v536_v26  ;;  %v4525_v9 = vcombine.low %v529_v27, %v537_v28  ;;  %v568_v42 = vld [vmem:[#allocation5 + $0xef0] sm:$0xff] }
 0x212   :  { %3708 = vmatpush1.bf16.msra.mxu0 %v4443_v40  ;;  %v3867_v2 = vcombine.low %v3859_v51, %v3866_v56  ;;  %3790 = vmatpush1.bf16.msra.mxu1 %v4445_v16  ;;  %v4542_v40 = vcombine.high %v545_v36, %v553_v63  ;;  %v569_v16 = vld [vmem:[#allocation5 + $0xef8] sm:$0xff]  ;;  %v4541_v51 = vcombine.low %v545_v36, %v553_v63 }
 0x213   :  { %3709 = vmatprep.subr.bf16.mxu0 %v4460_v50  ;;  %3791 = vmatprep.subr.bf16.mxu1 %v4462_v25  ;;  %v4539_v50 = vcombine.low %v544_v33, %v552_v35  ;;  %v4556_v52 = vcombine.high %v560_v41, %v568_v42  ;;  %v4558_v25 = vcombine.high %v561_v48, %v569_v16  ;;  %v577_v56 = vld [vmem:[#allocation5 + $0xf38] sm:$0xff] }
 0x214   :  { %v4062_v8 = vadd.f32 %v4022_v57, %v3867_v2  ;;  %v585_v57 = vld [vmem:[#allocation5 + $0xf78] sm:$0xff]  ;;  %v4555_v58 = vcombine.low %v560_v41, %v568_v42  ;;  %v4557_v60 = vcombine.low %v561_v48, %v569_v16 }
 0x215   :  { %v4574_v2 = vcombine.high %v577_v56, %v585_v57 }
 0x216   :  { %3710 = vmatpush1.bf16.msra.mxu0 %v4459_v1  ;;  %v4066_v13 = vmax.f32 %v4062_v8, 0.0  ;;  %3792 = vmatpush1.bf16.msra.mxu1 %v4461_v3  ;;  %v4572_v1 = vcombine.high %v576_v54, %v584_v55  ;;  %v592_v3 = vld [vmem:[#allocation5 + $0xfb0] sm:$0xff]  ;;  %v4573_v8 = vcombine.low %v577_v56, %v585_v57 }
 0x217   :  { %3711 = vmatprep.subr.bf16.mxu0 %v4476_v4  ;;  %3793 = vmatprep.subr.bf16.mxu1 %v4478_v5  ;;  %v600_v4 = vld [vmem:[#allocation5 + $0xff0] sm:$0xff]  ;;  %v593_v5 = vld [vmem:[#allocation5 + $0xfb8] sm:$0xff] }
 0x218   :  { %4070 = vst [vmem:[%s4907_s3 + $0x8] sm:$0xff] %v4066_v13  ;;  %v4588_v10 = vcombine.high %v592_v3, %v600_v4  ;;  %v4590_v11 = vcombine.high %v593_v5, %v601_v6  ;;  %v4589_v13 = vcombine.low %v593_v5, %v601_v6 }
 0x21a   :  { %3712 = vmatpush1.bf16.msra.mxu0 %v4475_v12  ;;  %3794 = vmatpush1.bf16.msra.mxu1 %v4477_v14  ;;  %v4587_v12 = vcombine.low %v592_v3, %v600_v4  ;;  %v3922_v14 = vld [vmem:[#allocation7 + $0x8] sm:$0xff] }
 0x21b   :  { %3713 = vmatprep.subr.bf16.mxu0 %v4492_v15  ;;  %3795 = vmatprep.subr.bf16.mxu1 %v4494_v17  ;;  %v3960_v15 = vrot.slane %v3922_v14, %v3927_v43  ;;  %v3964_v17 = vrot.slane %v3922_v14, %v3931_v45  ;;  %v3968_v18 = vrot.slane %v3922_v14, %v3935_v46 }
 0x21c   :  { %v3972_v19 = vrot.slane %v3922_v14, %v3939_v47  ;;  %v3976_v35 = vrot.slane %v3922_v14, %v3943_v61  ;;  %v3980_v36 = vrot.slane %v3922_v14, %v3947_v62  ;;  %v3984_v63 = vrot.slane %v3922_v14, %v3951_v0 }
 0x21d   :  { %v4023_v59 = vcombine.low %v3960_v15, %v3964_v17 }
 0x21e   :  { %3714 = vmatpush1.bf16.msra.mxu0 %v4491_v21  ;;  %3796 = vmatpush1.bf16.msra.mxu1 %v4493_v22  ;;  %v4024_v20 = vcombine.low %v3968_v18, %v3972_v19 }
 0x21f   :  { %3715 = vmatprep.subr.bf16.mxu0 %v4508_v23  ;;  %3797 = vmatprep.subr.bf16.mxu1 %v4510_v24 }
 0x220   :  { %v4038_v24 = vrot.slane %v4024_v20, %v4765_v53 }
 0x222   :  { %3716 = vmatpush1.bf16.msra.mxu0 %v4507_v29  ;;  %3798 = vmatpush1.bf16.msra.mxu1 %v4509_v30 }
 0x223   :  { %3717 = vmatprep.subr.bf16.mxu0 %v4524_v31  ;;  %3799 = vmatprep.subr.bf16.mxu1 %v4526_v32 }
 0x226   :  { %3718 = vmatpush1.bf16.msra.mxu0 %v4523_v37  ;;  %3800 = vmatpush1.bf16.msra.mxu1 %v4525_v9  ;;  %v3988_v37 = vrot.slane %v3922_v14, %v3955_v34  ;;  %v4040_v9 = vcombine.low %v3976_v35, %v3980_v36 }
 0x227   :  { %3719 = vmatprep.subr.bf16.mxu0 %v4540_v39  ;;  %3801 = vmatprep.subr.bf16.mxu1 %v4542_v40 }
 0x228   :  { %v4041_v39 = vcombine.low %v3984_v63, %v3988_v37  ;;  %v4048_v48 = vrot.slane %v4040_v9, %v4765_v53 }
 0x22a   :  { %3720 = vmatpush1.bf16.msra.mxu0 %v4539_v50  ;;  %3802 = vmatpush1.bf16.msra.mxu1 %v4541_v51  ;;  %v4055_v16 = vrot.slane %v4041_v39, %v4765_v53 }
 0x22b   :  { %3721 = vmatprep.subr.bf16.mxu0 %v4556_v52  ;;  %3803 = vmatprep.subr.bf16.mxu1 %v4558_v25 }
 0x22c   :  { %v4056_v34 = vcombine.low %v4048_v48, %v4055_v16 }
 0x22e   :  { %3722 = vmatpush1.bf16.msra.mxu0 %v4555_v58  ;;  %3804 = vmatpush1.bf16.msra.mxu1 %v4557_v60 }
 0x22f   :  { %3723 = vmatprep.subr.bf16.mxu0 %v4572_v1  ;;  %3805 = vmatprep.subr.bf16.mxu1 %v4574_v2 }
 0x232   :  { %3724 = vmatpush1.bf16.msra.mxu0 %v4571_v7  ;;  %3806 = vmatpush1.bf16.msra.mxu1 %v4573_v8 }
 0x233   :  { %3725 = vmatprep.subr.bf16.mxu0 %v4588_v10  ;;  %3807 = vmatprep.subr.bf16.mxu1 %v4590_v11 }
 0x236   :  { %3726 = vmatpush1.bf16.msra.mxu0 %v4587_v12  ;;  %3808 = vmatpush1.bf16.msra.mxu1 %v4589_v13 }
 0x239   :  { %3728 = vmatmul.mubr.bf16.vlgmr.msra.gmra.mrb[12].mxu0 %v4798_v38  ;;  %3810 = vmatmul.mubr.bf16.vlgmr.msra.gmra.mrb[12].mxu1 %v4798_v38  ;;  %v4031_v38 = vrot.slane %v4023_v59, %v4765_v53 }
 0x23b   :  { %v4039_v30 = vcombine.low %v4031_v38, %v4038_v24 }
 0x28c   :  { %v3565_v21 = vpop.f32.mrb[8].mxu0  ;;  %v3647_v22 = vpop.f32.mrb[8].mxu1 }
 0x28d   :  { %v3567_v23 = vpop.f32.mrb[9].mxu0  ;;  %v3649_v43 = vpop.f32.mrb[9].mxu1 }
 0x28e   :  { %v3868_v49 = vcombine.low %v3565_v21, %v3567_v23  ;;  %v3569_v26 = vpop.f32.mrb[10].mxu0  ;;  %v3869_v27 = vcombine.low %v3647_v22, %v3649_v43  ;;  %v3651_v45 = vpop.f32.mrb[10].mxu1 }
 0x28f   :  { %v3570_v28 = vpop.f32.mrb[11].mxu0  ;;  %v3652_v29 = vpop.f32.mrb[11].mxu1 }
 0x290   :  { %v3876_v46 = vrot.slane %v3868_v49, %v4765_v53  ;;  %v3883_v47 = vrot.slane %v3869_v27, %v4765_v53 }
 0x292   :  { %v3884_v31 = vcombine.low %v3876_v46, %v3883_v47 }
 0x294   :  { %v4063_v32 = vadd.f32 %v4039_v30, %v3884_v31 }
 0x296   :  { %v4067_v33 = vmax.f32 %v4063_v32, 0.0 }
 0x298   :  { %4071 = vst [vmem:[%s4907_s3 + $0x10] sm:$0xff] %v4067_v33 }
 0x30c   :  { %v3729_v40 = vpop.f32.mrb[12].mxu0  ;;  %v3811_v41 = vpop.f32.mrb[12].mxu1 }
 0x30d   :  { %v3731_v42 = vpop.f32.mrb[13].mxu0  ;;  %v3813_v61 = vpop.f32.mrb[13].mxu1 }
 0x30e   :  { %v3885_v50 = vcombine.low %v3729_v40, %v3731_v42  ;;  %v3733_v51 = vpop.f32.mrb[14].mxu0  ;;  %v3886_v52 = vcombine.low %v3811_v41, %v3813_v61  ;;  %v3815_v62 = vpop.f32.mrb[14].mxu1 }
 0x30f   :  { %v3734_v25 = vpop.f32.mrb[15].mxu0  ;;  %v3816_v54 = vpop.f32.mrb[15].mxu1 }
 0x310   :  { %v3893_v0 = vrot.slane %v3885_v50, %v4765_v53  ;;  %v3900_v44 = vrot.slane %v3886_v52, %v4765_v53 }
 0x312   :  { %v3901_v55 = vcombine.low %v3893_v0, %v3900_v44 }
 0x314   :  { %v4064_v56 = vadd.f32 %v4056_v34, %v3901_v55 }
 0x316   :  { %v4068_v57 = vmax.f32 %v4064_v56, 0.0 }
 0x318   :  { %4072 = vst [vmem:[%s4907_s3 + $0x18] sm:$0xff] %v4068_v57 }
 0x319   :  { %4077 = vsyncpa [#allocation4], 1 }
 0x31a   :  { %4078 = vsyncpa [#allocation6], 1 }

// kernel: classifier_forward.4
= control target key start
LH: loop header
LB: loop body
LE: loop exit
PB: predicated region body
PF: predicated region fallthrough
CT: control target
= control target key end

     0   :  { %8 = vsyncpa [#allocation4], 0  ;;  %s9201_s0 = inlined_call_operand.vmem [shape: f32[2,2048], index: 0, kind: input, shape index: {}]   ;;  %s9202_s1 = inlined_call_operand.hbm [shape: bf16[2048,1024], index: 1, kind: input, shape index: {}]   ;;  %s9203_s2 = inlined_call_operand.hbm [shape: f32[1,1024], index: 2, kind: input, shape index: {}]   ;;  %s9204_s3 = inlined_call_operand.vmem [shape: f32[2,1024], index: 3, kind: output, shape index: {}]  }
   0x1   :  { %9 = vsyncpa [#allocation6], 0  ;;  %s8941_s12 = smov [#allocation3]   ;;  %s8893_s16 = scalar_lea.hbm %s9202_s1, 131072 }
   0x2   :  { %s17_s13 = sshll.u32 %s8941_s12, 4  ;;  %p8894_p0 = scmp.ne.s32.totalorder %s9202_s1, %s8893_s16  ;;  %s18_s13 = int_to_ptr.vmem [resolvable:$true] %s17_s13 }
   0x3   :  { %p8897_p1 = scmp.lt.u32.totalorder %s8893_s16, %s9202_s1 }
   0x5   :  { %p8899_p2 = pnand %p8897_p1, %p8894_p0 }
   0x7   :  { %8902 = shalt.err (!%p8899_p2)
}
   0x8   :  { %s8903_s21 = scalar_lea.vmem %s18_s13, 131072  ;;  %p8908_p4 = scmp.lt.s32.totalorder %s18_s13, %s18_s13 }
   0x9   :  { %p8904_p3 = scmp.ne.s32.totalorder %s18_s13, %s8903_s21  ;;  %p8909_p5 = scmp.lt.s32.totalorder %s8903_s21, %s8903_s21 }
   0xb   :  { %p8910_p6 = por %p8909_p5, %p8908_p4 }
   0xd   :  { %p8911_p7 = pnand %p8910_p6, %p8904_p3 }
   0xf   :  { %8914 = shalt.err (!%p8911_p7)
}
  0x10   :  { %s8942_s22 = smov 512   ;;  %s8943_s23 = smov 32  }
  0x11   :  { %23 = dma.hbm_to_vmem [thread:$0]  %s9202_s1, 131072, %s18_s13, [#allocation4], %s8942_s22, %s8942_s22, %s8943_s23  }
  0x12   :  { %s8944_s26 = smov [#allocation5]   ;;  %s8915_s30 = scalar_lea.hbm %s9203_s2, 128 }
  0x13   :  { %s30_s27 = sshll.u32 %s8944_s26, 4  ;;  %p8916_p8 = scmp.ne.s32.totalorder %s9203_s2, %s8915_s30  ;;  %s31_s27 = int_to_ptr.vmem [resolvable:$true] %s30_s27 }
  0x14   :  { %p8919_p9 = scmp.lt.u32.totalorder %s8915_s30, %s9203_s2 }
  0x16   :  { %p8921_p10 = pnand %p8919_p9, %p8916_p8 }
  0x18   :  { %8924 = shalt.err (!%p8921_p10)
}
  0x19   :  { %s8925_s8 = scalar_lea.vmem %s31_s27, 128  ;;  %p8930_p12 = scmp.lt.s32.totalorder %s31_s27, %s31_s27 }
  0x1a   :  { %p8926_p11 = scmp.ne.s32.totalorder %s31_s27, %s8925_s8  ;;  %p8931_p13 = scmp.lt.s32.totalorder %s8925_s8, %s8925_s8 }
  0x1c   :  { %p8932_p0 = por %p8931_p13, %p8930_p12 }
  0x1e   :  { %p8933_p1 = pnand %p8932_p0, %p8926_p11 }
  0x20   :  { %8936 = shalt.err (!%p8933_p1)
}
  0x21   :  { %33 = dma.hbm_to_vmem [thread:$0]  %s9203_s2, 128, %s31_s27, [#allocation6]  }
  0x22   :  { %8937 = dma.done.wait [#allocation4], 131072  }
  0x23   :  { %8938 = vsyncadd [#allocation4], 4294836224 }
  0x24   :  { %8939 = dma.done.wait [#allocation6], 128  }
  0x25   :  { %8940 = vsyncadd [#allocation6], 4294967168  ;;  %v156_v0 = vld [vmem:[#allocation3] sm:$0xff]  ;;  %v157_v2 = vld [vmem:[#allocation3 + $0x8] sm:$0xff]  ;;  %v8945_v32 = vmov 1983009808   ;;  %v60_v34 = vlaneseq }
  0x26   :  { %v160_v1 = vld [vmem:[#allocation3 + $0x20] sm:$0xff]  ;;  %v161_v4 = vld [vmem:[#allocation3 + $0x28] sm:$0xff]  ;;  %v58_v33 = vunpack.c.l.s4 %v8945_v32 }
  0x27   :  { %v7748_v3 = vcombine.high %v156_v0, %v160_v1  ;;  %v7747_v5 = vcombine.low %v156_v0, %v160_v1  ;;  %v164_v6 = vld [vmem:[#allocation3 + $0x40] sm:$0xff]  ;;  %v7750_v8 = vcombine.high %v157_v2, %v161_v4  ;;  %v7749_v9 = vcombine.low %v157_v2, %v161_v4  ;;  %v165_v11 = vld [vmem:[#allocation3 + $0x48] sm:$0xff] }
  0x28   :  { %v168_v7 = vld [vmem:[#allocation3 + $0x60] sm:$0xff]  ;;  %v169_v12 = vld [vmem:[#allocation3 + $0x68] sm:$0xff]  ;;  %v59_v43 = vunpack.c.0.s8 %v58_v33  ;;  %v8990_v44 = vshrl.u32 %v60_v34, 7 }
  0x29   :  { %v7756_v10 = vcombine.high %v164_v6, %v168_v7  ;;  %v172_v13 = vld [vmem:[#allocation3 + $0x80] sm:$0xff]  ;;  %6300 = vmatprep.subr.bf16.mxu0 %v7748_v3  ;;  %v7758_v14 = vcombine.high %v165_v11, %v169_v12  ;;  %v173_v16 = vld [vmem:[#allocation3 + $0x88] sm:$0xff]  ;;  %6628 = vmatprep.subr.bf16.mxu1 %v7750_v8  ;;  %v7755_v18 = vcombine.low %v164_v6, %v168_v7 }
  0x2a   :  { %v176_v15 = vld [vmem:[#allocation3 + $0xa0] sm:$0xff]  ;;  %v177_v17 = vld [vmem:[#allocation3 + $0xa8] sm:$0xff]  ;;  %6301 = vmatpush1.bf16.msra.mxu0 %v7747_v5  ;;  %6629 = vmatpush1.bf16.msra.mxu1 %v7749_v9  ;;  %v7757_v19 = vcombine.low %v165_v11, %v169_v12  ;;  %v8993_v53 = vsub.s32 %v59_v43, %v8990_v44 }
  0x2b   :  { %6302 = vmatprep.subr.bf16.mxu0 %v7756_v10  ;;  %v7764_v20 = vcombine.high %v172_v13, %v176_v15  ;;  %6630 = vmatprep.subr.bf16.mxu1 %v7758_v14  ;;  %v7766_v21 = vcombine.high %v173_v16, %v177_v17  ;;  %v180_v22 = vld [vmem:[#allocation3 + $0xc0] sm:$0xff]  ;;  %v181_v24 = vld [vmem:[#allocation3 + $0xc8] sm:$0xff]  ;;  %v7763_v26 = vcombine.low %v172_v13, %v176_v15 }
  0x2c   :  { %v184_v23 = vld [vmem:[#allocation3 + $0xe0] sm:$0xff]  ;;  %v185_v25 = vld [vmem:[#allocation3 + $0xe8] sm:$0xff]  ;;  %v7765_v27 = vcombine.low %v173_v16, %v177_v17 }
  0x2d   :  { %v7772_v28 = vcombine.high %v180_v22, %v184_v23  ;;  %v7774_v29 = vcombine.high %v181_v24, %v185_v25  ;;  %v188_v30 = vld [vmem:[#allocation3 + $0x100] sm:$0xff]  ;;  %v189_v35 = vld [vmem:[#allocation3 + $0x108] sm:$0xff]  ;;  %v7771_v37 = vcombine.low %v180_v22, %v184_v23  ;;  %v7773_v38 = vcombine.low %v181_v24, %v185_v25 }
  0x2e   :  { %6303 = vmatpush1.bf16.msra.mxu0 %v7755_v18  ;;  %6631 = vmatpush1.bf16.msra.mxu1 %v7757_v19  ;;  %v192_v31 = vld [vmem:[#allocation3 + $0x120] sm:$0xff]  ;;  %v193_v36 = vld [vmem:[#allocation3 + $0x128] sm:$0xff] }
  0x2f   :  { %6304 = vmatprep.subr.bf16.mxu0 %v7764_v20  ;;  %6632 = vmatprep.subr.bf16.mxu1 %v7766_v21  ;;  %v7780_v39 = vcombine.high %v188_v30, %v192_v31  ;;  %v7782_v40 = vcombine.high %v189_v35, %v193_v36  ;;  %v196_v41 = vld [vmem:[#allocation3 + $0x140] sm:$0xff]  ;;  %v197_v45 = vld [vmem:[#allocation3 + $0x148] sm:$0xff]  ;;  %v7779_v47 = vcombine.low %v188_v30, %v192_v31 }
  0x30   :  { %v200_v42 = vld [vmem:[#allocation3 + $0x160] sm:$0xff]  ;;  %v201_v46 = vld [vmem:[#allocation3 + $0x168] sm:$0xff]  ;;  %v7781_v48 = vcombine.low %v189_v35, %v193_v36 }
  0x31   :  { %v7788_v49 = vcombine.high %v196_v41, %v200_v42  ;;  %v7790_v50 = vcombine.high %v197_v45, %v201_v46  ;;  %v204_v51 = vld [vmem:[#allocation3 + $0x180] sm:$0xff]  ;;  %v205_v54 = vld [vmem:[#allocation3 + $0x188] sm:$0xff]  ;;  %v7787_v56 = vcombine.low %v196_v41, %v200_v42  ;;  %v7789_v57 = vcombine.low %v197_v45, %v201_v46 }
  0x32   :  { %6305 = vmatpush1.bf16.msra.mxu0 %v7763_v26  ;;  %6633 = vmatpush1.bf16.msra.mxu1 %v7765_v27  ;;  %v208_v52 = vld [vmem:[#allocation3 + $0x1a0] sm:$0xff]  ;;  %v209_v55 = vld [vmem:[#allocation3 + $0x1a8] sm:$0xff] }
  0x33   :  { %6306 = vmatprep.subr.bf16.mxu0 %v7772_v28  ;;  %6634 = vmatprep.subr.bf16.mxu1 %v7774_v29  ;;  %v7796_v58 = vcombine.high %v204_v51, %v208_v52  ;;  %v8998_v59 = vld [vmem:[%s9201_s0] sm:$0xff]  ;;  %v7798_v60 = vcombine.high %v205_v54, %v209_v55  ;;  %v213_v0 = vld [vmem:[#allocation3 + $0x1c8] sm:$0xff]  ;;  %v7795_v2 = vcombine.low %v204_v51, %v208_v52 }
  0x34   :  { %v212_v61 = vld [vmem:[#allocation3 + $0x1c0] sm:$0xff]  ;;  %v9002_v63 = vrot.slane %v8998_v59, %v8993_v53  ;;  %v217_v1 = vld [vmem:[#allocation3 + $0x1e8] sm:$0xff]  ;;  %v7797_v4 = vcombine.low %v205_v54, %v209_v55 }
  0x35   :  { %v216_v62 = vld [vmem:[#allocation3 + $0x1e0] sm:$0xff]  ;;  %v7806_v6 = vcombine.high %v213_v0, %v217_v1  ;;  %v221_v10 = vld [vmem:[#allocation3 + $0x208] sm:$0xff]  ;;  %v7805_v13 = vcombine.low %v213_v0, %v217_v1 }
  0x36   :  { %6307 = vmatpush1.bf16.msra.mxu0 %v7771_v37  ;;  %6635 = vmatpush1.bf16.msra.mxu1 %v7773_v38  ;;  %v71_v3 = vcombine.high %v9002_v63, %v9002_v63  ;;  %v7804_v5 = vcombine.high %v212_v61, %v216_v62  ;;  %v220_v7 = vld [vmem:[#allocation3 + $0x200] sm:$0xff]  ;;  %v225_v11 = vld [vmem:[#allocation3 + $0x228] sm:$0xff]  ;;  %v7803_v12 = vcombine.low %v212_v61, %v216_v62 }
  0x37   :  { %6308 = vmatprep.subr.bf16.mxu0 %v7780_v39  ;;  %6636 = vmatprep.subr.bf16.mxu1 %v7782_v40  ;;  %v224_v8 = vld [vmem:[#allocation3 + $0x220] sm:$0xff]  ;;  %v7814_v15 = vcombine.high %v221_v10, %v225_v11  ;;  %v229_v18 = vld [vmem:[#allocation3 + $0x248] sm:$0xff]  ;;  %v7813_v21 = vcombine.low %v221_v10, %v225_v11 }
  0x38   :  { %v9006_v9 = vpack.c.bf16 %v71_v3, %v71_v3  ;;  %v7812_v14 = vcombine.high %v220_v7, %v224_v8  ;;  %v228_v16 = vld [vmem:[#allocation3 + $0x240] sm:$0xff]  ;;  %v233_v19 = vld [vmem:[#allocation3 + $0x268] sm:$0xff]  ;;  %v7811_v20 = vcombine.low %v220_v7, %v224_v8 }
  0x39   :  { %v232_v17 = vld [vmem:[#allocation3 + $0x260] sm:$0xff]  ;;  %v7822_v23 = vcombine.high %v229_v18, %v233_v19  ;;  %v237_v26 = vld [vmem:[#allocation3 + $0x288] sm:$0xff]  ;;  %v7821_v29 = vcombine.low %v229_v18, %v233_v19 }
  0x3a   :  { %6309 = vmatpush1.bf16.msra.mxu0 %v7779_v47  ;;  %6637 = vmatpush1.bf16.msra.mxu1 %v7781_v48  ;;  %v7820_v22 = vcombine.high %v228_v16, %v232_v17  ;;  %v236_v24 = vld [vmem:[#allocation3 + $0x280] sm:$0xff]  ;;  %v241_v27 = vld [vmem:[#allocation3 + $0x2a8] sm:$0xff]  ;;  %v7819_v28 = vcombine.low %v228_v16, %v232_v17 }
  0x3b   :  { %6310 = vmatprep.subr.bf16.mxu0 %v7788_v49  ;;  %6638 = vmatprep.subr.bf16.mxu1 %v7790_v50  ;;  %v240_v25 = vld [vmem:[#allocation3 + $0x2a0] sm:$0xff]  ;;  %v7830_v31 = vcombine.high %v237_v26, %v241_v27  ;;  %v245_v34 = vld [vmem:[#allocation3 + $0x2c8] sm:$0xff]  ;;  %v7829_v37 = vcombine.low %v237_v26, %v241_v27 }
  0x3c   :  { %6332 = vmatprep.mubr.bf16.mxu0 %v9006_v9  ;;  %6660 = vmatprep.mubr.bf16.mxu1 %v9006_v9  ;;  %v7828_v30 = vcombine.high %v236_v24, %v240_v25  ;;  %v244_v32 = vld [vmem:[#allocation3 + $0x2c0] sm:$0xff]  ;;  %v249_v35 = vld [vmem:[#allocation3 + $0x2e8] sm:$0xff]  ;;  %v7827_v36 = vcombine.low %v236_v24, %v240_v25  ;;  %v9019_v25 = vpack.c.bf16 %v9002_v63, %v9002_v63 }
  0x3d   :  { %v248_v33 = vld [vmem:[#allocation3 + $0x2e0] sm:$0xff]  ;;  %v7838_v39 = vcombine.high %v245_v34, %v249_v35  ;;  %v253_v42 = vld [vmem:[#allocation3 + $0x308] sm:$0xff]  ;;  %v7837_v46 = vcombine.low %v245_v34, %v249_v35 }
  0x3e   :  { %6311 = vmatpush1.bf16.msra.mxu0 %v7787_v56  ;;  %6639 = vmatpush1.bf16.msra.mxu1 %v7789_v57  ;;  %v7836_v38 = vcombine.high %v244_v32, %v248_v33  ;;  %v252_v40 = vld [vmem:[#allocation3 + $0x300] sm:$0xff]  ;;  %v257_v43 = vld [vmem:[#allocation3 + $0x328] sm:$0xff]  ;;  %v7835_v45 = vcombine.low %v244_v32, %v248_v33 }
  0x3f   :  { %6312 = vmatprep.subr.bf16.mxu0 %v7796_v58  ;;  %6640 = vmatprep.subr.bf16.mxu1 %v7798_v60  ;;  %v256_v41 = vld [vmem:[#allocation3 + $0x320] sm:$0xff]  ;;  %v7846_v48 = vcombine.high %v253_v42, %v257_v43  ;;  %v261_v51 = vld [vmem:[#allocation3 + $0x348] sm:$0xff]  ;;  %v7845_v55 = vcombine.low %v253_v42, %v257_v43 }
  0x40   :  { %v7844_v47 = vcombine.high %v252_v40, %v256_v41  ;;  %v260_v49 = vld [vmem:[#allocation3 + $0x340] sm:$0xff]  ;;  %v265_v52 = vld [vmem:[#allocation3 + $0x368] sm:$0xff]  ;;  %v7843_v54 = vcombine.low %v252_v40, %v256_v41 }
  0x41   :  { %v264_v50 = vld [vmem:[#allocation3 + $0x360] sm:$0xff]  ;;  %v7854_v57 = vcombine.high %v261_v51, %v265_v52  ;;  %v269_v61 = vld [vmem:[#allocation3 + $0x388] sm:$0xff]  ;;  %v7853_v1 = vcombine.low %v261_v51, %v265_v52 }
  0x42   :  { %6313 = vmatpush1.bf16.msra.mxu0 %v7795_v2  ;;  %6641 = vmatpush1.bf16.msra.mxu1 %v7797_v4  ;;  %v7852_v56 = vcombine.high %v260_v49, %v264_v50  ;;  %v268_v58 = vld [vmem:[#allocation3 + $0x380] sm:$0xff]  ;;  %v273_v62 = vld [vmem:[#allocation3 + $0x3a8] sm:$0xff]  ;;  %v7851_v0 = vcombine.low %v260_v49, %v264_v50 }
  0x43   :  { %6314 = vmatprep.subr.bf16.mxu0 %v7804_v5  ;;  %6642 = vmatprep.subr.bf16.mxu1 %v7806_v6  ;;  %v272_v60 = vld [vmem:[#allocation3 + $0x3a0] sm:$0xff]  ;;  %v7862_v3 = vcombine.high %v269_v61, %v273_v62  ;;  %v56_v6 = vcombine.high %v8998_v59, %v8998_v59  ;;  %v277_v7 = vld [vmem:[#allocation3 + $0x3c8] sm:$0xff]  ;;  %v7861_v11 = vcombine.low %v269_v61, %v273_v62 }
  0x44   :  { %v7860_v2 = vcombine.high %v268_v58, %v272_v60  ;;  %v276_v4 = vld [vmem:[#allocation3 + $0x3c0] sm:$0xff]  ;;  %v281_v8 = vld [vmem:[#allocation3 + $0x3e8] sm:$0xff]  ;;  %v7859_v10 = vcombine.low %v268_v58, %v272_v60 }
  0x45   :  { %v280_v5 = vld [vmem:[#allocation3 + $0x3e0] sm:$0xff]  ;;  %v9013_v16 = vrot.slane %v56_v6, %v8993_v53  ;;  %v285_v17 = vld [vmem:[#allocation3 + $0x408] sm:$0xff]  ;;  %v7869_v59 = vcombine.low %v277_v7, %v281_v8 }
  0x46   :  { %6315 = vmatpush1.bf16.msra.mxu0 %v7803_v12  ;;  %6643 = vmatpush1.bf16.msra.mxu1 %v7805_v13  ;;  %v7868_v12 = vcombine.high %v276_v4, %v280_v5  ;;  %v7870_v13 = vcombine.high %v277_v7, %v281_v8  ;;  %v289_v18 = vld [vmem:[#allocation3 + $0x428] sm:$0xff]  ;;  %v7867_v19 = vcombine.low %v276_v4, %v280_v5  ;;  %v300_v32 = vld [vmem:[#allocation3 + $0x480] sm:$0xff] }
  0x47   :  { %6316 = vmatprep.subr.bf16.mxu0 %v7812_v14  ;;  %6644 = vmatprep.subr.bf16.mxu1 %v7814_v15  ;;  %v284_v14 = vld [vmem:[#allocation3 + $0x400] sm:$0xff]  ;;  %v72_v24 = vcombine.high %v9013_v16, %v9013_v16  ;;  %v293_v26 = vld [vmem:[#allocation3 + $0x448] sm:$0xff] }
  0x48   :  { %v288_v15 = vld [vmem:[#allocation3 + $0x420] sm:$0xff]  ;;  %v297_v27 = vld [vmem:[#allocation3 + $0x468] sm:$0xff] }
  0x49   :  { %v304_v33 = vld [vmem:[#allocation3 + $0x4a0] sm:$0xff]  ;;  %v9021_v34 = vpack.c.bf16 %v72_v24, %v72_v24  ;;  %v301_v35 = vld [vmem:[#allocation3 + $0x488] sm:$0xff] }
  0x4a   :  { %6317 = vmatpush1.bf16.msra.mxu0 %v7811_v20  ;;  %6645 = vmatpush1.bf16.msra.mxu1 %v7813_v21  ;;  %v7876_v20 = vcombine.high %v284_v14, %v288_v15  ;;  %v7878_v21 = vcombine.high %v285_v17, %v289_v18  ;;  %v308_v40 = vld [vmem:[#allocation3 + $0x4c0] sm:$0xff]  ;;  %v309_v42 = vld [vmem:[#allocation3 + $0x4c8] sm:$0xff] }
  0x4b   :  { %6318 = vmatprep.subr.bf16.mxu0 %v7820_v22  ;;  %6646 = vmatprep.subr.bf16.mxu1 %v7822_v23  ;;  %v292_v22 = vld [vmem:[#allocation3 + $0x440] sm:$0xff]  ;;  %v313_v43 = vld [vmem:[#allocation3 + $0x4e8] sm:$0xff] }
  0x4c   :  { %v296_v23 = vld [vmem:[#allocation3 + $0x460] sm:$0xff]  ;;  %v317_v51 = vld [vmem:[#allocation3 + $0x508] sm:$0xff] }
  0x4d   :  { %v7883_v63 = vcombine.low %v292_v22, %v296_v23  ;;  %v312_v41 = vld [vmem:[#allocation3 + $0x4e0] sm:$0xff]  ;;  %v321_v52 = vld [vmem:[#allocation3 + $0x528] sm:$0xff] }
  0x4e   :  { %6319 = vmatpush1.bf16.msra.mxu0 %v7819_v28  ;;  %6647 = vmatpush1.bf16.msra.mxu1 %v7821_v29  ;;  %v7875_v28 = vcombine.low %v284_v14, %v288_v15  ;;  %v7877_v29 = vcombine.low %v285_v17, %v289_v18  ;;  %v316_v49 = vld [vmem:[#allocation3 + $0x500] sm:$0xff]  ;;  %v325_v61 = vld [vmem:[#allocation3 + $0x548] sm:$0xff] }
  0x4f   :  { %6320 = vmatprep.subr.bf16.mxu0 %v7828_v30  ;;  %6648 = vmatprep.subr.bf16.mxu1 %v7830_v31  ;;  %v7884_v30 = vcombine.high %v292_v22, %v296_v23  ;;  %v7886_v31 = vcombine.high %v293_v26, %v297_v27  ;;  %v320_v50 = vld [vmem:[#allocation3 + $0x520] sm:$0xff]  ;;  %v329_v62 = vld [vmem:[#allocation3 + $0x568] sm:$0xff] }
  0x50   :  { %v324_v58 = vld [vmem:[#allocation3 + $0x540] sm:$0xff]  ;;  %v333_v6 = vld [vmem:[#allocation3 + $0x588] sm:$0xff] }
  0x51   :  { %v328_v60 = vld [vmem:[#allocation3 + $0x560] sm:$0xff]  ;;  %v337_v7 = vld [vmem:[#allocation3 + $0x5a8] sm:$0xff] }
  0x52   :  { %6321 = vmatpush1.bf16.msra.mxu0 %v7827_v36  ;;  %6649 = vmatpush1.bf16.msra.mxu1 %v7829_v37  ;;  %v305_v36 = vld [vmem:[#allocation3 + $0x4a8] sm:$0xff]  ;;  %v7885_v37 = vcombine.low %v293_v26, %v297_v27  ;;  %v332_v4 = vld [vmem:[#allocation3 + $0x580] sm:$0xff]  ;;  %v7915_v8 = vcombine.low %v324_v58, %v328_v60 }
  0x53   :  { %6322 = vmatprep.subr.bf16.mxu0 %v7836_v38  ;;  %6650 = vmatprep.subr.bf16.mxu1 %v7838_v39  ;;  %v7892_v38 = vcombine.high %v300_v32, %v304_v33  ;;  %v7894_v39 = vcombine.high %v301_v35, %v305_v36  ;;  %v336_v5 = vld [vmem:[#allocation3 + $0x5a0] sm:$0xff]  ;;  %v341_v15 = vld [vmem:[#allocation3 + $0x5c8] sm:$0xff] }
  0x54   :  { %v344_v14 = vld [vmem:[#allocation3 + $0x5e0] sm:$0xff]  ;;  %v345_v17 = vld [vmem:[#allocation3 + $0x5e8] sm:$0xff]  ;;  %v7923_v18 = vcombine.low %v332_v4, %v336_v5 }
  0x55   :  { %v352_v22 = vld [vmem:[#allocation3 + $0x620] sm:$0xff]  ;;  %v349_v23 = vld [vmem:[#allocation3 + $0x608] sm:$0xff]  ;;  %v7933_v27 = vcombine.low %v341_v15, %v345_v17 }
  0x56   :  { %6323 = vmatpush1.bf16.msra.mxu0 %v7835_v45  ;;  %6651 = vmatpush1.bf16.msra.mxu1 %v7837_v46  ;;  %v7891_v45 = vcombine.low %v300_v32, %v304_v33  ;;  %v7893_v46 = vcombine.low %v301_v35, %v305_v36  ;;  %v353_v24 = vld [vmem:[#allocation3 + $0x628] sm:$0xff] }
  0x57   :  { %6324 = vmatprep.subr.bf16.mxu0 %v7844_v47  ;;  %6652 = vmatprep.subr.bf16.mxu1 %v7846_v48  ;;  %v7900_v47 = vcombine.high %v308_v40, %v312_v41  ;;  %v7902_v48 = vcombine.high %v309_v42, %v313_v43  ;;  %v357_v32 = vld [vmem:[#allocation3 + $0x648] sm:$0xff]  ;;  %v7941_v36 = vcombine.low %v349_v23, %v353_v24 }
  0x58   :  { %v361_v33 = vld [vmem:[#allocation3 + $0x668] sm:$0xff] }
  0x5a   :  { %6325 = vmatpush1.bf16.msra.mxu0 %v7843_v54  ;;  %6653 = vmatpush1.bf16.msra.mxu1 %v7845_v55  ;;  %v7899_v54 = vcombine.low %v308_v40, %v312_v41  ;;  %v7901_v55 = vcombine.low %v309_v42, %v313_v43  ;;  %v365_v40 = vld [vmem:[#allocation3 + $0x688] sm:$0xff]  ;;  %v7949_v43 = vcombine.low %v357_v32, %v361_v33 }
  0x5b   :  { %6326 = vmatprep.subr.bf16.mxu0 %v7852_v56  ;;  %6654 = vmatprep.subr.bf16.mxu1 %v7854_v57  ;;  %v7908_v56 = vcombine.high %v316_v49, %v320_v50  ;;  %v7910_v57 = vcombine.high %v317_v51, %v321_v52  ;;  %v369_v41 = vld [vmem:[#allocation3 + $0x6a8] sm:$0xff] }
  0x5e   :  { %6327 = vmatpush1.bf16.msra.mxu0 %v7851_v0  ;;  %6655 = vmatpush1.bf16.msra.mxu1 %v7853_v1  ;;  %v7907_v0 = vcombine.low %v316_v49, %v320_v50  ;;  %v7909_v1 = vcombine.low %v317_v51, %v321_v52  ;;  %v373_v49 = vld [vmem:[#allocation3 + $0x6c8] sm:$0xff]  ;;  %v7957_v52 = vcombine.low %v365_v40, %v369_v41 }
  0x5f   :  { %6328 = vmatprep.subr.bf16.mxu0 %v7860_v2  ;;  %6656 = vmatprep.subr.bf16.mxu1 %v7862_v3  ;;  %v7916_v2 = vcombine.high %v324_v58, %v328_v60  ;;  %v7918_v3 = vcombine.high %v325_v61, %v329_v62  ;;  %v377_v50 = vld [vmem:[#allocation3 + $0x6e8] sm:$0xff] }
  0x60   :  { %v381_v58 = vld [vmem:[#allocation3 + $0x708] sm:$0xff] }
  0x61   :  { %v385_v60 = vld [vmem:[#allocation3 + $0x728] sm:$0xff] }
  0x62   :  { %6329 = vmatpush1.bf16.msra.mxu0 %v7859_v10  ;;  %6657 = vmatpush1.bf16.msra.mxu1 %v7861_v11  ;;  %v7917_v10 = vcombine.low %v325_v61, %v329_v62  ;;  %v7924_v11 = vcombine.high %v332_v4, %v336_v5  ;;  %v7965_v62 = vcombine.low %v373_v49, %v377_v50  ;;  %v389_v4 = vld [vmem:[#allocation3 + $0x748] sm:$0xff] }
  0x63   :  { %6330 = vmatprep.subr.bf16.mxu0 %v7868_v12  ;;  %6658 = vmatprep.subr.bf16.mxu1 %v7870_v13  ;;  %v7926_v12 = vcombine.high %v333_v6, %v337_v7  ;;  %v340_v13 = vld [vmem:[#allocation3 + $0x5c0] sm:$0xff]  ;;  %v393_v5 = vld [vmem:[#allocation3 + $0x768] sm:$0xff] }
  0x64   :  { %v7931_v26 = vcombine.low %v340_v13, %v344_v14 }
  0x66   :  { %6331 = vmatpush1.bf16.msra.mxu0 %v7867_v19  ;;  %6659 = vmatpush1.bf16.msra.mxu1 %v7869_v59  ;;  %v7925_v19 = vcombine.low %v333_v6, %v337_v7  ;;  %v7932_v59 = vcombine.high %v340_v13, %v344_v14  ;;  %v7973_v7 = vcombine.low %v381_v58, %v385_v60  ;;  %v397_v13 = vld [vmem:[#allocation3 + $0x788] sm:$0xff] }
  0x67   :  { %6341 = vmatprep.subr.bf16.mxu0 %v7876_v20  ;;  %6669 = vmatprep.subr.bf16.mxu1 %v7878_v21  ;;  %v7934_v20 = vcombine.high %v341_v15, %v345_v17  ;;  %v348_v21 = vld [vmem:[#allocation3 + $0x600] sm:$0xff]  ;;  %v401_v14 = vld [vmem:[#allocation3 + $0x7a8] sm:$0xff]  ;;  %v7981_v17 = vcombine.low %v389_v4, %v393_v5 }
  0x68   :  { %v7939_v35 = vcombine.low %v348_v21, %v352_v22 }
  0x69   :  { %6333 = vmatmul.mubr.bf16.vlgmr.msra.gmra.mrb[0].mxu0 %v9019_v25  ;;  %6661 = vmatmul.mubr.bf16.vlgmr.msra.gmra.mrb[0].mxu1 %v9019_v25 }
  0x6a   :  { %6342 = vmatpush1.bf16.msra.mxu0 %v7875_v28  ;;  %6670 = vmatpush1.bf16.msra.mxu1 %v7877_v29  ;;  %v7940_v28 = vcombine.high %v348_v21, %v352_v22  ;;  %v7942_v29 = vcombine.high %v349_v23, %v353_v24  ;;  %v405_v21 = vld [vmem:[#allocation3 + $0x7c8] sm:$0xff] }
  0x6b   :  { %6343 = vmatprep.subr.bf16.mxu0 %v7884_v30  ;;  %6671 = vmatprep.subr.bf16.mxu1 %v7886_v31  ;;  %v356_v30 = vld [vmem:[#allocation3 + $0x640] sm:$0xff]  ;;  %v409_v22 = vld [vmem:[#allocation3 + $0x7e8] sm:$0xff] }
  0x6c   :  { %6373 = vmatprep.mubr.bf16.mxu0 %v9021_v34  ;;  %6701 = vmatprep.mubr.bf16.mxu1 %v9021_v34  ;;  %v360_v31 = vld [vmem:[#allocation3 + $0x660] sm:$0xff]  ;;  %v9030_v23 = vld [vmem:[%s9201_s0 + $0x8] sm:$0xff] }
  0x6d   :  { %v7947_v42 = vcombine.low %v356_v30, %v360_v31 }
  0x6e   :  { %6344 = vmatpush1.bf16.msra.mxu0 %v7883_v63  ;;  %6672 = vmatpush1.bf16.msra.mxu1 %v7885_v37  ;;  %v7948_v63 = vcombine.high %v356_v30, %v360_v31  ;;  %v7950_v37 = vcombine.high %v357_v32, %v361_v33  ;;  %v416_v30 = vld [vmem:[#allocation3 + $0x820] sm:$0xff]  ;;  %v9034_v31 = vrot.slane %v9030_v23, %v8993_v53  ;;  %v413_v32 = vld [vmem:[#allocation3 + $0x808] sm:$0xff] }
  0x6f   :  { %6345 = vmatprep.subr.bf16.mxu0 %v7892_v38  ;;  %6673 = vmatprep.subr.bf16.mxu1 %v7894_v39  ;;  %v364_v38 = vld [vmem:[#allocation3 + $0x680] sm:$0xff]  ;;  %v417_v33 = vld [vmem:[#allocation3 + $0x828] sm:$0xff] }
  0x70   :  { %v368_v39 = vld [vmem:[#allocation3 + $0x6a0] sm:$0xff] }
  0x71   :  { %v7955_v51 = vcombine.low %v364_v38, %v368_v39 }
  0x72   :  { %6346 = vmatpush1.bf16.msra.mxu0 %v7891_v45  ;;  %6674 = vmatpush1.bf16.msra.mxu1 %v7893_v46  ;;  %v7956_v45 = vcombine.high %v364_v38, %v368_v39  ;;  %v7958_v46 = vcombine.high %v365_v40, %v369_v41  ;;  %v420_v38 = vld [vmem:[#allocation3 + $0x840] sm:$0xff]  ;;  %v88_v40 = vcombine.high %v9034_v31, %v9034_v31 }
  0x73   :  { %6347 = vmatprep.subr.bf16.mxu0 %v7900_v47  ;;  %6675 = vmatprep.subr.bf16.mxu1 %v7902_v48  ;;  %v372_v47 = vld [vmem:[#allocation3 + $0x6c0] sm:$0xff]  ;;  %v9040_v41 = vpack.c.bf16 %v9013_v16, %v9013_v16 }
  0x74   :  { %v376_v48 = vld [vmem:[#allocation3 + $0x6e0] sm:$0xff] }
  0x75   :  { %v7963_v61 = vcombine.low %v372_v47, %v376_v48  ;;  %v424_v39 = vld [vmem:[#allocation3 + $0x860] sm:$0xff] }
  0x76   :  { %6348 = vmatpush1.bf16.msra.mxu0 %v7899_v54  ;;  %6676 = vmatpush1.bf16.msra.mxu1 %v7901_v55  ;;  %v7964_v54 = vcombine.high %v372_v47, %v376_v48  ;;  %v7966_v55 = vcombine.high %v373_v49, %v377_v50  ;;  %v8012_v47 = vcombine.high %v420_v38, %v424_v39  ;;  %v428_v49 = vld [vmem:[#allocation3 + $0x880] sm:$0xff] }
  0x77   :  { %6349 = vmatprep.subr.bf16.mxu0 %v7908_v56  ;;  %6677 = vmatprep.subr.bf16.mxu1 %v7910_v57  ;;  %v380_v56 = vld [vmem:[#allocation3 + $0x700] sm:$0xff]  ;;  %v8011_v16 = vcombine.low %v420_v38, %v424_v39 }
  0x78   :  { %v384_v57 = vld [vmem:[#allocation3 + $0x720] sm:$0xff] }
  0x79   :  { %v7971_v6 = vcombine.low %v380_v56, %v384_v57  ;;  %v432_v50 = vld [vmem:[#allocation3 + $0x8a0] sm:$0xff] }
  0x7a   :  { %6350 = vmatpush1.bf16.msra.mxu0 %v7907_v0  ;;  %6678 = vmatpush1.bf16.msra.mxu1 %v7909_v1  ;;  %v7972_v0 = vcombine.high %v380_v56, %v384_v57  ;;  %v7974_v1 = vcombine.high %v381_v58, %v385_v60  ;;  %v8020_v56 = vcombine.high %v428_v49, %v432_v50  ;;  %v436_v58 = vld [vmem:[#allocation3 + $0x8c0] sm:$0xff] }
  0x7b   :  { %6351 = vmatprep.subr.bf16.mxu0 %v7916_v2  ;;  %6679 = vmatprep.subr.bf16.mxu1 %v7918_v3  ;;  %v388_v2 = vld [vmem:[#allocation3 + $0x740] sm:$0xff] }
  0x7c   :  { %v392_v3 = vld [vmem:[#allocation3 + $0x760] sm:$0xff] }
  0x7d   :  { %v7979_v15 = vcombine.low %v388_v2, %v392_v3  ;;  %v440_v60 = vld [vmem:[#allocation3 + $0x8e0] sm:$0xff] }
  0x7e   :  { %6352 = vmatpush1.bf16.msra.mxu0 %v7915_v8  ;;  %6680 = vmatpush1.bf16.msra.mxu1 %v7917_v10  ;;  %v7980_v8 = vcombine.high %v388_v2, %v392_v3  ;;  %v7982_v10 = vcombine.high %v389_v4, %v393_v5  ;;  %v8028_v2 = vcombine.high %v436_v58, %v440_v60  ;;  %v444_v4 = vld [vmem:[#allocation3 + $0x900] sm:$0xff] }
  0x7f   :  { %6353 = vmatprep.subr.bf16.mxu0 %v7924_v11  ;;  %6681 = vmatprep.subr.bf16.mxu1 %v7926_v12  ;;  %v396_v11 = vld [vmem:[#allocation3 + $0x780] sm:$0xff] }
  0x80   :  { %v400_v12 = vld [vmem:[#allocation3 + $0x7a0] sm:$0xff] }
  0x81   :  { %v7987_v24 = vcombine.low %v396_v11, %v400_v12  ;;  %v448_v5 = vld [vmem:[#allocation3 + $0x920] sm:$0xff] }
  0x82   :  { %6354 = vmatpush1.bf16.msra.mxu0 %v7923_v18  ;;  %6682 = vmatpush1.bf16.msra.mxu1 %v7925_v19  ;;  %v7988_v18 = vcombine.high %v396_v11, %v400_v12  ;;  %v7990_v19 = vcombine.high %v397_v13, %v401_v14  ;;  %v8036_v11 = vcombine.high %v444_v4, %v448_v5 }
  0x83   :  { %6355 = vmatprep.subr.bf16.mxu0 %v7932_v59  ;;  %6683 = vmatprep.subr.bf16.mxu1 %v7934_v20  ;;  %v404_v59 = vld [vmem:[#allocation3 + $0x7c0] sm:$0xff] }
  0x84   :  { %v408_v20 = vld [vmem:[#allocation3 + $0x7e0] sm:$0xff] }
  0x86   :  { %6356 = vmatpush1.bf16.msra.mxu0 %v7931_v26  ;;  %6684 = vmatpush1.bf16.msra.mxu1 %v7933_v27  ;;  %v7989_v26 = vcombine.low %v397_v13, %v401_v14  ;;  %v7996_v27 = vcombine.high %v404_v59, %v408_v20  ;;  %v452_v13 = vld [vmem:[#allocation3 + $0x940] sm:$0xff] }
  0x87   :  { %6357 = vmatprep.subr.bf16.mxu0 %v7940_v28  ;;  %6685 = vmatprep.subr.bf16.mxu1 %v7942_v29  ;;  %v7998_v28 = vcombine.high %v405_v21, %v409_v22  ;;  %v412_v29 = vld [vmem:[#allocation3 + $0x800] sm:$0xff] }
  0x88   :  { %v456_v14 = vld [vmem:[#allocation3 + $0x960] sm:$0xff] }
  0x8a   :  { %6358 = vmatpush1.bf16.msra.mxu0 %v7939_v35  ;;  %6686 = vmatpush1.bf16.msra.mxu1 %v7941_v36  ;;  %v7995_v35 = vcombine.low %v404_v59, %v408_v20  ;;  %v7997_v36 = vcombine.low %v405_v21, %v409_v22  ;;  %v8044_v59 = vcombine.high %v452_v13, %v456_v14  ;;  %v460_v21 = vld [vmem:[#allocation3 + $0x980] sm:$0xff] }
  0x8b   :  { %6359 = vmatprep.subr.bf16.mxu0 %v7948_v63  ;;  %6687 = vmatprep.subr.bf16.mxu1 %v7950_v37  ;;  %v8004_v63 = vcombine.high %v412_v29, %v416_v30  ;;  %v8006_v37 = vcombine.high %v413_v32, %v417_v33  ;;  %v464_v22 = vld [vmem:[#allocation3 + $0x9a0] sm:$0xff] }
  0x8e   :  { %6360 = vmatpush1.bf16.msra.mxu0 %v7947_v42  ;;  %6688 = vmatpush1.bf16.msra.mxu1 %v7949_v43  ;;  %v421_v42 = vld [vmem:[#allocation3 + $0x848] sm:$0xff] }
  0x8f   :  { %6361 = vmatprep.subr.bf16.mxu0 %v7956_v45  ;;  %6689 = vmatprep.subr.bf16.mxu1 %v7958_v46  ;;  %v425_v43 = vld [vmem:[#allocation3 + $0x868] sm:$0xff]  ;;  %v8003_v45 = vcombine.low %v412_v29, %v416_v30  ;;  %v8005_v46 = vcombine.low %v413_v32, %v417_v33  ;;  %v8052_v29 = vcombine.high %v460_v21, %v464_v22  ;;  %v468_v32 = vld [vmem:[#allocation3 + $0x9c0] sm:$0xff] }
  0x90   :  { %v8014_v48 = vcombine.high %v421_v42, %v425_v43  ;;  %v472_v33 = vld [vmem:[#allocation3 + $0x9e0] sm:$0xff] }
  0x91   :  { %v8060_v38 = vcombine.high %v468_v32, %v472_v33 }
  0x92   :  { %6362 = vmatpush1.bf16.msra.mxu0 %v7955_v51  ;;  %6690 = vmatpush1.bf16.msra.mxu1 %v7957_v52  ;;  %v9042_v51 = vpack.c.bf16 %v88_v40, %v88_v40  ;;  %v429_v52 = vld [vmem:[#allocation3 + $0x888] sm:$0xff]  ;;  %v476_v40 = vld [vmem:[#allocation3 + $0xa00] sm:$0xff] }
  0x93   :  { %6363 = vmatprep.subr.bf16.mxu0 %v7964_v54  ;;  %6691 = vmatprep.subr.bf16.mxu1 %v7966_v55  ;;  %v433_v54 = vld [vmem:[#allocation3 + $0x8a8] sm:$0xff]  ;;  %v8013_v55 = vcombine.low %v421_v42, %v425_v43  ;;  %v480_v42 = vld [vmem:[#allocation3 + $0xa20] sm:$0xff] }
  0x94   :  { %v8022_v57 = vcombine.high %v429_v52, %v433_v54  ;;  %v477_v43 = vld [vmem:[#allocation3 + $0xa08] sm:$0xff] }
  0x96   :  { %6364 = vmatpush1.bf16.msra.mxu0 %v7963_v61  ;;  %6692 = vmatpush1.bf16.msra.mxu1 %v7965_v62  ;;  %v437_v61 = vld [vmem:[#allocation3 + $0x8c8] sm:$0xff] }
  0x97   :  { %6365 = vmatprep.subr.bf16.mxu0 %v7972_v0  ;;  %6693 = vmatprep.subr.bf16.mxu1 %v7974_v1  ;;  %v441_v62 = vld [vmem:[#allocation3 + $0x8e8] sm:$0xff]  ;;  %v8019_v0 = vcombine.low %v428_v49, %v432_v50  ;;  %v8021_v1 = vcombine.low %v429_v52, %v433_v54  ;;  %v484_v50 = vld [vmem:[#allocation3 + $0xa40] sm:$0xff] }
  0x98   :  { %v8030_v3 = vcombine.high %v437_v61, %v441_v62  ;;  %v488_v52 = vld [vmem:[#allocation3 + $0xa60] sm:$0xff]  ;;  %v485_v54 = vld [vmem:[#allocation3 + $0xa48] sm:$0xff] }
  0x9a   :  { %6366 = vmatpush1.bf16.msra.mxu0 %v7971_v6  ;;  %6694 = vmatpush1.bf16.msra.mxu1 %v7973_v7  ;;  %v445_v6 = vld [vmem:[#allocation3 + $0x908] sm:$0xff] }
  0x9b   :  { %6367 = vmatprep.subr.bf16.mxu0 %v7980_v8  ;;  %6695 = vmatprep.subr.bf16.mxu1 %v7982_v10  ;;  %v449_v7 = vld [vmem:[#allocation3 + $0x928] sm:$0xff]  ;;  %v8027_v8 = vcombine.low %v436_v58, %v440_v60  ;;  %v8029_v10 = vcombine.low %v437_v61, %v441_v62  ;;  %v492_v60 = vld [vmem:[#allocation3 + $0xa80] sm:$0xff] }
  0x9c   :  { %v8038_v12 = vcombine.high %v445_v6, %v449_v7  ;;  %v496_v61 = vld [vmem:[#allocation3 + $0xaa0] sm:$0xff]  ;;  %v493_v62 = vld [vmem:[#allocation3 + $0xa88] sm:$0xff] }
  0x9e   :  { %6368 = vmatpush1.bf16.msra.mxu0 %v7979_v15  ;;  %6696 = vmatpush1.bf16.msra.mxu1 %v7981_v17  ;;  %v453_v15 = vld [vmem:[#allocation3 + $0x948] sm:$0xff] }
  0x9f   :  { %6369 = vmatprep.subr.bf16.mxu0 %v7988_v18  ;;  %6697 = vmatprep.subr.bf16.mxu1 %v7990_v19  ;;  %v457_v17 = vld [vmem:[#allocation3 + $0x968] sm:$0xff]  ;;  %v8035_v18 = vcombine.low %v444_v4, %v448_v5  ;;  %v8037_v19 = vcombine.low %v445_v6, %v449_v7  ;;  %v500_v5 = vld [vmem:[#allocation3 + $0xac0] sm:$0xff] }
  0xa0   :  { %v8046_v20 = vcombine.high %v453_v15, %v457_v17  ;;  %v504_v6 = vld [vmem:[#allocation3 + $0xae0] sm:$0xff]  ;;  %v501_v7 = vld [vmem:[#allocation3 + $0xac8] sm:$0xff] }
  0xa2   :  { %6370 = vmatpush1.bf16.msra.mxu0 %v7987_v24  ;;  %6698 = vmatpush1.bf16.msra.mxu1 %v7989_v26  ;;  %v461_v24 = vld [vmem:[#allocation3 + $0x988] sm:$0xff] }
  0xa3   :  { %6371 = vmatprep.subr.bf16.mxu0 %v7996_v27  ;;  %6699 = vmatprep.subr.bf16.mxu1 %v7998_v28  ;;  %v465_v26 = vld [vmem:[#allocation3 + $0x9a8] sm:$0xff]  ;;  %v8043_v27 = vcombine.low %v452_v13, %v456_v14  ;;  %v8045_v28 = vcombine.low %v453_v15, %v457_v17  ;;  %v508_v14 = vld [vmem:[#allocation3 + $0xb00] sm:$0xff] }
  0xa4   :  { %v8054_v30 = vcombine.high %v461_v24, %v465_v26  ;;  %v512_v15 = vld [vmem:[#allocation3 + $0xb20] sm:$0xff]  ;;  %v509_v17 = vld [vmem:[#allocation3 + $0xb08] sm:$0xff] }
  0xa6   :  { %6372 = vmatpush1.bf16.msra.mxu0 %v7995_v35  ;;  %6700 = vmatpush1.bf16.msra.mxu1 %v7997_v36  ;;  %v469_v35 = vld [vmem:[#allocation3 + $0x9c8] sm:$0xff] }
  0xa7   :  { %6382 = vmatprep.subr.bf16.mxu0 %v8004_v63  ;;  %6710 = vmatprep.subr.bf16.mxu1 %v8006_v37  ;;  %v473_v36 = vld [vmem:[#allocation3 + $0x9e8] sm:$0xff]  ;;  %v8051_v63 = vcombine.low %v460_v21, %v464_v22  ;;  %v8053_v37 = vcombine.low %v461_v24, %v465_v26  ;;  %v516_v22 = vld [vmem:[#allocation3 + $0xb40] sm:$0xff] }
  0xa8   :  { %v8062_v39 = vcombine.high %v469_v35, %v473_v36  ;;  %v520_v24 = vld [vmem:[#allocation3 + $0xb60] sm:$0xff]  ;;  %v517_v26 = vld [vmem:[#allocation3 + $0xb48] sm:$0xff] }
  0xa9   :  { %6374 = vmatmul.mubr.bf16.vlgmr.msra.gmra.mrb[0].mxu0 %v9040_v41  ;;  %6702 = vmatmul.mubr.bf16.vlgmr.msra.gmra.mrb[0].mxu1 %v9040_v41 }
  0xaa   :  { %6383 = vmatpush1.bf16.msra.mxu0 %v8003_v45  ;;  %6711 = vmatpush1.bf16.msra.mxu1 %v8005_v46  ;;  %v481_v45 = vld [vmem:[#allocation3 + $0xa28] sm:$0xff]  ;;  %v8059_v46 = vcombine.low %v468_v32, %v472_v33  ;;  %v524_v33 = vld [vmem:[#allocation3 + $0xb80] sm:$0xff] }
  0xab   :  { %6384 = vmatprep.subr.bf16.mxu0 %v8012_v47  ;;  %6712 = vmatprep.subr.bf16.mxu1 %v8014_v48  ;;  %v8061_v47 = vcombine.low %v469_v35, %v473_v36  ;;  %v8068_v48 = vcombine.high %v476_v40, %v480_v42  ;;  %v8070_v49 = vcombine.high %v477_v43, %v481_v45  ;;  %v528_v35 = vld [vmem:[#allocation3 + $0xba0] sm:$0xff]  ;;  %v525_v36 = vld [vmem:[#allocation3 + $0xb88] sm:$0xff] }
  0xac   :  { %6414 = vmatprep.mubr.bf16.mxu0 %v9042_v51  ;;  %6742 = vmatprep.mubr.bf16.mxu1 %v9042_v51 }
  0xae   :  { %6385 = vmatpush1.bf16.msra.mxu0 %v8011_v16  ;;  %6713 = vmatpush1.bf16.msra.mxu1 %v8013_v55  ;;  %v489_v16 = vld [vmem:[#allocation3 + $0xa68] sm:$0xff]  ;;  %v8067_v55 = vcombine.low %v476_v40, %v480_v42  ;;  %v532_v42 = vld [vmem:[#allocation3 + $0xbc0] sm:$0xff] }
  0xaf   :  { %6386 = vmatprep.subr.bf16.mxu0 %v8020_v56  ;;  %6714 = vmatprep.subr.bf16.mxu1 %v8022_v57  ;;  %v8069_v56 = vcombine.low %v477_v43, %v481_v45  ;;  %v8076_v57 = vcombine.high %v484_v50, %v488_v52  ;;  %v8078_v58 = vcombine.high %v485_v54, %v489_v16  ;;  %v536_v43 = vld [vmem:[#allocation3 + $0xbe0] sm:$0xff] }
  0xb0   :  { %v73_v45 = vcombine.high %v9030_v23, %v9030_v23 }
  0xb2   :  { %6387 = vmatpush1.bf16.msra.mxu0 %v8019_v0  ;;  %6715 = vmatpush1.bf16.msra.mxu1 %v8021_v1  ;;  %v497_v0 = vld [vmem:[#allocation3 + $0xaa8] sm:$0xff]  ;;  %v8075_v1 = vcombine.low %v484_v50, %v488_v52  ;;  %v8124_v50 = vcombine.high %v532_v42, %v536_v43 }
  0xb3   :  { %6388 = vmatprep.subr.bf16.mxu0 %v8028_v2  ;;  %6716 = vmatprep.subr.bf16.mxu1 %v8030_v3  ;;  %v8077_v2 = vcombine.low %v485_v54, %v489_v16  ;;  %v8084_v3 = vcombine.high %v492_v60, %v496_v61  ;;  %v8086_v4 = vcombine.high %v493_v62, %v497_v0  ;;  %v540_v54 = vld [vmem:[#allocation3 + $0xc00] sm:$0xff] }
  0xb4   :  { %v544_v16 = vld [vmem:[#allocation3 + $0xc20] sm:$0xff] }
  0xb6   :  { %6389 = vmatpush1.bf16.msra.mxu0 %v8027_v8  ;;  %6717 = vmatpush1.bf16.msra.mxu1 %v8029_v10  ;;  %v505_v8 = vld [vmem:[#allocation3 + $0xae8] sm:$0xff]  ;;  %v8083_v10 = vcombine.low %v492_v60, %v496_v61  ;;  %v8132_v60 = vcombine.high %v540_v54, %v544_v16 }
  0xb7   :  { %6390 = vmatprep.subr.bf16.mxu0 %v8036_v11  ;;  %6718 = vmatprep.subr.bf16.mxu1 %v8038_v12  ;;  %v8085_v11 = vcombine.low %v493_v62, %v497_v0  ;;  %v8092_v12 = vcombine.high %v500_v5, %v504_v6  ;;  %v8094_v13 = vcombine.high %v501_v7, %v505_v8  ;;  %v548_v62 = vld [vmem:[#allocation3 + $0xc40] sm:$0xff] }
  0xb8   :  { %v552_v0 = vld [vmem:[#allocation3 + $0xc60] sm:$0xff] }
  0xba   :  { %6391 = vmatpush1.bf16.msra.mxu0 %v8035_v18  ;;  %6719 = vmatpush1.bf16.msra.mxu1 %v8037_v19  ;;  %v513_v18 = vld [vmem:[#allocation3 + $0xb28] sm:$0xff]  ;;  %v8091_v19 = vcombine.low %v500_v5, %v504_v6  ;;  %v8131_v5 = vcombine.low %v540_v54, %v544_v16 }
  0xbb   :  { %6392 = vmatprep.subr.bf16.mxu0 %v8044_v59  ;;  %6720 = vmatprep.subr.bf16.mxu1 %v8046_v20  ;;  %v8093_v59 = vcombine.low %v501_v7, %v505_v8  ;;  %v8100_v20 = vcombine.high %v508_v14, %v512_v15  ;;  %v8102_v21 = vcombine.high %v509_v17, %v513_v18 }
  0xbc   :  { %v8140_v7 = vcombine.high %v548_v62, %v552_v0 }
  0xbe   :  { %6393 = vmatpush1.bf16.msra.mxu0 %v8043_v27  ;;  %6721 = vmatpush1.bf16.msra.mxu1 %v8045_v28  ;;  %v521_v27 = vld [vmem:[#allocation3 + $0xb68] sm:$0xff]  ;;  %v8099_v28 = vcombine.low %v508_v14, %v512_v15 }
  0xbf   :  { %6394 = vmatprep.subr.bf16.mxu0 %v8052_v29  ;;  %6722 = vmatprep.subr.bf16.mxu1 %v8054_v30  ;;  %v8101_v29 = vcombine.low %v509_v17, %v513_v18  ;;  %v8108_v30 = vcombine.high %v516_v22, %v520_v24  ;;  %v8110_v32 = vcombine.high %v517_v26, %v521_v27  ;;  %v561_v14 = vld [vmem:[#allocation3 + $0xca8] sm:$0xff] }
  0xc2   :  { %6395 = vmatpush1.bf16.msra.mxu0 %v8051_v63  ;;  %6723 = vmatpush1.bf16.msra.mxu1 %v8053_v37  ;;  %v529_v63 = vld [vmem:[#allocation3 + $0xba8] sm:$0xff]  ;;  %v8107_v37 = vcombine.low %v516_v22, %v520_v24 }
  0xc3   :  { %6396 = vmatprep.subr.bf16.mxu0 %v8060_v38  ;;  %6724 = vmatprep.subr.bf16.mxu1 %v8062_v39  ;;  %v8109_v38 = vcombine.low %v517_v26, %v521_v27  ;;  %v8116_v39 = vcombine.high %v524_v33, %v528_v35  ;;  %v8118_v40 = vcombine.high %v525_v36, %v529_v63 }
  0xc6   :  { %6397 = vmatpush1.bf16.msra.mxu0 %v8059_v46  ;;  %6725 = vmatpush1.bf16.msra.mxu1 %v8061_v47  ;;  %v533_v46 = vld [vmem:[#allocation3 + $0xbc8] sm:$0xff] }
  0xc7   :  { %6398 = vmatprep.subr.bf16.mxu0 %v8068_v48  ;;  %6726 = vmatprep.subr.bf16.mxu1 %v8070_v49  ;;  %v537_v47 = vld [vmem:[#allocation3 + $0xbe8] sm:$0xff]  ;;  %v8115_v48 = vcombine.low %v524_v33, %v528_v35  ;;  %v8117_v49 = vcombine.low %v525_v36, %v529_v63 }
  0xc8   :  { %v8126_v52 = vcombine.high %v533_v46, %v537_v47  ;;  %v8125_v23 = vcombine.low %v533_v46, %v537_v47  ;;  %v588_v47 = vld [vmem:[#allocation3 + $0xd80] sm:$0xff] }
  0xca   :  { %6399 = vmatpush1.bf16.msra.mxu0 %v8067_v55  ;;  %6727 = vmatpush1.bf16.msra.mxu1 %v8069_v56  ;;  %v9051_v55 = vrot.slane %v73_v45, %v8993_v53  ;;  %v541_v56 = vld [vmem:[#allocation3 + $0xc08] sm:$0xff] }
  0xcb   :  { %6400 = vmatprep.subr.bf16.mxu0 %v8076_v57  ;;  %6728 = vmatprep.subr.bf16.mxu1 %v8078_v58  ;;  %v545_v57 = vld [vmem:[#allocation3 + $0xc28] sm:$0xff]  ;;  %v8123_v58 = vcombine.low %v532_v42, %v536_v43 }
  0xcc   :  { %v8134_v61 = vcombine.high %v541_v56, %v545_v57  ;;  %v8133_v6 = vcombine.low %v541_v56, %v545_v57  ;;  %v596_v57 = vld [vmem:[#allocation3 + $0xdc0] sm:$0xff] }
  0xce   :  { %6401 = vmatpush1.bf16.msra.mxu0 %v8075_v1  ;;  %6729 = vmatpush1.bf16.msra.mxu1 %v8077_v2  ;;  %v89_v1 = vcombine.high %v9051_v55, %v9051_v55  ;;  %v9057_v2 = vpack.c.bf16 %v9034_v31, %v9034_v31  ;;  %v8139_v31 = vcombine.low %v548_v62, %v552_v0 }
  0xcf   :  { %6402 = vmatprep.subr.bf16.mxu0 %v8084_v3  ;;  %6730 = vmatprep.subr.bf16.mxu1 %v8086_v4  ;;  %v549_v3 = vld [vmem:[#allocation3 + $0xc48] sm:$0xff] }
  0xd0   :  { %v553_v4 = vld [vmem:[#allocation3 + $0xc68] sm:$0xff] }
  0xd1   :  { %v8142_v8 = vcombine.high %v549_v3, %v553_v4  ;;  %v8141_v15 = vcombine.low %v549_v3, %v553_v4  ;;  %v604_v3 = vld [vmem:[#allocation3 + $0xe00] sm:$0xff] }
  0xd2   :  { %6403 = vmatpush1.bf16.msra.mxu0 %v8083_v10  ;;  %6731 = vmatpush1.bf16.msra.mxu1 %v8085_v11  ;;  %v556_v10 = vld [vmem:[#allocation3 + $0xc80] sm:$0xff] }
  0xd3   :  { %6404 = vmatprep.subr.bf16.mxu0 %v8092_v12  ;;  %6732 = vmatprep.subr.bf16.mxu1 %v8094_v13  ;;  %v560_v11 = vld [vmem:[#allocation3 + $0xca0] sm:$0xff]  ;;  %v9059_v12 = vpack.c.bf16 %v89_v1, %v89_v1  ;;  %v557_v13 = vld [vmem:[#allocation3 + $0xc88] sm:$0xff] }
  0xd4   :  { %v8148_v17 = vcombine.high %v556_v10, %v560_v11  ;;  %v8150_v18 = vcombine.high %v557_v13, %v561_v14  ;;  %v8147_v22 = vcombine.low %v556_v10, %v560_v11  ;;  %v8149_v24 = vcombine.low %v557_v13, %v561_v14  ;;  %v608_v4 = vld [vmem:[#allocation3 + $0xe20] sm:$0xff] }
  0xd5   :  { %v8196_v10 = vcombine.high %v604_v3, %v608_v4  ;;  %v612_v13 = vld [vmem:[#allocation3 + $0xe40] sm:$0xff] }
  0xd6   :  { %6405 = vmatpush1.bf16.msra.mxu0 %v8091_v19  ;;  %6733 = vmatpush1.bf16.msra.mxu1 %v8093_v59  ;;  %v564_v19 = vld [vmem:[#allocation3 + $0xcc0] sm:$0xff] }
  0xd7   :  { %6406 = vmatprep.subr.bf16.mxu0 %v8100_v20  ;;  %6734 = vmatprep.subr.bf16.mxu1 %v8102_v21  ;;  %v568_v59 = vld [vmem:[#allocation3 + $0xce0] sm:$0xff]  ;;  %v565_v20 = vld [vmem:[#allocation3 + $0xcc8] sm:$0xff] }
  0xd8   :  { %v569_v21 = vld [vmem:[#allocation3 + $0xce8] sm:$0xff]  ;;  %v8156_v26 = vcombine.high %v564_v19, %v568_v59  ;;  %v8155_v33 = vcombine.low %v564_v19, %v568_v59  ;;  %v616_v14 = vld [vmem:[#allocation3 + $0xe60] sm:$0xff] }
  0xd9   :  { %v8158_v27 = vcombine.high %v565_v20, %v569_v21  ;;  %v8157_v35 = vcombine.low %v565_v20, %v569_v21  ;;  %v8204_v19 = vcombine.high %v612_v13, %v616_v14  ;;  %v620_v20 = vld [vmem:[#allocation3 + $0xe80] sm:$0xff] }
  0xda   :  { %6407 = vmatpush1.bf16.msra.mxu0 %v8099_v28  ;;  %6735 = vmatpush1.bf16.msra.mxu1 %v8101_v29  ;;  %v572_v28 = vld [vmem:[#allocation3 + $0xd00] sm:$0xff] }
  0xdb   :  { %6408 = vmatprep.subr.bf16.mxu0 %v8108_v30  ;;  %6736 = vmatprep.subr.bf16.mxu1 %v8110_v32  ;;  %v576_v29 = vld [vmem:[#allocation3 + $0xd20] sm:$0xff]  ;;  %v573_v30 = vld [vmem:[#allocation3 + $0xd08] sm:$0xff] }
  0xdc   :  { %v577_v32 = vld [vmem:[#allocation3 + $0xd28] sm:$0xff]  ;;  %v8164_v36 = vcombine.high %v572_v28, %v576_v29  ;;  %v8163_v42 = vcombine.low %v572_v28, %v576_v29  ;;  %v624_v21 = vld [vmem:[#allocation3 + $0xea0] sm:$0xff] }
  0xdd   :  { %v8166_v63 = vcombine.high %v573_v30, %v577_v32  ;;  %v8165_v43 = vcombine.low %v573_v30, %v577_v32  ;;  %v8212_v28 = vcombine.high %v620_v20, %v624_v21  ;;  %v628_v30 = vld [vmem:[#allocation3 + $0xec0] sm:$0xff] }
  0xde   :  { %6409 = vmatpush1.bf16.msra.mxu0 %v8107_v37  ;;  %6737 = vmatpush1.bf16.msra.mxu1 %v8109_v38  ;;  %v580_v37 = vld [vmem:[#allocation3 + $0xd40] sm:$0xff] }
  0xdf   :  { %6410 = vmatprep.subr.bf16.mxu0 %v8116_v39  ;;  %6738 = vmatprep.subr.bf16.mxu1 %v8118_v40  ;;  %v584_v38 = vld [vmem:[#allocation3 + $0xd60] sm:$0xff]  ;;  %v581_v39 = vld [vmem:[#allocation3 + $0xd48] sm:$0xff] }
  0xe0   :  { %v585_v40 = vld [vmem:[#allocation3 + $0xd68] sm:$0xff]  ;;  %v8172_v45 = vcombine.high %v580_v37, %v584_v38  ;;  %v632_v32 = vld [vmem:[#allocation3 + $0xee0] sm:$0xff] }
  0xe1   :  { %v8174_v46 = vcombine.high %v581_v39, %v585_v40  ;;  %v8173_v54 = vcombine.low %v581_v39, %v585_v40  ;;  %v636_v39 = vld [vmem:[#allocation3 + $0xf00] sm:$0xff] }
  0xe2   :  { %6411 = vmatpush1.bf16.msra.mxu0 %v8115_v48  ;;  %6739 = vmatpush1.bf16.msra.mxu1 %v8117_v49  ;;  %v592_v48 = vld [vmem:[#allocation3 + $0xda0] sm:$0xff]  ;;  %v589_v49 = vld [vmem:[#allocation3 + $0xd88] sm:$0xff] }
  0xe3   :  { %6412 = vmatprep.subr.bf16.mxu0 %v8124_v50  ;;  %6740 = vmatprep.subr.bf16.mxu1 %v8126_v52  ;;  %v593_v50 = vld [vmem:[#allocation3 + $0xda8] sm:$0xff]  ;;  %v8171_v52 = vcombine.low %v580_v37, %v584_v38  ;;  %v8180_v16 = vcombine.high %v588_v47, %v592_v48  ;;  %v8220_v37 = vcombine.high %v628_v30, %v632_v32  ;;  %v640_v40 = vld [vmem:[#allocation3 + $0xf20] sm:$0xff] }
  0xe4   :  { %v8182_v56 = vcombine.high %v589_v49, %v593_v50  ;;  %v8181_v62 = vcombine.low %v589_v49, %v593_v50  ;;  %v644_v49 = vld [vmem:[#allocation3 + $0xf40] sm:$0xff] }
  0xe5   :  { %v648_v50 = vld [vmem:[#allocation3 + $0xf60] sm:$0xff] }
  0xe6   :  { %6413 = vmatpush1.bf16.msra.mxu0 %v8123_v58  ;;  %6741 = vmatpush1.bf16.msra.mxu1 %v8125_v23  ;;  %v600_v58 = vld [vmem:[#allocation3 + $0xde0] sm:$0xff]  ;;  %v597_v23 = vld [vmem:[#allocation3 + $0xdc8] sm:$0xff] }
  0xe7   :  { %6423 = vmatprep.subr.bf16.mxu0 %v8132_v60  ;;  %6751 = vmatprep.subr.bf16.mxu1 %v8134_v61  ;;  %v601_v60 = vld [vmem:[#allocation3 + $0xde8] sm:$0xff]  ;;  %v8179_v61 = vcombine.low %v588_v47, %v592_v48  ;;  %v8188_v0 = vcombine.high %v596_v57, %v600_v58  ;;  %v8228_v47 = vcombine.high %v636_v39, %v640_v40 }
  0xe8   :  { %v8190_v1 = vcombine.high %v597_v23, %v601_v60 }
  0xe9   :  { %6415 = vmatmul.mubr.bf16.vlgmr.msra.gmra.mrb[0].mxu0 %v9057_v2  ;;  %6743 = vmatmul.mubr.bf16.vlgmr.msra.gmra.mrb[0].mxu1 %v9057_v2 }
  0xea   :  { %6424 = vmatpush1.bf16.msra.mxu0 %v8131_v5  ;;  %6752 = vmatpush1.bf16.msra.mxu1 %v8133_v6  ;;  %v605_v5 = vld [vmem:[#allocation3 + $0xe08] sm:$0xff] }
  0xeb   :  { %6425 = vmatprep.subr.bf16.mxu0 %v8140_v7  ;;  %6753 = vmatprep.subr.bf16.mxu1 %v8142_v8  ;;  %v609_v6 = vld [vmem:[#allocation3 + $0xe28] sm:$0xff]  ;;  %v8187_v7 = vcombine.low %v596_v57, %v600_v58  ;;  %v8189_v8 = vcombine.low %v597_v23, %v601_v60  ;;  %v8236_v57 = vcombine.high %v644_v49, %v648_v50  ;;  %v652_v23 = vld [vmem:[#allocation3 + $0xf80] sm:$0xff] }
  0xec   :  { %6455 = vmatprep.mubr.bf16.mxu0 %v9059_v12  ;;  %6783 = vmatprep.mubr.bf16.mxu1 %v9059_v12  ;;  %v8198_v11 = vcombine.high %v605_v5, %v609_v6  ;;  %v656_v60 = vld [vmem:[#allocation3 + $0xfa0] sm:$0xff] }
  0xee   :  { %6426 = vmatpush1.bf16.msra.mxu0 %v8139_v31  ;;  %6754 = vmatpush1.bf16.msra.mxu1 %v8141_v15  ;;  %v613_v31 = vld [vmem:[#allocation3 + $0xe48] sm:$0xff] }
  0xef   :  { %6427 = vmatprep.subr.bf16.mxu0 %v8148_v17  ;;  %6755 = vmatprep.subr.bf16.mxu1 %v8150_v18  ;;  %v617_v15 = vld [vmem:[#allocation3 + $0xe68] sm:$0xff]  ;;  %v8195_v17 = vcombine.low %v604_v3, %v608_v4  ;;  %v8197_v18 = vcombine.low %v605_v5, %v609_v6  ;;  %v8244_v3 = vcombine.high %v652_v23, %v656_v60  ;;  %v660_v5 = vld [vmem:[#allocation3 + $0xfc0] sm:$0xff] }
  0xf0   :  { %v8206_v59 = vcombine.high %v613_v31, %v617_v15  ;;  %v664_v6 = vld [vmem:[#allocation3 + $0xfe0] sm:$0xff] }
  0xf2   :  { %6428 = vmatpush1.bf16.msra.mxu0 %v8147_v22  ;;  %6756 = vmatpush1.bf16.msra.mxu1 %v8149_v24  ;;  %v621_v22 = vld [vmem:[#allocation3 + $0xe88] sm:$0xff] }
  0xf3   :  { %6429 = vmatprep.subr.bf16.mxu0 %v8156_v26  ;;  %6757 = vmatprep.subr.bf16.mxu1 %v8158_v27  ;;  %v625_v24 = vld [vmem:[#allocation3 + $0xea8] sm:$0xff]  ;;  %v8203_v26 = vcombine.low %v612_v13, %v616_v14  ;;  %v8205_v27 = vcombine.low %v613_v31, %v617_v15  ;;  %v8252_v14 = vcombine.high %v660_v5, %v664_v6  ;;  %v668_v15 = vld [vmem:[#allocation3 + $0x1000] sm:$0xff] }
  0xf4   :  { %v8214_v29 = vcombine.high %v621_v22, %v625_v24 }
  0xf6   :  { %6430 = vmatpush1.bf16.msra.mxu0 %v8155_v33  ;;  %6758 = vmatpush1.bf16.msra.mxu1 %v8157_v35  ;;  %v629_v33 = vld [vmem:[#allocation3 + $0xec8] sm:$0xff] }
  0xf7   :  { %6431 = vmatprep.subr.bf16.mxu0 %v8164_v36  ;;  %6759 = vmatprep.subr.bf16.mxu1 %v8166_v63  ;;  %v633_v35 = vld [vmem:[#allocation3 + $0xee8] sm:$0xff]  ;;  %v8211_v36 = vcombine.low %v620_v20, %v624_v21  ;;  %v8213_v63 = vcombine.low %v621_v22, %v625_v24  ;;  %v8251_v20 = vcombine.low %v660_v5, %v664_v6 }
  0xf8   :  { %v8222_v38 = vcombine.high %v629_v33, %v633_v35  ;;  %v709_v5 = vld [vmem:[#allocation3 + $0x1148] sm:$0xff] }
  0xf9   :  { %v713_v6 = vld [vmem:[#allocation3 + $0x1168] sm:$0xff] }
  0xfa   :  { %6432 = vmatpush1.bf16.msra.mxu0 %v8163_v42  ;;  %6760 = vmatpush1.bf16.msra.mxu1 %v8165_v43  ;;  %v637_v42 = vld [vmem:[#allocation3 + $0xf08] sm:$0xff] }
  0xfb   :  { %6433 = vmatprep.subr.bf16.mxu0 %v8172_v45  ;;  %6761 = vmatprep.subr.bf16.mxu1 %v8174_v46  ;;  %v641_v43 = vld [vmem:[#allocation3 + $0xf28] sm:$0xff]  ;;  %v8219_v45 = vcombine.low %v628_v30, %v632_v32  ;;  %v8221_v46 = vcombine.low %v629_v33, %v633_v35 }
  0xfc   :  { %v8230_v48 = vcombine.high %v637_v42, %v641_v43  ;;  %v677_v30 = vld [vmem:[#allocation3 + $0x1048] sm:$0xff] }
  0xfd   :  { %v681_v32 = vld [vmem:[#allocation3 + $0x1068] sm:$0xff] }
  0xfe   :  { %6434 = vmatpush1.bf16.msra.mxu0 %v8171_v52  ;;  %6762 = vmatpush1.bf16.msra.mxu1 %v8173_v54  ;;  %v645_v52 = vld [vmem:[#allocation3 + $0xf48] sm:$0xff] }
  0xff   :  { %6435 = vmatprep.subr.bf16.mxu0 %v8180_v16  ;;  %6763 = vmatprep.subr.bf16.mxu1 %v8182_v56  ;;  %v649_v54 = vld [vmem:[#allocation3 + $0xf68] sm:$0xff]  ;;  %v8227_v16 = vcombine.low %v636_v39, %v640_v40  ;;  %v8229_v56 = vcombine.low %v637_v42, %v641_v43  ;;  %v8269_v43 = vcombine.low %v677_v30, %v681_v32 }
 0x100   :  { %v8238_v58 = vcombine.high %v645_v52, %v649_v54  ;;  %v685_v40 = vld [vmem:[#allocation3 + $0x1088] sm:$0xff] }
 0x101   :  { %v689_v42 = vld [vmem:[#allocation3 + $0x10a8] sm:$0xff] }
 0x102   :  { %6436 = vmatpush1.bf16.msra.mxu0 %v8179_v61  ;;  %6764 = vmatpush1.bf16.msra.mxu1 %v8181_v62  ;;  %v653_v61 = vld [vmem:[#allocation3 + $0xf88] sm:$0xff] }
 0x103   :  { %6437 = vmatprep.subr.bf16.mxu0 %v8188_v0  ;;  %6765 = vmatprep.subr.bf16.mxu1 %v8190_v1  ;;  %v657_v62 = vld [vmem:[#allocation3 + $0xfa8] sm:$0xff]  ;;  %v8235_v0 = vcombine.low %v644_v49, %v648_v50  ;;  %v8237_v1 = vcombine.low %v645_v52, %v649_v54  ;;  %v8277_v54 = vcombine.low %v685_v40, %v689_v42 }
 0x104   :  { %v8246_v4 = vcombine.high %v653_v61, %v657_v62  ;;  %v8245_v13 = vcombine.low %v653_v61, %v657_v62  ;;  %v693_v49 = vld [vmem:[#allocation3 + $0x10c8] sm:$0xff] }
 0x105   :  { %v697_v50 = vld [vmem:[#allocation3 + $0x10e8] sm:$0xff] }
 0x106   :  { %6438 = vmatpush1.bf16.msra.mxu0 %v8187_v7  ;;  %6766 = vmatpush1.bf16.msra.mxu1 %v8189_v8  ;;  %v661_v7 = vld [vmem:[#allocation3 + $0xfc8] sm:$0xff]  ;;  %v8285_v62 = vcombine.low %v693_v49, %v697_v50 }
 0x107   :  { %6439 = vmatprep.subr.bf16.mxu0 %v8196_v10  ;;  %6767 = vmatprep.subr.bf16.mxu1 %v8198_v11  ;;  %v665_v8 = vld [vmem:[#allocation3 + $0xfe8] sm:$0xff]  ;;  %v9068_v10 = vld [vmem:[%s9201_s0 + $0x10] sm:$0xff]  ;;  %v8243_v11 = vcombine.low %v652_v23, %v656_v60 }
 0x108   :  { %v8254_v31 = vcombine.high %v661_v7, %v665_v8  ;;  %v8253_v21 = vcombine.low %v661_v7, %v665_v8  ;;  %v701_v23 = vld [vmem:[#allocation3 + $0x1108] sm:$0xff] }
 0x109   :  { %v705_v60 = vld [vmem:[#allocation3 + $0x1128] sm:$0xff] }
 0x10a   :  { %6440 = vmatpush1.bf16.msra.mxu0 %v8195_v17  ;;  %6768 = vmatpush1.bf16.msra.mxu1 %v8197_v18  ;;  %v672_v17 = vld [vmem:[#allocation3 + $0x1020] sm:$0xff]  ;;  %v9072_v18 = vrot.slane %v9068_v10, %v8993_v53  ;;  %v8293_v8 = vcombine.low %v701_v23, %v705_v60 }
 0x10b   :  { %6441 = vmatprep.subr.bf16.mxu0 %v8204_v19  ;;  %6769 = vmatprep.subr.bf16.mxu1 %v8206_v59  ;;  %v669_v19 = vld [vmem:[#allocation3 + $0x1008] sm:$0xff]  ;;  %v8260_v22 = vcombine.high %v668_v15, %v672_v17  ;;  %v8259_v33 = vcombine.low %v668_v15, %v672_v17 }
 0x10c   :  { %v673_v59 = vld [vmem:[#allocation3 + $0x1028] sm:$0xff] }
 0x10d   :  { %v8262_v24 = vcombine.high %v669_v19, %v673_v59  ;;  %v8261_v35 = vcombine.low %v669_v19, %v673_v59  ;;  %v717_v15 = vld [vmem:[#allocation3 + $0x1188] sm:$0xff]  ;;  %v8301_v59 = vcombine.low %v709_v5, %v713_v6 }
 0x10e   :  { %6442 = vmatpush1.bf16.msra.mxu0 %v8203_v26  ;;  %6770 = vmatpush1.bf16.msra.mxu1 %v8205_v27  ;;  %v676_v26 = vld [vmem:[#allocation3 + $0x1040] sm:$0xff]  ;;  %v721_v17 = vld [vmem:[#allocation3 + $0x11a8] sm:$0xff] }
 0x10f   :  { %6443 = vmatprep.subr.bf16.mxu0 %v8212_v28  ;;  %6771 = vmatprep.subr.bf16.mxu1 %v8214_v29  ;;  %v680_v27 = vld [vmem:[#allocation3 + $0x1060] sm:$0xff]  ;;  %v105_v28 = vcombine.high %v9072_v18, %v9072_v18  ;;  %v9078_v29 = vpack.c.bf16 %v9051_v55, %v9051_v55 }
 0x110   :  { %v8267_v55 = vcombine.low %v676_v26, %v680_v27 }
 0x111   :  { %v9080_v39 = vpack.c.bf16 %v105_v28, %v105_v28 }
 0x112   :  { %6444 = vmatpush1.bf16.msra.mxu0 %v8211_v36  ;;  %6772 = vmatpush1.bf16.msra.mxu1 %v8213_v63  ;;  %v8268_v36 = vcombine.high %v676_v26, %v680_v27  ;;  %v8270_v63 = vcombine.high %v677_v30, %v681_v32  ;;  %v725_v26 = vld [vmem:[#allocation3 + $0x11c8] sm:$0xff]  ;;  %v8309_v30 = vcombine.low %v717_v15, %v721_v17 }
 0x113   :  { %6445 = vmatprep.subr.bf16.mxu0 %v8220_v37  ;;  %6773 = vmatprep.subr.bf16.mxu1 %v8222_v38  ;;  %v684_v37 = vld [vmem:[#allocation3 + $0x1080] sm:$0xff]  ;;  %v729_v27 = vld [vmem:[#allocation3 + $0x11e8] sm:$0xff] }
 0x114   :  { %v688_v38 = vld [vmem:[#allocation3 + $0x10a0] sm:$0xff] }
 0x115   :  { %v8275_v52 = vcombine.low %v684_v37, %v688_v38 }
 0x116   :  { %6446 = vmatpush1.bf16.msra.mxu0 %v8219_v45  ;;  %6774 = vmatpush1.bf16.msra.mxu1 %v8221_v46  ;;  %v8276_v45 = vcombine.high %v684_v37, %v688_v38  ;;  %v8278_v46 = vcombine.high %v685_v40, %v689_v42  ;;  %v737_v37 = vld [vmem:[#allocation3 + $0x1228] sm:$0xff]  ;;  %v8317_v40 = vcombine.low %v725_v26, %v729_v27 }
 0x117   :  { %6447 = vmatprep.subr.bf16.mxu0 %v8228_v47  ;;  %6775 = vmatprep.subr.bf16.mxu1 %v8230_v48  ;;  %v692_v47 = vld [vmem:[#allocation3 + $0x10c0] sm:$0xff] }
 0x118   :  { %v696_v48 = vld [vmem:[#allocation3 + $0x10e0] sm:$0xff] }
 0x119   :  { %v8283_v61 = vcombine.low %v692_v47, %v696_v48 }
 0x11a   :  { %6448 = vmatpush1.bf16.msra.mxu0 %v8227_v16  ;;  %6776 = vmatpush1.bf16.msra.mxu1 %v8229_v56  ;;  %v8284_v16 = vcombine.high %v692_v47, %v696_v48  ;;  %v8286_v56 = vcombine.high %v693_v49, %v697_v50  ;;  %v745_v47 = vld [vmem:[#allocation3 + $0x1268] sm:$0xff] }
 0x11b   :  { %6449 = vmatprep.subr.bf16.mxu0 %v8236_v57  ;;  %6777 = vmatprep.subr.bf16.mxu1 %v8238_v58  ;;  %v700_v57 = vld [vmem:[#allocation3 + $0x1100] sm:$0xff] }
 0x11c   :  { %v704_v58 = vld [vmem:[#allocation3 + $0x1120] sm:$0xff] }
 0x11d   :  { %v8291_v7 = vcombine.low %v700_v57, %v704_v58 }
 0x11e   :  { %6450 = vmatpush1.bf16.msra.mxu0 %v8235_v0  ;;  %6778 = vmatpush1.bf16.msra.mxu1 %v8237_v1  ;;  %v8292_v0 = vcombine.high %v700_v57, %v704_v58  ;;  %v8294_v1 = vcombine.high %v701_v23, %v705_v60  ;;  %v753_v57 = vld [vmem:[#allocation3 + $0x12a8] sm:$0xff] }
 0x11f   :  { %6451 = vmatprep.subr.bf16.mxu0 %v8244_v3  ;;  %6779 = vmatprep.subr.bf16.mxu1 %v8246_v4  ;;  %v708_v3 = vld [vmem:[#allocation3 + $0x1140] sm:$0xff] }
 0x120   :  { %v712_v4 = vld [vmem:[#allocation3 + $0x1160] sm:$0xff] }
 0x121   :  { %v8299_v19 = vcombine.low %v708_v3, %v712_v4 }
 0x122   :  { %6452 = vmatpush1.bf16.msra.mxu0 %v8243_v11  ;;  %6780 = vmatpush1.bf16.msra.mxu1 %v8245_v13  ;;  %v8300_v11 = vcombine.high %v708_v3, %v712_v4  ;;  %v8302_v13 = vcombine.high %v709_v5, %v713_v6  ;;  %v761_v3 = vld [vmem:[#allocation3 + $0x12e8] sm:$0xff] }
 0x123   :  { %6453 = vmatprep.subr.bf16.mxu0 %v8252_v14  ;;  %6781 = vmatprep.subr.bf16.mxu1 %v8254_v31  ;;  %v716_v14 = vld [vmem:[#allocation3 + $0x1180] sm:$0xff] }
 0x124   :  { %v720_v31 = vld [vmem:[#allocation3 + $0x11a0] sm:$0xff] }
 0x125   :  { %v8307_v28 = vcombine.low %v716_v14, %v720_v31 }
 0x126   :  { %6454 = vmatpush1.bf16.msra.mxu0 %v8251_v20  ;;  %6782 = vmatpush1.bf16.msra.mxu1 %v8253_v21  ;;  %v8308_v20 = vcombine.high %v716_v14, %v720_v31  ;;  %v8310_v21 = vcombine.high %v717_v15, %v721_v17  ;;  %v769_v14 = vld [vmem:[#allocation3 + $0x1328] sm:$0xff] }
 0x127   :  { %6464 = vmatprep.subr.bf16.mxu0 %v8260_v22  ;;  %6792 = vmatprep.subr.bf16.mxu1 %v8262_v24  ;;  %v724_v22 = vld [vmem:[#allocation3 + $0x11c0] sm:$0xff] }
 0x128   :  { %v728_v24 = vld [vmem:[#allocation3 + $0x11e0] sm:$0xff] }
 0x129   :  { %6456 = vmatmul.mubr.bf16.vlgmr.msra.gmra.mrb[0].mxu0 %v9078_v29  ;;  %6784 = vmatmul.mubr.bf16.vlgmr.msra.gmra.mrb[0].mxu1 %v9078_v29  ;;  %v8316_v32 = vcombine.high %v724_v22, %v728_v24  ;;  %v8315_v38 = vcombine.low %v724_v22, %v728_v24  ;;  %v777_v22 = vld [vmem:[#allocation3 + $0x1368] sm:$0xff] }
 0x12a   :  { %6465 = vmatpush1.bf16.msra.mxu0 %v8259_v33  ;;  %6793 = vmatpush1.bf16.msra.mxu1 %v8261_v35  ;;  %v8318_v33 = vcombine.high %v725_v26, %v729_v27  ;;  %v732_v35 = vld [vmem:[#allocation3 + $0x1200] sm:$0xff] }
 0x12b   :  { %6466 = vmatprep.subr.bf16.mxu0 %v8268_v36  ;;  %6794 = vmatprep.subr.bf16.mxu1 %v8270_v63  ;;  %v736_v36 = vld [vmem:[#allocation3 + $0x1220] sm:$0xff]  ;;  %v733_v63 = vld [vmem:[#allocation3 + $0x1208] sm:$0xff] }
 0x12c   :  { %6496 = vmatprep.mubr.bf16.mxu0 %v9080_v39  ;;  %6824 = vmatprep.mubr.bf16.mxu1 %v9080_v39  ;;  %v8324_v42 = vcombine.high %v732_v35, %v736_v36  ;;  %v8323_v48 = vcombine.low %v732_v35, %v736_v36  ;;  %v8325_v49 = vcombine.low %v733_v63, %v737_v37  ;;  %v785_v35 = vld [vmem:[#allocation3 + $0x13a8] sm:$0xff] }
 0x12e   :  { %6467 = vmatpush1.bf16.msra.mxu0 %v8267_v55  ;;  %6795 = vmatpush1.bf16.msra.mxu1 %v8269_v43  ;;  %v8326_v55 = vcombine.high %v733_v63, %v737_v37  ;;  %v740_v43 = vld [vmem:[#allocation3 + $0x1240] sm:$0xff] }
 0x12f   :  { %6468 = vmatprep.subr.bf16.mxu0 %v8276_v45  ;;  %6796 = vmatprep.subr.bf16.mxu1 %v8278_v46  ;;  %v744_v45 = vld [vmem:[#allocation3 + $0x1260] sm:$0xff]  ;;  %v741_v46 = vld [vmem:[#allocation3 + $0x1248] sm:$0xff] }
 0x130   :  { %v8332_v50 = vcombine.high %v740_v43, %v744_v45  ;;  %v8331_v58 = vcombine.low %v740_v43, %v744_v45  ;;  %v8333_v23 = vcombine.low %v741_v46, %v745_v47  ;;  %v789_v43 = vld [vmem:[#allocation3 + $0x13c8] sm:$0xff] }
 0x131   :  { %v793_v45 = vld [vmem:[#allocation3 + $0x13e8] sm:$0xff] }
 0x132   :  { %6469 = vmatpush1.bf16.msra.mxu0 %v8275_v52  ;;  %6797 = vmatpush1.bf16.msra.mxu1 %v8277_v54  ;;  %v8334_v52 = vcombine.high %v741_v46, %v745_v47  ;;  %v748_v54 = vld [vmem:[#allocation3 + $0x1280] sm:$0xff] }
 0x133   :  { %6470 = vmatprep.subr.bf16.mxu0 %v8284_v16  ;;  %6798 = vmatprep.subr.bf16.mxu1 %v8286_v56  ;;  %v752_v16 = vld [vmem:[#allocation3 + $0x12a0] sm:$0xff]  ;;  %v749_v56 = vld [vmem:[#allocation3 + $0x1288] sm:$0xff] }
 0x134   :  { %v8340_v60 = vcombine.high %v748_v54, %v752_v16  ;;  %v8339_v4 = vcombine.low %v748_v54, %v752_v16  ;;  %v8341_v5 = vcombine.low %v749_v56, %v753_v57  ;;  %v797_v16 = vld [vmem:[#allocation3 + $0x1408] sm:$0xff] }
 0x136   :  { %6471 = vmatpush1.bf16.msra.mxu0 %v8283_v61  ;;  %6799 = vmatpush1.bf16.msra.mxu1 %v8285_v62  ;;  %v8342_v61 = vcombine.high %v749_v56, %v753_v57  ;;  %v756_v62 = vld [vmem:[#allocation3 + $0x12c0] sm:$0xff]  ;;  %v801_v56 = vld [vmem:[#allocation3 + $0x1428] sm:$0xff] }
 0x137   :  { %6472 = vmatprep.subr.bf16.mxu0 %v8292_v0  ;;  %6800 = vmatprep.subr.bf16.mxu1 %v8294_v1  ;;  %v760_v0 = vld [vmem:[#allocation3 + $0x12e0] sm:$0xff]  ;;  %v757_v1 = vld [vmem:[#allocation3 + $0x12c8] sm:$0xff] }
 0x138   :  { %v8348_v6 = vcombine.high %v756_v62, %v760_v0  ;;  %v8347_v31 = vcombine.low %v756_v62, %v760_v0  ;;  %v8349_v15 = vcombine.low %v757_v1, %v761_v3  ;;  %v9095_v0 = vpack.c.bf16 %v9072_v18, %v9072_v18 }
 0x13a   :  { %6473 = vmatpush1.bf16.msra.mxu0 %v8291_v7  ;;  %6801 = vmatpush1.bf16.msra.mxu1 %v8293_v8  ;;  %v8350_v7 = vcombine.high %v757_v1, %v761_v3  ;;  %v764_v8 = vld [vmem:[#allocation3 + $0x1300] sm:$0xff]  ;;  %v805_v1 = vld [vmem:[#allocation3 + $0x1448] sm:$0xff] }
 0x13b   :  { %6474 = vmatprep.subr.bf16.mxu0 %v8300_v11  ;;  %6802 = vmatprep.subr.bf16.mxu1 %v8302_v13  ;;  %v768_v11 = vld [vmem:[#allocation3 + $0x1320] sm:$0xff]  ;;  %v765_v13 = vld [vmem:[#allocation3 + $0x1308] sm:$0xff] }
 0x13c   :  { %v8356_v17 = vcombine.high %v764_v8, %v768_v11  ;;  %v8355_v24 = vcombine.low %v764_v8, %v768_v11  ;;  %v8357_v26 = vcombine.low %v765_v13, %v769_v14  ;;  %v809_v3 = vld [vmem:[#allocation3 + $0x1468] sm:$0xff]  ;;  %v812_v8 = vld [vmem:[#allocation3 + $0x1480] sm:$0xff] }
 0x13d   :  { %v816_v11 = vld [vmem:[#allocation3 + $0x14a0] sm:$0xff] }
 0x13e   :  { %6475 = vmatpush1.bf16.msra.mxu0 %v8299_v19  ;;  %6803 = vmatpush1.bf16.msra.mxu1 %v8301_v59  ;;  %v8358_v19 = vcombine.high %v765_v13, %v769_v14  ;;  %v772_v59 = vld [vmem:[#allocation3 + $0x1340] sm:$0xff]  ;;  %v813_v14 = vld [vmem:[#allocation3 + $0x1488] sm:$0xff] }
 0x13f   :  { %6476 = vmatprep.subr.bf16.mxu0 %v8308_v20  ;;  %6804 = vmatprep.subr.bf16.mxu1 %v8310_v21  ;;  %v776_v20 = vld [vmem:[#allocation3 + $0x1360] sm:$0xff]  ;;  %v773_v21 = vld [vmem:[#allocation3 + $0x1348] sm:$0xff] }
 0x140   :  { %v8364_v27 = vcombine.high %v772_v59, %v776_v20  ;;  %v8363_v36 = vcombine.low %v772_v59, %v776_v20  ;;  %v8365_v63 = vcombine.low %v773_v21, %v777_v22  ;;  %v820_v59 = vld [vmem:[#allocation3 + $0x14c0] sm:$0xff] }
 0x141   :  { %v824_v20 = vld [vmem:[#allocation3 + $0x14e0] sm:$0xff] }
 0x142   :  { %6477 = vmatpush1.bf16.msra.mxu0 %v8307_v28  ;;  %6805 = vmatpush1.bf16.msra.mxu1 %v8309_v30  ;;  %v8366_v28 = vcombine.high %v773_v21, %v777_v22  ;;  %v780_v30 = vld [vmem:[#allocation3 + $0x1380] sm:$0xff]  ;;  %v821_v21 = vld [vmem:[#allocation3 + $0x14c8] sm:$0xff] }
 0x143   :  { %6478 = vmatprep.subr.bf16.mxu0 %v8316_v32  ;;  %6806 = vmatprep.subr.bf16.mxu1 %v8318_v33  ;;  %v784_v32 = vld [vmem:[#allocation3 + $0x13a0] sm:$0xff]  ;;  %v781_v33 = vld [vmem:[#allocation3 + $0x1388] sm:$0xff] }
 0x144   :  { %v8372_v37 = vcombine.high %v780_v30, %v784_v32  ;;  %v8371_v46 = vcombine.low %v780_v30, %v784_v32  ;;  %v8373_v47 = vcombine.low %v781_v33, %v785_v35  ;;  %v825_v22 = vld [vmem:[#allocation3 + $0x14e8] sm:$0xff]  ;;  %v828_v30 = vld [vmem:[#allocation3 + $0x1500] sm:$0xff] }
 0x145   :  { %v832_v32 = vld [vmem:[#allocation3 + $0x1520] sm:$0xff] }
 0x146   :  { %6479 = vmatpush1.bf16.msra.mxu0 %v8315_v38  ;;  %6807 = vmatpush1.bf16.msra.mxu1 %v8317_v40  ;;  %v8374_v38 = vcombine.high %v781_v33, %v785_v35  ;;  %v788_v40 = vld [vmem:[#allocation3 + $0x13c0] sm:$0xff]  ;;  %v829_v33 = vld [vmem:[#allocation3 + $0x1508] sm:$0xff] }
 0x147   :  { %6480 = vmatprep.subr.bf16.mxu0 %v8324_v42  ;;  %6808 = vmatprep.subr.bf16.mxu1 %v8326_v55  ;;  %v792_v42 = vld [vmem:[#allocation3 + $0x13e0] sm:$0xff]  ;;  %v90_v55 = vcombine.high %v9068_v10, %v9068_v10  ;;  %v8381_v10 = vcombine.low %v789_v43, %v793_v45  ;;  %v833_v35 = vld [vmem:[#allocation3 + $0x1528] sm:$0xff] }
 0x148   :  { %v8379_v57 = vcombine.low %v788_v40, %v792_v42 }
 0x149   :  { %v9089_v54 = vrot.slane %v90_v55, %v8993_v53  ;;  %v837_v55 = vld [vmem:[#allocation3 + $0x1548] sm:$0xff] }
 0x14a   :  { %6481 = vmatpush1.bf16.msra.mxu0 %v8323_v48  ;;  %6809 = vmatpush1.bf16.msra.mxu1 %v8325_v49  ;;  %v8380_v48 = vcombine.high %v788_v40, %v792_v42  ;;  %v8382_v49 = vcombine.high %v789_v43, %v793_v45  ;;  %v836_v40 = vld [vmem:[#allocation3 + $0x1540] sm:$0xff]  ;;  %v841_v43 = vld [vmem:[#allocation3 + $0x1568] sm:$0xff]  ;;  %v8419_v45 = vcombine.low %v828_v30, %v832_v32 }
 0x14b   :  { %6482 = vmatprep.subr.bf16.mxu0 %v8332_v50  ;;  %6810 = vmatprep.subr.bf16.mxu1 %v8334_v52  ;;  %v796_v50 = vld [vmem:[#allocation3 + $0x1400] sm:$0xff]  ;;  %v106_v62 = vcombine.high %v9089_v54, %v9089_v54 }
 0x14c   :  { %v800_v52 = vld [vmem:[#allocation3 + $0x1420] sm:$0xff] }
 0x14d   :  { %v9097_v13 = vpack.c.bf16 %v106_v62, %v106_v62  ;;  %v840_v42 = vld [vmem:[#allocation3 + $0x1560] sm:$0xff]  ;;  %v857_v62 = vld [vmem:[#allocation3 + $0x15e8] sm:$0xff] }
 0x14e   :  { %6483 = vmatpush1.bf16.msra.mxu0 %v8331_v58  ;;  %6811 = vmatpush1.bf16.msra.mxu1 %v8333_v23  ;;  %v8388_v58 = vcombine.high %v796_v50, %v800_v52  ;;  %v8390_v23 = vcombine.high %v797_v16, %v801_v56 }
 0x14f   :  { %6484 = vmatprep.subr.bf16.mxu0 %v8340_v60  ;;  %6812 = vmatprep.subr.bf16.mxu1 %v8342_v61  ;;  %v804_v60 = vld [vmem:[#allocation3 + $0x1440] sm:$0xff] }
 0x150   :  { %v808_v61 = vld [vmem:[#allocation3 + $0x1460] sm:$0xff] }
 0x151   :  { %v8395_v18 = vcombine.low %v804_v60, %v808_v61 }
 0x152   :  { %6485 = vmatpush1.bf16.msra.mxu0 %v8339_v4  ;;  %6813 = vmatpush1.bf16.msra.mxu1 %v8341_v5  ;;  %v8387_v4 = vcombine.low %v796_v50, %v800_v52  ;;  %v8389_v5 = vcombine.low %v797_v16, %v801_v56  ;;  %v848_v50 = vld [vmem:[#allocation3 + $0x15a0] sm:$0xff]  ;;  %v845_v52 = vld [vmem:[#allocation3 + $0x1588] sm:$0xff]  ;;  %v8427_v56 = vcombine.low %v836_v40, %v840_v42 }
 0x153   :  { %6486 = vmatprep.subr.bf16.mxu0 %v8348_v6  ;;  %6814 = vmatprep.subr.bf16.mxu1 %v8350_v7  ;;  %v8396_v6 = vcombine.high %v804_v60, %v808_v61  ;;  %v8398_v7 = vcombine.high %v805_v1, %v809_v3  ;;  %v849_v16 = vld [vmem:[#allocation3 + $0x15a8] sm:$0xff]  ;;  %v856_v60 = vld [vmem:[#allocation3 + $0x15e0] sm:$0xff] }
 0x154   :  { %v853_v61 = vld [vmem:[#allocation3 + $0x15c8] sm:$0xff] }
 0x156   :  { %6487 = vmatpush1.bf16.msra.mxu0 %v8347_v31  ;;  %6815 = vmatpush1.bf16.msra.mxu1 %v8349_v15  ;;  %v817_v31 = vld [vmem:[#allocation3 + $0x14a8] sm:$0xff]  ;;  %v8397_v15 = vcombine.low %v805_v1, %v809_v3  ;;  %v8437_v3 = vcombine.low %v845_v52, %v849_v16 }
 0x157   :  { %6488 = vmatprep.subr.bf16.mxu0 %v8356_v17  ;;  %6816 = vmatprep.subr.bf16.mxu1 %v8358_v19  ;;  %v8404_v17 = vcombine.high %v812_v8, %v816_v11  ;;  %v8406_v19 = vcombine.high %v813_v14, %v817_v31 }
 0x15a   :  { %6489 = vmatpush1.bf16.msra.mxu0 %v8355_v24  ;;  %6817 = vmatpush1.bf16.msra.mxu1 %v8357_v26  ;;  %v8403_v24 = vcombine.low %v812_v8, %v816_v11  ;;  %v8405_v26 = vcombine.low %v813_v14, %v817_v31  ;;  %v861_v8 = vld [vmem:[#allocation3 + $0x1608] sm:$0xff]  ;;  %v8445_v31 = vcombine.low %v853_v61, %v857_v62 }
 0x15b   :  { %6490 = vmatprep.subr.bf16.mxu0 %v8364_v27  ;;  %6818 = vmatprep.subr.bf16.mxu1 %v8366_v28  ;;  %v8412_v27 = vcombine.high %v820_v59, %v824_v20  ;;  %v8414_v28 = vcombine.high %v821_v21, %v825_v22  ;;  %v865_v11 = vld [vmem:[#allocation3 + $0x1628] sm:$0xff] }
 0x15e   :  { %6491 = vmatpush1.bf16.msra.mxu0 %v8363_v36  ;;  %6819 = vmatpush1.bf16.msra.mxu1 %v8365_v63  ;;  %v8411_v36 = vcombine.low %v820_v59, %v824_v20  ;;  %v8413_v63 = vcombine.low %v821_v21, %v825_v22  ;;  %v869_v59 = vld [vmem:[#allocation3 + $0x1648] sm:$0xff]  ;;  %v8453_v22 = vcombine.low %v861_v8, %v865_v11 }
 0x15f   :  { %6492 = vmatprep.subr.bf16.mxu0 %v8372_v37  ;;  %6820 = vmatprep.subr.bf16.mxu1 %v8374_v38  ;;  %v8420_v37 = vcombine.high %v828_v30, %v832_v32  ;;  %v8422_v38 = vcombine.high %v829_v33, %v833_v35  ;;  %v873_v20 = vld [vmem:[#allocation3 + $0x1668] sm:$0xff] }
 0x160   :  { %v877_v30 = vld [vmem:[#allocation3 + $0x1688] sm:$0xff] }
 0x161   :  { %v881_v32 = vld [vmem:[#allocation3 + $0x16a8] sm:$0xff] }
 0x162   :  { %6493 = vmatpush1.bf16.msra.mxu0 %v8371_v46  ;;  %6821 = vmatpush1.bf16.msra.mxu1 %v8373_v47  ;;  %v8421_v46 = vcombine.low %v829_v33, %v833_v35  ;;  %v8428_v47 = vcombine.high %v836_v40, %v840_v42  ;;  %v8461_v35 = vcombine.low %v869_v59, %v873_v20  ;;  %v885_v40 = vld [vmem:[#allocation3 + $0x16c8] sm:$0xff] }
 0x163   :  { %6494 = vmatprep.subr.bf16.mxu0 %v8380_v48  ;;  %6822 = vmatprep.subr.bf16.mxu1 %v8382_v49  ;;  %v8430_v48 = vcombine.high %v837_v55, %v841_v43  ;;  %v844_v49 = vld [vmem:[#allocation3 + $0x1580] sm:$0xff]  ;;  %v889_v42 = vld [vmem:[#allocation3 + $0x16e8] sm:$0xff] }
 0x164   :  { %v8435_v1 = vcombine.low %v844_v49, %v848_v50 }
 0x166   :  { %6495 = vmatpush1.bf16.msra.mxu0 %v8379_v57  ;;  %6823 = vmatpush1.bf16.msra.mxu1 %v8381_v10  ;;  %v8429_v57 = vcombine.low %v837_v55, %v841_v43  ;;  %v8436_v10 = vcombine.high %v844_v49, %v848_v50  ;;  %v8469_v43 = vcombine.low %v877_v30, %v881_v32  ;;  %v893_v49 = vld [vmem:[#allocation3 + $0x1708] sm:$0xff] }
 0x167   :  { %6505 = vmatprep.subr.bf16.mxu0 %v8388_v58  ;;  %6833 = vmatprep.subr.bf16.mxu1 %v8390_v23  ;;  %v8438_v58 = vcombine.high %v845_v52, %v849_v16  ;;  %v852_v23 = vld [vmem:[#allocation3 + $0x15c0] sm:$0xff]  ;;  %v897_v50 = vld [vmem:[#allocation3 + $0x1728] sm:$0xff]  ;;  %v8477_v16 = vcombine.low %v885_v40, %v889_v42 }
 0x168   :  { %v8443_v14 = vcombine.low %v852_v23, %v856_v60 }
 0x169   :  { %6497 = vmatmul.mubr.bf16.vlgmr.msra.gmra.mrb[0].mxu0 %v9095_v0  ;;  %6825 = vmatmul.mubr.bf16.vlgmr.msra.gmra.mrb[0].mxu1 %v9095_v0 }
 0x16a   :  { %6506 = vmatpush1.bf16.msra.mxu0 %v8387_v4  ;;  %6834 = vmatpush1.bf16.msra.mxu1 %v8389_v5  ;;  %v8444_v4 = vcombine.high %v852_v23, %v856_v60  ;;  %v8446_v5 = vcombine.high %v853_v61, %v857_v62  ;;  %v901_v23 = vld [vmem:[#allocation3 + $0x1748] sm:$0xff]  ;;  %v8485_v62 = vcombine.low %v893_v49, %v897_v50 }
 0x16b   :  { %6507 = vmatprep.subr.bf16.mxu0 %v8396_v6  ;;  %6835 = vmatprep.subr.bf16.mxu1 %v8398_v7  ;;  %v860_v6 = vld [vmem:[#allocation3 + $0x1600] sm:$0xff]  ;;  %v905_v60 = vld [vmem:[#allocation3 + $0x1768] sm:$0xff] }
 0x16c   :  { %6537 = vmatprep.mubr.bf16.mxu0 %v9097_v13  ;;  %6865 = vmatprep.mubr.bf16.mxu1 %v9097_v13  ;;  %v864_v7 = vld [vmem:[#allocation3 + $0x1620] sm:$0xff] }
 0x16d   :  { %v8451_v21 = vcombine.low %v860_v6, %v864_v7 }
 0x16e   :  { %6508 = vmatpush1.bf16.msra.mxu0 %v8395_v18  ;;  %6836 = vmatpush1.bf16.msra.mxu1 %v8397_v15  ;;  %v8452_v18 = vcombine.high %v860_v6, %v864_v7  ;;  %v8454_v15 = vcombine.high %v861_v8, %v865_v11  ;;  %v909_v6 = vld [vmem:[#allocation3 + $0x1788] sm:$0xff]  ;;  %v8493_v11 = vcombine.low %v901_v23, %v905_v60 }
 0x16f   :  { %6509 = vmatprep.subr.bf16.mxu0 %v8404_v17  ;;  %6837 = vmatprep.subr.bf16.mxu1 %v8406_v19  ;;  %v868_v17 = vld [vmem:[#allocation3 + $0x1640] sm:$0xff]  ;;  %v913_v7 = vld [vmem:[#allocation3 + $0x17a8] sm:$0xff] }
 0x170   :  { %v872_v19 = vld [vmem:[#allocation3 + $0x1660] sm:$0xff] }
 0x171   :  { %v8459_v33 = vcombine.low %v868_v17, %v872_v19 }
 0x172   :  { %6510 = vmatpush1.bf16.msra.mxu0 %v8403_v24  ;;  %6838 = vmatpush1.bf16.msra.mxu1 %v8405_v26  ;;  %v8460_v24 = vcombine.high %v868_v17, %v872_v19  ;;  %v8462_v26 = vcombine.high %v869_v59, %v873_v20  ;;  %v917_v17 = vld [vmem:[#allocation3 + $0x17c8] sm:$0xff]  ;;  %v9106_v59 = vld [vmem:[%s9201_s0 + $0x18] sm:$0xff] }
 0x173   :  { %6511 = vmatprep.subr.bf16.mxu0 %v8412_v27  ;;  %6839 = vmatprep.subr.bf16.mxu1 %v8414_v28  ;;  %v876_v27 = vld [vmem:[#allocation3 + $0x1680] sm:$0xff]  ;;  %v921_v19 = vld [vmem:[#allocation3 + $0x17e8] sm:$0xff] }
 0x174   :  { %v880_v28 = vld [vmem:[#allocation3 + $0x16a0] sm:$0xff] }
 0x175   :  { %v8467_v55 = vcombine.low %v876_v27, %v880_v28 }
 0x176   :  { %6512 = vmatpush1.bf16.msra.mxu0 %v8411_v36  ;;  %6840 = vmatpush1.bf16.msra.mxu1 %v8413_v63  ;;  %v8468_v36 = vcombine.high %v876_v27, %v880_v28  ;;  %v8470_v63 = vcombine.high %v877_v30, %v881_v32  ;;  %v928_v27 = vld [vmem:[#allocation3 + $0x1820] sm:$0xff]  ;;  %v9110_v28 = vrot.slane %v9106_v59, %v8993_v53  ;;  %v925_v30 = vld [vmem:[#allocation3 + $0x1808] sm:$0xff] }
 0x177   :  { %6513 = vmatprep.subr.bf16.mxu0 %v8420_v37  ;;  %6841 = vmatprep.subr.bf16.mxu1 %v8422_v38  ;;  %v884_v37 = vld [vmem:[#allocation3 + $0x16c0] sm:$0xff]  ;;  %v929_v32 = vld [vmem:[#allocation3 + $0x1828] sm:$0xff] }
 0x178   :  { %v888_v38 = vld [vmem:[#allocation3 + $0x16e0] sm:$0xff] }
 0x179   :  { %v8475_v52 = vcombine.low %v884_v37, %v888_v38 }
 0x17a   :  { %6514 = vmatpush1.bf16.msra.mxu0 %v8419_v45  ;;  %6842 = vmatpush1.bf16.msra.mxu1 %v8421_v46  ;;  %v8476_v45 = vcombine.high %v884_v37, %v888_v38  ;;  %v8478_v46 = vcombine.high %v885_v40, %v889_v42  ;;  %v932_v37 = vld [vmem:[#allocation3 + $0x1840] sm:$0xff]  ;;  %v122_v40 = vcombine.high %v9110_v28, %v9110_v28 }
 0x17b   :  { %6515 = vmatprep.subr.bf16.mxu0 %v8428_v47  ;;  %6843 = vmatprep.subr.bf16.mxu1 %v8430_v48  ;;  %v892_v47 = vld [vmem:[#allocation3 + $0x1700] sm:$0xff]  ;;  %v9116_v42 = vpack.c.bf16 %v9089_v54, %v9089_v54 }
 0x17c   :  { %v896_v48 = vld [vmem:[#allocation3 + $0x1720] sm:$0xff] }
 0x17d   :  { %v8483_v61 = vcombine.low %v892_v47, %v896_v48  ;;  %v936_v38 = vld [vmem:[#allocation3 + $0x1860] sm:$0xff] }
 0x17e   :  { %6516 = vmatpush1.bf16.msra.mxu0 %v8427_v56  ;;  %6844 = vmatpush1.bf16.msra.mxu1 %v8429_v57  ;;  %v8484_v56 = vcombine.high %v892_v47, %v896_v48  ;;  %v8486_v57 = vcombine.high %v893_v49, %v897_v50  ;;  %v8524_v47 = vcombine.high %v932_v37, %v936_v38  ;;  %v940_v49 = vld [vmem:[#allocation3 + $0x1880] sm:$0xff] }
 0x17f   :  { %6517 = vmatprep.subr.bf16.mxu0 %v8436_v10  ;;  %6845 = vmatprep.subr.bf16.mxu1 %v8438_v58  ;;  %v900_v10 = vld [vmem:[#allocation3 + $0x1740] sm:$0xff]  ;;  %v8523_v54 = vcombine.low %v932_v37, %v936_v38 }
 0x180   :  { %v904_v58 = vld [vmem:[#allocation3 + $0x1760] sm:$0xff] }
 0x181   :  { %v8491_v8 = vcombine.low %v900_v10, %v904_v58  ;;  %v944_v50 = vld [vmem:[#allocation3 + $0x18a0] sm:$0xff] }
 0x182   :  { %6518 = vmatpush1.bf16.msra.mxu0 %v8435_v1  ;;  %6846 = vmatpush1.bf16.msra.mxu1 %v8437_v3  ;;  %v8492_v1 = vcombine.high %v900_v10, %v904_v58  ;;  %v8494_v3 = vcombine.high %v901_v23, %v905_v60  ;;  %v8532_v10 = vcombine.high %v940_v49, %v944_v50  ;;  %v948_v23 = vld [vmem:[#allocation3 + $0x18c0] sm:$0xff] }
 0x183   :  { %6519 = vmatprep.subr.bf16.mxu0 %v8444_v4  ;;  %6847 = vmatprep.subr.bf16.mxu1 %v8446_v5  ;;  %v908_v4 = vld [vmem:[#allocation3 + $0x1780] sm:$0xff] }
 0x184   :  { %v912_v5 = vld [vmem:[#allocation3 + $0x17a0] sm:$0xff] }
 0x185   :  { %v8499_v20 = vcombine.low %v908_v4, %v912_v5  ;;  %v952_v60 = vld [vmem:[#allocation3 + $0x18e0] sm:$0xff] }
 0x186   :  { %6520 = vmatpush1.bf16.msra.mxu0 %v8443_v14  ;;  %6848 = vmatpush1.bf16.msra.mxu1 %v8445_v31  ;;  %v8500_v14 = vcombine.high %v908_v4, %v912_v5  ;;  %v8502_v31 = vcombine.high %v909_v6, %v913_v7  ;;  %v8540_v4 = vcombine.high %v948_v23, %v952_v60 }
 0x187   :  { %6521 = vmatprep.subr.bf16.mxu0 %v8452_v18  ;;  %6849 = vmatprep.subr.bf16.mxu1 %v8454_v15  ;;  %v916_v18 = vld [vmem:[#allocation3 + $0x17c0] sm:$0xff] }
 0x188   :  { %v920_v15 = vld [vmem:[#allocation3 + $0x17e0] sm:$0xff] }
 0x18a   :  { %6522 = vmatpush1.bf16.msra.mxu0 %v8451_v21  ;;  %6850 = vmatpush1.bf16.msra.mxu1 %v8453_v22  ;;  %v8501_v21 = vcombine.low %v909_v6, %v913_v7  ;;  %v8508_v22 = vcombine.high %v916_v18, %v920_v15  ;;  %v956_v6 = vld [vmem:[#allocation3 + $0x1900] sm:$0xff] }
 0x18b   :  { %6523 = vmatprep.subr.bf16.mxu0 %v8460_v24  ;;  %6851 = vmatprep.subr.bf16.mxu1 %v8462_v26  ;;  %v8510_v24 = vcombine.high %v917_v17, %v921_v19  ;;  %v924_v26 = vld [vmem:[#allocation3 + $0x1800] sm:$0xff] }
 0x18c   :  { %v960_v7 = vld [vmem:[#allocation3 + $0x1920] sm:$0xff] }
 0x18e   :  { %6524 = vmatpush1.bf16.msra.mxu0 %v8459_v33  ;;  %6852 = vmatpush1.bf16.msra.mxu1 %v8461_v35  ;;  %v8507_v33 = vcombine.low %v916_v18, %v920_v15  ;;  %v8509_v35 = vcombine.low %v917_v17, %v921_v19  ;;  %v8548_v18 = vcombine.high %v956_v6, %v960_v7  ;;  %v964_v17 = vld [vmem:[#allocation3 + $0x1940] sm:$0xff] }
 0x18f   :  { %6525 = vmatprep.subr.bf16.mxu0 %v8468_v36  ;;  %6853 = vmatprep.subr.bf16.mxu1 %v8470_v63  ;;  %v8516_v36 = vcombine.high %v924_v26, %v928_v27  ;;  %v8518_v63 = vcombine.high %v925_v30, %v929_v32  ;;  %v968_v19 = vld [vmem:[#allocation3 + $0x1960] sm:$0xff] }
 0x192   :  { %6526 = vmatpush1.bf16.msra.mxu0 %v8467_v55  ;;  %6854 = vmatpush1.bf16.msra.mxu1 %v8469_v43  ;;  %v933_v55 = vld [vmem:[#allocation3 + $0x1848] sm:$0xff] }
 0x193   :  { %6527 = vmatprep.subr.bf16.mxu0 %v8476_v45  ;;  %6855 = vmatprep.subr.bf16.mxu1 %v8478_v46  ;;  %v937_v43 = vld [vmem:[#allocation3 + $0x1868] sm:$0xff]  ;;  %v8515_v45 = vcombine.low %v924_v26, %v928_v27  ;;  %v8517_v46 = vcombine.low %v925_v30, %v929_v32  ;;  %v8556_v26 = vcombine.high %v964_v17, %v968_v19  ;;  %v972_v30 = vld [vmem:[#allocation3 + $0x1980] sm:$0xff] }
 0x194   :  { %v8526_v48 = vcombine.high %v933_v55, %v937_v43  ;;  %v976_v32 = vld [vmem:[#allocation3 + $0x19a0] sm:$0xff] }
 0x195   :  { %v8564_v37 = vcombine.high %v972_v30, %v976_v32 }
 0x196   :  { %6528 = vmatpush1.bf16.msra.mxu0 %v8475_v52  ;;  %6856 = vmatpush1.bf16.msra.mxu1 %v8477_v16  ;;  %v9118_v52 = vpack.c.bf16 %v122_v40, %v122_v40  ;;  %v941_v16 = vld [vmem:[#allocation3 + $0x1888] sm:$0xff]  ;;  %v980_v40 = vld [vmem:[#allocation3 + $0x19c0] sm:$0xff] }
 0x197   :  { %6529 = vmatprep.subr.bf16.mxu0 %v8484_v56  ;;  %6857 = vmatprep.subr.bf16.mxu1 %v8486_v57  ;;  %v945_v56 = vld [vmem:[#allocation3 + $0x18a8] sm:$0xff]  ;;  %v8525_v57 = vcombine.low %v933_v55, %v937_v43  ;;  %v984_v55 = vld [vmem:[#allocation3 + $0x19e0] sm:$0xff] }
 0x198   :  { %v8534_v58 = vcombine.high %v941_v16, %v945_v56  ;;  %v981_v43 = vld [vmem:[#allocation3 + $0x19c8] sm:$0xff] }
 0x19a   :  { %6530 = vmatpush1.bf16.msra.mxu0 %v8483_v61  ;;  %6858 = vmatpush1.bf16.msra.mxu1 %v8485_v62  ;;  %v949_v61 = vld [vmem:[#allocation3 + $0x18c8] sm:$0xff] }
 0x19b   :  { %6531 = vmatprep.subr.bf16.mxu0 %v8492_v1  ;;  %6859 = vmatprep.subr.bf16.mxu1 %v8494_v3  ;;  %v953_v62 = vld [vmem:[#allocation3 + $0x18e8] sm:$0xff]  ;;  %v8531_v1 = vcombine.low %v940_v49, %v944_v50  ;;  %v8533_v3 = vcombine.low %v941_v16, %v945_v56  ;;  %v988_v50 = vld [vmem:[#allocation3 + $0x1a00] sm:$0xff] }
 0x19c   :  { %v8542_v5 = vcombine.high %v949_v61, %v953_v62  ;;  %v992_v16 = vld [vmem:[#allocation3 + $0x1a20] sm:$0xff]  ;;  %v989_v56 = vld [vmem:[#allocation3 + $0x1a08] sm:$0xff] }
 0x19e   :  { %6532 = vmatpush1.bf16.msra.mxu0 %v8491_v8  ;;  %6860 = vmatpush1.bf16.msra.mxu1 %v8493_v11  ;;  %v957_v8 = vld [vmem:[#allocation3 + $0x1908] sm:$0xff] }
 0x19f   :  { %6533 = vmatprep.subr.bf16.mxu0 %v8500_v14  ;;  %6861 = vmatprep.subr.bf16.mxu1 %v8502_v31  ;;  %v961_v11 = vld [vmem:[#allocation3 + $0x1928] sm:$0xff]  ;;  %v8539_v14 = vcombine.low %v948_v23, %v952_v60  ;;  %v8541_v31 = vcombine.low %v949_v61, %v953_v62  ;;  %v996_v60 = vld [vmem:[#allocation3 + $0x1a40] sm:$0xff] }
 0x1a0   :  { %v8550_v15 = vcombine.high %v957_v8, %v961_v11  ;;  %v1000_v61 = vld [vmem:[#allocation3 + $0x1a60] sm:$0xff]  ;;  %v997_v62 = vld [vmem:[#allocation3 + $0x1a48] sm:$0xff] }
 0x1a2   :  { %6534 = vmatpush1.bf16.msra.mxu0 %v8499_v20  ;;  %6862 = vmatpush1.bf16.msra.mxu1 %v8501_v21  ;;  %v965_v20 = vld [vmem:[#allocation3 + $0x1948] sm:$0xff] }
 0x1a3   :  { %6535 = vmatprep.subr.bf16.mxu0 %v8508_v22  ;;  %6863 = vmatprep.subr.bf16.mxu1 %v8510_v24  ;;  %v969_v21 = vld [vmem:[#allocation3 + $0x1968] sm:$0xff]  ;;  %v8547_v22 = vcombine.low %v956_v6, %v960_v7  ;;  %v8549_v24 = vcombine.low %v957_v8, %v961_v11  ;;  %v1004_v7 = vld [vmem:[#allocation3 + $0x1a80] sm:$0xff] }
 0x1a4   :  { %v8558_v27 = vcombine.high %v965_v20, %v969_v21  ;;  %v1008_v8 = vld [vmem:[#allocation3 + $0x1aa0] sm:$0xff]  ;;  %v1005_v11 = vld [vmem:[#allocation3 + $0x1a88] sm:$0xff] }
 0x1a6   :  { %6536 = vmatpush1.bf16.msra.mxu0 %v8507_v33  ;;  %6864 = vmatpush1.bf16.msra.mxu1 %v8509_v35  ;;  %v973_v33 = vld [vmem:[#allocation3 + $0x1988] sm:$0xff] }
 0x1a7   :  { %6546 = vmatprep.subr.bf16.mxu0 %v8516_v36  ;;  %6874 = vmatprep.subr.bf16.mxu1 %v8518_v63  ;;  %v977_v35 = vld [vmem:[#allocation3 + $0x19a8] sm:$0xff]  ;;  %v8555_v36 = vcombine.low %v964_v17, %v968_v19  ;;  %v8557_v63 = vcombine.low %v965_v20, %v969_v21  ;;  %v1012_v19 = vld [vmem:[#allocation3 + $0x1ac0] sm:$0xff] }
 0x1a8   :  { %v8566_v38 = vcombine.high %v973_v33, %v977_v35  ;;  %v1016_v20 = vld [vmem:[#allocation3 + $0x1ae0] sm:$0xff]  ;;  %v1013_v21 = vld [vmem:[#allocation3 + $0x1ac8] sm:$0xff] }
 0x1a9   :  { %6538 = vmatmul.mubr.bf16.vlgmr.msra.gmra.mrb[0].mxu0 %v9116_v42  ;;  %6866 = vmatmul.mubr.bf16.vlgmr.msra.gmra.mrb[0].mxu1 %v9116_v42 }
 0x1aa   :  { %6547 = vmatpush1.bf16.msra.mxu0 %v8515_v45  ;;  %6875 = vmatpush1.bf16.msra.mxu1 %v8517_v46  ;;  %v985_v45 = vld [vmem:[#allocation3 + $0x19e8] sm:$0xff]  ;;  %v8563_v46 = vcombine.low %v972_v30, %v976_v32  ;;  %v1020_v32 = vld [vmem:[#allocation3 + $0x1b00] sm:$0xff] }
 0x1ab   :  { %6548 = vmatprep.subr.bf16.mxu0 %v8524_v47  ;;  %6876 = vmatprep.subr.bf16.mxu1 %v8526_v48  ;;  %v8565_v47 = vcombine.low %v973_v33, %v977_v35  ;;  %v8572_v48 = vcombine.high %v980_v40, %v984_v55  ;;  %v8574_v49 = vcombine.high %v981_v43, %v985_v45  ;;  %v1024_v33 = vld [vmem:[#allocation3 + $0x1b20] sm:$0xff]  ;;  %v1021_v35 = vld [vmem:[#allocation3 + $0x1b08] sm:$0xff] }
 0x1ac   :  { %6578 = vmatprep.mubr.bf16.mxu0 %v9118_v52  ;;  %6906 = vmatprep.mubr.bf16.mxu1 %v9118_v52 }
 0x1ae   :  { %6549 = vmatpush1.bf16.msra.mxu0 %v8523_v54  ;;  %6877 = vmatpush1.bf16.msra.mxu1 %v8525_v57  ;;  %v993_v54 = vld [vmem:[#allocation3 + $0x1a28] sm:$0xff]  ;;  %v8571_v57 = vcombine.low %v980_v40, %v984_v55  ;;  %v1028_v55 = vld [vmem:[#allocation3 + $0x1b40] sm:$0xff] }
 0x1af   :  { %6550 = vmatprep.subr.bf16.mxu0 %v8532_v10  ;;  %6878 = vmatprep.subr.bf16.mxu1 %v8534_v58  ;;  %v8573_v10 = vcombine.low %v981_v43, %v985_v45  ;;  %v8580_v58 = vcombine.high %v988_v50, %v992_v16  ;;  %v8582_v23 = vcombine.high %v989_v56, %v993_v54  ;;  %v1032_v43 = vld [vmem:[#allocation3 + $0x1b60] sm:$0xff]  ;;  %v1029_v45 = vld [vmem:[#allocation3 + $0x1b48] sm:$0xff] }
 0x1b2   :  { %6551 = vmatpush1.bf16.msra.mxu0 %v8531_v1  ;;  %6879 = vmatpush1.bf16.msra.mxu1 %v8533_v3  ;;  %v1001_v1 = vld [vmem:[#allocation3 + $0x1a68] sm:$0xff]  ;;  %v8579_v3 = vcombine.low %v988_v50, %v992_v16  ;;  %v1036_v16 = vld [vmem:[#allocation3 + $0x1b80] sm:$0xff] }
 0x1b3   :  { %6552 = vmatprep.subr.bf16.mxu0 %v8540_v4  ;;  %6880 = vmatprep.subr.bf16.mxu1 %v8542_v5  ;;  %v8581_v4 = vcombine.low %v989_v56, %v993_v54  ;;  %v8588_v5 = vcombine.high %v996_v60, %v1000_v61  ;;  %v8590_v6 = vcombine.high %v997_v62, %v1001_v1  ;;  %v1040_v56 = vld [vmem:[#allocation3 + $0x1ba0] sm:$0xff]  ;;  %v1037_v54 = vld [vmem:[#allocation3 + $0x1b88] sm:$0xff] }
 0x1b6   :  { %6553 = vmatpush1.bf16.msra.mxu0 %v8539_v14  ;;  %6881 = vmatpush1.bf16.msra.mxu1 %v8541_v31  ;;  %v1009_v14 = vld [vmem:[#allocation3 + $0x1aa8] sm:$0xff]  ;;  %v8587_v31 = vcombine.low %v996_v60, %v1000_v61  ;;  %v1044_v61 = vld [vmem:[#allocation3 + $0x1bc0] sm:$0xff] }
 0x1b7   :  { %6554 = vmatprep.subr.bf16.mxu0 %v8548_v18  ;;  %6882 = vmatprep.subr.bf16.mxu1 %v8550_v15  ;;  %v8589_v18 = vcombine.low %v997_v62, %v1001_v1  ;;  %v8596_v15 = vcombine.high %v1004_v7, %v1008_v8  ;;  %v8598_v17 = vcombine.high %v1005_v11, %v1009_v14  ;;  %v1048_v62 = vld [vmem:[#allocation3 + $0x1be0] sm:$0xff] }
 0x1b8   :  { %v107_v1 = vcombine.high %v9106_v59, %v9106_v59 }
 0x1ba   :  { %6555 = vmatpush1.bf16.msra.mxu0 %v8547_v22  ;;  %6883 = vmatpush1.bf16.msra.mxu1 %v8549_v24  ;;  %v1017_v22 = vld [vmem:[#allocation3 + $0x1ae8] sm:$0xff]  ;;  %v8595_v24 = vcombine.low %v1004_v7, %v1008_v8  ;;  %v8636_v7 = vcombine.high %v1044_v61, %v1048_v62 }
 0x1bb   :  { %6556 = vmatprep.subr.bf16.mxu0 %v8556_v26  ;;  %6884 = vmatprep.subr.bf16.mxu1 %v8558_v27  ;;  %v8597_v26 = vcombine.low %v1005_v11, %v1009_v14  ;;  %v8604_v27 = vcombine.high %v1012_v19, %v1016_v20  ;;  %v8606_v30 = vcombine.high %v1013_v21, %v1017_v22  ;;  %v1052_v11 = vld [vmem:[#allocation3 + $0x1c00] sm:$0xff] }
 0x1bc   :  { %v1056_v14 = vld [vmem:[#allocation3 + $0x1c20] sm:$0xff] }
 0x1be   :  { %6557 = vmatpush1.bf16.msra.mxu0 %v8555_v36  ;;  %6885 = vmatpush1.bf16.msra.mxu1 %v8557_v63  ;;  %v1025_v36 = vld [vmem:[#allocation3 + $0x1b28] sm:$0xff]  ;;  %v8603_v63 = vcombine.low %v1012_v19, %v1016_v20  ;;  %v8644_v19 = vcombine.high %v1052_v11, %v1056_v14 }
 0x1bf   :  { %6558 = vmatprep.subr.bf16.mxu0 %v8564_v37  ;;  %6886 = vmatprep.subr.bf16.mxu1 %v8566_v38  ;;  %v8605_v37 = vcombine.low %v1013_v21, %v1017_v22  ;;  %v8612_v38 = vcombine.high %v1020_v32, %v1024_v33  ;;  %v8614_v40 = vcombine.high %v1021_v35, %v1025_v36  ;;  %v1060_v21 = vld [vmem:[#allocation3 + $0x1c40] sm:$0xff] }
 0x1c0   :  { %v1064_v22 = vld [vmem:[#allocation3 + $0x1c60] sm:$0xff] }
 0x1c2   :  { %6559 = vmatpush1.bf16.msra.mxu0 %v8563_v46  ;;  %6887 = vmatpush1.bf16.msra.mxu1 %v8565_v47  ;;  %v1033_v46 = vld [vmem:[#allocation3 + $0x1b68] sm:$0xff]  ;;  %v8611_v47 = vcombine.low %v1020_v32, %v1024_v33  ;;  %v8643_v32 = vcombine.low %v1052_v11, %v1056_v14 }
 0x1c3   :  { %6560 = vmatprep.subr.bf16.mxu0 %v8572_v48  ;;  %6888 = vmatprep.subr.bf16.mxu1 %v8574_v49  ;;  %v8613_v48 = vcombine.low %v1021_v35, %v1025_v36  ;;  %v8620_v49 = vcombine.high %v1028_v55, %v1032_v43  ;;  %v8622_v50 = vcombine.high %v1029_v45, %v1033_v46 }
 0x1c4   :  { %v8652_v35 = vcombine.high %v1060_v21, %v1064_v22 }
 0x1c6   :  { %6561 = vmatpush1.bf16.msra.mxu0 %v8571_v57  ;;  %6889 = vmatpush1.bf16.msra.mxu1 %v8573_v10  ;;  %v1041_v57 = vld [vmem:[#allocation3 + $0x1ba8] sm:$0xff]  ;;  %v8619_v10 = vcombine.low %v1028_v55, %v1032_v43 }
 0x1c7   :  { %6562 = vmatprep.subr.bf16.mxu0 %v8580_v58  ;;  %6890 = vmatprep.subr.bf16.mxu1 %v8582_v23  ;;  %v8621_v58 = vcombine.low %v1029_v45, %v1033_v46  ;;  %v8628_v23 = vcombine.high %v1036_v16, %v1040_v56  ;;  %v8630_v60 = vcombine.high %v1037_v54, %v1041_v57  ;;  %v1073_v55 = vld [vmem:[#allocation3 + $0x1ca8] sm:$0xff] }
 0x1ca   :  { %6563 = vmatpush1.bf16.msra.mxu0 %v8579_v3  ;;  %6891 = vmatpush1.bf16.msra.mxu1 %v8581_v4  ;;  %v1045_v3 = vld [vmem:[#allocation3 + $0x1bc8] sm:$0xff] }
 0x1cb   :  { %6564 = vmatprep.subr.bf16.mxu0 %v8588_v5  ;;  %6892 = vmatprep.subr.bf16.mxu1 %v8590_v6  ;;  %v1049_v4 = vld [vmem:[#allocation3 + $0x1be8] sm:$0xff]  ;;  %v8627_v5 = vcombine.low %v1036_v16, %v1040_v56  ;;  %v8629_v6 = vcombine.low %v1037_v54, %v1041_v57 }
 0x1cc   :  { %v8638_v8 = vcombine.high %v1045_v3, %v1049_v4  ;;  %v8637_v59 = vcombine.low %v1045_v3, %v1049_v4  ;;  %v1092_v4 = vld [vmem:[#allocation3 + $0x1d40] sm:$0xff] }
 0x1ce   :  { %6565 = vmatpush1.bf16.msra.mxu0 %v8587_v31  ;;  %6893 = vmatpush1.bf16.msra.mxu1 %v8589_v18  ;;  %v9127_v31 = vrot.slane %v107_v1, %v8993_v53  ;;  %v1053_v18 = vld [vmem:[#allocation3 + $0x1c08] sm:$0xff] }
 0x1cf   :  { %6566 = vmatprep.subr.bf16.mxu0 %v8596_v15  ;;  %6894 = vmatprep.subr.bf16.mxu1 %v8598_v17  ;;  %v1057_v15 = vld [vmem:[#allocation3 + $0x1c28] sm:$0xff]  ;;  %v8635_v17 = vcombine.low %v1044_v61, %v1048_v62 }
 0x1d0   :  { %v8646_v20 = vcombine.high %v1053_v18, %v1057_v15  ;;  %v8645_v33 = vcombine.low %v1053_v18, %v1057_v15  ;;  %v1100_v15 = vld [vmem:[#allocation3 + $0x1d80] sm:$0xff] }
 0x1d2   :  { %6567 = vmatpush1.bf16.msra.mxu0 %v8595_v24  ;;  %6895 = vmatpush1.bf16.msra.mxu1 %v8597_v26  ;;  %v123_v24 = vcombine.high %v9127_v31, %v9127_v31  ;;  %v9133_v26 = vpack.c.bf16 %v9110_v28, %v9110_v28  ;;  %v8651_v28 = vcombine.low %v1060_v21, %v1064_v22 }
 0x1d3   :  { %6568 = vmatprep.subr.bf16.mxu0 %v8604_v27  ;;  %6896 = vmatprep.subr.bf16.mxu1 %v8606_v30  ;;  %v1061_v27 = vld [vmem:[#allocation3 + $0x1c48] sm:$0xff] }
 0x1d4   :  { %v1065_v30 = vld [vmem:[#allocation3 + $0x1c68] sm:$0xff] }
 0x1d5   :  { %v8654_v36 = vcombine.high %v1061_v27, %v1065_v30  ;;  %v8653_v43 = vcombine.low %v1061_v27, %v1065_v30  ;;  %v1108_v27 = vld [vmem:[#allocation3 + $0x1dc0] sm:$0xff] }
 0x1d6   :  { %6569 = vmatpush1.bf16.msra.mxu0 %v8603_v63  ;;  %6897 = vmatpush1.bf16.msra.mxu1 %v8605_v37  ;;  %v1068_v63 = vld [vmem:[#allocation3 + $0x1c80] sm:$0xff] }
 0x1d7   :  { %6570 = vmatprep.subr.bf16.mxu0 %v8612_v38  ;;  %6898 = vmatprep.subr.bf16.mxu1 %v8614_v40  ;;  %v1072_v37 = vld [vmem:[#allocation3 + $0x1ca0] sm:$0xff]  ;;  %v9135_v38 = vpack.c.bf16 %v123_v24, %v123_v24  ;;  %v1069_v40 = vld [vmem:[#allocation3 + $0x1c88] sm:$0xff] }
 0x1d8   :  { %v8660_v45 = vcombine.high %v1068_v63, %v1072_v37  ;;  %v8662_v46 = vcombine.high %v1069_v40, %v1073_v55  ;;  %v8659_v16 = vcombine.low %v1068_v63, %v1072_v37  ;;  %v8661_v56 = vcombine.low %v1069_v40, %v1073_v55  ;;  %v1112_v30 = vld [vmem:[#allocation3 + $0x1de0] sm:$0xff] }
 0x1d9   :  { %v8700_v63 = vcombine.high %v1108_v27, %v1112_v30  ;;  %v1116_v40 = vld [vmem:[#allocation3 + $0x1e00] sm:$0xff] }
 0x1da   :  { %6571 = vmatpush1.bf16.msra.mxu0 %v8611_v47  ;;  %6899 = vmatpush1.bf16.msra.mxu1 %v8613_v48  ;;  %v1076_v47 = vld [vmem:[#allocation3 + $0x1cc0] sm:$0xff] }
 0x1db   :  { %6572 = vmatprep.subr.bf16.mxu0 %v8620_v49  ;;  %6900 = vmatprep.subr.bf16.mxu1 %v8622_v50  ;;  %v1080_v48 = vld [vmem:[#allocation3 + $0x1ce0] sm:$0xff]  ;;  %v1077_v49 = vld [vmem:[#allocation3 + $0x1cc8] sm:$0xff] }
 0x1dc   :  { %v1081_v50 = vld [vmem:[#allocation3 + $0x1ce8] sm:$0xff]  ;;  %v8668_v54 = vcombine.high %v1076_v47, %v1080_v48  ;;  %v8667_v61 = vcombine.low %v1076_v47, %v1080_v48  ;;  %v1120_v55 = vld [vmem:[#allocation3 + $0x1e20] sm:$0xff] }
 0x1dd   :  { %v8670_v57 = vcombine.high %v1077_v49, %v1081_v50  ;;  %v8669_v62 = vcombine.low %v1077_v49, %v1081_v50  ;;  %v8708_v47 = vcombine.high %v1116_v40, %v1120_v55  ;;  %v1124_v49 = vld [vmem:[#allocation3 + $0x1e40] sm:$0xff] }
 0x1de   :  { %6573 = vmatpush1.bf16.msra.mxu0 %v8619_v10  ;;  %6901 = vmatpush1.bf16.msra.mxu1 %v8621_v58  ;;  %v1084_v10 = vld [vmem:[#allocation3 + $0x1d00] sm:$0xff] }
 0x1df   :  { %6574 = vmatprep.subr.bf16.mxu0 %v8628_v23  ;;  %6902 = vmatprep.subr.bf16.mxu1 %v8630_v60  ;;  %v1088_v58 = vld [vmem:[#allocation3 + $0x1d20] sm:$0xff]  ;;  %v1085_v23 = vld [vmem:[#allocation3 + $0x1d08] sm:$0xff] }
 0x1e0   :  { %v1089_v60 = vld [vmem:[#allocation3 + $0x1d28] sm:$0xff]  ;;  %v8676_v1 = vcombine.high %v1084_v10, %v1088_v58  ;;  %v1128_v50 = vld [vmem:[#allocation3 + $0x1e60] sm:$0xff] }
 0x1e1   :  { %v8678_v3 = vcombine.high %v1085_v23, %v1089_v60  ;;  %v8677_v11 = vcombine.low %v1085_v23, %v1089_v60  ;;  %v1132_v23 = vld [vmem:[#allocation3 + $0x1e80] sm:$0xff] }
 0x1e2   :  { %6575 = vmatpush1.bf16.msra.mxu0 %v8627_v5  ;;  %6903 = vmatpush1.bf16.msra.mxu1 %v8629_v6  ;;  %v1096_v5 = vld [vmem:[#allocation3 + $0x1d60] sm:$0xff]  ;;  %v1093_v6 = vld [vmem:[#allocation3 + $0x1d48] sm:$0xff] }
 0x1e3   :  { %6576 = vmatprep.subr.bf16.mxu0 %v8636_v7  ;;  %6904 = vmatprep.subr.bf16.mxu1 %v8638_v8  ;;  %v1097_v7 = vld [vmem:[#allocation3 + $0x1d68] sm:$0xff]  ;;  %v8675_v8 = vcombine.low %v1084_v10, %v1088_v58  ;;  %v8684_v14 = vcombine.high %v1092_v4, %v1096_v5  ;;  %v8716_v10 = vcombine.high %v1124_v49, %v1128_v50  ;;  %v1136_v60 = vld [vmem:[#allocation3 + $0x1ea0] sm:$0xff] }
 0x1e4   :  { %v8686_v18 = vcombine.high %v1093_v6, %v1097_v7  ;;  %v8685_v21 = vcombine.low %v1093_v6, %v1097_v7  ;;  %v1140_v6 = vld [vmem:[#allocation3 + $0x1ec0] sm:$0xff] }
 0x1e5   :  { %v1144_v7 = vld [vmem:[#allocation3 + $0x1ee0] sm:$0xff] }
 0x1e6   :  { %6577 = vmatpush1.bf16.msra.mxu0 %v8635_v17  ;;  %6905 = vmatpush1.bf16.msra.mxu1 %v8637_v59  ;;  %v1104_v17 = vld [vmem:[#allocation3 + $0x1da0] sm:$0xff]  ;;  %v1101_v59 = vld [vmem:[#allocation3 + $0x1d88] sm:$0xff] }
 0x1e7   :  { %6587 = vmatprep.subr.bf16.mxu0 %v8644_v19  ;;  %6915 = vmatprep.subr.bf16.mxu1 %v8646_v20  ;;  %v1105_v19 = vld [vmem:[#allocation3 + $0x1da8] sm:$0xff]  ;;  %v8683_v20 = vcombine.low %v1092_v4, %v1096_v5  ;;  %v8692_v22 = vcombine.high %v1100_v15, %v1104_v17  ;;  %v8724_v4 = vcombine.high %v1132_v23, %v1136_v60 }
 0x1e8   :  { %v8694_v24 = vcombine.high %v1101_v59, %v1105_v19 }
 0x1e9   :  { %6579 = vmatmul.mubr.bf16.vlgmr.msra.gmra.mrb[0].mxu0 %v9133_v26  ;;  %6907 = vmatmul.mubr.bf16.vlgmr.msra.gmra.mrb[0].mxu1 %v9133_v26 }
 0x1ea   :  { %6588 = vmatpush1.bf16.msra.mxu0 %v8643_v32  ;;  %6916 = vmatpush1.bf16.msra.mxu1 %v8645_v33  ;;  %v1109_v32 = vld [vmem:[#allocation3 + $0x1dc8] sm:$0xff] }
 0x1eb   :  { %6589 = vmatprep.subr.bf16.mxu0 %v8652_v35  ;;  %6917 = vmatprep.subr.bf16.mxu1 %v8654_v36  ;;  %v1113_v33 = vld [vmem:[#allocation3 + $0x1de8] sm:$0xff]  ;;  %v8691_v35 = vcombine.low %v1100_v15, %v1104_v17  ;;  %v8693_v36 = vcombine.low %v1101_v59, %v1105_v19  ;;  %v8732_v15 = vcombine.high %v1140_v6, %v1144_v7  ;;  %v1148_v59 = vld [vmem:[#allocation3 + $0x1f00] sm:$0xff] }
 0x1ec   :  { %6619 = vmatprep.mubr.bf16.mxu0 %v9135_v38  ;;  %6947 = vmatprep.mubr.bf16.mxu1 %v9135_v38  ;;  %v8702_v37 = vcombine.high %v1109_v32, %v1113_v33  ;;  %v1152_v19 = vld [vmem:[#allocation3 + $0x1f20] sm:$0xff] }
 0x1ee   :  { %6590 = vmatpush1.bf16.msra.mxu0 %v8651_v28  ;;  %6918 = vmatpush1.bf16.msra.mxu1 %v8653_v43  ;;  %v1117_v28 = vld [vmem:[#allocation3 + $0x1e08] sm:$0xff] }
 0x1ef   :  { %6591 = vmatprep.subr.bf16.mxu0 %v8660_v45  ;;  %6919 = vmatprep.subr.bf16.mxu1 %v8662_v46  ;;  %v1121_v43 = vld [vmem:[#allocation3 + $0x1e28] sm:$0xff]  ;;  %v8699_v45 = vcombine.low %v1108_v27, %v1112_v30  ;;  %v8701_v46 = vcombine.low %v1109_v32, %v1113_v33  ;;  %v8740_v27 = vcombine.high %v1148_v59, %v1152_v19  ;;  %v1156_v32 = vld [vmem:[#allocation3 + $0x1f40] sm:$0xff] }
 0x1f0   :  { %v8710_v48 = vcombine.high %v1117_v28, %v1121_v43  ;;  %v1160_v33 = vld [vmem:[#allocation3 + $0x1f60] sm:$0xff] }
 0x1f2   :  { %6592 = vmatpush1.bf16.msra.mxu0 %v8659_v16  ;;  %6920 = vmatpush1.bf16.msra.mxu1 %v8661_v56  ;;  %v1125_v16 = vld [vmem:[#allocation3 + $0x1e48] sm:$0xff] }
 0x1f3   :  { %6593 = vmatprep.subr.bf16.mxu0 %v8668_v54  ;;  %6921 = vmatprep.subr.bf16.mxu1 %v8670_v57  ;;  %v1129_v56 = vld [vmem:[#allocation3 + $0x1e68] sm:$0xff]  ;;  %v8707_v54 = vcombine.low %v1116_v40, %v1120_v55  ;;  %v8709_v57 = vcombine.low %v1117_v28, %v1121_v43  ;;  %v8748_v40 = vcombine.high %v1156_v32, %v1160_v33  ;;  %v1164_v28 = vld [vmem:[#allocation3 + $0x1f80] sm:$0xff] }
 0x1f4   :  { %v8718_v58 = vcombine.high %v1125_v16, %v1129_v56  ;;  %v1168_v43 = vld [vmem:[#allocation3 + $0x1fa0] sm:$0xff] }
 0x1f6   :  { %6594 = vmatpush1.bf16.msra.mxu0 %v8667_v61  ;;  %6922 = vmatpush1.bf16.msra.mxu1 %v8669_v62  ;;  %v1133_v61 = vld [vmem:[#allocation3 + $0x1e88] sm:$0xff] }
 0x1f7   :  { %6595 = vmatprep.subr.bf16.mxu0 %v8676_v1  ;;  %6923 = vmatprep.subr.bf16.mxu1 %v8678_v3  ;;  %v1137_v62 = vld [vmem:[#allocation3 + $0x1ea8] sm:$0xff]  ;;  %v8715_v1 = vcombine.low %v1124_v49, %v1128_v50  ;;  %v8717_v3 = vcombine.low %v1125_v16, %v1129_v56  ;;  %v8756_v49 = vcombine.high %v1164_v28, %v1168_v43  ;;  %v1172_v16 = vld [vmem:[#allocation3 + $0x1fc0] sm:$0xff] }
 0x1f8   :  { %v8726_v5 = vcombine.high %v1133_v61, %v1137_v62  ;;  %v1176_v56 = vld [vmem:[#allocation3 + $0x1fe0] sm:$0xff] }
 0x1fa   :  { %6596 = vmatpush1.bf16.msra.mxu0 %v8675_v8  ;;  %6924 = vmatpush1.bf16.msra.mxu1 %v8677_v11  ;;  %v1141_v8 = vld [vmem:[#allocation3 + $0x1ec8] sm:$0xff] }
 0x1fb   :  { %6597 = vmatprep.subr.bf16.mxu0 %v8684_v14  ;;  %6925 = vmatprep.subr.bf16.mxu1 %v8686_v18  ;;  %v1145_v11 = vld [vmem:[#allocation3 + $0x1ee8] sm:$0xff]  ;;  %v8723_v14 = vcombine.low %v1132_v23, %v1136_v60  ;;  %v8725_v18 = vcombine.low %v1133_v61, %v1137_v62  ;;  %v8764_v23 = vcombine.high %v1172_v16, %v1176_v56  ;;  %v158_v61 = vld [vmem:[#allocation3 + $0x10] sm:$0xff] }
 0x1fc   :  { %v8734_v17 = vcombine.high %v1141_v8, %v1145_v11  ;;  %v162_v62 = vld [vmem:[#allocation3 + $0x30] sm:$0xff] }
 0x1fe   :  { %6598 = vmatpush1.bf16.msra.mxu0 %v8683_v20  ;;  %6926 = vmatpush1.bf16.msra.mxu1 %v8685_v21  ;;  %v1149_v20 = vld [vmem:[#allocation3 + $0x1f08] sm:$0xff] }
 0x1ff   :  { %6599 = vmatprep.subr.bf16.mxu0 %v8692_v22  ;;  %6927 = vmatprep.subr.bf16.mxu1 %v8694_v24  ;;  %v1153_v21 = vld [vmem:[#allocation3 + $0x1f28] sm:$0xff]  ;;  %v8731_v22 = vcombine.low %v1140_v6, %v1144_v7  ;;  %v8733_v24 = vcombine.low %v1141_v8, %v1145_v11  ;;  %v7752_v6 = vcombine.high %v158_v61, %v162_v62  ;;  %v166_v8 = vld [vmem:[#allocation3 + $0x50] sm:$0xff] }
 0x200   :  { %v8742_v30 = vcombine.high %v1149_v20, %v1153_v21  ;;  %v170_v11 = vld [vmem:[#allocation3 + $0x70] sm:$0xff] }
 0x202   :  { %6600 = vmatpush1.bf16.msra.mxu0 %v8691_v35  ;;  %6928 = vmatpush1.bf16.msra.mxu1 %v8693_v36  ;;  %v1157_v35 = vld [vmem:[#allocation3 + $0x1f48] sm:$0xff] }
 0x203   :  { %6601 = vmatprep.subr.bf16.mxu0 %v8700_v63  ;;  %6929 = vmatprep.subr.bf16.mxu1 %v8702_v37  ;;  %v1161_v36 = vld [vmem:[#allocation3 + $0x1f68] sm:$0xff]  ;;  %v8739_v63 = vcombine.low %v1148_v59, %v1152_v19  ;;  %v8741_v37 = vcombine.low %v1149_v20, %v1153_v21  ;;  %v7760_v19 = vcombine.high %v166_v8, %v170_v11  ;;  %v174_v21 = vld [vmem:[#allocation3 + $0x90] sm:$0xff] }
 0x204   :  { %v8750_v55 = vcombine.high %v1157_v35, %v1161_v36 }
 0x206   :  { %6602 = vmatpush1.bf16.msra.mxu0 %v8699_v45  ;;  %6930 = vmatpush1.bf16.msra.mxu1 %v8701_v46  ;;  %v1165_v45 = vld [vmem:[#allocation3 + $0x1f88] sm:$0xff] }
 0x207   :  { %6603 = vmatprep.subr.bf16.mxu0 %v8708_v47  ;;  %6931 = vmatprep.subr.bf16.mxu1 %v8710_v48  ;;  %v1169_v46 = vld [vmem:[#allocation3 + $0x1fa8] sm:$0xff]  ;;  %v8747_v47 = vcombine.low %v1156_v32, %v1160_v33  ;;  %v8749_v48 = vcombine.low %v1157_v35, %v1161_v36  ;;  %v182_v35 = vld [vmem:[#allocation3 + $0xd0] sm:$0xff] }
 0x208   :  { %v8758_v50 = vcombine.high %v1165_v45, %v1169_v46  ;;  %v186_v36 = vld [vmem:[#allocation3 + $0xf0] sm:$0xff] }
 0x20a   :  { %6604 = vmatpush1.bf16.msra.mxu0 %v8707_v54  ;;  %6932 = vmatpush1.bf16.msra.mxu1 %v8709_v57  ;;  %v1173_v54 = vld [vmem:[#allocation3 + $0x1fc8] sm:$0xff] }
 0x20b   :  { %6605 = vmatprep.subr.bf16.mxu0 %v8716_v10  ;;  %6933 = vmatprep.subr.bf16.mxu1 %v8718_v58  ;;  %v1177_v57 = vld [vmem:[#allocation3 + $0x1fe8] sm:$0xff]  ;;  %v8755_v10 = vcombine.low %v1164_v28, %v1168_v43  ;;  %v8757_v58 = vcombine.low %v1165_v45, %v1169_v46  ;;  %v7776_v28 = vcombine.high %v182_v35, %v186_v36  ;;  %v190_v45 = vld [vmem:[#allocation3 + $0x110] sm:$0xff] }
 0x20c   :  { %v8766_v60 = vcombine.high %v1173_v54, %v1177_v57  ;;  %v194_v46 = vld [vmem:[#allocation3 + $0x130] sm:$0xff] }
 0x20e   :  { %6606 = vmatpush1.bf16.msra.mxu0 %v8715_v1  ;;  %6934 = vmatpush1.bf16.msra.mxu1 %v8717_v3  ;;  %v159_v1 = vld [vmem:[#allocation3 + $0x18] sm:$0xff] }
 0x20f   :  { %6607 = vmatprep.subr.bf16.mxu0 %v8724_v4  ;;  %6935 = vmatprep.subr.bf16.mxu1 %v8726_v5  ;;  %v163_v3 = vld [vmem:[#allocation3 + $0x38] sm:$0xff]  ;;  %v8763_v4 = vcombine.low %v1172_v16, %v1176_v56  ;;  %v8765_v5 = vcombine.low %v1173_v54, %v1177_v57  ;;  %v7784_v16 = vcombine.high %v190_v45, %v194_v46  ;;  %v198_v56 = vld [vmem:[#allocation3 + $0x150] sm:$0xff] }
 0x210   :  { %v7754_v7 = vcombine.high %v159_v1, %v163_v3  ;;  %v7753_v59 = vcombine.low %v159_v1, %v163_v3  ;;  %v202_v54 = vld [vmem:[#allocation3 + $0x170] sm:$0xff]  ;;  %v199_v57 = vld [vmem:[#allocation3 + $0x158] sm:$0xff] }
 0x211   :  { %v210_v1 = vld [vmem:[#allocation3 + $0x1b0] sm:$0xff]  ;;  %v207_v3 = vld [vmem:[#allocation3 + $0x198] sm:$0xff] }
 0x212   :  { %6608 = vmatpush1.bf16.msra.mxu0 %v8723_v14  ;;  %6936 = vmatpush1.bf16.msra.mxu1 %v8725_v18  ;;  %v9143_v14 = vpack.c.bf16 %v9127_v31, %v9127_v31  ;;  %v167_v18 = vld [vmem:[#allocation3 + $0x58] sm:$0xff]  ;;  %v7759_v31 = vcombine.low %v166_v8, %v170_v11  ;;  %v214_v11 = vld [vmem:[#allocation3 + $0x1d0] sm:$0xff] }
 0x213   :  { %6609 = vmatprep.subr.bf16.mxu0 %v8732_v15  ;;  %6937 = vmatprep.subr.bf16.mxu1 %v8734_v17  ;;  %v171_v15 = vld [vmem:[#allocation3 + $0x78] sm:$0xff]  ;;  %v7751_v17 = vcombine.low %v158_v61, %v162_v62  ;;  %v206_v62 = vld [vmem:[#allocation3 + $0x190] sm:$0xff] }
 0x214   :  { %v7762_v20 = vcombine.high %v167_v18, %v171_v15 }
 0x216   :  { %6610 = vmatpush1.bf16.msra.mxu0 %v8731_v22  ;;  %6938 = vmatpush1.bf16.msra.mxu1 %v8733_v24  ;;  %v178_v22 = vld [vmem:[#allocation3 + $0xb0] sm:$0xff]  ;;  %v175_v24 = vld [vmem:[#allocation3 + $0x98] sm:$0xff] }
 0x217   :  { %6611 = vmatprep.subr.bf16.mxu0 %v8740_v27  ;;  %6939 = vmatprep.subr.bf16.mxu1 %v8742_v30  ;;  %v179_v27 = vld [vmem:[#allocation3 + $0xb8] sm:$0xff]  ;;  %v7761_v30 = vcombine.low %v167_v18, %v171_v15  ;;  %v7768_v32 = vcombine.high %v174_v21, %v178_v22  ;;  %v218_v18 = vld [vmem:[#allocation3 + $0x1f0] sm:$0xff] }
 0x218   :  { %v7770_v33 = vcombine.high %v175_v24, %v179_v27  ;;  %v215_v15 = vld [vmem:[#allocation3 + $0x1d8] sm:$0xff] }
 0x21a   :  { %6612 = vmatpush1.bf16.msra.mxu0 %v8739_v63  ;;  %6940 = vmatpush1.bf16.msra.mxu1 %v8741_v37  ;;  %v183_v63 = vld [vmem:[#allocation3 + $0xd8] sm:$0xff] }
 0x21b   :  { %6613 = vmatprep.subr.bf16.mxu0 %v8748_v40  ;;  %6941 = vmatprep.subr.bf16.mxu1 %v8750_v55  ;;  %v187_v37 = vld [vmem:[#allocation3 + $0xf8] sm:$0xff]  ;;  %v7767_v40 = vcombine.low %v174_v21, %v178_v22  ;;  %v7769_v55 = vcombine.low %v175_v24, %v179_v27  ;;  %v222_v22 = vld [vmem:[#allocation3 + $0x210] sm:$0xff] }
 0x21c   :  { %v7778_v43 = vcombine.high %v183_v63, %v187_v37  ;;  %v226_v24 = vld [vmem:[#allocation3 + $0x230] sm:$0xff]  ;;  %v223_v27 = vld [vmem:[#allocation3 + $0x218] sm:$0xff] }
 0x21e   :  { %6614 = vmatpush1.bf16.msra.mxu0 %v8747_v47  ;;  %6942 = vmatpush1.bf16.msra.mxu1 %v8749_v48  ;;  %v191_v47 = vld [vmem:[#allocation3 + $0x118] sm:$0xff] }
 0x21f   :  { %6615 = vmatprep.subr.bf16.mxu0 %v8756_v49  ;;  %6943 = vmatprep.subr.bf16.mxu1 %v8758_v50  ;;  %v195_v48 = vld [vmem:[#allocation3 + $0x138] sm:$0xff]  ;;  %v7775_v49 = vcombine.low %v182_v35, %v186_v36  ;;  %v7777_v50 = vcombine.low %v183_v63, %v187_v37  ;;  %v230_v36 = vld [vmem:[#allocation3 + $0x250] sm:$0xff] }
 0x220   :  { %v234_v63 = vld [vmem:[#allocation3 + $0x270] sm:$0xff]  ;;  %v231_v37 = vld [vmem:[#allocation3 + $0x258] sm:$0xff] }
 0x222   :  { %6616 = vmatpush1.bf16.msra.mxu0 %v8755_v10  ;;  %6944 = vmatpush1.bf16.msra.mxu1 %v8757_v58  ;;  %v203_v10 = vld [vmem:[#allocation3 + $0x178] sm:$0xff]  ;;  %v7783_v58 = vcombine.low %v190_v45, %v194_v46  ;;  %v238_v46 = vld [vmem:[#allocation3 + $0x290] sm:$0xff] }
 0x223   :  { %6617 = vmatprep.subr.bf16.mxu0 %v8764_v23  ;;  %6945 = vmatprep.subr.bf16.mxu1 %v8766_v60  ;;  %v7785_v23 = vcombine.low %v191_v47, %v195_v48  ;;  %v7792_v60 = vcombine.high %v198_v56, %v202_v54  ;;  %v7794_v61 = vcombine.high %v199_v57, %v203_v10 }
 0x226   :  { %6618 = vmatpush1.bf16.msra.mxu0 %v8763_v4  ;;  %6946 = vmatpush1.bf16.msra.mxu1 %v8765_v5  ;;  %v211_v4 = vld [vmem:[#allocation3 + $0x1b8] sm:$0xff]  ;;  %v7791_v5 = vcombine.low %v198_v56, %v202_v54  ;;  %v246_v54 = vld [vmem:[#allocation3 + $0x2d0] sm:$0xff] }
 0x227   :  { %6956 = vmatprep.subr.bf16.mxu0 %v7752_v6  ;;  %7284 = vmatprep.subr.bf16.mxu1 %v7754_v7  ;;  %v7793_v6 = vcombine.low %v199_v57, %v203_v10  ;;  %v7800_v7 = vcombine.high %v206_v62, %v210_v1  ;;  %v7802_v8 = vcombine.high %v207_v3, %v211_v4  ;;  %v250_v57 = vld [vmem:[#allocation3 + $0x2f0] sm:$0xff]  ;;  %v247_v10 = vld [vmem:[#allocation3 + $0x2d8] sm:$0xff] }
 0x229   :  { %6620 = vmatmul.mubr.bf16.vlgmr.msra.gmra.mrb[0].mxu0 %v9143_v14  ;;  %6948 = vmatmul.mubr.bf16.vlgmr.msra.gmra.mrb[0].mxu1 %v9143_v14 }
 0x22a   :  { %6957 = vmatpush1.bf16.msra.mxu0 %v7751_v17  ;;  %7285 = vmatpush1.bf16.msra.mxu1 %v7753_v59  ;;  %v219_v17 = vld [vmem:[#allocation3 + $0x1f8] sm:$0xff]  ;;  %v7799_v59 = vcombine.low %v206_v62, %v210_v1  ;;  %v254_v1 = vld [vmem:[#allocation3 + $0x310] sm:$0xff] }
 0x22b   :  { %6958 = vmatprep.subr.bf16.mxu0 %v7760_v19  ;;  %7286 = vmatprep.subr.bf16.mxu1 %v7762_v20  ;;  %v7801_v19 = vcombine.low %v207_v3, %v211_v4  ;;  %v7808_v20 = vcombine.high %v214_v11, %v218_v18  ;;  %v7810_v21 = vcombine.high %v215_v15, %v219_v17  ;;  %v258_v3 = vld [vmem:[#allocation3 + $0x330] sm:$0xff]  ;;  %v255_v4 = vld [vmem:[#allocation3 + $0x318] sm:$0xff] }
 0x22c   :  { %6988 = vmatprep.mubr.bf16.mxu0 %v9006_v9  ;;  %7316 = vmatprep.mubr.bf16.mxu1 %v9006_v9  ;;  %v7786_v9 = vcombine.high %v191_v47, %v195_v48  ;;  %v242_v47 = vld [vmem:[#allocation3 + $0x2b0] sm:$0xff]  ;;  %v239_v48 = vld [vmem:[#allocation3 + $0x298] sm:$0xff] }
 0x22e   :  { %6959 = vmatpush1.bf16.msra.mxu0 %v7759_v31  ;;  %7287 = vmatpush1.bf16.msra.mxu1 %v7761_v30  ;;  %v227_v31 = vld [vmem:[#allocation3 + $0x238] sm:$0xff]  ;;  %v7807_v30 = vcombine.low %v214_v11, %v218_v18  ;;  %v262_v18 = vld [vmem:[#allocation3 + $0x350] sm:$0xff] }
 0x22f   :  { %6960 = vmatprep.subr.bf16.mxu0 %v7768_v32  ;;  %7288 = vmatprep.subr.bf16.mxu1 %v7770_v33  ;;  %v7809_v32 = vcombine.low %v215_v15, %v219_v17  ;;  %v7816_v33 = vcombine.high %v222_v22, %v226_v24  ;;  %v7818_v35 = vcombine.high %v223_v27, %v227_v31  ;;  %v266_v15 = vld [vmem:[#allocation3 + $0x370] sm:$0xff]  ;;  %v263_v17 = vld [vmem:[#allocation3 + $0x358] sm:$0xff] }
 0x232   :  { %6961 = vmatpush1.bf16.msra.mxu0 %v7767_v40  ;;  %7289 = vmatpush1.bf16.msra.mxu1 %v7769_v55  ;;  %v235_v40 = vld [vmem:[#allocation3 + $0x278] sm:$0xff]  ;;  %v7815_v55 = vcombine.low %v222_v22, %v226_v24  ;;  %v270_v24 = vld [vmem:[#allocation3 + $0x390] sm:$0xff] }
 0x233   :  { %6962 = vmatprep.subr.bf16.mxu0 %v7776_v28  ;;  %7290 = vmatprep.subr.bf16.mxu1 %v7778_v43  ;;  %v7817_v28 = vcombine.low %v223_v27, %v227_v31  ;;  %v7824_v43 = vcombine.high %v230_v36, %v234_v63  ;;  %v7826_v45 = vcombine.high %v231_v37, %v235_v40  ;;  %v274_v27 = vld [vmem:[#allocation3 + $0x3b0] sm:$0xff]  ;;  %v271_v31 = vld [vmem:[#allocation3 + $0x398] sm:$0xff] }
 0x236   :  { %6963 = vmatpush1.bf16.msra.mxu0 %v7775_v49  ;;  %7291 = vmatpush1.bf16.msra.mxu1 %v7777_v50  ;;  %v243_v49 = vld [vmem:[#allocation3 + $0x2b8] sm:$0xff]  ;;  %v7823_v50 = vcombine.low %v230_v36, %v234_v63  ;;  %v278_v63 = vld [vmem:[#allocation3 + $0x3d0] sm:$0xff] }
 0x237   :  { %6964 = vmatprep.subr.bf16.mxu0 %v7784_v16  ;;  %7292 = vmatprep.subr.bf16.mxu1 %v7786_v9  ;;  %v7825_v16 = vcombine.low %v231_v37, %v235_v40  ;;  %v7832_v9 = vcombine.high %v238_v46, %v242_v47  ;;  %v7834_v56 = vcombine.high %v239_v48, %v243_v49  ;;  %v282_v37 = vld [vmem:[#allocation3 + $0x3f0] sm:$0xff]  ;;  %v279_v40 = vld [vmem:[#allocation3 + $0x3d8] sm:$0xff] }
 0x23a   :  { %6965 = vmatpush1.bf16.msra.mxu0 %v7783_v58  ;;  %7293 = vmatpush1.bf16.msra.mxu1 %v7785_v23  ;;  %v251_v58 = vld [vmem:[#allocation3 + $0x2f8] sm:$0xff]  ;;  %v7831_v23 = vcombine.low %v238_v46, %v242_v47  ;;  %v286_v47 = vld [vmem:[#allocation3 + $0x410] sm:$0xff] }
 0x23b   :  { %6966 = vmatprep.subr.bf16.mxu0 %v7792_v60  ;;  %7294 = vmatprep.subr.bf16.mxu1 %v7794_v61  ;;  %v7833_v60 = vcombine.low %v239_v48, %v243_v49  ;;  %v7840_v61 = vcombine.high %v246_v54, %v250_v57  ;;  %v7842_v62 = vcombine.high %v247_v10, %v251_v58  ;;  %v290_v48 = vld [vmem:[#allocation3 + $0x430] sm:$0xff]  ;;  %v287_v49 = vld [vmem:[#allocation3 + $0x418] sm:$0xff] }
 0x23e   :  { %6967 = vmatpush1.bf16.msra.mxu0 %v7791_v5  ;;  %7295 = vmatpush1.bf16.msra.mxu1 %v7793_v6  ;;  %v259_v5 = vld [vmem:[#allocation3 + $0x338] sm:$0xff]  ;;  %v7839_v6 = vcombine.low %v246_v54, %v250_v57  ;;  %v294_v57 = vld [vmem:[#allocation3 + $0x450] sm:$0xff] }
 0x23f   :  { %6968 = vmatprep.subr.bf16.mxu0 %v7800_v7  ;;  %7296 = vmatprep.subr.bf16.mxu1 %v7802_v8  ;;  %v7841_v7 = vcombine.low %v247_v10, %v251_v58  ;;  %v7848_v8 = vcombine.high %v254_v1, %v258_v3  ;;  %v7850_v11 = vcombine.high %v255_v4, %v259_v5  ;;  %v298_v10 = vld [vmem:[#allocation3 + $0x470] sm:$0xff]  ;;  %v295_v58 = vld [vmem:[#allocation3 + $0x458] sm:$0xff] }
 0x242   :  { %6969 = vmatpush1.bf16.msra.mxu0 %v7799_v59  ;;  %7297 = vmatpush1.bf16.msra.mxu1 %v7801_v19  ;;  %v267_v59 = vld [vmem:[#allocation3 + $0x378] sm:$0xff]  ;;  %v7847_v19 = vcombine.low %v254_v1, %v258_v3  ;;  %v302_v3 = vld [vmem:[#allocation3 + $0x490] sm:$0xff] }
 0x243   :  { %6970 = vmatprep.subr.bf16.mxu0 %v7808_v20  ;;  %7298 = vmatprep.subr.bf16.mxu1 %v7810_v21  ;;  %v7849_v20 = vcombine.low %v255_v4, %v259_v5  ;;  %v7856_v21 = vcombine.high %v262_v18, %v266_v15  ;;  %v7858_v22 = vcombine.high %v263_v17, %v267_v59  ;;  %v306_v4 = vld [vmem:[#allocation3 + $0x4b0] sm:$0xff]  ;;  %v303_v5 = vld [vmem:[#allocation3 + $0x498] sm:$0xff] }
 0x246   :  { %6971 = vmatpush1.bf16.msra.mxu0 %v7807_v30  ;;  %7299 = vmatpush1.bf16.msra.mxu1 %v7809_v32  ;;  %v275_v30 = vld [vmem:[#allocation3 + $0x3b8] sm:$0xff]  ;;  %v7855_v32 = vcombine.low %v262_v18, %v266_v15  ;;  %v310_v15 = vld [vmem:[#allocation3 + $0x4d0] sm:$0xff] }
 0x247   :  { %6972 = vmatprep.subr.bf16.mxu0 %v7816_v33  ;;  %7300 = vmatprep.subr.bf16.mxu1 %v7818_v35  ;;  %v7857_v33 = vcombine.low %v263_v17, %v267_v59  ;;  %v7864_v35 = vcombine.high %v270_v24, %v274_v27  ;;  %v7866_v36 = vcombine.high %v271_v31, %v275_v30  ;;  %v314_v17 = vld [vmem:[#allocation3 + $0x4f0] sm:$0xff]  ;;  %v311_v59 = vld [vmem:[#allocation3 + $0x4d8] sm:$0xff] }
 0x24a   :  { %6973 = vmatpush1.bf16.msra.mxu0 %v7815_v55  ;;  %7301 = vmatpush1.bf16.msra.mxu1 %v7817_v28  ;;  %v283_v55 = vld [vmem:[#allocation3 + $0x3f8] sm:$0xff]  ;;  %v7863_v28 = vcombine.low %v270_v24, %v274_v27  ;;  %v318_v24 = vld [vmem:[#allocation3 + $0x510] sm:$0xff] }
 0x24b   :  { %6974 = vmatprep.subr.bf16.mxu0 %v7824_v43  ;;  %7302 = vmatprep.subr.bf16.mxu1 %v7826_v45  ;;  %v7865_v43 = vcombine.low %v271_v31, %v275_v30  ;;  %v7872_v45 = vcombine.high %v278_v63, %v282_v37  ;;  %v7874_v46 = vcombine.high %v279_v40, %v283_v55  ;;  %v322_v27 = vld [vmem:[#allocation3 + $0x530] sm:$0xff]  ;;  %v319_v31 = vld [vmem:[#allocation3 + $0x518] sm:$0xff] }
 0x24c   :  { %v323_v30 = vld [vmem:[#allocation3 + $0x538] sm:$0xff] }
 0x24e   :  { %6975 = vmatpush1.bf16.msra.mxu0 %v7823_v50  ;;  %7303 = vmatpush1.bf16.msra.mxu1 %v7825_v16  ;;  %v291_v50 = vld [vmem:[#allocation3 + $0x438] sm:$0xff]  ;;  %v7871_v16 = vcombine.low %v278_v63, %v282_v37  ;;  %v330_v63 = vld [vmem:[#allocation3 + $0x570] sm:$0xff] }
 0x24f   :  { %6976 = vmatprep.subr.bf16.mxu0 %v7832_v9  ;;  %7304 = vmatprep.subr.bf16.mxu1 %v7834_v56  ;;  %v7873_v9 = vcombine.low %v279_v40, %v283_v55  ;;  %v7880_v56 = vcombine.high %v286_v47, %v290_v48  ;;  %v7882_v54 = vcombine.high %v287_v49, %v291_v50  ;;  %v327_v37 = vld [vmem:[#allocation3 + $0x558] sm:$0xff] }
 0x250   :  { %v331_v40 = vld [vmem:[#allocation3 + $0x578] sm:$0xff]  ;;  %v7911_v55 = vcombine.low %v318_v24, %v322_v27 }
 0x252   :  { %6977 = vmatpush1.bf16.msra.mxu0 %v7831_v23  ;;  %7305 = vmatpush1.bf16.msra.mxu1 %v7833_v60  ;;  %v299_v23 = vld [vmem:[#allocation3 + $0x478] sm:$0xff]  ;;  %v7879_v60 = vcombine.low %v286_v47, %v290_v48  ;;  %v338_v47 = vld [vmem:[#allocation3 + $0x5b0] sm:$0xff] }
 0x253   :  { %6978 = vmatprep.subr.bf16.mxu0 %v7840_v61  ;;  %7306 = vmatprep.subr.bf16.mxu1 %v7842_v62  ;;  %v7881_v61 = vcombine.low %v287_v49, %v291_v50  ;;  %v7888_v62 = vcombine.high %v294_v57, %v298_v10  ;;  %v7890_v1 = vcombine.high %v295_v58, %v299_v23  ;;  %v335_v48 = vld [vmem:[#allocation3 + $0x598] sm:$0xff] }
 0x254   :  { %v339_v49 = vld [vmem:[#allocation3 + $0x5b8] sm:$0xff] }
 0x256   :  { %6979 = vmatpush1.bf16.msra.mxu0 %v7839_v6  ;;  %7307 = vmatpush1.bf16.msra.mxu1 %v7841_v7  ;;  %v307_v6 = vld [vmem:[#allocation3 + $0x4b8] sm:$0xff]  ;;  %v7887_v7 = vcombine.low %v294_v57, %v298_v10  ;;  %v346_v57 = vld [vmem:[#allocation3 + $0x5f0] sm:$0xff] }
 0x257   :  { %6980 = vmatprep.subr.bf16.mxu0 %v7848_v8  ;;  %7308 = vmatprep.subr.bf16.mxu1 %v7850_v11  ;;  %v7889_v8 = vcombine.low %v295_v58, %v299_v23  ;;  %v7896_v11 = vcombine.high %v302_v3, %v306_v4  ;;  %v7898_v18 = vcombine.high %v303_v5, %v307_v6  ;;  %v343_v10 = vld [vmem:[#allocation3 + $0x5d8] sm:$0xff] }
 0x258   :  { %v347_v58 = vld [vmem:[#allocation3 + $0x5f8] sm:$0xff] }
 0x25a   :  { %6981 = vmatpush1.bf16.msra.mxu0 %v7847_v19  ;;  %7309 = vmatpush1.bf16.msra.mxu1 %v7849_v20  ;;  %v315_v19 = vld [vmem:[#allocation3 + $0x4f8] sm:$0xff]  ;;  %v7895_v20 = vcombine.low %v302_v3, %v306_v4  ;;  %v354_v3 = vld [vmem:[#allocation3 + $0x630] sm:$0xff] }
 0x25b   :  { %6982 = vmatprep.subr.bf16.mxu0 %v7856_v21  ;;  %7310 = vmatprep.subr.bf16.mxu1 %v7858_v22  ;;  %v7904_v21 = vcombine.high %v310_v15, %v314_v17  ;;  %v7906_v22 = vcombine.high %v311_v59, %v315_v19  ;;  %v351_v4 = vld [vmem:[#allocation3 + $0x618] sm:$0xff] }
 0x25e   :  { %6983 = vmatpush1.bf16.msra.mxu0 %v7855_v32  ;;  %7311 = vmatpush1.bf16.msra.mxu1 %v7857_v33  ;;  %v7903_v32 = vcombine.low %v310_v15, %v314_v17  ;;  %v7905_v33 = vcombine.low %v311_v59, %v315_v19  ;;  %v362_v15 = vld [vmem:[#allocation3 + $0x670] sm:$0xff]  ;;  %v359_v17 = vld [vmem:[#allocation3 + $0x658] sm:$0xff] }
 0x25f   :  { %6984 = vmatprep.subr.bf16.mxu0 %v7864_v35  ;;  %7312 = vmatprep.subr.bf16.mxu1 %v7866_v36  ;;  %v7912_v35 = vcombine.high %v318_v24, %v322_v27  ;;  %v326_v36 = vld [vmem:[#allocation3 + $0x550] sm:$0xff]  ;;  %v363_v59 = vld [vmem:[#allocation3 + $0x678] sm:$0xff] }
 0x260   :  { %v7919_v50 = vcombine.low %v326_v36, %v330_v63  ;;  %v370_v24 = vld [vmem:[#allocation3 + $0x6b0] sm:$0xff]  ;;  %v367_v27 = vld [vmem:[#allocation3 + $0x698] sm:$0xff] }
 0x262   :  { %6985 = vmatpush1.bf16.msra.mxu0 %v7863_v28  ;;  %7313 = vmatpush1.bf16.msra.mxu1 %v7865_v43  ;;  %v7913_v28 = vcombine.low %v319_v31, %v323_v30  ;;  %v7920_v43 = vcombine.high %v326_v36, %v330_v63  ;;  %v378_v36 = vld [vmem:[#allocation3 + $0x6f0] sm:$0xff]  ;;  %v375_v63 = vld [vmem:[#allocation3 + $0x6d8] sm:$0xff] }
 0x263   :  { %6986 = vmatprep.subr.bf16.mxu0 %v7872_v45  ;;  %7314 = vmatprep.subr.bf16.mxu1 %v7874_v46  ;;  %v7922_v45 = vcombine.high %v327_v37, %v331_v40  ;;  %v334_v46 = vld [vmem:[#allocation3 + $0x590] sm:$0xff] }
 0x264   :  { %v7927_v23 = vcombine.low %v334_v46, %v338_v47 }
 0x266   :  { %6987 = vmatpush1.bf16.msra.mxu0 %v7871_v16  ;;  %7315 = vmatpush1.bf16.msra.mxu1 %v7873_v9  ;;  %v7921_v16 = vcombine.low %v327_v37, %v331_v40  ;;  %v7928_v9 = vcombine.high %v334_v46, %v338_v47  ;;  %v379_v37 = vld [vmem:[#allocation3 + $0x6f8] sm:$0xff]  ;;  %v386_v46 = vld [vmem:[#allocation3 + $0x730] sm:$0xff] }
 0x267   :  { %6997 = vmatprep.subr.bf16.mxu0 %v7880_v56  ;;  %7325 = vmatprep.subr.bf16.mxu1 %v7882_v54  ;;  %v7930_v56 = vcombine.high %v335_v48, %v339_v49  ;;  %v342_v54 = vld [vmem:[#allocation3 + $0x5d0] sm:$0xff]  ;;  %v383_v47 = vld [vmem:[#allocation3 + $0x718] sm:$0xff] }
 0x269   :  { %6989 = vmatmul.mubr.bf16.vlgmr.msra.gmra.mrb[4].mxu0 %v9019_v25  ;;  %7317 = vmatmul.mubr.bf16.vlgmr.msra.gmra.mrb[4].mxu1 %v9019_v25  ;;  %v7897_v25 = vcombine.low %v303_v5, %v307_v6  ;;  %v355_v5 = vld [vmem:[#allocation3 + $0x638] sm:$0xff]  ;;  %v7935_v6 = vcombine.low %v342_v54, %v346_v57 }
 0x26a   :  { %6998 = vmatpush1.bf16.msra.mxu0 %v7879_v60  ;;  %7326 = vmatpush1.bf16.msra.mxu1 %v7881_v61  ;;  %v7929_v60 = vcombine.low %v335_v48, %v339_v49  ;;  %v7936_v61 = vcombine.high %v342_v54, %v346_v57  ;;  %v387_v48 = vld [vmem:[#allocation3 + $0x738] sm:$0xff]  ;;  %v394_v54 = vld [vmem:[#allocation3 + $0x770] sm:$0xff] }
 0x26b   :  { %6999 = vmatprep.subr.bf16.mxu0 %v7888_v62  ;;  %7327 = vmatprep.subr.bf16.mxu1 %v7890_v1  ;;  %v7938_v62 = vcombine.high %v343_v10, %v347_v58  ;;  %v350_v1 = vld [vmem:[#allocation3 + $0x610] sm:$0xff]  ;;  %v391_v57 = vld [vmem:[#allocation3 + $0x758] sm:$0xff] }
 0x26c   :  { %7029 = vmatprep.mubr.bf16.mxu0 %v9021_v34  ;;  %7357 = vmatprep.mubr.bf16.mxu1 %v9021_v34  ;;  %v7914_v34 = vcombine.high %v319_v31, %v323_v30  ;;  %v7943_v19 = vcombine.low %v350_v1, %v354_v3  ;;  %v371_v31 = vld [vmem:[#allocation3 + $0x6b8] sm:$0xff] }
 0x26e   :  { %7000 = vmatpush1.bf16.msra.mxu0 %v7887_v7  ;;  %7328 = vmatpush1.bf16.msra.mxu1 %v7889_v8  ;;  %v7937_v7 = vcombine.low %v343_v10, %v347_v58  ;;  %v7944_v8 = vcombine.high %v350_v1, %v354_v3  ;;  %v395_v10 = vld [vmem:[#allocation3 + $0x778] sm:$0xff]  ;;  %v402_v1 = vld [vmem:[#allocation3 + $0x7b0] sm:$0xff] }
 0x26f   :  { %7001 = vmatprep.subr.bf16.mxu0 %v7896_v11  ;;  %7329 = vmatprep.subr.bf16.mxu1 %v7898_v18  ;;  %v7946_v11 = vcombine.high %v351_v4, %v355_v5  ;;  %v358_v18 = vld [vmem:[#allocation3 + $0x650] sm:$0xff]  ;;  %v399_v3 = vld [vmem:[#allocation3 + $0x798] sm:$0xff] }
 0x270   :  { %v7951_v30 = vcombine.low %v358_v18, %v362_v15 }
 0x272   :  { %7002 = vmatpush1.bf16.msra.mxu0 %v7895_v20  ;;  %7330 = vmatpush1.bf16.msra.mxu1 %v7897_v25  ;;  %v7945_v20 = vcombine.low %v351_v4, %v355_v5  ;;  %v7952_v25 = vcombine.high %v358_v18, %v362_v15  ;;  %v403_v4 = vld [vmem:[#allocation3 + $0x7b8] sm:$0xff]  ;;  %v410_v18 = vld [vmem:[#allocation3 + $0x7f0] sm:$0xff] }
 0x273   :  { %7003 = vmatprep.subr.bf16.mxu0 %v7904_v21  ;;  %7331 = vmatprep.subr.bf16.mxu1 %v7906_v22  ;;  %v7954_v21 = vcombine.high %v359_v17, %v363_v59  ;;  %v366_v22 = vld [vmem:[#allocation3 + $0x690] sm:$0xff]  ;;  %v407_v15 = vld [vmem:[#allocation3 + $0x7d8] sm:$0xff] }
 0x274   :  { %v7959_v40 = vcombine.low %v366_v22, %v370_v24 }
 0x276   :  { %7004 = vmatpush1.bf16.msra.mxu0 %v7903_v32  ;;  %7332 = vmatpush1.bf16.msra.mxu1 %v7905_v33  ;;  %v7953_v32 = vcombine.low %v359_v17, %v363_v59  ;;  %v7960_v33 = vcombine.high %v366_v22, %v370_v24  ;;  %v411_v17 = vld [vmem:[#allocation3 + $0x7f8] sm:$0xff]  ;;  %v418_v22 = vld [vmem:[#allocation3 + $0x830] sm:$0xff] }
 0x277   :  { %7005 = vmatprep.subr.bf16.mxu0 %v7912_v35  ;;  %7333 = vmatprep.subr.bf16.mxu1 %v7914_v34  ;;  %v7962_v35 = vcombine.high %v367_v27, %v371_v31  ;;  %v374_v34 = vld [vmem:[#allocation3 + $0x6d0] sm:$0xff]  ;;  %v415_v24 = vld [vmem:[#allocation3 + $0x818] sm:$0xff] }
 0x278   :  { %v7967_v49 = vcombine.low %v374_v34, %v378_v36 }
 0x27a   :  { %7006 = vmatpush1.bf16.msra.mxu0 %v7911_v55  ;;  %7334 = vmatpush1.bf16.msra.mxu1 %v7913_v28  ;;  %v7961_v55 = vcombine.low %v367_v27, %v371_v31  ;;  %v7968_v28 = vcombine.high %v374_v34, %v378_v36  ;;  %v419_v27 = vld [vmem:[#allocation3 + $0x838] sm:$0xff]  ;;  %v426_v34 = vld [vmem:[#allocation3 + $0x870] sm:$0xff] }
 0x27b   :  { %7007 = vmatprep.subr.bf16.mxu0 %v7920_v43  ;;  %7335 = vmatprep.subr.bf16.mxu1 %v7922_v45  ;;  %v7970_v43 = vcombine.high %v375_v63, %v379_v37  ;;  %v382_v45 = vld [vmem:[#allocation3 + $0x710] sm:$0xff]  ;;  %v423_v36 = vld [vmem:[#allocation3 + $0x858] sm:$0xff] }
 0x27c   :  { %v7975_v58 = vcombine.low %v382_v45, %v386_v46 }
 0x27e   :  { %7008 = vmatpush1.bf16.msra.mxu0 %v7919_v50  ;;  %7336 = vmatpush1.bf16.msra.mxu1 %v7921_v16  ;;  %v7969_v50 = vcombine.low %v375_v63, %v379_v37  ;;  %v7976_v16 = vcombine.high %v382_v45, %v386_v46  ;;  %v427_v63 = vld [vmem:[#allocation3 + $0x878] sm:$0xff]  ;;  %v434_v45 = vld [vmem:[#allocation3 + $0x8b0] sm:$0xff] }
 0x27f   :  { %7009 = vmatprep.subr.bf16.mxu0 %v7928_v9  ;;  %7337 = vmatprep.subr.bf16.mxu1 %v7930_v56  ;;  %v7978_v9 = vcombine.high %v383_v47, %v387_v48  ;;  %v390_v56 = vld [vmem:[#allocation3 + $0x750] sm:$0xff]  ;;  %v431_v46 = vld [vmem:[#allocation3 + $0x898] sm:$0xff] }
 0x280   :  { %v7983_v5 = vcombine.low %v390_v56, %v394_v54 }
 0x282   :  { %7010 = vmatpush1.bf16.msra.mxu0 %v7927_v23  ;;  %7338 = vmatpush1.bf16.msra.mxu1 %v7929_v60  ;;  %v7977_v23 = vcombine.low %v383_v47, %v387_v48  ;;  %v7984_v60 = vcombine.high %v390_v56, %v394_v54  ;;  %v435_v47 = vld [vmem:[#allocation3 + $0x8b8] sm:$0xff]  ;;  %v442_v56 = vld [vmem:[#allocation3 + $0x8f0] sm:$0xff] }
 0x283   :  { %7011 = vmatprep.subr.bf16.mxu0 %v7936_v61  ;;  %7339 = vmatprep.subr.bf16.mxu1 %v7938_v62  ;;  %v7986_v61 = vcombine.high %v391_v57, %v395_v10  ;;  %v398_v62 = vld [vmem:[#allocation3 + $0x790] sm:$0xff]  ;;  %v439_v54 = vld [vmem:[#allocation3 + $0x8d8] sm:$0xff] }
 0x284   :  { %v7991_v59 = vcombine.low %v398_v62, %v402_v1 }
 0x286   :  { %7012 = vmatpush1.bf16.msra.mxu0 %v7935_v6  ;;  %7340 = vmatpush1.bf16.msra.mxu1 %v7937_v7  ;;  %v7985_v6 = vcombine.low %v391_v57, %v395_v10  ;;  %v7992_v7 = vcombine.high %v398_v62, %v402_v1  ;;  %v443_v57 = vld [vmem:[#allocation3 + $0x8f8] sm:$0xff] }
 0x287   :  { %7013 = vmatprep.subr.bf16.mxu0 %v7944_v8  ;;  %7341 = vmatprep.subr.bf16.mxu1 %v7946_v11  ;;  %v7994_v8 = vcombine.high %v399_v3, %v403_v4  ;;  %v406_v11 = vld [vmem:[#allocation3 + $0x7d0] sm:$0xff]  ;;  %v447_v62 = vld [vmem:[#allocation3 + $0x918] sm:$0xff] }
 0x288   :  { %v7999_v31 = vcombine.low %v406_v11, %v410_v18  ;;  %v451_v1 = vld [vmem:[#allocation3 + $0x938] sm:$0xff] }
 0x28a   :  { %7014 = vmatpush1.bf16.msra.mxu0 %v7943_v19  ;;  %7342 = vmatpush1.bf16.msra.mxu1 %v7945_v20  ;;  %v7993_v19 = vcombine.low %v399_v3, %v403_v4  ;;  %v8000_v20 = vcombine.high %v406_v11, %v410_v18  ;;  %v8033_v4 = vcombine.low %v439_v54, %v443_v57  ;;  %v459_v11 = vld [vmem:[#allocation3 + $0x978] sm:$0xff] }
 0x28b   :  { %7015 = vmatprep.subr.bf16.mxu0 %v7952_v25  ;;  %7343 = vmatprep.subr.bf16.mxu1 %v7954_v21  ;;  %v8002_v25 = vcombine.high %v407_v15, %v411_v17  ;;  %v414_v21 = vld [vmem:[#allocation3 + $0x810] sm:$0xff] }
 0x28c   :  { %v8007_v37 = vcombine.low %v414_v21, %v418_v22 }
 0x28e   :  { %7016 = vmatpush1.bf16.msra.mxu0 %v7951_v30  ;;  %7344 = vmatpush1.bf16.msra.mxu1 %v7953_v32  ;;  %v8001_v30 = vcombine.low %v407_v15, %v411_v17  ;;  %v8008_v32 = vcombine.high %v414_v21, %v418_v22  ;;  %v8041_v15 = vcombine.low %v447_v62, %v451_v1  ;;  %v467_v21 = vld [vmem:[#allocation3 + $0x9b8] sm:$0xff] }
 0x28f   :  { %7017 = vmatprep.subr.bf16.mxu0 %v7960_v33  ;;  %7345 = vmatprep.subr.bf16.mxu1 %v7962_v35  ;;  %v8010_v33 = vcombine.high %v415_v24, %v419_v27  ;;  %v422_v35 = vld [vmem:[#allocation3 + $0x850] sm:$0xff] }
 0x290   :  { %v8015_v48 = vcombine.low %v422_v35, %v426_v34 }
 0x292   :  { %7018 = vmatpush1.bf16.msra.mxu0 %v7959_v40  ;;  %7346 = vmatpush1.bf16.msra.mxu1 %v7961_v55  ;;  %v8009_v40 = vcombine.low %v415_v24, %v419_v27  ;;  %v8016_v55 = vcombine.high %v422_v35, %v426_v34  ;;  %v475_v35 = vld [vmem:[#allocation3 + $0x9f8] sm:$0xff] }
 0x293   :  { %7019 = vmatprep.subr.bf16.mxu0 %v7968_v28  ;;  %7347 = vmatprep.subr.bf16.mxu1 %v7970_v43  ;;  %v8018_v28 = vcombine.high %v423_v36, %v427_v63  ;;  %v430_v43 = vld [vmem:[#allocation3 + $0x890] sm:$0xff] }
 0x294   :  { %v8023_v10 = vcombine.low %v430_v43, %v434_v45 }
 0x296   :  { %7020 = vmatpush1.bf16.msra.mxu0 %v7967_v49  ;;  %7348 = vmatpush1.bf16.msra.mxu1 %v7969_v50  ;;  %v8017_v49 = vcombine.low %v423_v36, %v427_v63  ;;  %v8024_v50 = vcombine.high %v430_v43, %v434_v45  ;;  %v483_v43 = vld [vmem:[#allocation3 + $0xa38] sm:$0xff] }
 0x297   :  { %7021 = vmatprep.subr.bf16.mxu0 %v7976_v16  ;;  %7349 = vmatprep.subr.bf16.mxu1 %v7978_v9  ;;  %v8026_v16 = vcombine.high %v431_v46, %v435_v47  ;;  %v438_v9 = vld [vmem:[#allocation3 + $0x8d0] sm:$0xff] }
 0x298   :  { %v8031_v3 = vcombine.low %v438_v9, %v442_v56 }
 0x29a   :  { %7022 = vmatpush1.bf16.msra.mxu0 %v7975_v58  ;;  %7350 = vmatpush1.bf16.msra.mxu1 %v7977_v23  ;;  %v8032_v58 = vcombine.high %v438_v9, %v442_v56  ;;  %v8034_v23 = vcombine.high %v439_v54, %v443_v57  ;;  %v491_v9 = vld [vmem:[#allocation3 + $0xa78] sm:$0xff] }
 0x29b   :  { %7023 = vmatprep.subr.bf16.mxu0 %v7984_v60  ;;  %7351 = vmatprep.subr.bf16.mxu1 %v7986_v61  ;;  %v446_v60 = vld [vmem:[#allocation3 + $0x910] sm:$0xff] }
 0x29c   :  { %v450_v61 = vld [vmem:[#allocation3 + $0x930] sm:$0xff] }
 0x29d   :  { %v8039_v18 = vcombine.low %v446_v60, %v450_v61 }
 0x29e   :  { %7024 = vmatpush1.bf16.msra.mxu0 %v7983_v5  ;;  %7352 = vmatpush1.bf16.msra.mxu1 %v7985_v6  ;;  %v8040_v5 = vcombine.high %v446_v60, %v450_v61  ;;  %v454_v6 = vld [vmem:[#allocation3 + $0x950] sm:$0xff]  ;;  %v499_v60 = vld [vmem:[#allocation3 + $0xab8] sm:$0xff] }
 0x29f   :  { %7025 = vmatprep.subr.bf16.mxu0 %v7992_v7  ;;  %7353 = vmatprep.subr.bf16.mxu1 %v7994_v8  ;;  %v458_v7 = vld [vmem:[#allocation3 + $0x970] sm:$0xff]  ;;  %v455_v8 = vld [vmem:[#allocation3 + $0x958] sm:$0xff] }
 0x2a0   :  { %v8048_v17 = vcombine.high %v454_v6, %v458_v7  ;;  %v8047_v22 = vcombine.low %v454_v6, %v458_v7  ;;  %v8049_v24 = vcombine.low %v455_v8, %v459_v11  ;;  %v507_v6 = vld [vmem:[#allocation3 + $0xaf8] sm:$0xff] }
 0x2a2   :  { %7026 = vmatpush1.bf16.msra.mxu0 %v7991_v59  ;;  %7354 = vmatpush1.bf16.msra.mxu1 %v7993_v19  ;;  %v8050_v59 = vcombine.high %v455_v8, %v459_v11  ;;  %v462_v19 = vld [vmem:[#allocation3 + $0x990] sm:$0xff] }
 0x2a3   :  { %7027 = vmatprep.subr.bf16.mxu0 %v8000_v20  ;;  %7355 = vmatprep.subr.bf16.mxu1 %v8002_v25  ;;  %v466_v20 = vld [vmem:[#allocation3 + $0x9b0] sm:$0xff]  ;;  %v463_v25 = vld [vmem:[#allocation3 + $0x998] sm:$0xff] }
 0x2a4   :  { %v8056_v27 = vcombine.high %v462_v19, %v466_v20  ;;  %v8055_v34 = vcombine.low %v462_v19, %v466_v20  ;;  %v8057_v36 = vcombine.low %v463_v25, %v467_v21  ;;  %v515_v19 = vld [vmem:[#allocation3 + $0xb38] sm:$0xff] }
 0x2a6   :  { %7028 = vmatpush1.bf16.msra.mxu0 %v7999_v31  ;;  %7356 = vmatpush1.bf16.msra.mxu1 %v8001_v30  ;;  %v8058_v31 = vcombine.high %v463_v25, %v467_v21  ;;  %v470_v30 = vld [vmem:[#allocation3 + $0x9d0] sm:$0xff] }
 0x2a7   :  { %7038 = vmatprep.subr.bf16.mxu0 %v8008_v32  ;;  %7366 = vmatprep.subr.bf16.mxu1 %v8010_v33  ;;  %v474_v32 = vld [vmem:[#allocation3 + $0x9f0] sm:$0xff]  ;;  %v471_v33 = vld [vmem:[#allocation3 + $0x9d8] sm:$0xff] }
 0x2a8   :  { %v8064_v63 = vcombine.high %v470_v30, %v474_v32  ;;  %v8063_v45 = vcombine.low %v470_v30, %v474_v32  ;;  %v523_v30 = vld [vmem:[#allocation3 + $0xb78] sm:$0xff] }
 0x2a9   :  { %7030 = vmatmul.mubr.bf16.vlgmr.msra.gmra.mrb[4].mxu0 %v9040_v41  ;;  %7358 = vmatmul.mubr.bf16.vlgmr.msra.gmra.mrb[4].mxu1 %v9040_v41  ;;  %v8025_v41 = vcombine.low %v431_v46, %v435_v47  ;;  %v8065_v46 = vcombine.low %v471_v33, %v475_v35 }
 0x2aa   :  { %7039 = vmatpush1.bf16.msra.mxu0 %v8007_v37  ;;  %7367 = vmatpush1.bf16.msra.mxu1 %v8009_v40  ;;  %v8066_v37 = vcombine.high %v471_v33, %v475_v35  ;;  %v478_v40 = vld [vmem:[#allocation3 + $0xa10] sm:$0xff] }
 0x2ab   :  { %7040 = vmatprep.subr.bf16.mxu0 %v8016_v55  ;;  %7368 = vmatprep.subr.bf16.mxu1 %v8018_v28  ;;  %v482_v55 = vld [vmem:[#allocation3 + $0xa30] sm:$0xff]  ;;  %v479_v28 = vld [vmem:[#allocation3 + $0xa18] sm:$0xff] }
 0x2ac   :  { %7070 = vmatprep.mubr.bf16.mxu0 %v9042_v51  ;;  %7398 = vmatprep.mubr.bf16.mxu1 %v9042_v51  ;;  %v8042_v51 = vcombine.high %v447_v62, %v451_v1  ;;  %v8072_v47 = vcombine.high %v478_v40, %v482_v55  ;;  %v8071_v56 = vcombine.low %v478_v40, %v482_v55  ;;  %v531_v40 = vld [vmem:[#allocation3 + $0xbb8] sm:$0xff] }
 0x2ad   :  { %v8073_v54 = vcombine.low %v479_v28, %v483_v43 }
 0x2ae   :  { %7041 = vmatpush1.bf16.msra.mxu0 %v8015_v48  ;;  %7369 = vmatpush1.bf16.msra.mxu1 %v8017_v49  ;;  %v8074_v48 = vcombine.high %v479_v28, %v483_v43  ;;  %v486_v49 = vld [vmem:[#allocation3 + $0xa50] sm:$0xff] }
 0x2af   :  { %7042 = vmatprep.subr.bf16.mxu0 %v8024_v50  ;;  %7370 = vmatprep.subr.bf16.mxu1 %v8026_v16  ;;  %v490_v50 = vld [vmem:[#allocation3 + $0xa70] sm:$0xff]  ;;  %v487_v16 = vld [vmem:[#allocation3 + $0xa58] sm:$0xff] }
 0x2b0   :  { %v8080_v57 = vcombine.high %v486_v49, %v490_v50  ;;  %v8079_v61 = vcombine.low %v486_v49, %v490_v50  ;;  %v8081_v62 = vcombine.low %v487_v16, %v491_v9  ;;  %v539_v49 = vld [vmem:[#allocation3 + $0xbf8] sm:$0xff] }
 0x2b2   :  { %7043 = vmatpush1.bf16.msra.mxu0 %v8023_v10  ;;  %7371 = vmatpush1.bf16.msra.mxu1 %v8025_v41  ;;  %v8082_v10 = vcombine.high %v487_v16, %v491_v9  ;;  %v494_v41 = vld [vmem:[#allocation3 + $0xa90] sm:$0xff] }
 0x2b3   :  { %7044 = vmatprep.subr.bf16.mxu0 %v8032_v58  ;;  %7372 = vmatprep.subr.bf16.mxu1 %v8034_v23  ;;  %v498_v58 = vld [vmem:[#allocation3 + $0xab0] sm:$0xff]  ;;  %v495_v23 = vld [vmem:[#allocation3 + $0xa98] sm:$0xff] }
 0x2b4   :  { %v8088_v1 = vcombine.high %v494_v41, %v498_v58  ;;  %v8087_v7 = vcombine.low %v494_v41, %v498_v58  ;;  %v8089_v8 = vcombine.low %v495_v23, %v499_v60  ;;  %v547_v41 = vld [vmem:[#allocation3 + $0xc38] sm:$0xff] }
 0x2b6   :  { %7045 = vmatpush1.bf16.msra.mxu0 %v8031_v3  ;;  %7373 = vmatpush1.bf16.msra.mxu1 %v8033_v4  ;;  %v8090_v3 = vcombine.high %v495_v23, %v499_v60  ;;  %v502_v4 = vld [vmem:[#allocation3 + $0xad0] sm:$0xff] }
 0x2b7   :  { %7046 = vmatprep.subr.bf16.mxu0 %v8040_v5  ;;  %7374 = vmatprep.subr.bf16.mxu1 %v8042_v51  ;;  %v506_v5 = vld [vmem:[#allocation3 + $0xaf0] sm:$0xff]  ;;  %v503_v51 = vld [vmem:[#allocation3 + $0xad8] sm:$0xff] }
 0x2b8   :  { %v8096_v11 = vcombine.high %v502_v4, %v506_v5  ;;  %v8095_v20 = vcombine.low %v502_v4, %v506_v5  ;;  %v8097_v25 = vcombine.low %v503_v51, %v507_v6  ;;  %v555_v4 = vld [vmem:[#allocation3 + $0xc78] sm:$0xff] }
 0x2ba   :  { %7047 = vmatpush1.bf16.msra.mxu0 %v8039_v18  ;;  %7375 = vmatpush1.bf16.msra.mxu1 %v8041_v15  ;;  %v8098_v18 = vcombine.high %v503_v51, %v507_v6  ;;  %v510_v15 = vld [vmem:[#allocation3 + $0xb10] sm:$0xff] }
 0x2bb   :  { %7048 = vmatprep.subr.bf16.mxu0 %v8048_v17  ;;  %7376 = vmatprep.subr.bf16.mxu1 %v8050_v59  ;;  %v514_v17 = vld [vmem:[#allocation3 + $0xb30] sm:$0xff]  ;;  %v511_v59 = vld [vmem:[#allocation3 + $0xb18] sm:$0xff] }
 0x2bc   :  { %v8104_v21 = vcombine.high %v510_v15, %v514_v17  ;;  %v8103_v32 = vcombine.low %v510_v15, %v514_v17  ;;  %v8105_v33 = vcombine.low %v511_v59, %v515_v19  ;;  %v563_v15 = vld [vmem:[#allocation3 + $0xcb8] sm:$0xff] }
 0x2be   :  { %7049 = vmatpush1.bf16.msra.mxu0 %v8047_v22  ;;  %7377 = vmatpush1.bf16.msra.mxu1 %v8049_v24  ;;  %v8106_v22 = vcombine.high %v511_v59, %v515_v19  ;;  %v518_v24 = vld [vmem:[#allocation3 + $0xb50] sm:$0xff] }
 0x2bf   :  { %7050 = vmatprep.subr.bf16.mxu0 %v8056_v27  ;;  %7378 = vmatprep.subr.bf16.mxu1 %v8058_v31  ;;  %v522_v27 = vld [vmem:[#allocation3 + $0xb70] sm:$0xff]  ;;  %v519_v31 = vld [vmem:[#allocation3 + $0xb58] sm:$0xff] }
 0x2c0   :  { %v8112_v35 = vcombine.high %v518_v24, %v522_v27  ;;  %v8111_v55 = vcombine.low %v518_v24, %v522_v27  ;;  %v8113_v28 = vcombine.low %v519_v31, %v523_v30  ;;  %v571_v24 = vld [vmem:[#allocation3 + $0xcf8] sm:$0xff] }
 0x2c2   :  { %7051 = vmatpush1.bf16.msra.mxu0 %v8055_v34  ;;  %7379 = vmatpush1.bf16.msra.mxu1 %v8057_v36  ;;  %v8114_v34 = vcombine.high %v519_v31, %v523_v30  ;;  %v526_v36 = vld [vmem:[#allocation3 + $0xb90] sm:$0xff] }
 0x2c3   :  { %7052 = vmatprep.subr.bf16.mxu0 %v8064_v63  ;;  %7380 = vmatprep.subr.bf16.mxu1 %v8066_v37  ;;  %v530_v63 = vld [vmem:[#allocation3 + $0xbb0] sm:$0xff]  ;;  %v527_v37 = vld [vmem:[#allocation3 + $0xb98] sm:$0xff] }
 0x2c4   :  { %v8120_v43 = vcombine.high %v526_v36, %v530_v63  ;;  %v8119_v50 = vcombine.low %v526_v36, %v530_v63  ;;  %v8121_v16 = vcombine.low %v527_v37, %v531_v40  ;;  %v7669_v36 = vsub.s32 0, %v8990_v44 }
 0x2c5   :  { %v7673_v63 = vsub.s32 1, %v8990_v44 }
 0x2c6   :  { %7053 = vmatpush1.bf16.msra.mxu0 %v8063_v45  ;;  %7381 = vmatpush1.bf16.msra.mxu1 %v8065_v46  ;;  %v8122_v45 = vcombine.high %v527_v37, %v531_v40  ;;  %v534_v46 = vld [vmem:[#allocation3 + $0xbd0] sm:$0xff]  ;;  %v7677_v37 = vsub.s32 2, %v8990_v44 }
 0x2c7   :  { %7054 = vmatprep.subr.bf16.mxu0 %v8072_v47  ;;  %7382 = vmatprep.subr.bf16.mxu1 %v8074_v48  ;;  %v538_v47 = vld [vmem:[#allocation3 + $0xbf0] sm:$0xff]  ;;  %v535_v48 = vld [vmem:[#allocation3 + $0xbd8] sm:$0xff] }
 0x2c8   :  { %v8128_v9 = vcombine.high %v534_v46, %v538_v47  ;;  %v8127_v58 = vcombine.low %v534_v46, %v538_v47  ;;  %v8129_v23 = vcombine.low %v535_v48, %v539_v49  ;;  %v582_v46 = vld [vmem:[#allocation3 + $0xd50] sm:$0xff] }
 0x2c9   :  { %v586_v47 = vld [vmem:[#allocation3 + $0xd70] sm:$0xff] }
 0x2ca   :  { %7055 = vmatpush1.bf16.msra.mxu0 %v8071_v56  ;;  %7383 = vmatpush1.bf16.msra.mxu1 %v8073_v54  ;;  %v8130_v56 = vcombine.high %v535_v48, %v539_v49  ;;  %v542_v54 = vld [vmem:[#allocation3 + $0xc10] sm:$0xff] }
 0x2cb   :  { %7056 = vmatprep.subr.bf16.mxu0 %v8080_v57  ;;  %7384 = vmatprep.subr.bf16.mxu1 %v8082_v10  ;;  %v546_v57 = vld [vmem:[#allocation3 + $0xc30] sm:$0xff]  ;;  %v543_v10 = vld [vmem:[#allocation3 + $0xc18] sm:$0xff] }
 0x2cc   :  { %v8136_v60 = vcombine.high %v542_v54, %v546_v57  ;;  %v8135_v5 = vcombine.low %v542_v54, %v546_v57  ;;  %v8137_v51 = vcombine.low %v543_v10, %v547_v41 }
 0x2ce   :  { %7057 = vmatpush1.bf16.msra.mxu0 %v8079_v61  ;;  %7385 = vmatpush1.bf16.msra.mxu1 %v8081_v62  ;;  %v8138_v61 = vcombine.high %v543_v10, %v547_v41  ;;  %v550_v62 = vld [vmem:[#allocation3 + $0xc50] sm:$0xff]  ;;  %v8176_v10 = vcombine.high %v582_v46, %v586_v47 }
 0x2cf   :  { %7058 = vmatprep.subr.bf16.mxu0 %v8088_v1  ;;  %7386 = vmatprep.subr.bf16.mxu1 %v8090_v3  ;;  %v554_v1 = vld [vmem:[#allocation3 + $0xc70] sm:$0xff]  ;;  %v551_v3 = vld [vmem:[#allocation3 + $0xc58] sm:$0xff] }
 0x2d0   :  { %v8144_v6 = vcombine.high %v550_v62, %v554_v1  ;;  %v8143_v17 = vcombine.low %v550_v62, %v554_v1  ;;  %v8145_v59 = vcombine.low %v551_v3, %v555_v4  ;;  %v591_v62 = vld [vmem:[#allocation3 + $0xd98] sm:$0xff] }
 0x2d1   :  { %v595_v1 = vld [vmem:[#allocation3 + $0xdb8] sm:$0xff] }
 0x2d2   :  { %7059 = vmatpush1.bf16.msra.mxu0 %v8087_v7  ;;  %7387 = vmatpush1.bf16.msra.mxu1 %v8089_v8  ;;  %v8146_v7 = vcombine.high %v551_v3, %v555_v4  ;;  %v558_v8 = vld [vmem:[#allocation3 + $0xc90] sm:$0xff]  ;;  %v8175_v3 = vcombine.low %v582_v46, %v586_v47 }
 0x2d3   :  { %7060 = vmatprep.subr.bf16.mxu0 %v8096_v11  ;;  %7388 = vmatprep.subr.bf16.mxu1 %v8098_v18  ;;  %v562_v11 = vld [vmem:[#allocation3 + $0xcb0] sm:$0xff]  ;;  %v559_v18 = vld [vmem:[#allocation3 + $0xc98] sm:$0xff] }
 0x2d4   :  { %v8152_v19 = vcombine.high %v558_v8, %v562_v11  ;;  %v8151_v27 = vcombine.low %v558_v8, %v562_v11  ;;  %v602_v8 = vld [vmem:[#allocation3 + $0xdf0] sm:$0xff] }
 0x2d5   :  { %v614_v47 = vld [vmem:[#allocation3 + $0xe50] sm:$0xff] }
 0x2d6   :  { %7061 = vmatpush1.bf16.msra.mxu0 %v8095_v20  ;;  %7389 = vmatpush1.bf16.msra.mxu1 %v8097_v25  ;;  %v8154_v20 = vcombine.high %v559_v18, %v563_v15  ;;  %v566_v25 = vld [vmem:[#allocation3 + $0xcd0] sm:$0xff] }
 0x2d7   :  { %7062 = vmatprep.subr.bf16.mxu0 %v8104_v21  ;;  %7390 = vmatprep.subr.bf16.mxu1 %v8106_v22  ;;  %v570_v21 = vld [vmem:[#allocation3 + $0xcf0] sm:$0xff]  ;;  %v567_v22 = vld [vmem:[#allocation3 + $0xcd8] sm:$0xff] }
 0x2d8   :  { %v8160_v31 = vcombine.high %v566_v25, %v570_v21  ;;  %v8162_v30 = vcombine.high %v567_v22, %v571_v24  ;;  %v8159_v40 = vcombine.low %v566_v25, %v570_v21 }
 0x2da   :  { %7063 = vmatpush1.bf16.msra.mxu0 %v8103_v32  ;;  %7391 = vmatpush1.bf16.msra.mxu1 %v8105_v33  ;;  %v574_v32 = vld [vmem:[#allocation3 + $0xd10] sm:$0xff] }
 0x2db   :  { %7064 = vmatprep.subr.bf16.mxu0 %v8112_v35  ;;  %7392 = vmatprep.subr.bf16.mxu1 %v8114_v34  ;;  %v578_v33 = vld [vmem:[#allocation3 + $0xd30] sm:$0xff]  ;;  %v575_v35 = vld [vmem:[#allocation3 + $0xd18] sm:$0xff] }
 0x2dc   :  { %v579_v34 = vld [vmem:[#allocation3 + $0xd38] sm:$0xff]  ;;  %v8167_v54 = vcombine.low %v574_v32, %v578_v33 }
 0x2dd   :  { %v8169_v57 = vcombine.low %v575_v35, %v579_v34 }
 0x2de   :  { %7065 = vmatpush1.bf16.msra.mxu0 %v8111_v55  ;;  %7393 = vmatpush1.bf16.msra.mxu1 %v8113_v28  ;;  %v7665_v55 = vld [vmem:[#allocation5] sm:$0xff]  ;;  %v8161_v28 = vcombine.low %v567_v22, %v571_v24 }
 0x2df   :  { %7066 = vmatprep.subr.bf16.mxu0 %v8120_v43  ;;  %7394 = vmatprep.subr.bf16.mxu1 %v8122_v45  ;;  %v8168_v43 = vcombine.high %v574_v32, %v578_v33  ;;  %v8170_v45 = vcombine.high %v575_v35, %v579_v34  ;;  %v7670_v48 = vrot.slane %v7665_v55, %v7669_v36  ;;  %v606_v34 = vld [vmem:[#allocation3 + $0xe10] sm:$0xff] }
 0x2e0   :  { %v7674_v49 = vrot.slane %v7665_v55, %v7673_v63  ;;  %v610_v36 = vld [vmem:[#allocation3 + $0xe30] sm:$0xff] }
 0x2e2   :  { %7067 = vmatpush1.bf16.msra.mxu0 %v8119_v50  ;;  %7395 = vmatpush1.bf16.msra.mxu1 %v8121_v16  ;;  %v7678_v50 = vrot.slane %v7665_v55, %v7677_v37 }
 0x2e3   :  { %7068 = vmatprep.subr.bf16.mxu0 %v8128_v9  ;;  %7396 = vmatprep.subr.bf16.mxu1 %v8130_v56  ;;  %v583_v9 = vld [vmem:[#allocation3 + $0xd58] sm:$0xff] }
 0x2e4   :  { %v587_v56 = vld [vmem:[#allocation3 + $0xd78] sm:$0xff] }
 0x2e5   :  { %v8178_v41 = vcombine.high %v583_v9, %v587_v56  ;;  %v8177_v4 = vcombine.low %v583_v9, %v587_v56  ;;  %v8199_v9 = vcombine.low %v606_v34, %v610_v36 }
 0x2e6   :  { %7069 = vmatpush1.bf16.msra.mxu0 %v8127_v58  ;;  %7397 = vmatpush1.bf16.msra.mxu1 %v8129_v23  ;;  %v590_v58 = vld [vmem:[#allocation3 + $0xd90] sm:$0xff] }
 0x2e7   :  { %7079 = vmatprep.subr.bf16.mxu0 %v8136_v60  ;;  %7407 = vmatprep.subr.bf16.mxu1 %v8138_v61  ;;  %v594_v23 = vld [vmem:[#allocation3 + $0xdb0] sm:$0xff]  ;;  %v7699_v60 = vcombine.low %v7670_v48, %v7674_v49 }
 0x2e8   :  { %v8183_v22 = vcombine.low %v590_v58, %v594_v23  ;;  %v618_v48 = vld [vmem:[#allocation3 + $0xe70] sm:$0xff] }
 0x2e9   :  { %7071 = vmatmul.mubr.bf16.vlgmr.msra.gmra.mrb[4].mxu0 %v9057_v2  ;;  %7399 = vmatmul.mubr.bf16.vlgmr.msra.gmra.mrb[4].mxu1 %v9057_v2  ;;  %v8153_v2 = vcombine.low %v559_v18, %v563_v15  ;;  %v7707_v15 = vrot.slane %v7699_v60, %v8993_v53  ;;  %v627_v60 = vld [vmem:[#allocation3 + $0xeb8] sm:$0xff] }
 0x2ea   :  { %7080 = vmatpush1.bf16.msra.mxu0 %v8135_v5  ;;  %7408 = vmatpush1.bf16.msra.mxu1 %v8137_v51  ;;  %v8184_v5 = vcombine.high %v590_v58, %v594_v23  ;;  %v626_v58 = vld [vmem:[#allocation3 + $0xeb0] sm:$0xff]  ;;  %v623_v23 = vld [vmem:[#allocation3 + $0xe98] sm:$0xff] }
 0x2eb   :  { %7081 = vmatprep.subr.bf16.mxu0 %v8144_v6  ;;  %7409 = vmatprep.subr.bf16.mxu1 %v8146_v7  ;;  %v8186_v6 = vcombine.high %v591_v62, %v595_v1  ;;  %v598_v7 = vld [vmem:[#allocation3 + $0xdd0] sm:$0xff] }
 0x2ec   :  { %7111 = vmatprep.mubr.bf16.mxu0 %v9059_v12  ;;  %7439 = vmatprep.mubr.bf16.mxu1 %v9059_v12  ;;  %v7681_v12 = vsub.s32 3, %v8990_v44 }
 0x2ee   :  { %7082 = vmatpush1.bf16.msra.mxu0 %v8143_v17  ;;  %7410 = vmatpush1.bf16.msra.mxu1 %v8145_v59  ;;  %v7682_v16 = vrot.slane %v7665_v55, %v7681_v12  ;;  %v599_v59 = vld [vmem:[#allocation3 + $0xdd8] sm:$0xff]  ;;  %v8191_v55 = vcombine.low %v598_v7, %v602_v8 }
 0x2ef   :  { %7083 = vmatprep.subr.bf16.mxu0 %v8152_v19  ;;  %7411 = vmatprep.subr.bf16.mxu1 %v8154_v20  ;;  %v603_v19 = vld [vmem:[#allocation3 + $0xdf8] sm:$0xff] }
 0x2f0   :  { %v7700_v61 = vcombine.low %v7678_v50, %v7682_v16  ;;  %v8194_v35 = vcombine.high %v599_v59, %v603_v19  ;;  %v607_v12 = vld [vmem:[#allocation3 + $0xe18] sm:$0xff] }
 0x2f1   :  { %v615_v50 = vld [vmem:[#allocation3 + $0xe58] sm:$0xff] }
 0x2f2   :  { %7084 = vmatpush1.bf16.msra.mxu0 %v8151_v27  ;;  %7412 = vmatpush1.bf16.msra.mxu1 %v8153_v2  ;;  %v7714_v17 = vrot.slane %v7700_v61, %v8993_v53  ;;  %v619_v16 = vld [vmem:[#allocation3 + $0xe78] sm:$0xff]  ;;  %v8207_v61 = vcombine.low %v614_v47, %v618_v48 }
 0x2f3   :  { %7085 = vmatprep.subr.bf16.mxu0 %v8160_v31  ;;  %7413 = vmatprep.subr.bf16.mxu1 %v8162_v30  ;;  %v8185_v31 = vcombine.low %v591_v62, %v595_v1  ;;  %v8192_v30 = vcombine.high %v598_v7, %v602_v8  ;;  %v8209_v62 = vcombine.low %v615_v50, %v619_v16 }
 0x2f4   :  { %v7715_v37 = vcombine.low %v7707_v15, %v7714_v17  ;;  %v8217_v8 = vcombine.low %v623_v23, %v627_v60  ;;  %v638_v15 = vld [vmem:[#allocation3 + $0xf10] sm:$0xff] }
 0x2f5   :  { %v642_v17 = vld [vmem:[#allocation3 + $0xf30] sm:$0xff] }
 0x2f6   :  { %7086 = vmatpush1.bf16.msra.mxu0 %v8159_v40  ;;  %7414 = vmatpush1.bf16.msra.mxu1 %v8161_v28  ;;  %v611_v40 = vld [vmem:[#allocation3 + $0xe38] sm:$0xff] }
 0x2f7   :  { %7087 = vmatprep.subr.bf16.mxu0 %v8168_v43  ;;  %7415 = vmatprep.subr.bf16.mxu1 %v8170_v45  ;;  %v8193_v43 = vcombine.low %v599_v59, %v603_v19  ;;  %v8200_v45 = vcombine.high %v606_v34, %v610_v36  ;;  %v8202_v46 = vcombine.high %v607_v12, %v611_v40  ;;  %v639_v59 = vld [vmem:[#allocation3 + $0xf18] sm:$0xff]  ;;  %v654_v34 = vld [vmem:[#allocation3 + $0xf90] sm:$0xff] }
 0x2f8   :  { %v643_v19 = vld [vmem:[#allocation3 + $0xf38] sm:$0xff]  ;;  %v658_v36 = vld [vmem:[#allocation3 + $0xfb0] sm:$0xff] }
 0x2fa   :  { %7088 = vmatpush1.bf16.msra.mxu0 %v8167_v54  ;;  %7416 = vmatpush1.bf16.msra.mxu1 %v8169_v57  ;;  %v8201_v54 = vcombine.low %v607_v12, %v611_v40  ;;  %v8208_v57 = vcombine.high %v614_v47, %v618_v48  ;;  %v667_v47 = vld [vmem:[#allocation3 + $0xff8] sm:$0xff]  ;;  %v8247_v48 = vcombine.low %v654_v34, %v658_v36 }
 0x2fb   :  { %7089 = vmatprep.subr.bf16.mxu0 %v8176_v10  ;;  %7417 = vmatprep.subr.bf16.mxu1 %v8178_v41  ;;  %v8210_v10 = vcombine.high %v615_v50, %v619_v16  ;;  %v622_v41 = vld [vmem:[#allocation3 + $0xe90] sm:$0xff] }
 0x2fc   :  { %v6621_v51 = vpop.f32.mrb[0].mxu0  ;;  %v6949_v11 = vpop.f32.mrb[0].mxu1  ;;  %v8216_v1 = vcombine.high %v622_v41, %v626_v58  ;;  %v8215_v7 = vcombine.low %v622_v41, %v626_v58 }
 0x2fd   :  { %v6623_v18 = vpop.f32.mrb[1].mxu0  ;;  %v6951_v25 = vpop.f32.mrb[1].mxu1 }
 0x2fe   :  { %v7620_v20 = vcombine.low %v6621_v51, %v6623_v18  ;;  %v6625_v21 = vpop.f32.mrb[2].mxu0  ;;  %7090 = vmatpush1.bf16.msra.mxu0 %v8175_v3  ;;  %v7621_v24 = vcombine.low %v6949_v11, %v6951_v25  ;;  %v6953_v27 = vpop.f32.mrb[2].mxu1  ;;  %7418 = vmatpush1.bf16.msra.mxu1 %v8177_v4  ;;  %v8218_v3 = vcombine.high %v623_v23, %v627_v60  ;;  %v630_v4 = vld [vmem:[#allocation3 + $0xed0] sm:$0xff]  ;;  %v631_v51 = vld [vmem:[#allocation3 + $0xed8] sm:$0xff] }
 0x2ff   :  { %v6626_v2 = vpop.f32.mrb[3].mxu0  ;;  %7091 = vmatprep.subr.bf16.mxu0 %v8184_v5  ;;  %v6954_v33 = vpop.f32.mrb[3].mxu1  ;;  %7419 = vmatprep.subr.bf16.mxu1 %v8186_v6  ;;  %v634_v5 = vld [vmem:[#allocation3 + $0xef0] sm:$0xff]  ;;  %v635_v6 = vld [vmem:[#allocation3 + $0xef8] sm:$0xff]  ;;  %v8232_v21 = vcombine.high %v638_v15, %v642_v17 }
 0x300   :  { %v7628_v32 = vrot.slane %v7620_v20, %v8993_v53  ;;  %v7635_v63 = vrot.slane %v7621_v24, %v8993_v53  ;;  %v8224_v11 = vcombine.high %v630_v4, %v634_v5  ;;  %v8226_v18 = vcombine.high %v631_v51, %v635_v6  ;;  %v646_v24 = vld [vmem:[#allocation3 + $0xf50] sm:$0xff]  ;;  %v647_v2 = vld [vmem:[#allocation3 + $0xf58] sm:$0xff] }
 0x301   :  { %v8223_v20 = vcombine.low %v630_v4, %v634_v5  ;;  %v8225_v25 = vcombine.low %v631_v51, %v635_v6  ;;  %v650_v27 = vld [vmem:[#allocation3 + $0xf70] sm:$0xff] }
 0x302   :  { %7092 = vmatpush1.bf16.msra.mxu0 %v8183_v22  ;;  %v7636_v28 = vcombine.low %v7628_v32, %v7635_v63  ;;  %7420 = vmatpush1.bf16.msra.mxu1 %v8185_v31  ;;  %v8234_v22 = vcombine.high %v639_v59, %v643_v19  ;;  %v651_v31 = vld [vmem:[#allocation3 + $0xf78] sm:$0xff]  ;;  %v8233_v32 = vcombine.low %v639_v59, %v643_v19  ;;  %v678_v60 = vld [vmem:[#allocation3 + $0x1050] sm:$0xff] }
 0x303   :  { %7093 = vmatprep.subr.bf16.mxu0 %v8192_v30  ;;  %7421 = vmatprep.subr.bf16.mxu1 %v8194_v35  ;;  %v8231_v30 = vcombine.low %v638_v15, %v642_v17  ;;  %v8240_v33 = vcombine.high %v646_v24, %v650_v27  ;;  %v8242_v35 = vcombine.high %v647_v2, %v651_v31  ;;  %v655_v63 = vld [vmem:[#allocation3 + $0xf98] sm:$0xff]  ;;  %v686_v6 = vld [vmem:[#allocation3 + $0x1090] sm:$0xff] }
 0x304   :  { %v7735_v49 = vadd.f32 %v7715_v37, %v7636_v28  ;;  %v659_v37 = vld [vmem:[#allocation3 + $0xfb8] sm:$0xff]  ;;  %v8239_v12 = vcombine.low %v646_v24, %v650_v27  ;;  %v8241_v40 = vcombine.low %v647_v2, %v651_v31  ;;  %v694_v19 = vld [vmem:[#allocation3 + $0x10d0] sm:$0xff] }
 0x305   :  { %v8250_v28 = vcombine.high %v655_v63, %v659_v37  ;;  %v702_v2 = vld [vmem:[#allocation3 + $0x1110] sm:$0xff] }
 0x306   :  { %7094 = vmatpush1.bf16.msra.mxu0 %v8191_v55  ;;  %v7737_v56 = vmax.f32 %v7735_v49, 0.0  ;;  %7422 = vmatpush1.bf16.msra.mxu1 %v8193_v43  ;;  %v8248_v55 = vcombine.high %v654_v34, %v658_v36  ;;  %v662_v43 = vld [vmem:[#allocation3 + $0xfd0] sm:$0xff]  ;;  %v8249_v49 = vcombine.low %v655_v63, %v659_v37  ;;  %v711_v37 = vld [vmem:[#allocation3 + $0x1158] sm:$0xff] }
 0x307   :  { %7095 = vmatprep.subr.bf16.mxu0 %v8200_v45  ;;  %7423 = vmatprep.subr.bf16.mxu1 %v8202_v46  ;;  %v666_v45 = vld [vmem:[#allocation3 + $0xff0] sm:$0xff]  ;;  %v663_v46 = vld [vmem:[#allocation3 + $0xfd8] sm:$0xff] }
 0x308   :  { %7739 = vst [vmem:[%s9204_s3] sm:$0xff] %v7737_v56  ;;  %v8256_v50 = vcombine.high %v662_v43, %v666_v45  ;;  %v8258_v16 = vcombine.high %v663_v46, %v667_v47  ;;  %v674_v56 = vld [vmem:[#allocation3 + $0x1030] sm:$0xff]  ;;  %v8257_v41 = vcombine.low %v663_v46, %v667_v47  ;;  %v719_v47 = vld [vmem:[#allocation3 + $0x1198] sm:$0xff] }
 0x309   :  { %v706_v31 = vld [vmem:[#allocation3 + $0x1130] sm:$0xff] }
 0x30a   :  { %7096 = vmatpush1.bf16.msra.mxu0 %v8199_v9  ;;  %7424 = vmatpush1.bf16.msra.mxu1 %v8201_v54  ;;  %v670_v9 = vld [vmem:[#allocation3 + $0x1010] sm:$0xff]  ;;  %v671_v54 = vld [vmem:[#allocation3 + $0x1018] sm:$0xff]  ;;  %v8296_v34 = vcombine.high %v702_v2, %v706_v31 }
 0x30b   :  { %7097 = vmatprep.subr.bf16.mxu0 %v8208_v57  ;;  %7425 = vmatprep.subr.bf16.mxu1 %v8210_v10  ;;  %v675_v57 = vld [vmem:[#allocation3 + $0x1038] sm:$0xff]  ;;  %v8255_v10 = vcombine.low %v662_v43, %v666_v45  ;;  %v8264_v58 = vcombine.high %v670_v9, %v674_v56  ;;  %v710_v36 = vld [vmem:[#allocation3 + $0x1150] sm:$0xff] }
 0x30c   :  { %v8266_v23 = vcombine.high %v671_v54, %v675_v57  ;;  %v8265_v4 = vcombine.low %v671_v54, %v675_v57  ;;  %v714_v63 = vld [vmem:[#allocation3 + $0x1170] sm:$0xff]  ;;  %v727_v57 = vld [vmem:[#allocation3 + $0x11d8] sm:$0xff] }
 0x30d   :  { %v718_v45 = vld [vmem:[#allocation3 + $0x1190] sm:$0xff] }
 0x30e   :  { %7098 = vmatpush1.bf16.msra.mxu0 %v8207_v61  ;;  %7426 = vmatpush1.bf16.msra.mxu1 %v8209_v62  ;;  %v682_v61 = vld [vmem:[#allocation3 + $0x1070] sm:$0xff]  ;;  %v679_v62 = vld [vmem:[#allocation3 + $0x1058] sm:$0xff] }
 0x30f   :  { %7099 = vmatprep.subr.bf16.mxu0 %v8216_v1  ;;  %7427 = vmatprep.subr.bf16.mxu1 %v8218_v3  ;;  %v683_v1 = vld [vmem:[#allocation3 + $0x1078] sm:$0xff]  ;;  %v8263_v3 = vcombine.low %v670_v9, %v674_v56  ;;  %v8272_v5 = vcombine.high %v678_v60, %v682_v61  ;;  %v722_v46 = vld [vmem:[#allocation3 + $0x11b0] sm:$0xff] }
 0x310   :  { %v8274_v51 = vcombine.high %v679_v62, %v683_v1  ;;  %v8273_v15 = vcombine.low %v679_v62, %v683_v1  ;;  %v726_v56 = vld [vmem:[#allocation3 + $0x11d0] sm:$0xff]  ;;  %v735_v1 = vld [vmem:[#allocation3 + $0x1218] sm:$0xff] }
 0x311   :  { %v730_v54 = vld [vmem:[#allocation3 + $0x11f0] sm:$0xff] }
 0x312   :  { %7100 = vmatpush1.bf16.msra.mxu0 %v8215_v7  ;;  %7428 = vmatpush1.bf16.msra.mxu1 %v8217_v8  ;;  %v690_v7 = vld [vmem:[#allocation3 + $0x10b0] sm:$0xff]  ;;  %v687_v8 = vld [vmem:[#allocation3 + $0x1098] sm:$0xff] }
 0x313   :  { %7101 = vmatprep.subr.bf16.mxu0 %v8224_v11  ;;  %7429 = vmatprep.subr.bf16.mxu1 %v8226_v18  ;;  %v691_v11 = vld [vmem:[#allocation3 + $0x10b8] sm:$0xff]  ;;  %v8271_v18 = vcombine.low %v678_v60, %v682_v61  ;;  %v8280_v17 = vcombine.high %v686_v6, %v690_v7  ;;  %v734_v61 = vld [vmem:[#allocation3 + $0x1210] sm:$0xff] }
 0x314   :  { %v8282_v59 = vcombine.high %v687_v8, %v691_v11  ;;  %v738_v62 = vld [vmem:[#allocation3 + $0x1230] sm:$0xff] }
 0x316   :  { %7102 = vmatpush1.bf16.msra.mxu0 %v8223_v20  ;;  %7430 = vmatpush1.bf16.msra.mxu1 %v8225_v25  ;;  %v698_v20 = vld [vmem:[#allocation3 + $0x10f0] sm:$0xff]  ;;  %v695_v25 = vld [vmem:[#allocation3 + $0x10d8] sm:$0xff] }
 0x317   :  { %7103 = vmatprep.subr.bf16.mxu0 %v8232_v21  ;;  %7431 = vmatprep.subr.bf16.mxu1 %v8234_v22  ;;  %v699_v21 = vld [vmem:[#allocation3 + $0x10f8] sm:$0xff]  ;;  %v8279_v22 = vcombine.low %v686_v6, %v690_v7  ;;  %v8288_v24 = vcombine.high %v694_v19, %v698_v20  ;;  %v742_v7 = vld [vmem:[#allocation3 + $0x1250] sm:$0xff] }
 0x318   :  { %v8290_v27 = vcombine.high %v695_v25, %v699_v21 }
 0x31a   :  { %7104 = vmatpush1.bf16.msra.mxu0 %v8231_v30  ;;  %7432 = vmatpush1.bf16.msra.mxu1 %v8233_v32  ;;  %v703_v30 = vld [vmem:[#allocation3 + $0x1118] sm:$0xff] }
 0x31b   :  { %7105 = vmatprep.subr.bf16.mxu0 %v8240_v33  ;;  %7433 = vmatprep.subr.bf16.mxu1 %v8242_v35  ;;  %v707_v32 = vld [vmem:[#allocation3 + $0x1138] sm:$0xff]  ;;  %v8287_v33 = vcombine.low %v694_v19, %v698_v20  ;;  %v8289_v35 = vcombine.low %v695_v25, %v699_v21  ;;  %v750_v20 = vld [vmem:[#allocation3 + $0x1290] sm:$0xff] }
 0x31c   :  { %v754_v25 = vld [vmem:[#allocation3 + $0x12b0] sm:$0xff]  ;;  %v751_v21 = vld [vmem:[#allocation3 + $0x1298] sm:$0xff] }
 0x31e   :  { %7106 = vmatpush1.bf16.msra.mxu0 %v8239_v12  ;;  %7434 = vmatpush1.bf16.msra.mxu1 %v8241_v40  ;;  %v715_v12 = vld [vmem:[#allocation3 + $0x1178] sm:$0xff]  ;;  %v8295_v40 = vcombine.low %v702_v2, %v706_v31  ;;  %v758_v31 = vld [vmem:[#allocation3 + $0x12d0] sm:$0xff] }
 0x31f   :  { %7107 = vmatprep.subr.bf16.mxu0 %v8248_v55  ;;  %7435 = vmatprep.subr.bf16.mxu1 %v8250_v28  ;;  %v8297_v55 = vcombine.low %v703_v30, %v707_v32  ;;  %v8304_v28 = vcombine.high %v710_v36, %v714_v63  ;;  %v8306_v43 = vcombine.high %v711_v37, %v715_v12 }
 0x322   :  { %7108 = vmatpush1.bf16.msra.mxu0 %v8247_v48  ;;  %7436 = vmatpush1.bf16.msra.mxu1 %v8249_v49  ;;  %v723_v48 = vld [vmem:[#allocation3 + $0x11b8] sm:$0xff]  ;;  %v8303_v49 = vcombine.low %v710_v36, %v714_v63  ;;  %v766_v63 = vld [vmem:[#allocation3 + $0x1310] sm:$0xff] }
 0x323   :  { %7109 = vmatprep.subr.bf16.mxu0 %v8256_v50  ;;  %7437 = vmatprep.subr.bf16.mxu1 %v8258_v16  ;;  %v8305_v50 = vcombine.low %v711_v37, %v715_v12  ;;  %v8312_v16 = vcombine.high %v718_v45, %v722_v46  ;;  %v8314_v9 = vcombine.high %v719_v47, %v723_v48  ;;  %v770_v37 = vld [vmem:[#allocation3 + $0x1330] sm:$0xff]  ;;  %v767_v12 = vld [vmem:[#allocation3 + $0x1318] sm:$0xff] }
 0x326   :  { %7110 = vmatpush1.bf16.msra.mxu0 %v8255_v10  ;;  %7438 = vmatpush1.bf16.msra.mxu1 %v8257_v41  ;;  %v731_v10 = vld [vmem:[#allocation3 + $0x11f8] sm:$0xff]  ;;  %v8311_v41 = vcombine.low %v718_v45, %v722_v46  ;;  %v774_v46 = vld [vmem:[#allocation3 + $0x1350] sm:$0xff] }
 0x327   :  { %7120 = vmatprep.subr.bf16.mxu0 %v8264_v58  ;;  %7448 = vmatprep.subr.bf16.mxu1 %v8266_v23  ;;  %v8313_v58 = vcombine.low %v719_v47, %v723_v48  ;;  %v8320_v23 = vcombine.high %v726_v56, %v730_v54  ;;  %v8322_v60 = vcombine.high %v727_v57, %v731_v10  ;;  %v778_v47 = vld [vmem:[#allocation3 + $0x1370] sm:$0xff]  ;;  %v775_v48 = vld [vmem:[#allocation3 + $0x1358] sm:$0xff] }
 0x329   :  { %7112 = vmatmul.mubr.bf16.vlgmr.msra.gmra.mrb[4].mxu0 %v9078_v29  ;;  %7440 = vmatmul.mubr.bf16.vlgmr.msra.gmra.mrb[4].mxu1 %v9078_v29  ;;  %v8281_v29 = vcombine.low %v687_v8, %v691_v11  ;;  %v746_v8 = vld [vmem:[#allocation3 + $0x1270] sm:$0xff]  ;;  %v743_v11 = vld [vmem:[#allocation3 + $0x1258] sm:$0xff] }
 0x32a   :  { %7121 = vmatpush1.bf16.msra.mxu0 %v8263_v3  ;;  %7449 = vmatpush1.bf16.msra.mxu1 %v8265_v4  ;;  %v739_v3 = vld [vmem:[#allocation3 + $0x1238] sm:$0xff]  ;;  %v8319_v4 = vcombine.low %v726_v56, %v730_v54  ;;  %v782_v54 = vld [vmem:[#allocation3 + $0x1390] sm:$0xff] }
 0x32b   :  { %7122 = vmatprep.subr.bf16.mxu0 %v8272_v5  ;;  %7450 = vmatprep.subr.bf16.mxu1 %v8274_v51  ;;  %v8321_v5 = vcombine.low %v727_v57, %v731_v10  ;;  %v8328_v51 = vcombine.high %v734_v61, %v738_v62  ;;  %v8330_v6 = vcombine.high %v735_v1, %v739_v3  ;;  %v786_v57 = vld [vmem:[#allocation3 + $0x13b0] sm:$0xff]  ;;  %v783_v10 = vld [vmem:[#allocation3 + $0x1398] sm:$0xff] }
 0x32c   :  { %7152 = vmatprep.mubr.bf16.mxu0 %v9080_v39  ;;  %7480 = vmatprep.mubr.bf16.mxu1 %v9080_v39  ;;  %v8298_v39 = vcombine.high %v703_v30, %v707_v32  ;;  %v762_v30 = vld [vmem:[#allocation3 + $0x12f0] sm:$0xff]  ;;  %v759_v32 = vld [vmem:[#allocation3 + $0x12d8] sm:$0xff] }
 0x32e   :  { %7123 = vmatpush1.bf16.msra.mxu0 %v8271_v18  ;;  %7451 = vmatpush1.bf16.msra.mxu1 %v8273_v15  ;;  %v747_v18 = vld [vmem:[#allocation3 + $0x1278] sm:$0xff]  ;;  %v8327_v15 = vcombine.low %v734_v61, %v738_v62  ;;  %v790_v62 = vld [vmem:[#allocation3 + $0x13d0] sm:$0xff] }
 0x32f   :  { %7124 = vmatprep.subr.bf16.mxu0 %v8280_v17  ;;  %7452 = vmatprep.subr.bf16.mxu1 %v8282_v59  ;;  %v8329_v17 = vcombine.low %v735_v1, %v739_v3  ;;  %v8336_v59 = vcombine.high %v742_v7, %v746_v8  ;;  %v8338_v19 = vcombine.high %v743_v11, %v747_v18  ;;  %v794_v1 = vld [vmem:[#allocation3 + $0x13f0] sm:$0xff]  ;;  %v791_v3 = vld [vmem:[#allocation3 + $0x13d8] sm:$0xff] }
 0x332   :  { %7125 = vmatpush1.bf16.msra.mxu0 %v8279_v22  ;;  %7453 = vmatpush1.bf16.msra.mxu1 %v8281_v29  ;;  %v755_v22 = vld [vmem:[#allocation3 + $0x12b8] sm:$0xff]  ;;  %v8335_v29 = vcombine.low %v742_v7, %v746_v8  ;;  %v798_v8 = vld [vmem:[#allocation3 + $0x1410] sm:$0xff] }
 0x333   :  { %7126 = vmatprep.subr.bf16.mxu0 %v8288_v24  ;;  %7454 = vmatprep.subr.bf16.mxu1 %v8290_v27  ;;  %v8337_v24 = vcombine.low %v743_v11, %v747_v18  ;;  %v8344_v27 = vcombine.high %v750_v20, %v754_v25  ;;  %v8346_v2 = vcombine.high %v751_v21, %v755_v22  ;;  %v802_v11 = vld [vmem:[#allocation3 + $0x1430] sm:$0xff]  ;;  %v799_v18 = vld [vmem:[#allocation3 + $0x1418] sm:$0xff] }
 0x336   :  { %7127 = vmatpush1.bf16.msra.mxu0 %v8287_v33  ;;  %7455 = vmatpush1.bf16.msra.mxu1 %v8289_v35  ;;  %v763_v33 = vld [vmem:[#allocation3 + $0x12f8] sm:$0xff]  ;;  %v8343_v35 = vcombine.low %v750_v20, %v754_v25  ;;  %v806_v25 = vld [vmem:[#allocation3 + $0x1450] sm:$0xff] }
 0x337   :  { %7128 = vmatprep.subr.bf16.mxu0 %v8296_v34  ;;  %7456 = vmatprep.subr.bf16.mxu1 %v8298_v39  ;;  %v8345_v34 = vcombine.low %v751_v21, %v755_v22  ;;  %v8352_v39 = vcombine.high %v758_v31, %v762_v30  ;;  %v8354_v36 = vcombine.high %v759_v32, %v763_v33  ;;  %v810_v21 = vld [vmem:[#allocation3 + $0x1470] sm:$0xff]  ;;  %v807_v22 = vld [vmem:[#allocation3 + $0x1458] sm:$0xff] }
 0x33a   :  { %7129 = vmatpush1.bf16.msra.mxu0 %v8295_v40  ;;  %7457 = vmatpush1.bf16.msra.mxu1 %v8297_v55  ;;  %v771_v40 = vld [vmem:[#allocation3 + $0x1338] sm:$0xff]  ;;  %v8351_v55 = vcombine.low %v758_v31, %v762_v30  ;;  %v814_v30 = vld [vmem:[#allocation3 + $0x1490] sm:$0xff] }
 0x33b   :  { %7130 = vmatprep.subr.bf16.mxu0 %v8304_v28  ;;  %7458 = vmatprep.subr.bf16.mxu1 %v8306_v43  ;;  %v8353_v28 = vcombine.low %v759_v32, %v763_v33  ;;  %v8360_v43 = vcombine.high %v766_v63, %v770_v37  ;;  %v8362_v45 = vcombine.high %v767_v12, %v771_v40  ;;  %v818_v32 = vld [vmem:[#allocation3 + $0x14b0] sm:$0xff]  ;;  %v815_v33 = vld [vmem:[#allocation3 + $0x1498] sm:$0xff] }
 0x33e   :  { %7131 = vmatpush1.bf16.msra.mxu0 %v8303_v49  ;;  %7459 = vmatpush1.bf16.msra.mxu1 %v8305_v50  ;;  %v779_v49 = vld [vmem:[#allocation3 + $0x1378] sm:$0xff]  ;;  %v8359_v50 = vcombine.low %v766_v63, %v770_v37  ;;  %v822_v37 = vld [vmem:[#allocation3 + $0x14d0] sm:$0xff] }
 0x33f   :  { %7132 = vmatprep.subr.bf16.mxu0 %v8312_v16  ;;  %7460 = vmatprep.subr.bf16.mxu1 %v8314_v9  ;;  %v8361_v16 = vcombine.low %v767_v12, %v771_v40  ;;  %v8368_v9 = vcombine.high %v774_v46, %v778_v47  ;;  %v8370_v56 = vcombine.high %v775_v48, %v779_v49  ;;  %v826_v12 = vld [vmem:[#allocation3 + $0x14f0] sm:$0xff]  ;;  %v823_v40 = vld [vmem:[#allocation3 + $0x14d8] sm:$0xff] }
 0x342   :  { %7133 = vmatpush1.bf16.msra.mxu0 %v8311_v41  ;;  %7461 = vmatpush1.bf16.msra.mxu1 %v8313_v58  ;;  %v787_v41 = vld [vmem:[#allocation3 + $0x13b8] sm:$0xff]  ;;  %v8367_v58 = vcombine.low %v774_v46, %v778_v47  ;;  %v830_v46 = vld [vmem:[#allocation3 + $0x1510] sm:$0xff] }
 0x343   :  { %7134 = vmatprep.subr.bf16.mxu0 %v8320_v23  ;;  %7462 = vmatprep.subr.bf16.mxu1 %v8322_v60  ;;  %v8369_v23 = vcombine.low %v775_v48, %v779_v49  ;;  %v8376_v60 = vcombine.high %v782_v54, %v786_v57  ;;  %v8378_v61 = vcombine.high %v783_v10, %v787_v41  ;;  %v834_v47 = vld [vmem:[#allocation3 + $0x1530] sm:$0xff]  ;;  %v831_v48 = vld [vmem:[#allocation3 + $0x1518] sm:$0xff] }
 0x344   :  { %v835_v49 = vld [vmem:[#allocation3 + $0x1538] sm:$0xff] }
 0x346   :  { %7135 = vmatpush1.bf16.msra.mxu0 %v8319_v4  ;;  %7463 = vmatpush1.bf16.msra.mxu1 %v8321_v5  ;;  %v795_v4 = vld [vmem:[#allocation3 + $0x13f8] sm:$0xff]  ;;  %v8375_v5 = vcombine.low %v782_v54, %v786_v57  ;;  %v842_v54 = vld [vmem:[#allocation3 + $0x1570] sm:$0xff] }
 0x347   :  { %7136 = vmatprep.subr.bf16.mxu0 %v8328_v51  ;;  %7464 = vmatprep.subr.bf16.mxu1 %v8330_v6  ;;  %v8377_v51 = vcombine.low %v783_v10, %v787_v41  ;;  %v8384_v6 = vcombine.high %v790_v62, %v794_v1  ;;  %v8386_v7 = vcombine.high %v791_v3, %v795_v4  ;;  %v839_v57 = vld [vmem:[#allocation3 + $0x1558] sm:$0xff] }
 0x348   :  { %v843_v10 = vld [vmem:[#allocation3 + $0x1578] sm:$0xff]  ;;  %v8423_v41 = vcombine.low %v830_v46, %v834_v47 }
 0x34a   :  { %7137 = vmatpush1.bf16.msra.mxu0 %v8327_v15  ;;  %7465 = vmatpush1.bf16.msra.mxu1 %v8329_v17  ;;  %v803_v15 = vld [vmem:[#allocation3 + $0x1438] sm:$0xff]  ;;  %v8383_v17 = vcombine.low %v790_v62, %v794_v1  ;;  %v850_v62 = vld [vmem:[#allocation3 + $0x15b0] sm:$0xff] }
 0x34b   :  { %7138 = vmatprep.subr.bf16.mxu0 %v8336_v59  ;;  %7466 = vmatprep.subr.bf16.mxu1 %v8338_v19  ;;  %v8385_v59 = vcombine.low %v791_v3, %v795_v4  ;;  %v8392_v19 = vcombine.high %v798_v8, %v802_v11  ;;  %v8394_v20 = vcombine.high %v799_v18, %v803_v15  ;;  %v847_v1 = vld [vmem:[#allocation3 + $0x1598] sm:$0xff] }
 0x34c   :  { %v851_v3 = vld [vmem:[#allocation3 + $0x15b8] sm:$0xff] }
 0x34e   :  { %7139 = vmatpush1.bf16.msra.mxu0 %v8335_v29  ;;  %7467 = vmatpush1.bf16.msra.mxu1 %v8337_v24  ;;  %v811_v29 = vld [vmem:[#allocation3 + $0x1478] sm:$0xff]  ;;  %v8391_v24 = vcombine.low %v798_v8, %v802_v11  ;;  %v858_v8 = vld [vmem:[#allocation3 + $0x15f0] sm:$0xff] }
 0x34f   :  { %7140 = vmatprep.subr.bf16.mxu0 %v8344_v27  ;;  %7468 = vmatprep.subr.bf16.mxu1 %v8346_v2  ;;  %v8393_v27 = vcombine.low %v799_v18, %v803_v15  ;;  %v8400_v2 = vcombine.high %v806_v25, %v810_v21  ;;  %v8402_v31 = vcombine.high %v807_v22, %v811_v29  ;;  %v855_v11 = vld [vmem:[#allocation3 + $0x15d8] sm:$0xff] }
 0x350   :  { %v859_v18 = vld [vmem:[#allocation3 + $0x15f8] sm:$0xff] }
 0x352   :  { %7141 = vmatpush1.bf16.msra.mxu0 %v8343_v35  ;;  %7469 = vmatpush1.bf16.msra.mxu1 %v8345_v34  ;;  %v819_v35 = vld [vmem:[#allocation3 + $0x14b8] sm:$0xff]  ;;  %v8399_v34 = vcombine.low %v806_v25, %v810_v21  ;;  %v866_v25 = vld [vmem:[#allocation3 + $0x1630] sm:$0xff] }
 0x353   :  { %7142 = vmatprep.subr.bf16.mxu0 %v8352_v39  ;;  %7470 = vmatprep.subr.bf16.mxu1 %v8354_v36  ;;  %v8401_v39 = vcombine.low %v807_v22, %v811_v29  ;;  %v8408_v36 = vcombine.high %v814_v30, %v818_v32  ;;  %v8410_v63 = vcombine.high %v815_v33, %v819_v35  ;;  %v863_v21 = vld [vmem:[#allocation3 + $0x1618] sm:$0xff] }
 0x354   :  { %v867_v22 = vld [vmem:[#allocation3 + $0x1638] sm:$0xff] }
 0x356   :  { %7143 = vmatpush1.bf16.msra.mxu0 %v8351_v55  ;;  %7471 = vmatpush1.bf16.msra.mxu1 %v8353_v28  ;;  %v827_v55 = vld [vmem:[#allocation3 + $0x14f8] sm:$0xff]  ;;  %v8407_v28 = vcombine.low %v814_v30, %v818_v32  ;;  %v874_v30 = vld [vmem:[#allocation3 + $0x1670] sm:$0xff] }
 0x357   :  { %7144 = vmatprep.subr.bf16.mxu0 %v8360_v43  ;;  %7472 = vmatprep.subr.bf16.mxu1 %v8362_v45  ;;  %v8416_v43 = vcombine.high %v822_v37, %v826_v12  ;;  %v8418_v45 = vcombine.high %v823_v40, %v827_v55  ;;  %v871_v32 = vld [vmem:[#allocation3 + $0x1658] sm:$0xff] }
 0x35a   :  { %7145 = vmatpush1.bf16.msra.mxu0 %v8359_v50  ;;  %7473 = vmatpush1.bf16.msra.mxu1 %v8361_v16  ;;  %v8415_v50 = vcombine.low %v822_v37, %v826_v12  ;;  %v8417_v16 = vcombine.low %v823_v40, %v827_v55  ;;  %v882_v37 = vld [vmem:[#allocation3 + $0x16b0] sm:$0xff]  ;;  %v879_v12 = vld [vmem:[#allocation3 + $0x1698] sm:$0xff] }
 0x35b   :  { %7146 = vmatprep.subr.bf16.mxu0 %v8368_v9  ;;  %7474 = vmatprep.subr.bf16.mxu1 %v8370_v56  ;;  %v8424_v9 = vcombine.high %v830_v46, %v834_v47  ;;  %v838_v56 = vld [vmem:[#allocation3 + $0x1550] sm:$0xff]  ;;  %v883_v40 = vld [vmem:[#allocation3 + $0x16b8] sm:$0xff] }
 0x35c   :  { %v8431_v4 = vcombine.low %v838_v56, %v842_v54  ;;  %v890_v46 = vld [vmem:[#allocation3 + $0x16f0] sm:$0xff]  ;;  %v887_v47 = vld [vmem:[#allocation3 + $0x16d8] sm:$0xff] }
 0x35e   :  { %7147 = vmatpush1.bf16.msra.mxu0 %v8367_v58  ;;  %7475 = vmatpush1.bf16.msra.mxu1 %v8369_v23  ;;  %v8425_v58 = vcombine.low %v831_v48, %v835_v49  ;;  %v8432_v23 = vcombine.high %v838_v56, %v842_v54  ;;  %v898_v56 = vld [vmem:[#allocation3 + $0x1730] sm:$0xff]  ;;  %v895_v54 = vld [vmem:[#allocation3 + $0x1718] sm:$0xff] }
 0x35f   :  { %7148 = vmatprep.subr.bf16.mxu0 %v8376_v60  ;;  %7476 = vmatprep.subr.bf16.mxu1 %v8378_v61  ;;  %v8434_v60 = vcombine.high %v839_v57, %v843_v10  ;;  %v846_v61 = vld [vmem:[#allocation3 + $0x1590] sm:$0xff] }
 0x360   :  { %v8439_v15 = vcombine.low %v846_v61, %v850_v62 }
 0x362   :  { %7149 = vmatpush1.bf16.msra.mxu0 %v8375_v5  ;;  %7477 = vmatpush1.bf16.msra.mxu1 %v8377_v51  ;;  %v8433_v5 = vcombine.low %v839_v57, %v843_v10  ;;  %v8440_v51 = vcombine.high %v846_v61, %v850_v62  ;;  %v899_v57 = vld [vmem:[#allocation3 + $0x1738] sm:$0xff]  ;;  %v906_v61 = vld [vmem:[#allocation3 + $0x1770] sm:$0xff] }
 0x363   :  { %7150 = vmatprep.subr.bf16.mxu0 %v8384_v6  ;;  %7478 = vmatprep.subr.bf16.mxu1 %v8386_v7  ;;  %v8442_v6 = vcombine.high %v847_v1, %v851_v3  ;;  %v854_v7 = vld [vmem:[#allocation3 + $0x15d0] sm:$0xff]  ;;  %v903_v62 = vld [vmem:[#allocation3 + $0x1758] sm:$0xff] }
 0x364   :  { %v8447_v29 = vcombine.low %v854_v7, %v858_v8 }
 0x366   :  { %7151 = vmatpush1.bf16.msra.mxu0 %v8383_v17  ;;  %7479 = vmatpush1.bf16.msra.mxu1 %v8385_v59  ;;  %v8441_v17 = vcombine.low %v847_v1, %v851_v3  ;;  %v8448_v59 = vcombine.high %v854_v7, %v858_v8  ;;  %v907_v1 = vld [vmem:[#allocation3 + $0x1778] sm:$0xff]  ;;  %v914_v7 = vld [vmem:[#allocation3 + $0x17b0] sm:$0xff] }
 0x367   :  { %7161 = vmatprep.subr.bf16.mxu0 %v8392_v19  ;;  %7489 = vmatprep.subr.bf16.mxu1 %v8394_v20  ;;  %v8450_v19 = vcombine.high %v855_v11, %v859_v18  ;;  %v862_v20 = vld [vmem:[#allocation3 + $0x1610] sm:$0xff]  ;;  %v911_v8 = vld [vmem:[#allocation3 + $0x1798] sm:$0xff] }
 0x369   :  { %7153 = vmatmul.mubr.bf16.vlgmr.msra.gmra.mrb[4].mxu0 %v9095_v0  ;;  %7481 = vmatmul.mubr.bf16.vlgmr.msra.gmra.mrb[4].mxu1 %v9095_v0  ;;  %v8409_v0 = vcombine.low %v815_v33, %v819_v35  ;;  %v875_v33 = vld [vmem:[#allocation3 + $0x1678] sm:$0xff]  ;;  %v8455_v35 = vcombine.low %v862_v20, %v866_v25 }
 0x36a   :  { %7162 = vmatpush1.bf16.msra.mxu0 %v8391_v24  ;;  %7490 = vmatpush1.bf16.msra.mxu1 %v8393_v27  ;;  %v8449_v24 = vcombine.low %v855_v11, %v859_v18  ;;  %v8456_v27 = vcombine.high %v862_v20, %v866_v25  ;;  %v915_v11 = vld [vmem:[#allocation3 + $0x17b8] sm:$0xff]  ;;  %v922_v20 = vld [vmem:[#allocation3 + $0x17f0] sm:$0xff] }
 0x36b   :  { %7163 = vmatprep.subr.bf16.mxu0 %v8400_v2  ;;  %7491 = vmatprep.subr.bf16.mxu1 %v8402_v31  ;;  %v8458_v2 = vcombine.high %v863_v21, %v867_v22  ;;  %v870_v31 = vld [vmem:[#allocation3 + $0x1650] sm:$0xff]  ;;  %v919_v25 = vld [vmem:[#allocation3 + $0x17d8] sm:$0xff] }
 0x36c   :  { %7193 = vmatprep.mubr.bf16.mxu0 %v9097_v13  ;;  %7521 = vmatprep.mubr.bf16.mxu1 %v9097_v13  ;;  %v8426_v13 = vcombine.high %v831_v48, %v835_v49  ;;  %v8463_v55 = vcombine.low %v870_v31, %v874_v30  ;;  %v891_v48 = vld [vmem:[#allocation3 + $0x16f8] sm:$0xff] }
 0x36e   :  { %7164 = vmatpush1.bf16.msra.mxu0 %v8399_v34  ;;  %7492 = vmatpush1.bf16.msra.mxu1 %v8401_v39  ;;  %v8457_v34 = vcombine.low %v863_v21, %v867_v22  ;;  %v8464_v39 = vcombine.high %v870_v31, %v874_v30  ;;  %v923_v21 = vld [vmem:[#allocation3 + $0x17f8] sm:$0xff]  ;;  %v930_v31 = vld [vmem:[#allocation3 + $0x1830] sm:$0xff] }
 0x36f   :  { %7165 = vmatprep.subr.bf16.mxu0 %v8408_v36  ;;  %7493 = vmatprep.subr.bf16.mxu1 %v8410_v63  ;;  %v8466_v36 = vcombine.high %v871_v32, %v875_v33  ;;  %v878_v63 = vld [vmem:[#allocation3 + $0x1690] sm:$0xff]  ;;  %v927_v30 = vld [vmem:[#allocation3 + $0x1818] sm:$0xff] }
 0x370   :  { %v8471_v49 = vcombine.low %v878_v63, %v882_v37 }
 0x372   :  { %7166 = vmatpush1.bf16.msra.mxu0 %v8407_v28  ;;  %7494 = vmatpush1.bf16.msra.mxu1 %v8409_v0  ;;  %v8465_v28 = vcombine.low %v871_v32, %v875_v33  ;;  %v8472_v0 = vcombine.high %v878_v63, %v882_v37  ;;  %v931_v32 = vld [vmem:[#allocation3 + $0x1838] sm:$0xff]  ;;  %v938_v63 = vld [vmem:[#allocation3 + $0x1870] sm:$0xff] }
 0x373   :  { %7167 = vmatprep.subr.bf16.mxu0 %v8416_v43  ;;  %7495 = vmatprep.subr.bf16.mxu1 %v8418_v45  ;;  %v8474_v43 = vcombine.high %v879_v12, %v883_v40  ;;  %v886_v45 = vld [vmem:[#allocation3 + $0x16d0] sm:$0xff]  ;;  %v935_v37 = vld [vmem:[#allocation3 + $0x1858] sm:$0xff] }
 0x374   :  { %v8479_v10 = vcombine.low %v886_v45, %v890_v46 }
 0x376   :  { %7168 = vmatpush1.bf16.msra.mxu0 %v8415_v50  ;;  %7496 = vmatpush1.bf16.msra.mxu1 %v8417_v16  ;;  %v8473_v50 = vcombine.low %v879_v12, %v883_v40  ;;  %v8480_v16 = vcombine.high %v886_v45, %v890_v46  ;;  %v939_v12 = vld [vmem:[#allocation3 + $0x1878] sm:$0xff]  ;;  %v946_v45 = vld [vmem:[#allocation3 + $0x18b0] sm:$0xff] }
 0x377   :  { %7169 = vmatprep.subr.bf16.mxu0 %v8424_v9  ;;  %7497 = vmatprep.subr.bf16.mxu1 %v8426_v13  ;;  %v8482_v9 = vcombine.high %v887_v47, %v891_v48  ;;  %v894_v13 = vld [vmem:[#allocation3 + $0x1710] sm:$0xff]  ;;  %v943_v46 = vld [vmem:[#allocation3 + $0x1898] sm:$0xff] }
 0x378   :  { %v8487_v3 = vcombine.low %v894_v13, %v898_v56 }
 0x37a   :  { %7170 = vmatpush1.bf16.msra.mxu0 %v8423_v41  ;;  %7498 = vmatpush1.bf16.msra.mxu1 %v8425_v58  ;;  %v8481_v41 = vcombine.low %v887_v47, %v891_v48  ;;  %v8488_v58 = vcombine.high %v894_v13, %v898_v56  ;;  %v947_v47 = vld [vmem:[#allocation3 + $0x18b8] sm:$0xff]  ;;  %v954_v13 = vld [vmem:[#allocation3 + $0x18f0] sm:$0xff] }
 0x37b   :  { %7171 = vmatprep.subr.bf16.mxu0 %v8432_v23  ;;  %7499 = vmatprep.subr.bf16.mxu1 %v8434_v60  ;;  %v8490_v23 = vcombine.high %v895_v54, %v899_v57  ;;  %v902_v60 = vld [vmem:[#allocation3 + $0x1750] sm:$0xff]  ;;  %v951_v56 = vld [vmem:[#allocation3 + $0x18d8] sm:$0xff] }
 0x37c   :  { %v8495_v18 = vcombine.low %v902_v60, %v906_v61 }
 0x37e   :  { %7172 = vmatpush1.bf16.msra.mxu0 %v8431_v4  ;;  %7500 = vmatpush1.bf16.msra.mxu1 %v8433_v5  ;;  %v8489_v4 = vcombine.low %v895_v54, %v899_v57  ;;  %v8496_v5 = vcombine.high %v902_v60, %v906_v61  ;;  %v955_v54 = vld [vmem:[#allocation3 + $0x18f8] sm:$0xff] }
 0x37f   :  { %7173 = vmatprep.subr.bf16.mxu0 %v8440_v51  ;;  %7501 = vmatprep.subr.bf16.mxu1 %v8442_v6  ;;  %v8498_v51 = vcombine.high %v903_v62, %v907_v1  ;;  %v910_v6 = vld [vmem:[#allocation3 + $0x1790] sm:$0xff]  ;;  %v959_v60 = vld [vmem:[#allocation3 + $0x1918] sm:$0xff] }
 0x380   :  { %v8503_v22 = vcombine.low %v910_v6, %v914_v7  ;;  %v963_v61 = vld [vmem:[#allocation3 + $0x1938] sm:$0xff] }
 0x382   :  { %7174 = vmatpush1.bf16.msra.mxu0 %v8439_v15  ;;  %7502 = vmatpush1.bf16.msra.mxu1 %v8441_v17  ;;  %v8497_v15 = vcombine.low %v903_v62, %v907_v1  ;;  %v8504_v17 = vcombine.high %v910_v6, %v914_v7  ;;  %v8545_v1 = vcombine.low %v951_v56, %v955_v54  ;;  %v971_v6 = vld [vmem:[#allocation3 + $0x1978] sm:$0xff] }
 0x383   :  { %7175 = vmatprep.subr.bf16.mxu0 %v8448_v59  ;;  %7503 = vmatprep.subr.bf16.mxu1 %v8450_v19  ;;  %v8506_v59 = vcombine.high %v911_v8, %v915_v11  ;;  %v918_v19 = vld [vmem:[#allocation3 + $0x17d0] sm:$0xff] }
 0x384   :  { %v8511_v33 = vcombine.low %v918_v19, %v922_v20 }
 0x386   :  { %7176 = vmatpush1.bf16.msra.mxu0 %v8447_v29  ;;  %7504 = vmatpush1.bf16.msra.mxu1 %v8449_v24  ;;  %v8505_v29 = vcombine.low %v911_v8, %v915_v11  ;;  %v8512_v24 = vcombine.high %v918_v19, %v922_v20  ;;  %v8553_v8 = vcombine.low %v959_v60, %v963_v61  ;;  %v979_v19 = vld [vmem:[#allocation3 + $0x19b8] sm:$0xff] }
 0x387   :  { %7177 = vmatprep.subr.bf16.mxu0 %v8456_v27  ;;  %7505 = vmatprep.subr.bf16.mxu1 %v8458_v2  ;;  %v8514_v27 = vcombine.high %v919_v25, %v923_v21  ;;  %v926_v2 = vld [vmem:[#allocation3 + $0x1810] sm:$0xff] }
 0x388   :  { %v8519_v40 = vcombine.low %v926_v2, %v930_v31 }
 0x38a   :  { %7178 = vmatpush1.bf16.msra.mxu0 %v8455_v35  ;;  %7506 = vmatpush1.bf16.msra.mxu1 %v8457_v34  ;;  %v8513_v35 = vcombine.low %v919_v25, %v923_v21  ;;  %v8520_v34 = vcombine.high %v926_v2, %v930_v31  ;;  %v987_v2 = vld [vmem:[#allocation3 + $0x19f8] sm:$0xff] }
 0x38b   :  { %7179 = vmatprep.subr.bf16.mxu0 %v8464_v39  ;;  %7507 = vmatprep.subr.bf16.mxu1 %v8466_v36  ;;  %v8522_v39 = vcombine.high %v927_v30, %v931_v32  ;;  %v934_v36 = vld [vmem:[#allocation3 + $0x1850] sm:$0xff] }
 0x38c   :  { %v8527_v48 = vcombine.low %v934_v36, %v938_v63 }
 0x38e   :  { %7180 = vmatpush1.bf16.msra.mxu0 %v8463_v55  ;;  %7508 = vmatpush1.bf16.msra.mxu1 %v8465_v28  ;;  %v8521_v55 = vcombine.low %v927_v30, %v931_v32  ;;  %v8528_v28 = vcombine.high %v934_v36, %v938_v63  ;;  %v995_v36 = vld [vmem:[#allocation3 + $0x1a38] sm:$0xff] }
 0x38f   :  { %7181 = vmatprep.subr.bf16.mxu0 %v8472_v0  ;;  %7509 = vmatprep.subr.bf16.mxu1 %v8474_v43  ;;  %v8530_v0 = vcombine.high %v935_v37, %v939_v12  ;;  %v942_v43 = vld [vmem:[#allocation3 + $0x1890] sm:$0xff] }
 0x390   :  { %v8535_v57 = vcombine.low %v942_v43, %v946_v45 }
 0x392   :  { %7182 = vmatpush1.bf16.msra.mxu0 %v8471_v49  ;;  %7510 = vmatpush1.bf16.msra.mxu1 %v8473_v50  ;;  %v8529_v49 = vcombine.low %v935_v37, %v939_v12  ;;  %v8536_v50 = vcombine.high %v942_v43, %v946_v45  ;;  %v1003_v43 = vld [vmem:[#allocation3 + $0x1a78] sm:$0xff] }
 0x393   :  { %7183 = vmatprep.subr.bf16.mxu0 %v8480_v16  ;;  %7511 = vmatprep.subr.bf16.mxu1 %v8482_v9  ;;  %v8538_v16 = vcombine.high %v943_v46, %v947_v47  ;;  %v950_v9 = vld [vmem:[#allocation3 + $0x18d0] sm:$0xff] }
 0x394   :  { %v8543_v62 = vcombine.low %v950_v9, %v954_v13 }
 0x396   :  { %7184 = vmatpush1.bf16.msra.mxu0 %v8479_v10  ;;  %7512 = vmatpush1.bf16.msra.mxu1 %v8481_v41  ;;  %v8544_v10 = vcombine.high %v950_v9, %v954_v13  ;;  %v8546_v41 = vcombine.high %v951_v56, %v955_v54  ;;  %v1011_v9 = vld [vmem:[#allocation3 + $0x1ab8] sm:$0xff] }
 0x397   :  { %7185 = vmatprep.subr.bf16.mxu0 %v8488_v58  ;;  %7513 = vmatprep.subr.bf16.mxu1 %v8490_v23  ;;  %v958_v58 = vld [vmem:[#allocation3 + $0x1910] sm:$0xff] }
 0x398   :  { %v962_v23 = vld [vmem:[#allocation3 + $0x1930] sm:$0xff] }
 0x399   :  { %v8551_v7 = vcombine.low %v958_v58, %v962_v23 }
 0x39a   :  { %7186 = vmatpush1.bf16.msra.mxu0 %v8487_v3  ;;  %7514 = vmatpush1.bf16.msra.mxu1 %v8489_v4  ;;  %v8552_v3 = vcombine.high %v958_v58, %v962_v23  ;;  %v966_v4 = vld [vmem:[#allocation3 + $0x1950] sm:$0xff]  ;;  %v1019_v58 = vld [vmem:[#allocation3 + $0x1af8] sm:$0xff] }
 0x39b   :  { %7187 = vmatprep.subr.bf16.mxu0 %v8496_v5  ;;  %7515 = vmatprep.subr.bf16.mxu1 %v8498_v51  ;;  %v970_v5 = vld [vmem:[#allocation3 + $0x1970] sm:$0xff]  ;;  %v967_v51 = vld [vmem:[#allocation3 + $0x1958] sm:$0xff] }
 0x39c   :  { %v8560_v11 = vcombine.high %v966_v4, %v970_v5  ;;  %v8559_v20 = vcombine.low %v966_v4, %v970_v5  ;;  %v8561_v25 = vcombine.low %v967_v51, %v971_v6  ;;  %v1027_v4 = vld [vmem:[#allocation3 + $0x1b38] sm:$0xff] }
 0x39e   :  { %7188 = vmatpush1.bf16.msra.mxu0 %v8495_v18  ;;  %7516 = vmatpush1.bf16.msra.mxu1 %v8497_v15  ;;  %v8562_v18 = vcombine.high %v967_v51, %v971_v6  ;;  %v974_v15 = vld [vmem:[#allocation3 + $0x1990] sm:$0xff] }
 0x39f   :  { %7189 = vmatprep.subr.bf16.mxu0 %v8504_v17  ;;  %7517 = vmatprep.subr.bf16.mxu1 %v8506_v59  ;;  %v978_v17 = vld [vmem:[#allocation3 + $0x19b0] sm:$0xff]  ;;  %v975_v59 = vld [vmem:[#allocation3 + $0x1998] sm:$0xff] }
 0x3a0   :  { %v8568_v21 = vcombine.high %v974_v15, %v978_v17  ;;  %v8567_v31 = vcombine.low %v974_v15, %v978_v17  ;;  %v8569_v30 = vcombine.low %v975_v59, %v979_v19  ;;  %v1035_v15 = vld [vmem:[#allocation3 + $0x1b78] sm:$0xff] }
 0x3a2   :  { %7190 = vmatpush1.bf16.msra.mxu0 %v8503_v22  ;;  %7518 = vmatpush1.bf16.msra.mxu1 %v8505_v29  ;;  %v8570_v22 = vcombine.high %v975_v59, %v979_v19  ;;  %v982_v29 = vld [vmem:[#allocation3 + $0x19d0] sm:$0xff] }
 0x3a3   :  { %7191 = vmatprep.subr.bf16.mxu0 %v8512_v24  ;;  %7519 = vmatprep.subr.bf16.mxu1 %v8514_v27  ;;  %v986_v24 = vld [vmem:[#allocation3 + $0x19f0] sm:$0xff]  ;;  %v983_v27 = vld [vmem:[#allocation3 + $0x19d8] sm:$0xff] }
 0x3a4   :  { %v8576_v32 = vcombine.high %v982_v29, %v986_v24  ;;  %v8575_v63 = vcombine.low %v982_v29, %v986_v24  ;;  %v8577_v37 = vcombine.low %v983_v27, %v987_v2  ;;  %v1043_v29 = vld [vmem:[#allocation3 + $0x1bb8] sm:$0xff] }
 0x3a6   :  { %7192 = vmatpush1.bf16.msra.mxu0 %v8511_v33  ;;  %7520 = vmatpush1.bf16.msra.mxu1 %v8513_v35  ;;  %v8578_v33 = vcombine.high %v983_v27, %v987_v2  ;;  %v990_v35 = vld [vmem:[#allocation3 + $0x1a10] sm:$0xff] }
 0x3a7   :  { %7202 = vmatprep.subr.bf16.mxu0 %v8520_v34  ;;  %7530 = vmatprep.subr.bf16.mxu1 %v8522_v39  ;;  %v994_v34 = vld [vmem:[#allocation3 + $0x1a30] sm:$0xff]  ;;  %v991_v39 = vld [vmem:[#allocation3 + $0x1a18] sm:$0xff] }
 0x3a8   :  { %v8584_v12 = vcombine.high %v990_v35, %v994_v34  ;;  %v8583_v45 = vcombine.low %v990_v35, %v994_v34  ;;  %v1051_v35 = vld [vmem:[#allocation3 + $0x1bf8] sm:$0xff] }
 0x3a9   :  { %7194 = vmatmul.mubr.bf16.vlgmr.msra.gmra.mrb[4].mxu0 %v9116_v42  ;;  %7522 = vmatmul.mubr.bf16.vlgmr.msra.gmra.mrb[4].mxu1 %v9116_v42  ;;  %v8537_v42 = vcombine.low %v943_v46, %v947_v47  ;;  %v8585_v46 = vcombine.low %v991_v39, %v995_v36 }
 0x3aa   :  { %7203 = vmatpush1.bf16.msra.mxu0 %v8519_v40  ;;  %7531 = vmatpush1.bf16.msra.mxu1 %v8521_v55  ;;  %v8586_v40 = vcombine.high %v991_v39, %v995_v36  ;;  %v998_v55 = vld [vmem:[#allocation3 + $0x1a50] sm:$0xff] }
 0x3ab   :  { %7204 = vmatprep.subr.bf16.mxu0 %v8528_v28  ;;  %7532 = vmatprep.subr.bf16.mxu1 %v8530_v0  ;;  %v1002_v28 = vld [vmem:[#allocation3 + $0x1a70] sm:$0xff]  ;;  %v999_v0 = vld [vmem:[#allocation3 + $0x1a58] sm:$0xff] }
 0x3ac   :  { %7234 = vmatprep.mubr.bf16.mxu0 %v9118_v52  ;;  %7562 = vmatprep.mubr.bf16.mxu1 %v9118_v52  ;;  %v8554_v52 = vcombine.high %v959_v60, %v963_v61  ;;  %v8592_v47 = vcombine.high %v998_v55, %v1002_v28  ;;  %v8591_v13 = vcombine.low %v998_v55, %v1002_v28  ;;  %v1059_v55 = vld [vmem:[#allocation3 + $0x1c38] sm:$0xff] }
 0x3ad   :  { %v8593_v56 = vcombine.low %v999_v0, %v1003_v43 }
 0x3ae   :  { %7205 = vmatpush1.bf16.msra.mxu0 %v8527_v48  ;;  %7533 = vmatpush1.bf16.msra.mxu1 %v8529_v49  ;;  %v8594_v48 = vcombine.high %v999_v0, %v1003_v43  ;;  %v1006_v49 = vld [vmem:[#allocation3 + $0x1a90] sm:$0xff] }
 0x3af   :  { %7206 = vmatprep.subr.bf16.mxu0 %v8536_v50  ;;  %7534 = vmatprep.subr.bf16.mxu1 %v8538_v16  ;;  %v1010_v50 = vld [vmem:[#allocation3 + $0x1ab0] sm:$0xff]  ;;  %v1007_v16 = vld [vmem:[#allocation3 + $0x1a98] sm:$0xff] }
 0x3b0   :  { %v8600_v54 = vcombine.high %v1006_v49, %v1010_v50  ;;  %v8599_v23 = vcombine.low %v1006_v49, %v1010_v50  ;;  %v8601_v60 = vcombine.low %v1007_v16, %v1011_v9  ;;  %v1067_v49 = vld [vmem:[#allocation3 + $0x1c78] sm:$0xff] }
 0x3b2   :  { %7207 = vmatpush1.bf16.msra.mxu0 %v8535_v57  ;;  %7535 = vmatpush1.bf16.msra.mxu1 %v8537_v42  ;;  %v8602_v57 = vcombine.high %v1007_v16, %v1011_v9  ;;  %v1014_v42 = vld [vmem:[#allocation3 + $0x1ad0] sm:$0xff] }
 0x3b3   :  { %7208 = vmatprep.subr.bf16.mxu0 %v8544_v10  ;;  %7536 = vmatprep.subr.bf16.mxu1 %v8546_v41  ;;  %v1018_v10 = vld [vmem:[#allocation3 + $0x1af0] sm:$0xff]  ;;  %v1015_v41 = vld [vmem:[#allocation3 + $0x1ad8] sm:$0xff] }
 0x3b4   :  { %v8608_v61 = vcombine.high %v1014_v42, %v1018_v10  ;;  %v8607_v5 = vcombine.low %v1014_v42, %v1018_v10  ;;  %v8609_v51 = vcombine.low %v1015_v41, %v1019_v58  ;;  %v1075_v42 = vld [vmem:[#allocation3 + $0x1cb8] sm:$0xff] }
 0x3b6   :  { %7209 = vmatpush1.bf16.msra.mxu0 %v8543_v62  ;;  %7537 = vmatpush1.bf16.msra.mxu1 %v8545_v1  ;;  %v8610_v62 = vcombine.high %v1015_v41, %v1019_v58  ;;  %v1022_v1 = vld [vmem:[#allocation3 + $0x1b10] sm:$0xff] }
 0x3b7   :  { %7210 = vmatprep.subr.bf16.mxu0 %v8552_v3  ;;  %7538 = vmatprep.subr.bf16.mxu1 %v8554_v52  ;;  %v1026_v3 = vld [vmem:[#allocation3 + $0x1b30] sm:$0xff]  ;;  %v1023_v52 = vld [vmem:[#allocation3 + $0x1b18] sm:$0xff] }
 0x3b8   :  { %v8616_v6 = vcombine.high %v1022_v1, %v1026_v3  ;;  %v8615_v17 = vcombine.low %v1022_v1, %v1026_v3  ;;  %v8617_v59 = vcombine.low %v1023_v52, %v1027_v4  ;;  %v1083_v1 = vld [vmem:[#allocation3 + $0x1cf8] sm:$0xff] }
 0x3ba   :  { %7211 = vmatpush1.bf16.msra.mxu0 %v8551_v7  ;;  %7539 = vmatpush1.bf16.msra.mxu1 %v8553_v8  ;;  %v8618_v7 = vcombine.high %v1023_v52, %v1027_v4  ;;  %v1030_v8 = vld [vmem:[#allocation3 + $0x1b50] sm:$0xff] }
 0x3bb   :  { %7212 = vmatprep.subr.bf16.mxu0 %v8560_v11  ;;  %7540 = vmatprep.subr.bf16.mxu1 %v8562_v18  ;;  %v1034_v11 = vld [vmem:[#allocation3 + $0x1b70] sm:$0xff]  ;;  %v1031_v18 = vld [vmem:[#allocation3 + $0x1b58] sm:$0xff] }
 0x3bc   :  { %v8624_v19 = vcombine.high %v1030_v8, %v1034_v11  ;;  %v8623_v24 = vcombine.low %v1030_v8, %v1034_v11  ;;  %v8625_v27 = vcombine.low %v1031_v18, %v1035_v15 }
 0x3be   :  { %7213 = vmatpush1.bf16.msra.mxu0 %v8559_v20  ;;  %7541 = vmatpush1.bf16.msra.mxu1 %v8561_v25  ;;  %v8626_v20 = vcombine.high %v1031_v18, %v1035_v15  ;;  %v1038_v25 = vld [vmem:[#allocation3 + $0x1b90] sm:$0xff] }
 0x3bf   :  { %7214 = vmatprep.subr.bf16.mxu0 %v8568_v21  ;;  %7542 = vmatprep.subr.bf16.mxu1 %v8570_v22  ;;  %v1042_v21 = vld [vmem:[#allocation3 + $0x1bb0] sm:$0xff]  ;;  %v1039_v22 = vld [vmem:[#allocation3 + $0x1b98] sm:$0xff] }
 0x3c0   :  { %v8632_v2 = vcombine.high %v1038_v25, %v1042_v21  ;;  %v8631_v34 = vcombine.low %v1038_v25, %v1042_v21  ;;  %v8633_v39 = vcombine.low %v1039_v22, %v1043_v29  ;;  %v1094_v15 = vld [vmem:[#allocation3 + $0x1d50] sm:$0xff] }
 0x3c2   :  { %7215 = vmatpush1.bf16.msra.mxu0 %v8567_v31  ;;  %7543 = vmatpush1.bf16.msra.mxu1 %v8569_v30  ;;  %v8634_v31 = vcombine.high %v1039_v22, %v1043_v29  ;;  %v1046_v30 = vld [vmem:[#allocation3 + $0x1bd0] sm:$0xff] }
 0x3c3   :  { %7216 = vmatprep.subr.bf16.mxu0 %v8576_v32  ;;  %7544 = vmatprep.subr.bf16.mxu1 %v8578_v33  ;;  %v1050_v32 = vld [vmem:[#allocation3 + $0x1bf0] sm:$0xff]  ;;  %v1047_v33 = vld [vmem:[#allocation3 + $0x1bd8] sm:$0xff] }
 0x3c4   :  { %v8640_v36 = vcombine.high %v1046_v30, %v1050_v32  ;;  %v8639_v28 = vcombine.low %v1046_v30, %v1050_v32  ;;  %v8641_v0 = vcombine.low %v1047_v33, %v1051_v35  ;;  %v1102_v29 = vld [vmem:[#allocation3 + $0x1d90] sm:$0xff] }
 0x3c6   :  { %7217 = vmatpush1.bf16.msra.mxu0 %v8575_v63  ;;  %7545 = vmatpush1.bf16.msra.mxu1 %v8577_v37  ;;  %v8642_v63 = vcombine.high %v1047_v33, %v1051_v35  ;;  %v1054_v37 = vld [vmem:[#allocation3 + $0x1c10] sm:$0xff] }
 0x3c7   :  { %7218 = vmatprep.subr.bf16.mxu0 %v8584_v12  ;;  %7546 = vmatprep.subr.bf16.mxu1 %v8586_v40  ;;  %v1058_v12 = vld [vmem:[#allocation3 + $0x1c30] sm:$0xff]  ;;  %v1055_v40 = vld [vmem:[#allocation3 + $0x1c18] sm:$0xff] }
 0x3c8   :  { %v8648_v43 = vcombine.high %v1054_v37, %v1058_v12  ;;  %v8647_v50 = vcombine.low %v1054_v37, %v1058_v12  ;;  %v8649_v16 = vcombine.low %v1055_v40, %v1059_v55  ;;  %v1110_v35 = vld [vmem:[#allocation3 + $0x1dd0] sm:$0xff] }
 0x3ca   :  { %7219 = vmatpush1.bf16.msra.mxu0 %v8583_v45  ;;  %7547 = vmatpush1.bf16.msra.mxu1 %v8585_v46  ;;  %v8650_v45 = vcombine.high %v1055_v40, %v1059_v55  ;;  %v1062_v46 = vld [vmem:[#allocation3 + $0x1c50] sm:$0xff] }
 0x3cb   :  { %7220 = vmatprep.subr.bf16.mxu0 %v8592_v47  ;;  %7548 = vmatprep.subr.bf16.mxu1 %v8594_v48  ;;  %v1066_v47 = vld [vmem:[#allocation3 + $0x1c70] sm:$0xff]  ;;  %v1063_v48 = vld [vmem:[#allocation3 + $0x1c58] sm:$0xff] }
 0x3cc   :  { %v8656_v9 = vcombine.high %v1062_v46, %v1066_v47  ;;  %v8655_v10 = vcombine.low %v1062_v46, %v1066_v47  ;;  %v8657_v41 = vcombine.low %v1063_v48, %v1067_v49  ;;  %v1118_v55 = vld [vmem:[#allocation3 + $0x1e10] sm:$0xff] }
 0x3ce   :  { %7221 = vmatpush1.bf16.msra.mxu0 %v8591_v13  ;;  %7549 = vmatpush1.bf16.msra.mxu1 %v8593_v56  ;;  %v8658_v13 = vcombine.high %v1063_v48, %v1067_v49  ;;  %v1070_v56 = vld [vmem:[#allocation3 + $0x1c90] sm:$0xff] }
 0x3cf   :  { %7222 = vmatprep.subr.bf16.mxu0 %v8600_v54  ;;  %7550 = vmatprep.subr.bf16.mxu1 %v8602_v57  ;;  %v1074_v54 = vld [vmem:[#allocation3 + $0x1cb0] sm:$0xff]  ;;  %v1071_v57 = vld [vmem:[#allocation3 + $0x1c98] sm:$0xff] }
 0x3d0   :  { %v8664_v58 = vcombine.high %v1070_v56, %v1074_v54  ;;  %v8663_v3 = vcombine.low %v1070_v56, %v1074_v54  ;;  %v1126_v49 = vld [vmem:[#allocation3 + $0x1e50] sm:$0xff] }
 0x3d2   :  { %7223 = vmatpush1.bf16.msra.mxu0 %v8599_v23  ;;  %7551 = vmatpush1.bf16.msra.mxu1 %v8601_v60  ;;  %v8666_v23 = vcombine.high %v1071_v57, %v1075_v42  ;;  %v1078_v60 = vld [vmem:[#allocation3 + $0x1cd0] sm:$0xff] }
 0x3d3   :  { %7224 = vmatprep.subr.bf16.mxu0 %v8608_v61  ;;  %7552 = vmatprep.subr.bf16.mxu1 %v8610_v62  ;;  %v1082_v61 = vld [vmem:[#allocation3 + $0x1cf0] sm:$0xff]  ;;  %v1079_v62 = vld [vmem:[#allocation3 + $0x1cd8] sm:$0xff] }
 0x3d4   :  { %v8672_v52 = vcombine.high %v1078_v60, %v1082_v61  ;;  %v8674_v4 = vcombine.high %v1079_v62, %v1083_v1  ;;  %v8671_v8 = vcombine.low %v1078_v60, %v1082_v61  ;;  %v8673_v11 = vcombine.low %v1079_v62, %v1083_v1  ;;  %v1142_v1 = vld [vmem:[#allocation3 + $0x1ed0] sm:$0xff] }
 0x3d6   :  { %7225 = vmatpush1.bf16.msra.mxu0 %v8607_v5  ;;  %7553 = vmatpush1.bf16.msra.mxu1 %v8609_v51  ;;  %v1086_v5 = vld [vmem:[#allocation3 + $0x1d10] sm:$0xff] }
 0x3d7   :  { %7226 = vmatprep.subr.bf16.mxu0 %v8616_v6  ;;  %7554 = vmatprep.subr.bf16.mxu1 %v8618_v7  ;;  %v1090_v51 = vld [vmem:[#allocation3 + $0x1d30] sm:$0xff]  ;;  %v1087_v6 = vld [vmem:[#allocation3 + $0x1d18] sm:$0xff] }
 0x3d8   :  { %v1091_v7 = vld [vmem:[#allocation3 + $0x1d38] sm:$0xff]  ;;  %v8680_v18 = vcombine.high %v1086_v5, %v1090_v51 }
 0x3d9   :  { %v8681_v25 = vcombine.low %v1087_v6, %v1091_v7 }
 0x3da   :  { %7227 = vmatpush1.bf16.msra.mxu0 %v8615_v17  ;;  %7555 = vmatpush1.bf16.msra.mxu1 %v8617_v59  ;;  %v1098_v17 = vld [vmem:[#allocation3 + $0x1d70] sm:$0xff]  ;;  %v1095_v59 = vld [vmem:[#allocation3 + $0x1d58] sm:$0xff] }
 0x3db   :  { %7228 = vmatprep.subr.bf16.mxu0 %v8624_v19  ;;  %7556 = vmatprep.subr.bf16.mxu1 %v8626_v20  ;;  %v1099_v19 = vld [vmem:[#allocation3 + $0x1d78] sm:$0xff]  ;;  %v8679_v20 = vcombine.low %v1086_v5, %v1090_v51  ;;  %v8688_v21 = vcombine.high %v1094_v15, %v1098_v17 }
 0x3dc   :  { %v8690_v22 = vcombine.high %v1095_v59, %v1099_v19  ;;  %v8689_v30 = vcombine.low %v1095_v59, %v1099_v19  ;;  %v1158_v19 = vld [vmem:[#allocation3 + $0x1f50] sm:$0xff] }
 0x3de   :  { %7229 = vmatpush1.bf16.msra.mxu0 %v8623_v24  ;;  %7557 = vmatpush1.bf16.msra.mxu1 %v8625_v27  ;;  %v1106_v24 = vld [vmem:[#allocation3 + $0x1db0] sm:$0xff]  ;;  %v1103_v27 = vld [vmem:[#allocation3 + $0x1d98] sm:$0xff] }
 0x3df   :  { %7230 = vmatprep.subr.bf16.mxu0 %v8632_v2  ;;  %7558 = vmatprep.subr.bf16.mxu1 %v8634_v31  ;;  %v1107_v2 = vld [vmem:[#allocation3 + $0x1db8] sm:$0xff]  ;;  %v8687_v31 = vcombine.low %v1094_v15, %v1098_v17  ;;  %v8696_v32 = vcombine.high %v1102_v29, %v1106_v24 }
 0x3e0   :  { %v8698_v33 = vcombine.high %v1103_v27, %v1107_v2  ;;  %v8697_v37 = vcombine.low %v1103_v27, %v1107_v2  ;;  %v1166_v2 = vld [vmem:[#allocation3 + $0x1f90] sm:$0xff] }
 0x3e2   :  { %7231 = vmatpush1.bf16.msra.mxu0 %v8631_v34  ;;  %7559 = vmatpush1.bf16.msra.mxu1 %v8633_v39  ;;  %v1114_v34 = vld [vmem:[#allocation3 + $0x1df0] sm:$0xff]  ;;  %v1111_v39 = vld [vmem:[#allocation3 + $0x1dd8] sm:$0xff] }
 0x3e3   :  { %7232 = vmatprep.subr.bf16.mxu0 %v8640_v36  ;;  %7560 = vmatprep.subr.bf16.mxu1 %v8642_v63  ;;  %v1115_v36 = vld [vmem:[#allocation3 + $0x1df8] sm:$0xff]  ;;  %v8695_v63 = vcombine.low %v1102_v29, %v1106_v24  ;;  %v8704_v12 = vcombine.high %v1110_v35, %v1114_v34 }
 0x3e4   :  { %v8706_v40 = vcombine.high %v1111_v39, %v1115_v36  ;;  %v8705_v46 = vcombine.low %v1111_v39, %v1115_v36  ;;  %v1174_v36 = vld [vmem:[#allocation3 + $0x1fd0] sm:$0xff] }
 0x3e6   :  { %7233 = vmatpush1.bf16.msra.mxu0 %v8639_v28  ;;  %7561 = vmatpush1.bf16.msra.mxu1 %v8641_v0  ;;  %v1122_v28 = vld [vmem:[#allocation3 + $0x1e30] sm:$0xff]  ;;  %v1119_v0 = vld [vmem:[#allocation3 + $0x1e18] sm:$0xff] }
 0x3e7   :  { %7243 = vmatprep.subr.bf16.mxu0 %v8648_v43  ;;  %7571 = vmatprep.subr.bf16.mxu1 %v8650_v45  ;;  %v1123_v43 = vld [vmem:[#allocation3 + $0x1e38] sm:$0xff]  ;;  %v8703_v45 = vcombine.low %v1110_v35, %v1114_v34  ;;  %v8712_v47 = vcombine.high %v1118_v55, %v1122_v28 }
 0x3e8   :  { %v8714_v48 = vcombine.high %v1119_v0, %v1123_v43  ;;  %v8713_v56 = vcombine.low %v1119_v0, %v1123_v43 }
 0x3e9   :  { %7235 = vmatmul.mubr.bf16.vlgmr.msra.gmra.mrb[4].mxu0 %v9133_v26  ;;  %7563 = vmatmul.mubr.bf16.vlgmr.msra.gmra.mrb[4].mxu1 %v9133_v26  ;;  %v8665_v26 = vcombine.low %v1071_v57, %v1075_v42  ;;  %v1134_v42 = vld [vmem:[#allocation3 + $0x1e90] sm:$0xff] }
 0x3ea   :  { %7244 = vmatpush1.bf16.msra.mxu0 %v8647_v50  ;;  %7572 = vmatpush1.bf16.msra.mxu1 %v8649_v16  ;;  %v1130_v50 = vld [vmem:[#allocation3 + $0x1e70] sm:$0xff]  ;;  %v1127_v16 = vld [vmem:[#allocation3 + $0x1e58] sm:$0xff] }
 0x3eb   :  { %7245 = vmatprep.subr.bf16.mxu0 %v8656_v9  ;;  %7573 = vmatprep.subr.bf16.mxu1 %v8658_v13  ;;  %v1131_v9 = vld [vmem:[#allocation3 + $0x1e78] sm:$0xff]  ;;  %v8711_v13 = vcombine.low %v1118_v55, %v1122_v28  ;;  %v8720_v54 = vcombine.high %v1126_v49, %v1130_v50 }
 0x3ec   :  { %7275 = vmatprep.mubr.bf16.mxu0 %v9135_v38  ;;  %7603 = vmatprep.mubr.bf16.mxu1 %v9135_v38  ;;  %v8682_v38 = vcombine.high %v1087_v6, %v1091_v7  ;;  %v8722_v57 = vcombine.high %v1127_v16, %v1131_v9  ;;  %v8721_v60 = vcombine.low %v1127_v16, %v1131_v9  ;;  %v1150_v7 = vld [vmem:[#allocation3 + $0x1f10] sm:$0xff] }
 0x3ee   :  { %7246 = vmatpush1.bf16.msra.mxu0 %v8655_v10  ;;  %7574 = vmatpush1.bf16.msra.mxu1 %v8657_v41  ;;  %v1138_v10 = vld [vmem:[#allocation3 + $0x1eb0] sm:$0xff]  ;;  %v1135_v41 = vld [vmem:[#allocation3 + $0x1e98] sm:$0xff] }
 0x3ef   :  { %7247 = vmatprep.subr.bf16.mxu0 %v8664_v58  ;;  %7575 = vmatprep.subr.bf16.mxu1 %v8666_v23  ;;  %v1139_v58 = vld [vmem:[#allocation3 + $0x1eb8] sm:$0xff]  ;;  %v8719_v23 = vcombine.low %v1126_v49, %v1130_v50  ;;  %v8728_v61 = vcombine.high %v1134_v42, %v1138_v10  ;;  %v7697_v49 = vsub.s32 7, %v8990_v44  ;;  %v8892_v50 = vld [vmem:[#allocation5] sm:$0xff] }
 0x3f0   :  { %v8730_v62 = vcombine.high %v1135_v41, %v1139_v58  ;;  %v8729_v5 = vcombine.low %v1135_v41, %v1139_v58 }
 0x3f2   :  { %7248 = vmatpush1.bf16.msra.mxu0 %v8663_v3  ;;  %7576 = vmatpush1.bf16.msra.mxu1 %v8665_v26  ;;  %v1146_v3 = vld [vmem:[#allocation3 + $0x1ef0] sm:$0xff]  ;;  %v1143_v26 = vld [vmem:[#allocation3 + $0x1ed8] sm:$0xff] }
 0x3f3   :  { %7249 = vmatprep.subr.bf16.mxu0 %v8672_v52  ;;  %7577 = vmatprep.subr.bf16.mxu1 %v8674_v4  ;;  %v1147_v52 = vld [vmem:[#allocation3 + $0x1ef8] sm:$0xff]  ;;  %v8727_v4 = vcombine.low %v1134_v42, %v1138_v10  ;;  %v8736_v51 = vcombine.high %v1142_v1, %v1146_v3 }
 0x3f4   :  { %v8738_v6 = vcombine.high %v1143_v26, %v1147_v52  ;;  %v8737_v15 = vcombine.low %v1143_v26, %v1147_v52 }
 0x3f6   :  { %7250 = vmatpush1.bf16.msra.mxu0 %v8671_v8  ;;  %7578 = vmatpush1.bf16.msra.mxu1 %v8673_v11  ;;  %v1154_v8 = vld [vmem:[#allocation3 + $0x1f30] sm:$0xff]  ;;  %v1151_v11 = vld [vmem:[#allocation3 + $0x1f18] sm:$0xff] }
 0x3f7   :  { %7251 = vmatprep.subr.bf16.mxu0 %v8680_v18  ;;  %7579 = vmatprep.subr.bf16.mxu1 %v8682_v38  ;;  %v1155_v18 = vld [vmem:[#allocation3 + $0x1f38] sm:$0xff]  ;;  %v8735_v38 = vcombine.low %v1142_v1, %v1146_v3  ;;  %v8744_v17 = vcombine.high %v1150_v7, %v1154_v8 }
 0x3f8   :  { %v8746_v59 = vcombine.high %v1151_v11, %v1155_v18  ;;  %v8745_v29 = vcombine.low %v1151_v11, %v1155_v18 }
 0x3fa   :  { %7252 = vmatpush1.bf16.msra.mxu0 %v8679_v20  ;;  %7580 = vmatpush1.bf16.msra.mxu1 %v8681_v25  ;;  %v1162_v20 = vld [vmem:[#allocation3 + $0x1f70] sm:$0xff]  ;;  %v1159_v25 = vld [vmem:[#allocation3 + $0x1f58] sm:$0xff] }
 0x3fb   :  { %7253 = vmatprep.subr.bf16.mxu0 %v8688_v21  ;;  %7581 = vmatprep.subr.bf16.mxu1 %v8690_v22  ;;  %v1163_v21 = vld [vmem:[#allocation3 + $0x1f78] sm:$0xff]  ;;  %v8743_v22 = vcombine.low %v1150_v7, %v1154_v8  ;;  %v8752_v24 = vcombine.high %v1158_v19, %v1162_v20 }
 0x3fc   :  { %v8754_v27 = vcombine.high %v1159_v25, %v1163_v21  ;;  %v8753_v35 = vcombine.low %v1159_v25, %v1163_v21 }
 0x3fe   :  { %7254 = vmatpush1.bf16.msra.mxu0 %v8687_v31  ;;  %7582 = vmatpush1.bf16.msra.mxu1 %v8689_v30  ;;  %v1170_v31 = vld [vmem:[#allocation3 + $0x1fb0] sm:$0xff]  ;;  %v1167_v30 = vld [vmem:[#allocation3 + $0x1f98] sm:$0xff] }
 0x3ff   :  { %7255 = vmatprep.subr.bf16.mxu0 %v8696_v32  ;;  %7583 = vmatprep.subr.bf16.mxu1 %v8698_v33  ;;  %v1171_v32 = vld [vmem:[#allocation3 + $0x1fb8] sm:$0xff]  ;;  %v8751_v33 = vcombine.low %v1158_v19, %v1162_v20  ;;  %v8760_v34 = vcombine.high %v1166_v2, %v1170_v31 }
 0x400   :  { %v8762_v39 = vcombine.high %v1167_v30, %v1171_v32  ;;  %v8761_v55 = vcombine.low %v1167_v30, %v1171_v32 }
 0x402   :  { %7256 = vmatpush1.bf16.msra.mxu0 %v8695_v63  ;;  %7584 = vmatpush1.bf16.msra.mxu1 %v8697_v37  ;;  %v1178_v63 = vld [vmem:[#allocation3 + $0x1ff0] sm:$0xff]  ;;  %v1175_v37 = vld [vmem:[#allocation3 + $0x1fd8] sm:$0xff] }
 0x403   :  { %7257 = vmatprep.subr.bf16.mxu0 %v8704_v12  ;;  %7585 = vmatprep.subr.bf16.mxu1 %v8706_v40  ;;  %v1179_v12 = vld [vmem:[#allocation3 + $0x1ff8] sm:$0xff]  ;;  %v8759_v40 = vcombine.low %v1166_v2, %v1170_v31  ;;  %v8768_v28 = vcombine.high %v1174_v36, %v1178_v63  ;;  %v8767_v43 = vcombine.low %v1174_v36, %v1178_v63 }
 0x404   :  { %v8770_v0 = vcombine.high %v1175_v37, %v1179_v12 }
 0x406   :  { %7258 = vmatpush1.bf16.msra.mxu0 %v8703_v45  ;;  %7586 = vmatpush1.bf16.msra.mxu1 %v8705_v46  ;;  %v8769_v45 = vcombine.low %v1175_v37, %v1179_v12  ;;  %v7685_v46 = vsub.s32 4, %v8990_v44 }
 0x407   :  { %7259 = vmatprep.subr.bf16.mxu0 %v8712_v47  ;;  %7587 = vmatprep.subr.bf16.mxu1 %v8714_v48  ;;  %v7689_v47 = vsub.s32 5, %v8990_v44  ;;  %v7693_v48 = vsub.s32 6, %v8990_v44 }
 0x408   :  { %v7686_v16 = vrot.slane %v8892_v50, %v7685_v46 }
 0x409   :  { %v7690_v9 = vrot.slane %v8892_v50, %v7689_v47 }
 0x40a   :  { %7260 = vmatpush1.bf16.msra.mxu0 %v8711_v13  ;;  %7588 = vmatpush1.bf16.msra.mxu1 %v8713_v56  ;;  %v7694_v13 = vrot.slane %v8892_v50, %v7693_v48  ;;  %v7698_v56 = vrot.slane %v8892_v50, %v7697_v49 }
 0x40b   :  { %7261 = vmatprep.subr.bf16.mxu0 %v8720_v54  ;;  %7589 = vmatprep.subr.bf16.mxu1 %v8722_v57  ;;  %v7716_v54 = vcombine.low %v7686_v16, %v7690_v9 }
 0x40c   :  { %v7717_v57 = vcombine.low %v7694_v13, %v7698_v56 }
 0x40e   :  { %7262 = vmatpush1.bf16.msra.mxu0 %v8719_v23  ;;  %7590 = vmatpush1.bf16.msra.mxu1 %v8721_v60  ;;  %v7731_v58 = vrot.slane %v7717_v57, %v8993_v53 }
 0x40f   :  { %7263 = vmatprep.subr.bf16.mxu0 %v8728_v61  ;;  %7591 = vmatprep.subr.bf16.mxu1 %v8730_v62 }
 0x412   :  { %7264 = vmatpush1.bf16.msra.mxu0 %v8727_v4  ;;  %7592 = vmatpush1.bf16.msra.mxu1 %v8729_v5 }
 0x413   :  { %7265 = vmatprep.subr.bf16.mxu0 %v8736_v51  ;;  %7593 = vmatprep.subr.bf16.mxu1 %v8738_v6 }
 0x416   :  { %7266 = vmatpush1.bf16.msra.mxu0 %v8735_v38  ;;  %7594 = vmatpush1.bf16.msra.mxu1 %v8737_v15 }
 0x417   :  { %7267 = vmatprep.subr.bf16.mxu0 %v8744_v17  ;;  %7595 = vmatprep.subr.bf16.mxu1 %v8746_v59 }
 0x41a   :  { %7268 = vmatpush1.bf16.msra.mxu0 %v8743_v22  ;;  %7596 = vmatpush1.bf16.msra.mxu1 %v8745_v29 }
 0x41b   :  { %7269 = vmatprep.subr.bf16.mxu0 %v8752_v24  ;;  %7597 = vmatprep.subr.bf16.mxu1 %v8754_v27 }
 0x41e   :  { %7270 = vmatpush1.bf16.msra.mxu0 %v8751_v33  ;;  %7598 = vmatpush1.bf16.msra.mxu1 %v8753_v35 }
 0x41f   :  { %7271 = vmatprep.subr.bf16.mxu0 %v8760_v34  ;;  %7599 = vmatprep.subr.bf16.mxu1 %v8762_v39 }
 0x422   :  { %7272 = vmatpush1.bf16.msra.mxu0 %v8759_v40  ;;  %7600 = vmatpush1.bf16.msra.mxu1 %v8761_v55 }
 0x423   :  { %7273 = vmatprep.subr.bf16.mxu0 %v8768_v28  ;;  %7601 = vmatprep.subr.bf16.mxu1 %v8770_v0 }
 0x426   :  { %7274 = vmatpush1.bf16.msra.mxu0 %v8767_v43  ;;  %7602 = vmatpush1.bf16.msra.mxu1 %v8769_v45 }
 0x429   :  { %7276 = vmatmul.mubr.bf16.vlgmr.msra.gmra.mrb[4].mxu0 %v9143_v14  ;;  %7604 = vmatmul.mubr.bf16.vlgmr.msra.gmra.mrb[4].mxu1 %v9143_v14  ;;  %v7724_v14 = vrot.slane %v7716_v54, %v8993_v53 }
 0x42b   :  { %v7732_v4 = vcombine.low %v7724_v14, %v7731_v58 }
 0x4fc   :  { %v7277_v42 = vpop.f32.mrb[4].mxu0  ;;  %v7605_v10 = vpop.f32.mrb[4].mxu1 }
 0x4fd   :  { %v7279_v41 = vpop.f32.mrb[5].mxu0  ;;  %v7607_v60 = vpop.f32.mrb[5].mxu1 }
 0x4fe   :  { %v7637_v23 = vcombine.low %v7277_v42, %v7279_v41  ;;  %v7281_v61 = vpop.f32.mrb[6].mxu0  ;;  %v7638_v62 = vcombine.low %v7605_v10, %v7607_v60  ;;  %v7609_v1 = vpop.f32.mrb[6].mxu1 }
 0x4ff   :  { %v7282_v44 = vpop.f32.mrb[7].mxu0  ;;  %v7610_v26 = vpop.f32.mrb[7].mxu1 }
 0x500   :  { %v7645_v3 = vrot.slane %v7637_v23, %v8993_v53  ;;  %v7652_v52 = vrot.slane %v7638_v62, %v8993_v53 }
 0x502   :  { %v7653_v5 = vcombine.low %v7645_v3, %v7652_v52 }
 0x504   :  { %v7736_v51 = vadd.f32 %v7732_v4, %v7653_v5 }
 0x506   :  { %v7738_v6 = vmax.f32 %v7736_v51, 0.0 }
 0x508   :  { %7740 = vst [vmem:[%s9204_s3 + $0x8] sm:$0xff] %v7738_v6 }
 0x509   :  { %7745 = vsyncpa [#allocation4], 1 }
 0x50a   :  { %7746 = vsyncpa [#allocation6], 1 }

</bundles_post_ra>
